<compile_context>
chip_gen: v5e
topology: v5e:2x2
jax: 0.10.0
libtpu: 0.0.40
codegen_flags: <defaults>
</compile_context>

<pallas_src>
import functools
import math

import jax
import jax.numpy as jnp
from jax import lax
from jax.experimental import pallas as pl
from jax.experimental.pallas import tpu as pltpu


# ----------------------------------------------------------------------------
# Pallas kernels
# ----------------------------------------------------------------------------
def _mm_bias_act_kernel(a_ref, b_ref, bias_ref, alpha_ref, o_ref, *, act):
    """One M-tile of  A @ B + bias  (optionally PReLU); K and N fully resident."""
    acc = jnp.dot(a_ref[...], b_ref[...], preferred_element_type=jnp.float32)
    acc = acc + bias_ref[...]
    if act == "prelu":
        alpha = alpha_ref[0, 0]
        acc = jnp.where(acc >= 0, acc, alpha * acc)
    o_ref[...] = acc.astype(o_ref.dtype)


def matmul_bias_act(a, b, bias, act="none", alpha=None, tm=256):
    """a: (M, K) @ b: (K, N) + bias with optional fused PReLU epilogue.

    K and N are small for every conv in this block, so they are kept whole:
    no zero padding, no K grid axis, no accumulator scratch.  Only M is tiled
    (M = B*T*H*W = 4096 here, so the grid keeps both v7x TensorCores busy).
    Operands go to the MXU in bf16; accumulation / epilogue stay f32."""
    M, K = a.shape
    K2, N = b.shape
    assert K == K2
    Mp = pl.cdiv(M, tm) * tm
    a_p = a if Mp == M else jnp.pad(a, ((0, Mp - M), (0, 0)))
    a_p = a_p.astype(jnp.bfloat16)
    b_p = b.astype(jnp.bfloat16)
    bias2 = bias.reshape(1, N).astype(jnp.float32)
    if alpha is None:
        alpha = jnp.zeros((), jnp.float32)
    alpha2 = jnp.asarray(alpha, jnp.float32).reshape(1, 1)

    out = pl.pallas_call(
        functools.partial(_mm_bias_act_kernel, act=act),
        out_shape=jax.ShapeDtypeStruct((Mp, N), jnp.float32),
        grid=(Mp // tm,),
        in_specs=[
            pl.BlockSpec((tm, K), lambda i: (i, 0)),
            pl.BlockSpec((K, N), lambda i: (0, 0)),
            pl.BlockSpec((1, N), lambda i: (0, 0)),
            pl.BlockSpec((1, 1), lambda i: (0, 0)),
        ],
        out_specs=pl.BlockSpec((tm, N), lambda i: (i, 0)),
        compiler_params=pltpu.CompilerParams(
            dimension_semantics=("parallel",)),
    )(a_p, b_p, bias2, alpha2)
    return out if Mp == M else out[:M]


def _layernorm_kernel(x_ref, g_ref, b_ref, o_ref, *, eps):
    x = x_ref[...].astype(jnp.float32)
    mu = jnp.mean(x, axis=-1, keepdims=True)
    var = jnp.mean((x - mu) ** 2, axis=-1, keepdims=True)
    xn = (x - mu) * lax.rsqrt(var + eps)
    o_ref[...] = (xn * g_ref[...] + b_ref[...]).astype(o_ref.dtype)


def pallas_layernorm(x2d, gamma, beta, eps=1e-5, block_rows=8):
    """LayerNorm over the last dim of an (N, D) slab (== LayerNorm([C,H,W]))."""
    N, D = x2d.shape
    Np = pl.cdiv(N, block_rows) * block_rows
    x_p = x2d if Np == N else jnp.pad(x2d, ((0, Np - N), (0, 0)))
    out = pl.pallas_call(
        functools.partial(_layernorm_kernel, eps=eps),
        out_shape=jax.ShapeDtypeStruct((Np, D), x2d.dtype),
        grid=(Np // block_rows,),
        in_specs=[
            pl.BlockSpec((block_rows, D), lambda i: (i, 0)),
            pl.BlockSpec((1, D), lambda i: (0, 0)),
            pl.BlockSpec((1, D), lambda i: (0, 0)),
        ],
        out_specs=pl.BlockSpec((block_rows, D), lambda i: (i, 0)),
        compiler_params=pltpu.CompilerParams(
            dimension_semantics=("parallel",)),
    )(x_p, gamma.reshape(1, D), beta.reshape(1, D))
    return out if Np == N else out[:N]


def _cos_attn_kernel(q_ref, k_ref, v_ref, scale_ref, bias_ref, o_ref):
    q = q_ref[...].astype(jnp.float32)     # (hb, T, F)
    k = k_ref[...].astype(jnp.float32)
    v = v_ref[...].astype(jnp.float32)
    qn = q * lax.rsqrt(jnp.sum(q * q, axis=-1, keepdims=True) + 1e-12)
    kn = k * lax.rsqrt(jnp.sum(k * k, axis=-1, keepdims=True) + 1e-12)
    s = jnp.einsum('htf,hsf->hts', qn, kn,
                   preferred_element_type=jnp.float32)          # (hb, T, T)
    scale = scale_ref[...][..., None]                           # (hb, 1, 1)
    s = s * scale + bias_ref[...]
    m = jnp.max(s, axis=-1, keepdims=True)
    p = jnp.exp(s - m)
    p = p * pl.reciprocal(jnp.sum(p, axis=-1, keepdims=True))
    o_ref[...] = jnp.einsum('hts,hsf->htf', p, v,
                            preferred_element_type=jnp.float32).astype(o_ref.dtype)


def pallas_cosine_attention(q, k, v, logit_scale, rel_bias, bh_block=8):
    """q, k, v: (B*n_head, T, F) -> (B*n_head, T, F).

    Cosine-similarity attention over T with per-head clamped logit scale and
    temporal relative-position bias; all heads of a block processed together
    so the grid collapses to 2 steps (keeps both v7x cores busy)."""
    BH, T, F = q.shape
    if BH % bh_block != 0:
        bh_block = BH
    spec3 = pl.BlockSpec((bh_block, T, F), lambda i: (i, 0, 0))
    return pl.pallas_call(
        _cos_attn_kernel,
        out_shape=jax.ShapeDtypeStruct((BH, T, F), jnp.float32),
        grid=(BH // bh_block,),
        in_specs=[
            spec3, spec3, spec3,
            pl.BlockSpec((bh_block, 1), lambda i: (i, 0)),
            pl.BlockSpec((bh_block, T, T), lambda i: (i, 0, 0)),
        ],
        out_specs=spec3,
        compiler_params=pltpu.CompilerParams(
            dimension_semantics=("parallel",)),
    )(q, k, v, logit_scale, rel_bias)


# ----------------------------------------------------------------------------
# Convolution as im2col (bf16 layout glue) + fused Pallas matmul (hot path)
# ----------------------------------------------------------------------------
def _im2col_nhwc(x, kh, kw):
    """x: (N, H, W, C) -> (N*H*W, kh*kw*C). 'same' padding, stride 1."""
    N, H, W, C = x.shape
    ph, pw = kh // 2, kw // 2
    xp = jnp.pad(x, ((0, 0), (ph, ph), (pw, pw), (0, 0)))
    cols = []
    for i in range(kh):
        for j in range(kw):
            cols.append(xp[:, i:i + H, j:j + W, :])
    patches = jnp.concatenate(cols, axis=-1)        # (N, H, W, kh*kw*C)
    return patches.reshape(N * H * W, kh * kw * C)


def conv2d_nhwc(x, w, b, act="none", alpha=None):
    """x: (N, H, W, C_in); w: (C_out, C_in, kh, kw); b: (C_out,).
    Stride 1, same padding; bias (and optional PReLU) fused in the matmul."""
    N, H, W, Cin = x.shape
    Cout, _, kh, kw = w.shape
    if kh == 1 and kw == 1:
        cols = x.reshape(N * H * W, Cin)
    else:
        cols = _im2col_nhwc(x.astype(jnp.bfloat16), kh, kw)
    wm = w.transpose(2, 3, 1, 0).reshape(kh * kw * Cin, Cout)
    y = matmul_bias_act(cols, wm, b, act=act, alpha=alpha)
    return y.reshape(N, H, W, Cout)


def conv2d_qkv_nhwc(x, wq, bq, wk, bk, wv, bv):
    """Fused Q/K/V convs: one im2col slab, one matmul with 3*C_out columns."""
    Cout = wq.shape[0]
    w_all = jnp.concatenate([wq, wk, wv], axis=0)   # (3*C_out, C_in, kh, kw)
    b_all = jnp.concatenate([bq, bk, bv], axis=0)
    y = conv2d_nhwc(x, w_all, b_all)                # (N, H, W, 3*C_out)
    return y[..., :Cout], y[..., Cout:2 * Cout], y[..., 2 * Cout:]


# ----------------------------------------------------------------------------
# STCNNT cell / block forward (NHWC internal layout)
# ----------------------------------------------------------------------------
def stcnnt_cell(x, p, n_head):
    """Sequential temporal-attention cell with conv mixer.
    x: (B, T, H, W, C_in) -> (B, T, H, W, C_out)."""
    B, T, H, W, C_in = x.shape
    C_out = p["wq"].shape[0]
    hd = C_out // n_head

    # ---- attention branch: y = input_proj(x) + attn(norm1(x)) ----
    xn = pallas_layernorm(x.reshape(B * T, -1), p["ln1_g"], p["ln1_b"])
    xn4 = xn.reshape(B * T, H, W, C_in)

    q, k, v = conv2d_qkv_nhwc(xn4, p["wq"], p["bq"], p["wk"], p["bk"],
                              p["wv"], p["bv"])     # each (B*T, H, W, C_out)

    def to_heads(t):
        t = t.reshape(B, T, H, W, n_head, hd).transpose(0, 4, 1, 2, 3, 5)
        return t.reshape(B * n_head, T, H * W * hd)

    # cosine attention extras: clamped logit scale + temporal rel-pos bias
    rel = jnp.arange(T)[:, None] - jnp.arange(T)[None, :] + (T - 1)   # (T, T)
    bias = jnp.take(p["rel_bias_table"], rel, axis=0)                 # (T, T, nh)
    bias = bias.transpose(2, 0, 1)                                    # (nh, T, T)
    rel_bias = jnp.tile(bias, (B, 1, 1))                              # (B*nh, T, T)
    scale = jnp.exp(jnp.minimum(p["logit_scale"], math.log(100.0)))   # (nh, 1)
    scale = jnp.tile(scale, (B, 1))                                   # (B*nh, 1)

    o = pallas_cosine_attention(to_heads(q), to_heads(k), to_heads(v),
                                scale, rel_bias)
    o = o.reshape(B, n_head, T, H, W, hd).transpose(0, 2, 3, 4, 1, 5)
    o = o.reshape(B * T, H, W, C_out)
    o = conv2d_nhwc(o, p["wo"], p["bo"])            # output projection (1x1)

    if p["proj_w"] is not None:                     # channel expansion (first cell)
        res = conv2d_nhwc(x.reshape(B * T, H, W, C_in), p["proj_w"], p["proj_b"])
    else:
        res = x.reshape(B * T, H, W, C_out)
    y = res + o                                     # (B*T, H, W, C_out)

    # ---- conv mixer branch: y = y + mlp(norm2(y)) ----
    yn = pallas_layernorm(y.reshape(B * T, -1), p["ln2_g"], p["ln2_b"])
    yn4 = yn.reshape(B * T, H, W, C_out)
    z = conv2d_nhwc(yn4, p["wm1"], p["bm1"], act="prelu", alpha=p["alpha"])
    z = conv2d_nhwc(z, p["wm2"], p["bm2"])
    return (y + z).reshape(B, T, H, W, C_out)


def stcnnt_block(x, cell_params, n_head):
    """STCNNT_Block forward with dense connections; interpolate='none'.
    x: (B, T, C, H, W) -> ((B, T, C_out, H, W), None)."""
    xh = x.transpose(0, 1, 3, 4, 2)                 # NHWC internally
    block_res = []
    for i, p in enumerate(cell_params):
        if i == 0:
            block_res.append(stcnnt_cell(xh, p, n_head))
        else:
            inp = block_res[0]
            for r in block_res[1:]:
                inp = inp + r
            block_res.append(stcnnt_cell(inp, p, n_head))
    out = block_res[-1].transpose(0, 1, 4, 2, 3)    # back to (B, T, C, H, W)
    interp = None                                   # interpolate == 'none'
    return out, interp


# ----------------------------------------------------------------------------
# Deterministic parameter construction (synthetic weights)
# ----------------------------------------------------------------------------
def init_cell_params(key, C_in, C_out, H, W, T, n_head, scale_ratio=4.0,
                     kernel_size=3, mixer_kernel_size=5):
    C_mid = int(C_out * scale_ratio)
    ks = jax.random.split(key, 8)
    nrm = lambda k, s: 0.02 * jax.random.normal(k, s, jnp.float32)
    p = {
        # NOTE: LN affine params stored in flattened (H, W, C) order to match
        # the NHWC internal layout (permute from (C, H, W) if loading torch weights).
        "ln1_g": jnp.ones((H * W * C_in,), jnp.float32),
        "ln1_b": jnp.zeros((H * W * C_in,), jnp.float32),
        "wq": nrm(ks[0], (C_out, C_in, kernel_size, kernel_size)),
        "bq": jnp.zeros((C_out,), jnp.float32),
        "wk": nrm(ks[1], (C_out, C_in, kernel_size, kernel_size)),
        "bk": jnp.zeros((C_out,), jnp.float32),
        "wv": nrm(ks[2], (C_out, C_in, kernel_size, kernel_size)),
        "bv": jnp.zeros((C_out,), jnp.float32),
        "wo": nrm(ks[3], (C_out, C_out, 1, 1)),
        "bo": jnp.zeros((C_out,), jnp.float32),
        "proj_w": nrm(ks[4], (C_out, C_in, 1, 1)) if C_in != C_out else None,
        "proj_b": jnp.zeros((C_out,), jnp.float32) if C_in != C_out else None,
        # cosine attention logit scale (Swin-V2 style, clamped at log(100))
        "logit_scale": jnp.full((n_head, 1), math.log(10.0), jnp.float32),
        # temporal relative-position bias table over (2T-1) relative offsets
        "rel_bias_table": nrm(ks[5], (2 * T - 1, n_head)),
        "ln2_g": jnp.ones((H * W * C_out,), jnp.float32),
        "ln2_b": jnp.zeros((H * W * C_out,), jnp.float32),
        "wm1": nrm(ks[6], (C_mid, C_out, mixer_kernel_size, mixer_kernel_size)),
        "bm1": jnp.zeros((C_mid,), jnp.float32),
        "alpha": jnp.asarray(0.25, jnp.float32),     # nn.PReLU default
        "wm2": nrm(ks[7], (C_out, C_mid, mixer_kernel_size, mixer_kernel_size)),
        "bm2": jnp.zeros((C_out,), jnp.float32),
    }
    return p


# ----------------------------------------------------------------------------
# Main
# ----------------------------------------------------------------------------
if __name__ == "__main__":
    B, T, C_in, C_out, H, W = 2, 8, 4, 16, 16, 16
    n_head = 8
    att_types = "T1T1"           # two temporal-attention cells with conv mixer
    n_cells = len(att_types) // 2

    key = jax.random.PRNGKey(0)
    k_x, k_p = jax.random.split(key)
    x = jax.random.normal(k_x, (B, T, C_in, H, W), jnp.float32)

    cell_keys = jax.random.split(k_p, n_cells)
    cell_params = []
    for i in range(n_cells):
        Ci = C_in if i == 0 else C_out
        cell_params.append(init_cell_params(cell_keys[i], Ci, C_out, H, W, T, n_head))

    fwd = jax.jit(lambda xx, pp: stcnnt_block(xx, pp, n_head))
    out, interp = fwd(x, cell_params)
    jax.block_until_ready(out)

    assert out.shape == (B, T, C_out, H, W), out.shape
    assert out.dtype == jnp.float32
    assert interp is None
    assert bool(jnp.all(jnp.isfinite(out)))
    print("KERNEL_OK")
</pallas_src>

<mosaic_0001>
module attributes {stable_mosaic.version = 11 : i64} {
  func.func @_layernorm_kernel(%arg0: i32, %arg1: memref<8x1024xf32, #tpu.memory_space<vmem>>, %arg2: memref<1x1024xf32, #tpu.memory_space<vmem>>, %arg3: memref<1x1024xf32, #tpu.memory_space<vmem>>, %arg4: memref<8x1024xf32, #tpu.memory_space<vmem>>) attributes {dimension_semantics = [#tpu.dimension_semantics<parallel>], iteration_bounds = array<i64: 2>, scalar_prefetch = 0 : i64, scratch_operands = 0 : i64, tpu.core_type = #tpu.core_type<tc>, window_params = [{transform_indices = @transform_0, window_bounds = array<i64: 8, 1024>}, {pipeline_mode = #tpu.pipeline_mode<synchronous>, transform_indices = @transform_1, window_bounds = array<i64: 1, 1024>}, {pipeline_mode = #tpu.pipeline_mode<synchronous>, transform_indices = @transform_2, window_bounds = array<i64: 1, 1024>}, {transform_indices = @transform_3, window_bounds = array<i64: 8, 1024>}]} {
    %c0 = arith.constant 0 : index
    %c0_0 = arith.constant 0 : index
    %0 = vector.load %arg1[%c0, %c0_0] : memref<8x1024xf32, #tpu.memory_space<vmem>>, vector<8x1024xf32>
    %cst = arith.constant dense<0.000000e+00> : vector<8xf32>
    %1 = vector.multi_reduction <add>, %0, %cst [1] : vector<8x1024xf32> to vector<8xf32>
    %2 = vector.shape_cast %1 : vector<8xf32> to vector<8x1xf32>
    %cst_1 = arith.constant 1.024000e+03 : f32
    %3 = vector.broadcast %cst_1 : f32 to vector<8x1xf32>
    %4 = arith.divf %2, %3 : vector<8x1xf32>
    %5 = vector.broadcast %4 : vector<8x1xf32> to vector<8x1024xf32>
    %6 = arith.subf %0, %5 : vector<8x1024xf32>
    %7 = arith.mulf %6, %6 : vector<8x1024xf32>
    %cst_2 = arith.constant dense<0.000000e+00> : vector<8xf32>
    %8 = vector.multi_reduction <add>, %7, %cst_2 [1] : vector<8x1024xf32> to vector<8xf32>
    %9 = vector.shape_cast %8 : vector<8xf32> to vector<8x1xf32>
    %cst_3 = arith.constant 1.024000e+03 : f32
    %10 = vector.broadcast %cst_3 : f32 to vector<8x1xf32>
    %11 = arith.divf %9, %10 : vector<8x1xf32>
    %12 = vector.broadcast %4 : vector<8x1xf32> to vector<8x1024xf32>
    %13 = arith.subf %0, %12 : vector<8x1024xf32>
    %cst_4 = arith.constant 9.99999974E-6 : f32
    %14 = vector.broadcast %cst_4 : f32 to vector<8x1xf32>
    %15 = arith.addf %11, %14 : vector<8x1xf32>
    %16 = math.rsqrt %15 : vector<8x1xf32>
    %17 = vector.broadcast %16 : vector<8x1xf32> to vector<8x1024xf32>
    %18 = arith.mulf %13, %17 : vector<8x1024xf32>
    %c0_5 = arith.constant 0 : index
    %c0_6 = arith.constant 0 : index
    %19 = vector.load %arg2[%c0_5, %c0_6] : memref<1x1024xf32, #tpu.memory_space<vmem>>, vector<1x1024xf32>
    %20 = vector.broadcast %19 : vector<1x1024xf32> to vector<8x1024xf32>
    %21 = arith.mulf %18, %20 : vector<8x1024xf32>
    %c0_7 = arith.constant 0 : index
    %c0_8 = arith.constant 0 : index
    %22 = vector.load %arg3[%c0_7, %c0_8] : memref<1x1024xf32, #tpu.memory_space<vmem>>, vector<1x1024xf32>
    %23 = vector.broadcast %22 : vector<1x1024xf32> to vector<8x1024xf32>
    %24 = arith.addf %21, %23 : vector<8x1024xf32>
    %c0_9 = arith.constant 0 : index
    %c0_10 = arith.constant 0 : index
    %25 = vector.load %arg4[%c0_9, %c0_10] : memref<8x1024xf32, #tpu.memory_space<vmem>>, vector<8x1024xf32>
    tpu.vector_store %arg4[%c0_9, %c0_10], %24 {strides = array<i32>} : memref<8x1024xf32, #tpu.memory_space<vmem>>, vector<8x1024xf32>,
    return
  }
  func.func @transform_0(%arg0: i32) -> (i32, i32) {
    %c0_i32 = arith.constant 0 : i32
    %c0_i32_0 = arith.constant 0 : i32
    return %arg0, %c0_i32 : i32, i32
  }
  func.func @transform_1(%arg0: i32) -> (i32, i32) {
    %c0_i32 = arith.constant 0 : i32
    %c0_i32_0 = arith.constant 0 : i32
    %c0_i32_1 = arith.constant 0 : i32
    return %c0_i32, %c0_i32_0 : i32, i32
  }
  func.func @transform_2(%arg0: i32) -> (i32, i32) {
    %c0_i32 = arith.constant 0 : i32
    %c0_i32_0 = arith.constant 0 : i32
    %c0_i32_1 = arith.constant 0 : i32
    return %c0_i32, %c0_i32_0 : i32, i32
  }
  func.func @transform_3(%arg0: i32) -> (i32, i32) {
    %c0_i32 = arith.constant 0 : i32
    %c0_i32_0 = arith.constant 0 : i32
    return %arg0, %c0_i32 : i32, i32
  }
}

module attributes {stable_mosaic.version = 11 : i64} {
  func.func @_mm_bias_act_kernel(%arg0: i32, %arg1: memref<256x36xbf16, #tpu.memory_space<vmem>>, %arg2: memref<36x48xbf16, #tpu.memory_space<vmem>>, %arg3: memref<1x48xf32, #tpu.memory_space<vmem>>, %arg4: memref<1x1xf32, #tpu.memory_space<vmem>>, %arg5: memref<256x48xf32, #tpu.memory_space<vmem>>) attributes {dimension_semantics = [#tpu.dimension_semantics<parallel>], iteration_bounds = array<i64: 16>, scalar_prefetch = 0 : i64, scratch_operands = 0 : i64, tpu.core_type = #tpu.core_type<tc>, window_params = [{transform_indices = @transform_0, window_bounds = array<i64: 256, 36>}, {pipeline_mode = #tpu.pipeline_mode<synchronous>, transform_indices = @transform_1, window_bounds = array<i64: 36, 48>}, {pipeline_mode = #tpu.pipeline_mode<synchronous>, transform_indices = @transform_2, window_bounds = array<i64: 1, 48>}, {pipeline_mode = #tpu.pipeline_mode<synchronous>, transform_indices = @transform_3, window_bounds = array<i64: 1, 1>}, {transform_indices = @transform_4, window_bounds = array<i64: 256, 48>}]} {
    %c0 = arith.constant 0 : index
    %c0_0 = arith.constant 0 : index
    %0 = vector.load %arg1[%c0, %c0_0] : memref<256x36xbf16, #tpu.memory_space<vmem>>, vector<256x36xbf16>
    %c0_1 = arith.constant 0 : index
    %c0_2 = arith.constant 0 : index
    %1 = vector.load %arg2[%c0_1, %c0_2] : memref<36x48xbf16, #tpu.memory_space<vmem>>, vector<36x48xbf16>
    %cst = arith.constant dense<0.000000e+00> : vector<256x48xf32>
    %2 = tpu.matmul %0, %1, %cst {dimension_numbers = #tpu.dot_dimension_numbers<[1], [0], [0], [1], [0, 0, 1, 1], [], []>} : vector<256x36xbf16>, vector<36x48xbf16>, vector<256x48xf32> -> vector<256x48xf32>
    %c0_3 = arith.constant 0 : index
    %c0_4 = arith.constant 0 : index
    %3 = vector.load %arg3[%c0_3, %c0_4] : memref<1x48xf32, #tpu.memory_space<vmem>>, vector<1x48xf32>
    %4 = vector.broadcast %3 : vector<1x48xf32> to vector<256x48xf32>
    %5 = arith.addf %2, %4 : vector<256x48xf32>
    %c0_5 = arith.constant 0 : index
    %c0_6 = arith.constant 0 : index
    %6 = vector.load %arg5[%c0_5, %c0_6] : memref<256x48xf32, #tpu.memory_space<vmem>>, vector<256x48xf32>
    tpu.vector_store %arg5[%c0_5, %c0_6], %5 {strides = array<i32>} : memref<256x48xf32, #tpu.memory_space<vmem>>, vector<256x48xf32>,
    return
  }
  func.func @transform_0(%arg0: i32) -> (i32, i32) {
    %c0_i32 = arith.constant 0 : i32
    %c0_i32_0 = arith.constant 0 : i32
    return %arg0, %c0_i32 : i32, i32
  }
  func.func @transform_1(%arg0: i32) -> (i32, i32) {
    %c0_i32 = arith.constant 0 : i32
    %c0_i32_0 = arith.constant 0 : i32
    %c0_i32_1 = arith.constant 0 : i32
    return %c0_i32, %c0_i32_0 : i32, i32
  }
  func.func @transform_2(%arg0: i32) -> (i32, i32) {
    %c0_i32 = arith.constant 0 : i32
    %c0_i32_0 = arith.constant 0 : i32
    %c0_i32_1 = arith.constant 0 : i32
    return %c0_i32, %c0_i32_0 : i32, i32
  }
  func.func @transform_3(%arg0: i32) -> (i32, i32) {
    %c0_i32 = arith.constant 0 : i32
    %c0_i32_0 = arith.constant 0 : i32
    %c0_i32_1 = arith.constant 0 : i32
    return %c0_i32, %c0_i32_0 : i32, i32
  }
  func.func @transform_4(%arg0: i32) -> (i32, i32) {
    %c0_i32 = arith.constant 0 : i32
    %c0_i32_0 = arith.constant 0 : i32
    return %arg0, %c0_i32 : i32, i32
  }
}

module attributes {stable_mosaic.version = 11 : i64} {
  func.func @_cos_attn_kernel(%arg0: i32, %arg1: memref<8x8x512xf32, #tpu.memory_space<vmem>>, %arg2: memref<8x8x512xf32, #tpu.memory_space<vmem>>, %arg3: memref<8x8x512xf32, #tpu.memory_space<vmem>>, %arg4: memref<8x1xf32, #tpu.memory_space<vmem>>, %arg5: memref<8x8x8xf32, #tpu.memory_space<vmem>>, %arg6: memref<8x8x512xf32, #tpu.memory_space<vmem>>) attributes {dimension_semantics = [#tpu.dimension_semantics<parallel>], iteration_bounds = array<i64: 2>, scalar_prefetch = 0 : i64, scratch_operands = 0 : i64, tpu.core_type = #tpu.core_type<tc>, window_params = [{transform_indices = @transform_0, window_bounds = array<i64: 8, 8, 512>}, {transform_indices = @transform_1, window_bounds = array<i64: 8, 8, 512>}, {transform_indices = @transform_2, window_bounds = array<i64: 8, 8, 512>}, {transform_indices = @transform_3, window_bounds = array<i64: 8, 1>}, {transform_indices = @transform_4, window_bounds = array<i64: 8, 8, 8>}, {transform_indices = @transform_5, window_bounds = array<i64: 8, 8, 512>}]} {
    %c0 = arith.constant 0 : index
    %c0_0 = arith.constant 0 : index
    %c0_1 = arith.constant 0 : index
    %0 = vector.load %arg1[%c0, %c0_0, %c0_1] : memref<8x8x512xf32, #tpu.memory_space<vmem>>, vector<8x8x512xf32>
    %c0_2 = arith.constant 0 : index
    %c0_3 = arith.constant 0 : index
    %c0_4 = arith.constant 0 : index
    %1 = vector.load %arg2[%c0_2, %c0_3, %c0_4] : memref<8x8x512xf32, #tpu.memory_space<vmem>>, vector<8x8x512xf32>
    %c0_5 = arith.constant 0 : index
    %c0_6 = arith.constant 0 : index
    %c0_7 = arith.constant 0 : index
    %2 = vector.load %arg3[%c0_5, %c0_6, %c0_7] : memref<8x8x512xf32, #tpu.memory_space<vmem>>, vector<8x8x512xf32>
    %3 = arith.mulf %0, %0 : vector<8x8x512xf32>
    %cst = arith.constant dense<0.000000e+00> : vector<8x8xf32>
    %4 = vector.multi_reduction <add>, %3, %cst [2] : vector<8x8x512xf32> to vector<8x8xf32>
    %5 = vector.shape_cast %4 : vector<8x8xf32> to vector<8x8x1xf32>
    %cst_8 = arith.constant 9.99999996E-13 : f32
    %6 = vector.broadcast %cst_8 : f32 to vector<8x8x1xf32>
    %7 = arith.addf %5, %6 : vector<8x8x1xf32>
    %8 = math.rsqrt %7 : vector<8x8x1xf32>
    %9 = vector.broadcast %8 : vector<8x8x1xf32> to vector<8x8x512xf32>
    %10 = arith.mulf %0, %9 : vector<8x8x512xf32>
    %11 = arith.mulf %1, %1 : vector<8x8x512xf32>
    %cst_9 = arith.constant dense<0.000000e+00> : vector<8x8xf32>
    %12 = vector.multi_reduction <add>, %11, %cst_9 [2] : vector<8x8x512xf32> to vector<8x8xf32>
    %13 = vector.shape_cast %12 : vector<8x8xf32> to vector<8x8x1xf32>
    %cst_10 = arith.constant 9.99999996E-13 : f32
    %14 = vector.broadcast %cst_10 : f32 to vector<8x8x1xf32>
    %15 = arith.addf %13, %14 : vector<8x8x1xf32>
    %16 = math.rsqrt %15 : vector<8x8x1xf32>
    %17 = vector.broadcast %16 : vector<8x8x1xf32> to vector<8x8x512xf32>
    %18 = arith.mulf %1, %17 : vector<8x8x512xf32>
    "tpu.trace_start"() <{level = 10 : i32, message = "htf,hsf->hts"}> : () -> ()
    %cst_11 = arith.constant dense<0.000000e+00> : vector<8x8x8xf32>
    %19 = tpu.matmul %10, %18, %cst_11 {dimension_numbers = #tpu.dot_dimension_numbers<[2], [2], [1], [1], [0, 0, 0, 1, 1, 1], [0], [0]>} : vector<8x8x512xf32>, vector<8x8x512xf32>, vector<8x8x8xf32> -> vector<8x8x8xf32>
    "tpu.trace_stop"() : () -> ()
    %c0_12 = arith.constant 0 : index
    %c0_13 = arith.constant 0 : index
    %20 = vector.load %arg4[%c0_12, %c0_13] : memref<8x1xf32, #tpu.memory_space<vmem>>, vector<8x1xf32>
    %21 = vector.shape_cast %20 : vector<8x1xf32> to vector<8x1x1xf32>
    %22 = vector.broadcast %21 : vector<8x1x1xf32> to vector<8x8x8xf32>
    %23 = arith.mulf %19, %22 : vector<8x8x8xf32>
    %c0_14 = arith.constant 0 : index
    %c0_15 = arith.constant 0 : index
    %c0_16 = arith.constant 0 : index
    %24 = vector.load %arg5[%c0_14, %c0_15, %c0_16] : memref<8x8x8xf32, #tpu.memory_space<vmem>>, vector<8x8x8xf32>
    %25 = arith.addf %23, %24 : vector<8x8x8xf32>
    %cst_17 = arith.constant dense<0xFF800000> : vector<8x8xf32>
    %26 = vector.multi_reduction <maximumf>, %25, %cst_17 [2] : vector<8x8x8xf32> to vector<8x8xf32>
    %27 = vector.shape_cast %26 : vector<8x8xf32> to vector<8x8x1xf32>
    %28 = vector.broadcast %27 : vector<8x8x1xf32> to vector<8x8x8xf32>
    %29 = arith.subf %25, %28 : vector<8x8x8xf32>
    %30 = math.exp %29 : vector<8x8x8xf32>
    %cst_18 = arith.constant dense<0.000000e+00> : vector<8x8xf32>
    %31 = vector.multi_reduction <add>, %30, %cst_18 [2] : vector<8x8x8xf32> to vector<8x8xf32>
    %32 = vector.shape_cast %31 : vector<8x8xf32> to vector<8x8x1xf32>
    %33 = tpu.reciprocal %32 : vector<8x8x1xf32> -> vector<8x8x1xf32>
    %34 = vector.broadcast %33 : vector<8x8x1xf32> to vector<8x8x8xf32>
    %35 = arith.mulf %30, %34 : vector<8x8x8xf32>
    "tpu.trace_start"() <{level = 10 : i32, message = "hts,hsf->htf"}> : () -> ()
    %cst_19 = arith.constant dense<0.000000e+00> : vector<8x8x512xf32>
    %36 = tpu.matmul %35, %2, %cst_19 {dimension_numbers = #tpu.dot_dimension_numbers<[2], [1], [1], [2], [0, 0, 0, 1, 1, 2], [0], [0]>} : vector<8x8x8xf32>, vector<8x8x512xf32>, vector<8x8x512xf32> -> vector<8x8x512xf32>
    "tpu.trace_stop"() : () -> ()
    %c0_20 = arith.constant 0 : index
    %c0_21 = arith.constant 0 : index
    %c0_22 = arith.constant 0 : index
    %37 = vector.load %arg6[%c0_20, %c0_21, %c0_22] : memref<8x8x512xf32, #tpu.memory_space<vmem>>, vector<8x8x512xf32>
    tpu.vector_store %arg6[%c0_20, %c0_21, %c0_22], %36 {strides = array<i32>} : memref<8x8x512xf32, #tpu.memory_space<vmem>>, vector<8x8x512xf32>,
    return
  }
  func.func @transform_0(%arg0: i32) -> (i32, i32, i32) {
    %c0_i32 = arith.constant 0 : i32
    %c0_i32_0 = arith.constant 0 : i32
    %c0_i32_1 = arith.constant 0 : i32
    return %arg0, %c0_i32, %c0_i32_0 : i32, i32, i32
  }
  func.func @transform_1(%arg0: i32) -> (i32, i32, i32) {
    %c0_i32 = arith.constant 0 : i32
    %c0_i32_0 = arith.constant 0 : i32
    %c0_i32_1 = arith.constant 0 : i32
    return %arg0, %c0_i32, %c0_i32_0 : i32, i32, i32
  }
  func.func @transform_2(%arg0: i32) -> (i32, i32, i32) {
    %c0_i32 = arith.constant 0 : i32
    %c0_i32_0 = arith.constant 0 : i32
    %c0_i32_1 = arith.constant 0 : i32
    return %arg0, %c0_i32, %c0_i32_0 : i32, i32, i32
  }
  func.func @transform_3(%arg0: i32) -> (i32, i32) {
    %c0_i32 = arith.constant 0 : i32
    %c0_i32_0 = arith.constant 0 : i32
    return %arg0, %c0_i32 : i32, i32
  }
  func.func @transform_4(%arg0: i32) -> (i32, i32, i32) {
    %c0_i32 = arith.constant 0 : i32
    %c0_i32_0 = arith.constant 0 : i32
    %c0_i32_1 = arith.constant 0 : i32
    return %arg0, %c0_i32, %c0_i32_0 : i32, i32, i32
  }
  func.func @transform_5(%arg0: i32) -> (i32, i32, i32) {
    %c0_i32 = arith.constant 0 : i32
    %c0_i32_0 = arith.constant 0 : i32
    %c0_i32_1 = arith.constant 0 : i32
    return %arg0, %c0_i32, %c0_i32_0 : i32, i32, i32
  }
}

module attributes {stable_mosaic.version = 11 : i64} {
  func.func @_mm_bias_act_kernel(%arg0: i32, %arg1: memref<256x16xbf16, #tpu.memory_space<vmem>>, %arg2: memref<16x16xbf16, #tpu.memory_space<vmem>>, %arg3: memref<1x16xf32, #tpu.memory_space<vmem>>, %arg4: memref<1x1xf32, #tpu.memory_space<vmem>>, %arg5: memref<256x16xf32, #tpu.memory_space<vmem>>) attributes {dimension_semantics = [#tpu.dimension_semantics<parallel>], iteration_bounds = array<i64: 16>, scalar_prefetch = 0 : i64, scratch_operands = 0 : i64, tpu.core_type = #tpu.core_type<tc>, window_params = [{transform_indices = @transform_0, window_bounds = array<i64: 256, 16>}, {pipeline_mode = #tpu.pipeline_mode<synchronous>, transform_indices = @transform_1, window_bounds = array<i64: 16, 16>}, {pipeline_mode = #tpu.pipeline_mode<synchronous>, transform_indices = @transform_2, window_bounds = array<i64: 1, 16>}, {pipeline_mode = #tpu.pipeline_mode<synchronous>, transform_indices = @transform_3, window_bounds = array<i64: 1, 1>}, {transform_indices = @transform_4, window_bounds = array<i64: 256, 16>}]} {
    %c0 = arith.constant 0 : index
    %c0_0 = arith.constant 0 : index
    %0 = vector.load %arg1[%c0, %c0_0] : memref<256x16xbf16, #tpu.memory_space<vmem>>, vector<256x16xbf16>
    %c0_1 = arith.constant 0 : index
    %c0_2 = arith.constant 0 : index
    %1 = vector.load %arg2[%c0_1, %c0_2] : memref<16x16xbf16, #tpu.memory_space<vmem>>, vector<16x16xbf16>
    %cst = arith.constant dense<0.000000e+00> : vector<256x16xf32>
    %2 = tpu.matmul %0, %1, %cst {dimension_numbers = #tpu.dot_dimension_numbers<[1], [0], [0], [1], [0, 0, 1, 1], [], []>} : vector<256x16xbf16>, vector<16x16xbf16>, vector<256x16xf32> -> vector<256x16xf32>
    %c0_3 = arith.constant 0 : index
    %c0_4 = arith.constant 0 : index
    %3 = vector.load %arg3[%c0_3, %c0_4] : memref<1x16xf32, #tpu.memory_space<vmem>>, vector<1x16xf32>
    %4 = vector.broadcast %3 : vector<1x16xf32> to vector<256x16xf32>
    %5 = arith.addf %2, %4 : vector<256x16xf32>
    %c0_5 = arith.constant 0 : index
    %c0_6 = arith.constant 0 : index
    %6 = vector.load %arg5[%c0_5, %c0_6] : memref<256x16xf32, #tpu.memory_space<vmem>>, vector<256x16xf32>
    tpu.vector_store %arg5[%c0_5, %c0_6], %5 {strides = array<i32>} : memref<256x16xf32, #tpu.memory_space<vmem>>, vector<256x16xf32>,
    return
  }
  func.func @transform_0(%arg0: i32) -> (i32, i32) {
    %c0_i32 = arith.constant 0 : i32
    %c0_i32_0 = arith.constant 0 : i32
    return %arg0, %c0_i32 : i32, i32
  }
  func.func @transform_1(%arg0: i32) -> (i32, i32) {
    %c0_i32 = arith.constant 0 : i32
    %c0_i32_0 = arith.constant 0 : i32
    %c0_i32_1 = arith.constant 0 : i32
    return %c0_i32, %c0_i32_0 : i32, i32
  }
  func.func @transform_2(%arg0: i32) -> (i32, i32) {
    %c0_i32 = arith.constant 0 : i32
    %c0_i32_0 = arith.constant 0 : i32
    %c0_i32_1 = arith.constant 0 : i32
    return %c0_i32, %c0_i32_0 : i32, i32
  }
  func.func @transform_3(%arg0: i32) -> (i32, i32) {
    %c0_i32 = arith.constant 0 : i32
    %c0_i32_0 = arith.constant 0 : i32
    %c0_i32_1 = arith.constant 0 : i32
    return %c0_i32, %c0_i32_0 : i32, i32
  }
  func.func @transform_4(%arg0: i32) -> (i32, i32) {
    %c0_i32 = arith.constant 0 : i32
    %c0_i32_0 = arith.constant 0 : i32
    return %arg0, %c0_i32 : i32, i32
  }
}

module attributes {stable_mosaic.version = 11 : i64} {
  func.func @_mm_bias_act_kernel(%arg0: i32, %arg1: memref<256x4xbf16, #tpu.memory_space<vmem>>, %arg2: memref<4x16xbf16, #tpu.memory_space<vmem>>, %arg3: memref<1x16xf32, #tpu.memory_space<vmem>>, %arg4: memref<1x1xf32, #tpu.memory_space<vmem>>, %arg5: memref<256x16xf32, #tpu.memory_space<vmem>>) attributes {dimension_semantics = [#tpu.dimension_semantics<parallel>], iteration_bounds = array<i64: 16>, scalar_prefetch = 0 : i64, scratch_operands = 0 : i64, tpu.core_type = #tpu.core_type<tc>, window_params = [{transform_indices = @transform_0, window_bounds = array<i64: 256, 4>}, {pipeline_mode = #tpu.pipeline_mode<synchronous>, transform_indices = @transform_1, window_bounds = array<i64: 4, 16>}, {pipeline_mode = #tpu.pipeline_mode<synchronous>, transform_indices = @transform_2, window_bounds = array<i64: 1, 16>}, {pipeline_mode = #tpu.pipeline_mode<synchronous>, transform_indices = @transform_3, window_bounds = array<i64: 1, 1>}, {transform_indices = @transform_4, window_bounds = array<i64: 256, 16>}]} {
    %c0 = arith.constant 0 : index
    %c0_0 = arith.constant 0 : index
    %0 = vector.load %arg1[%c0, %c0_0] : memref<256x4xbf16, #tpu.memory_space<vmem>>, vector<256x4xbf16>
    %c0_1 = arith.constant 0 : index
    %c0_2 = arith.constant 0 : index
    %1 = vector.load %arg2[%c0_1, %c0_2] : memref<4x16xbf16, #tpu.memory_space<vmem>>, vector<4x16xbf16>
    %cst = arith.constant dense<0.000000e+00> : vector<256x16xf32>
    %2 = tpu.matmul %0, %1, %cst {dimension_numbers = #tpu.dot_dimension_numbers<[1], [0], [0], [1], [0, 0, 1, 1], [], []>} : vector<256x4xbf16>, vector<4x16xbf16>, vector<256x16xf32> -> vector<256x16xf32>
    %c0_3 = arith.constant 0 : index
    %c0_4 = arith.constant 0 : index
    %3 = vector.load %arg3[%c0_3, %c0_4] : memref<1x16xf32, #tpu.memory_space<vmem>>, vector<1x16xf32>
    %4 = vector.broadcast %3 : vector<1x16xf32> to vector<256x16xf32>
    %5 = arith.addf %2, %4 : vector<256x16xf32>
    %c0_5 = arith.constant 0 : index
    %c0_6 = arith.constant 0 : index
    %6 = vector.load %arg5[%c0_5, %c0_6] : memref<256x16xf32, #tpu.memory_space<vmem>>, vector<256x16xf32>
    tpu.vector_store %arg5[%c0_5, %c0_6], %5 {strides = array<i32>} : memref<256x16xf32, #tpu.memory_space<vmem>>, vector<256x16xf32>,
    return
  }
  func.func @transform_0(%arg0: i32) -> (i32, i32) {
    %c0_i32 = arith.constant 0 : i32
    %c0_i32_0 = arith.constant 0 : i32
    return %arg0, %c0_i32 : i32, i32
  }
  func.func @transform_1(%arg0: i32) -> (i32, i32) {
    %c0_i32 = arith.constant 0 : i32
    %c0_i32_0 = arith.constant 0 : i32
    %c0_i32_1 = arith.constant 0 : i32
    return %c0_i32, %c0_i32_0 : i32, i32
  }
  func.func @transform_2(%arg0: i32) -> (i32, i32) {
    %c0_i32 = arith.constant 0 : i32
    %c0_i32_0 = arith.constant 0 : i32
    %c0_i32_1 = arith.constant 0 : i32
    return %c0_i32, %c0_i32_0 : i32, i32
  }
  func.func @transform_3(%arg0: i32) -> (i32, i32) {
    %c0_i32 = arith.constant 0 : i32
    %c0_i32_0 = arith.constant 0 : i32
    %c0_i32_1 = arith.constant 0 : i32
    return %c0_i32, %c0_i32_0 : i32, i32
  }
  func.func @transform_4(%arg0: i32) -> (i32, i32) {
    %c0_i32 = arith.constant 0 : i32
    %c0_i32_0 = arith.constant 0 : i32
    return %arg0, %c0_i32 : i32, i32
  }
}

module attributes {stable_mosaic.version = 11 : i64} {
  func.func @_layernorm_kernel(%arg0: i32, %arg1: memref<8x4096xf32, #tpu.memory_space<vmem>>, %arg2: memref<1x4096xf32, #tpu.memory_space<vmem>>, %arg3: memref<1x4096xf32, #tpu.memory_space<vmem>>, %arg4: memref<8x4096xf32, #tpu.memory_space<vmem>>) attributes {dimension_semantics = [#tpu.dimension_semantics<parallel>], iteration_bounds = array<i64: 2>, scalar_prefetch = 0 : i64, scratch_operands = 0 : i64, tpu.core_type = #tpu.core_type<tc>, window_params = [{transform_indices = @transform_0, window_bounds = array<i64: 8, 4096>}, {pipeline_mode = #tpu.pipeline_mode<synchronous>, transform_indices = @transform_1, window_bounds = array<i64: 1, 4096>}, {pipeline_mode = #tpu.pipeline_mode<synchronous>, transform_indices = @transform_2, window_bounds = array<i64: 1, 4096>}, {transform_indices = @transform_3, window_bounds = array<i64: 8, 4096>}]} {
    %c0 = arith.constant 0 : index
    %c0_0 = arith.constant 0 : index
    %0 = vector.load %arg1[%c0, %c0_0] : memref<8x4096xf32, #tpu.memory_space<vmem>>, vector<8x4096xf32>
    %cst = arith.constant dense<0.000000e+00> : vector<8xf32>
    %1 = vector.multi_reduction <add>, %0, %cst [1] : vector<8x4096xf32> to vector<8xf32>
    %2 = vector.shape_cast %1 : vector<8xf32> to vector<8x1xf32>
    %cst_1 = arith.constant 4.096000e+03 : f32
    %3 = vector.broadcast %cst_1 : f32 to vector<8x1xf32>
    %4 = arith.divf %2, %3 : vector<8x1xf32>
    %5 = vector.broadcast %4 : vector<8x1xf32> to vector<8x4096xf32>
    %6 = arith.subf %0, %5 : vector<8x4096xf32>
    %7 = arith.mulf %6, %6 : vector<8x4096xf32>
    %cst_2 = arith.constant dense<0.000000e+00> : vector<8xf32>
    %8 = vector.multi_reduction <add>, %7, %cst_2 [1] : vector<8x4096xf32> to vector<8xf32>
    %9 = vector.shape_cast %8 : vector<8xf32> to vector<8x1xf32>
    %cst_3 = arith.constant 4.096000e+03 : f32
    %10 = vector.broadcast %cst_3 : f32 to vector<8x1xf32>
    %11 = arith.divf %9, %10 : vector<8x1xf32>
    %12 = vector.broadcast %4 : vector<8x1xf32> to vector<8x4096xf32>
    %13 = arith.subf %0, %12 : vector<8x4096xf32>
    %cst_4 = arith.constant 9.99999974E-6 : f32
    %14 = vector.broadcast %cst_4 : f32 to vector<8x1xf32>
    %15 = arith.addf %11, %14 : vector<8x1xf32>
    %16 = math.rsqrt %15 : vector<8x1xf32>
    %17 = vector.broadcast %16 : vector<8x1xf32> to vector<8x4096xf32>
    %18 = arith.mulf %13, %17 : vector<8x4096xf32>
    %c0_5 = arith.constant 0 : index
    %c0_6 = arith.constant 0 : index
    %19 = vector.load %arg2[%c0_5, %c0_6] : memref<1x4096xf32, #tpu.memory_space<vmem>>, vector<1x4096xf32>
    %20 = vector.broadcast %19 : vector<1x4096xf32> to vector<8x4096xf32>
    %21 = arith.mulf %18, %20 : vector<8x4096xf32>
    %c0_7 = arith.constant 0 : index
    %c0_8 = arith.constant 0 : index
    %22 = vector.load %arg3[%c0_7, %c0_8] : memref<1x4096xf32, #tpu.memory_space<vmem>>, vector<1x4096xf32>
    %23 = vector.broadcast %22 : vector<1x4096xf32> to vector<8x4096xf32>
    %24 = arith.addf %21, %23 : vector<8x4096xf32>
    %c0_9 = arith.constant 0 : index
    %c0_10 = arith.constant 0 : index
    %25 = vector.load %arg4[%c0_9, %c0_10] : memref<8x4096xf32, #tpu.memory_space<vmem>>, vector<8x4096xf32>
    tpu.vector_store %arg4[%c0_9, %c0_10], %24 {strides = array<i32>} : memref<8x4096xf32, #tpu.memory_space<vmem>>, vector<8x4096xf32>,
    return
  }
  func.func @transform_0(%arg0: i32) -> (i32, i32) {
    %c0_i32 = arith.constant 0 : i32
    %c0_i32_0 = arith.constant 0 : i32
    return %arg0, %c0_i32 : i32, i32
  }
  func.func @transform_1(%arg0: i32) -> (i32, i32) {
    %c0_i32 = arith.constant 0 : i32
    %c0_i32_0 = arith.constant 0 : i32
    %c0_i32_1 = arith.constant 0 : i32
    return %c0_i32, %c0_i32_0 : i32, i32
  }
  func.func @transform_2(%arg0: i32) -> (i32, i32) {
    %c0_i32 = arith.constant 0 : i32
    %c0_i32_0 = arith.constant 0 : i32
    %c0_i32_1 = arith.constant 0 : i32
    return %c0_i32, %c0_i32_0 : i32, i32
  }
  func.func @transform_3(%arg0: i32) -> (i32, i32) {
    %c0_i32 = arith.constant 0 : i32
    %c0_i32_0 = arith.constant 0 : i32
    return %arg0, %c0_i32 : i32, i32
  }
}

module attributes {stable_mosaic.version = 11 : i64} {
  func.func @_mm_bias_act_kernel(%arg0: i32, %arg1: memref<256x400xbf16, #tpu.memory_space<vmem>>, %arg2: memref<400x64xbf16, #tpu.memory_space<vmem>>, %arg3: memref<1x64xf32, #tpu.memory_space<vmem>>, %arg4: memref<1x1xf32, #tpu.memory_space<vmem>>, %arg5: memref<256x64xf32, #tpu.memory_space<vmem>>) attributes {dimension_semantics = [#tpu.dimension_semantics<parallel>], iteration_bounds = array<i64: 16>, scalar_prefetch = 0 : i64, scratch_operands = 0 : i64, tpu.core_type = #tpu.core_type<tc>, window_params = [{transform_indices = @transform_0, window_bounds = array<i64: 256, 400>}, {pipeline_mode = #tpu.pipeline_mode<synchronous>, transform_indices = @transform_1, window_bounds = array<i64: 400, 64>}, {pipeline_mode = #tpu.pipeline_mode<synchronous>, transform_indices = @transform_2, window_bounds = array<i64: 1, 64>}, {pipeline_mode = #tpu.pipeline_mode<synchronous>, transform_indices = @transform_3, window_bounds = array<i64: 1, 1>}, {transform_indices = @transform_4, window_bounds = array<i64: 256, 64>}]} {
    %c0 = arith.constant 0 : index
    %c0_0 = arith.constant 0 : index
    %0 = vector.load %arg1[%c0, %c0_0] : memref<256x400xbf16, #tpu.memory_space<vmem>>, vector<256x400xbf16>
    %c0_1 = arith.constant 0 : index
    %c0_2 = arith.constant 0 : index
    %1 = vector.load %arg2[%c0_1, %c0_2] : memref<400x64xbf16, #tpu.memory_space<vmem>>, vector<400x64xbf16>
    %cst = arith.constant dense<0.000000e+00> : vector<256x64xf32>
    %2 = tpu.matmul %0, %1, %cst {dimension_numbers = #tpu.dot_dimension_numbers<[1], [0], [0], [1], [0, 0, 1, 1], [], []>} : vector<256x400xbf16>, vector<400x64xbf16>, vector<256x64xf32> -> vector<256x64xf32>
    %c0_3 = arith.constant 0 : index
    %c0_4 = arith.constant 0 : index
    %3 = vector.load %arg3[%c0_3, %c0_4] : memref<1x64xf32, #tpu.memory_space<vmem>>, vector<1x64xf32>
    %4 = vector.broadcast %3 : vector<1x64xf32> to vector<256x64xf32>
    %5 = arith.addf %2, %4 : vector<256x64xf32>
    %c0_5 = arith.constant 0 : index
    %c0_6 = arith.constant 0 : index
    %6 = vector.load %arg4[%c0_5, %c0_6] : memref<1x1xf32, #tpu.memory_space<vmem>>, vector<1x1xf32>
    %7 = vector.extract %6[0, 0] : f32 from vector<1x1xf32>
    %cst_7 = arith.constant 0.000000e+00 : f32
    %8 = vector.broadcast %cst_7 : f32 to vector<256x64xf32>
    %9 = arith.cmpf oge, %5, %8 : vector<256x64xf32>
    %10 = vector.broadcast %7 : f32 to vector<256x64xf32>
    %11 = arith.mulf %10, %5 : vector<256x64xf32>
    %12 = arith.select %9, %5, %11 : vector<256x64xi1>, vector<256x64xf32>
    %c0_8 = arith.constant 0 : index
    %c0_9 = arith.constant 0 : index
    %13 = vector.load %arg5[%c0_8, %c0_9] : memref<256x64xf32, #tpu.memory_space<vmem>>, vector<256x64xf32>
    tpu.vector_store %arg5[%c0_8, %c0_9], %12 {strides = array<i32>} : memref<256x64xf32, #tpu.memory_space<vmem>>, vector<256x64xf32>,
    return
  }
  func.func @transform_0(%arg0: i32) -> (i32, i32) {
    %c0_i32 = arith.constant 0 : i32
    %c0_i32_0 = arith.constant 0 : i32
    return %arg0, %c0_i32 : i32, i32
  }
  func.func @transform_1(%arg0: i32) -> (i32, i32) {
    %c0_i32 = arith.constant 0 : i32
    %c0_i32_0 = arith.constant 0 : i32
    %c0_i32_1 = arith.constant 0 : i32
    return %c0_i32, %c0_i32_0 : i32, i32
  }
  func.func @transform_2(%arg0: i32) -> (i32, i32) {
    %c0_i32 = arith.constant 0 : i32
    %c0_i32_0 = arith.constant 0 : i32
    %c0_i32_1 = arith.constant 0 : i32
    return %c0_i32, %c0_i32_0 : i32, i32
  }
  func.func @transform_3(%arg0: i32) -> (i32, i32) {
    %c0_i32 = arith.constant 0 : i32
    %c0_i32_0 = arith.constant 0 : i32
    %c0_i32_1 = arith.constant 0 : i32
    return %c0_i32, %c0_i32_0 : i32, i32
  }
  func.func @transform_4(%arg0: i32) -> (i32, i32) {
    %c0_i32 = arith.constant 0 : i32
    %c0_i32_0 = arith.constant 0 : i32
    return %arg0, %c0_i32 : i32, i32
  }
}

module attributes {stable_mosaic.version = 11 : i64} {
  func.func @_mm_bias_act_kernel(%arg0: i32, %arg1: memref<256x1600xbf16, #tpu.memory_space<vmem>>, %arg2: memref<1600x16xbf16, #tpu.memory_space<vmem>>, %arg3: memref<1x16xf32, #tpu.memory_space<vmem>>, %arg4: memref<1x1xf32, #tpu.memory_space<vmem>>, %arg5: memref<256x16xf32, #tpu.memory_space<vmem>>) attributes {dimension_semantics = [#tpu.dimension_semantics<parallel>], iteration_bounds = array<i64: 16>, scalar_prefetch = 0 : i64, scratch_operands = 0 : i64, tpu.core_type = #tpu.core_type<tc>, window_params = [{transform_indices = @transform_0, window_bounds = array<i64: 256, 1600>}, {pipeline_mode = #tpu.pipeline_mode<synchronous>, transform_indices = @transform_1, window_bounds = array<i64: 1600, 16>}, {pipeline_mode = #tpu.pipeline_mode<synchronous>, transform_indices = @transform_2, window_bounds = array<i64: 1, 16>}, {pipeline_mode = #tpu.pipeline_mode<synchronous>, transform_indices = @transform_3, window_bounds = array<i64: 1, 1>}, {transform_indices = @transform_4, window_bounds = array<i64: 256, 16>}]} {
    %c0 = arith.constant 0 : index
    %c0_0 = arith.constant 0 : index
    %0 = vector.load %arg1[%c0, %c0_0] : memref<256x1600xbf16, #tpu.memory_space<vmem>>, vector<256x1600xbf16>
    %c0_1 = arith.constant 0 : index
    %c0_2 = arith.constant 0 : index
    %1 = vector.load %arg2[%c0_1, %c0_2] : memref<1600x16xbf16, #tpu.memory_space<vmem>>, vector<1600x16xbf16>
    %cst = arith.constant dense<0.000000e+00> : vector<256x16xf32>
    %2 = tpu.matmul %0, %1, %cst {dimension_numbers = #tpu.dot_dimension_numbers<[1], [0], [0], [1], [0, 0, 1, 1], [], []>} : vector<256x1600xbf16>, vector<1600x16xbf16>, vector<256x16xf32> -> vector<256x16xf32>
    %c0_3 = arith.constant 0 : index
    %c0_4 = arith.constant 0 : index
    %3 = vector.load %arg3[%c0_3, %c0_4] : memref<1x16xf32, #tpu.memory_space<vmem>>, vector<1x16xf32>
    %4 = vector.broadcast %3 : vector<1x16xf32> to vector<256x16xf32>
    %5 = arith.addf %2, %4 : vector<256x16xf32>
    %c0_5 = arith.constant 0 : index
    %c0_6 = arith.constant 0 : index
    %6 = vector.load %arg5[%c0_5, %c0_6] : memref<256x16xf32, #tpu.memory_space<vmem>>, vector<256x16xf32>
    tpu.vector_store %arg5[%c0_5, %c0_6], %5 {strides = array<i32>} : memref<256x16xf32, #tpu.memory_space<vmem>>, vector<256x16xf32>,
    return
  }
  func.func @transform_0(%arg0: i32) -> (i32, i32) {
    %c0_i32 = arith.constant 0 : i32
    %c0_i32_0 = arith.constant 0 : i32
    return %arg0, %c0_i32 : i32, i32
  }
  func.func @transform_1(%arg0: i32) -> (i32, i32) {
    %c0_i32 = arith.constant 0 : i32
    %c0_i32_0 = arith.constant 0 : i32
    %c0_i32_1 = arith.constant 0 : i32
    return %c0_i32, %c0_i32_0 : i32, i32
  }
  func.func @transform_2(%arg0: i32) -> (i32, i32) {
    %c0_i32 = arith.constant 0 : i32
    %c0_i32_0 = arith.constant 0 : i32
    %c0_i32_1 = arith.constant 0 : i32
    return %c0_i32, %c0_i32_0 : i32, i32
  }
  func.func @transform_3(%arg0: i32) -> (i32, i32) {
    %c0_i32 = arith.constant 0 : i32
    %c0_i32_0 = arith.constant 0 : i32
    %c0_i32_1 = arith.constant 0 : i32
    return %c0_i32, %c0_i32_0 : i32, i32
  }
  func.func @transform_4(%arg0: i32) -> (i32, i32) {
    %c0_i32 = arith.constant 0 : i32
    %c0_i32_0 = arith.constant 0 : i32
    return %arg0, %c0_i32 : i32, i32
  }
}

module attributes {stable_mosaic.version = 11 : i64} {
  func.func @_mm_bias_act_kernel(%arg0: i32, %arg1: memref<256x144xbf16, #tpu.memory_space<vmem>>, %arg2: memref<144x48xbf16, #tpu.memory_space<vmem>>, %arg3: memref<1x48xf32, #tpu.memory_space<vmem>>, %arg4: memref<1x1xf32, #tpu.memory_space<vmem>>, %arg5: memref<256x48xf32, #tpu.memory_space<vmem>>) attributes {dimension_semantics = [#tpu.dimension_semantics<parallel>], iteration_bounds = array<i64: 16>, scalar_prefetch = 0 : i64, scratch_operands = 0 : i64, tpu.core_type = #tpu.core_type<tc>, window_params = [{transform_indices = @transform_0, window_bounds = array<i64: 256, 144>}, {pipeline_mode = #tpu.pipeline_mode<synchronous>, transform_indices = @transform_1, window_bounds = array<i64: 144, 48>}, {pipeline_mode = #tpu.pipeline_mode<synchronous>, transform_indices = @transform_2, window_bounds = array<i64: 1, 48>}, {pipeline_mode = #tpu.pipeline_mode<synchronous>, transform_indices = @transform_3, window_bounds = array<i64: 1, 1>}, {transform_indices = @transform_4, window_bounds = array<i64: 256, 48>}]} {
    %c0 = arith.constant 0 : index
    %c0_0 = arith.constant 0 : index
    %0 = vector.load %arg1[%c0, %c0_0] : memref<256x144xbf16, #tpu.memory_space<vmem>>, vector<256x144xbf16>
    %c0_1 = arith.constant 0 : index
    %c0_2 = arith.constant 0 : index
    %1 = vector.load %arg2[%c0_1, %c0_2] : memref<144x48xbf16, #tpu.memory_space<vmem>>, vector<144x48xbf16>
    %cst = arith.constant dense<0.000000e+00> : vector<256x48xf32>
    %2 = tpu.matmul %0, %1, %cst {dimension_numbers = #tpu.dot_dimension_numbers<[1], [0], [0], [1], [0, 0, 1, 1], [], []>} : vector<256x144xbf16>, vector<144x48xbf16>, vector<256x48xf32> -> vector<256x48xf32>
    %c0_3 = arith.constant 0 : index
    %c0_4 = arith.constant 0 : index
    %3 = vector.load %arg3[%c0_3, %c0_4] : memref<1x48xf32, #tpu.memory_space<vmem>>, vector<1x48xf32>
    %4 = vector.broadcast %3 : vector<1x48xf32> to vector<256x48xf32>
    %5 = arith.addf %2, %4 : vector<256x48xf32>
    %c0_5 = arith.constant 0 : index
    %c0_6 = arith.constant 0 : index
    %6 = vector.load %arg5[%c0_5, %c0_6] : memref<256x48xf32, #tpu.memory_space<vmem>>, vector<256x48xf32>
    tpu.vector_store %arg5[%c0_5, %c0_6], %5 {strides = array<i32>} : memref<256x48xf32, #tpu.memory_space<vmem>>, vector<256x48xf32>,
    return
  }
  func.func @transform_0(%arg0: i32) -> (i32, i32) {
    %c0_i32 = arith.constant 0 : i32
    %c0_i32_0 = arith.constant 0 : i32
    return %arg0, %c0_i32 : i32, i32
  }
  func.func @transform_1(%arg0: i32) -> (i32, i32) {
    %c0_i32 = arith.constant 0 : i32
    %c0_i32_0 = arith.constant 0 : i32
    %c0_i32_1 = arith.constant 0 : i32
    return %c0_i32, %c0_i32_0 : i32, i32
  }
  func.func @transform_2(%arg0: i32) -> (i32, i32) {
    %c0_i32 = arith.constant 0 : i32
    %c0_i32_0 = arith.constant 0 : i32
    %c0_i32_1 = arith.constant 0 : i32
    return %c0_i32, %c0_i32_0 : i32, i32
  }
  func.func @transform_3(%arg0: i32) -> (i32, i32) {
    %c0_i32 = arith.constant 0 : i32
    %c0_i32_0 = arith.constant 0 : i32
    %c0_i32_1 = arith.constant 0 : i32
    return %c0_i32, %c0_i32_0 : i32, i32
  }
  func.func @transform_4(%arg0: i32) -> (i32, i32) {
    %c0_i32 = arith.constant 0 : i32
    %c0_i32_0 = arith.constant 0 : i32
    return %arg0, %c0_i32 : i32, i32
  }
}

</mosaic_0001>

<bundles_post_ra>
// kernel: _lambda_.15
= control target key start
LH: loop header
LB: loop body
LE: loop exit
PB: predicated region body
PF: predicated region fallthrough
CT: control target
= control target key end

     0   :  { %s411_s12 = smov 0   ;;  %s441_s0 = inlined_call_operand.vmem [shape: f32[16,1024], index: 0, kind: input, shape index: {}]   ;;  %s442_s1 = inlined_call_operand.vmem [shape: f32[1,1024], index: 1, kind: input, shape index: {}]   ;;  %s443_s2 = inlined_call_operand.vmem [shape: f32[1,1024], index: 2, kind: input, shape index: {}]   ;;  %s444_s3 = inlined_call_operand.vmem [shape: f32[16,1024], index: 3, kind: output, shape index: {}]  }
   0x1 LB: > { %s356_s13 = sadd.s32 4294967295, %s388_s12   ;;  %p360_p0 = scmp.ge.s32.totalorder %s388_s12, 1  ;;  %s388_s12 = sphi %s411_s12, %s13_s12  }
   0x2   : > { %p137_p1 = scmp.lt.s32.totalorder %s388_s12, 3 }
   0x4   : > { %p138_p2 = pnand %p360_p0, %p137_p1 }
   0x5   : > { %p161_p3 = scmp.lt.s32.totalorder (!%p138_p2), %s356_s13, 1 }
   0x6   : > { %141 = sbr.rel (%p138_p2) target bundleno = 317 (0x13d), region = 32 }
   0xb   : > { %s446_s13 = smov (!%p161_p3, %s356_s13), 1  ;;  %v390_v15 = vmov 1024.0   ;;  %v241_v53 = vld [vmem:[%s442_s1] sm:$0xff] }
   0xc   : > { %s367_s14 = sshll.u32 %s446_s13, 6  ;;  %378 = vrcp.f32 %v390_v15  ;;  %v267_v55 = vld [vmem:[%s443_s2] sm:$0xff]  ;;  %v243_v57 = vperm.slane %v241_v53, 0  ;;  %v244_v58 = vperm.slane %v241_v53, 1  ;;  %v245_v59 = vperm.slane %v241_v53, 2 }
   0xd   : > { %s165_s17 = scalar_lea.vmem %s441_s0, %s367_s14  ;;  %v246_v60 = vperm.slane %v241_v53, 3  ;;  %v247_v61 = vperm.slane %v241_v53, 4  ;;  %v248_v62 = vperm.slane %v241_v53, 5  ;;  %s170_s24 = scalar_lea.vmem %s444_s3, %s367_s14 }
   0xe   : > { %v171_v0 = vld [vmem:[%s165_s17] sm:$0xff]  ;;  %v172_v1 = vld [vmem:[%s165_s17 + $0x8] sm:$0xff]  ;;  %v173_v2 = vld [vmem:[%s165_s17 + $0x10] sm:$0xff] }
   0xf   : > { %v179_v3 = vadd.f32 %v172_v1, %v171_v0  ;;  %v174_v4 = vld [vmem:[%s165_s17 + $0x18] sm:$0xff]  ;;  %v175_v6 = vld [vmem:[%s165_s17 + $0x20] sm:$0xff]  ;;  %v176_v8 = vld [vmem:[%s165_s17 + $0x28] sm:$0xff] }
  0x10   : > { %v177_v10 = vld [vmem:[%s165_s17 + $0x30] sm:$0xff]  ;;  %v178_v12 = vld [vmem:[%s165_s17 + $0x38] sm:$0xff] }
  0x11   : > { %v180_v5 = vadd.f32 %v179_v3, %v173_v2  ;;  %v270_v3 = vperm.slane %v267_v55, 1 }
  0x12   : > { %v379_v16 = vpop.eup %378 }
  0x13   : > { %v181_v7 = vadd.f32 %v180_v5, %v174_v4  ;;  %v189_v17 = vmul.f32 1024.0, %v379_v16  ;;  %vm193_vm0 = vweird.f32 %v379_v16  ;;  %v272_v5 = vperm.slane %v267_v55, 3 }
  0x15   : > { %v182_v9 = vadd.f32 %v181_v7, %v175_v6  ;;  %v190_v18 = vsub.f32 1.0, %v189_v17 }
  0x17   : > { %v183_v11 = vadd.f32 %v182_v9, %v176_v8  ;;  %v191_v19 = vmul.f32 %v379_v16, %v190_v18 }
  0x19   : > { %v184_v13 = vadd.f32 %v183_v11, %v177_v10  ;;  %v192_v20 = vadd.f32 %v379_v16, %v191_v19 }
  0x1b   : > { %v185_v14 = vadd.f32 %v184_v13, %v178_v12  ;;  %v194_v21 = vsel %vm193_vm0, %v379_v16, %v192_v20  ;;  %v274_v20 = vperm.slane %v267_v55, 5 }
  0x1d   : > { %186 = vadd.xlane.f32.xlu0 %v185_v14 }
  0x90   : > { %v187_v22 = vpop.xlane.xlu0 %186 }
  0x91   : > { %v195_v23 = vmul.f32 %v194_v21, %v187_v22 }
  0x93   : > { %v196_v24 = vsub.f32 %v171_v0, %v195_v23  ;;  %v197_v25 = vsub.f32 %v172_v1, %v195_v23  ;;  %v198_v26 = vsub.f32 %v173_v2, %v195_v23  ;;  %v199_v27 = vsub.f32 %v174_v4, %v195_v23 }
  0x94   : > { %v200_v30 = vsub.f32 %v175_v6, %v195_v23  ;;  %v201_v33 = vsub.f32 %v176_v8, %v195_v23  ;;  %v202_v36 = vsub.f32 %v177_v10, %v195_v23  ;;  %v203_v39 = vsub.f32 %v178_v12, %v195_v23 }
  0x95   : > { %v204_v28 = vmul.f32 %v196_v24, %v196_v24  ;;  %v205_v29 = vmul.f32 %v197_v25, %v197_v25  ;;  %v206_v31 = vmul.f32 %v198_v26, %v198_v26  ;;  %v207_v34 = vmul.f32 %v199_v27, %v199_v27 }
  0x96   : > { %v208_v37 = vmul.f32 %v200_v30, %v200_v30  ;;  %v209_v40 = vmul.f32 %v201_v33, %v201_v33  ;;  %v210_v42 = vmul.f32 %v202_v36, %v202_v36  ;;  %v211_v44 = vmul.f32 %v203_v39, %v203_v39 }
  0x97   : > { %v212_v32 = vadd.f32 %v205_v29, %v204_v28  ;;  %v249_v0 = vperm.slane %v241_v53, 6  ;;  %v250_v1 = vperm.slane %v241_v53, 7  ;;  %v269_v2 = vperm.slane %v267_v55, 0 }
  0x98   : > { %v271_v4 = vperm.slane %v267_v55, 2  ;;  %v273_v6 = vperm.slane %v267_v55, 4  ;;  %v276_v28 = vperm.slane %v267_v55, 7 }
  0x99   : > { %v213_v35 = vadd.f32 %v212_v32, %v206_v31 }
  0x9b   : > { %v214_v38 = vadd.f32 %v213_v35, %v207_v34 }
  0x9d   : > { %v215_v41 = vadd.f32 %v214_v38, %v208_v37 }
  0x9f   : > { %v216_v43 = vadd.f32 %v215_v41, %v209_v40 }
  0xa1   : > { %v217_v45 = vadd.f32 %v216_v43, %v210_v42 }
  0xa3   : > { %v218_v46 = vadd.f32 %v217_v45, %v211_v44 }
  0xa5   : > { %219 = vadd.xlane.f32.xlu0 %v218_v46 }
 0x118   : > { %v220_v47 = vpop.xlane.xlu0 %219 }
 0x119   : > { %v221_v48 = vmul.f32 %v220_v47, %v194_v21  ;;  %v275_v21 = vperm.slane %v267_v55, 6 }
 0x11b   : > { %v222_v49 = vadd.f32 1e-05, %v221_v48 }
 0x11d   : > { %380 = vrsqrt.f32 %v222_v49  ;;  %vm229_vm2 = vweird.f32 %v222_v49 }
 0x123   : > { %v381_v50 = vpop.eup %380 }
 0x124   : > { %v224_v51 = vmul.f32 %v381_v50, %v222_v49  ;;  %vm230_vm1 = vweird.f32 %v381_v50 }
 0x125   : > { %vm231_vm3 = vmor %vm229_vm2, %vm230_vm1 }
 0x126   : > { %v225_v52 = vmul.f32 %v381_v50, %v224_v51 }
 0x128   : > { %v226_v54 = vmul.f32 0.5, %v225_v52 }
 0x12a   : > { %v227_v56 = vsub.f32 1.5, %v226_v54 }
 0x12c   : > { %v228_v63 = vmul.f32 %v381_v50, %v227_v56 }
 0x12e   : > { %v232_v7 = vsel %vm231_vm3, %v381_v50, %v228_v63 }
 0x12f   : > { %v233_v8 = vmul.f32 %v232_v7, %v196_v24  ;;  %v234_v9 = vmul.f32 %v232_v7, %v197_v25  ;;  %v235_v10 = vmul.f32 %v232_v7, %v198_v26  ;;  %v236_v11 = vmul.f32 %v232_v7, %v199_v27 }
 0x130   : > { %v237_v12 = vmul.f32 %v232_v7, %v200_v30  ;;  %v238_v13 = vmul.f32 %v232_v7, %v201_v33  ;;  %v239_v14 = vmul.f32 %v232_v7, %v202_v36  ;;  %v240_v15 = vmul.f32 %v232_v7, %v203_v39 }
 0x131   : > { %v259_v16 = vmul.f32 %v243_v57, %v233_v8  ;;  %v260_v17 = vmul.f32 %v244_v58, %v234_v9  ;;  %v261_v18 = vmul.f32 %v245_v59, %v235_v10  ;;  %v262_v19 = vmul.f32 %v246_v60, %v236_v11 }
 0x132   : > { %v263_v22 = vmul.f32 %v247_v61, %v237_v12  ;;  %v264_v23 = vmul.f32 %v248_v62, %v238_v13  ;;  %v265_v24 = vmul.f32 %v249_v0, %v239_v14  ;;  %v266_v29 = vmul.f32 %v250_v1, %v240_v15 }
 0x133   : > { %v285_v25 = vadd.f32 %v269_v2, %v259_v16  ;;  %v286_v26 = vadd.f32 %v270_v3, %v260_v17  ;;  %v287_v27 = vadd.f32 %v271_v4, %v261_v18  ;;  %v288_v30 = vadd.f32 %v272_v5, %v262_v19 }
 0x134   : > { %v289_v31 = vadd.f32 %v273_v6, %v263_v22  ;;  %v290_v32 = vadd.f32 %v274_v20, %v264_v23  ;;  %v291_v33 = vadd.f32 %v275_v21, %v265_v24  ;;  %v292_v34 = vadd.f32 %v276_v28, %v266_v29 }
 0x135   : > { %293 = vst [vmem:[%s170_s24] sm:$0xff] %v285_v25 }
 0x136   : > { %294 = vst [vmem:[%s170_s24 + $0x8] sm:$0xff] %v286_v26 }
 0x137   : > { %295 = vst [vmem:[%s170_s24 + $0x10] sm:$0xff] %v287_v27 }
 0x138   : > { %296 = vst [vmem:[%s170_s24 + $0x18] sm:$0xff] %v288_v30 }
 0x139   : > { %297 = vst [vmem:[%s170_s24 + $0x20] sm:$0xff] %v289_v31 }
 0x13a   : > { %298 = vst [vmem:[%s170_s24 + $0x28] sm:$0xff] %v290_v32 }
 0x13b   : > { %299 = vst [vmem:[%s170_s24 + $0x30] sm:$0xff] %v291_v33 }
 0x13c   : > { %300 = vst [vmem:[%s170_s24 + $0x38] sm:$0xff] %v292_v34 }
 0x13d PF: > { %s13_s12 = sadd.s32 1, %s388_s12  }
 0x13e   : > { %p10_p4 = scmp.ge.s32.totalorder %s13_s12, 4  }
 0x140   :  { %12 = sbr.rel (!%p10_p4) target bundleno = 1 (0x1), region = 62 }

// kernel: _lambda_.16
= control target key start
LH: loop header
LB: loop body
LE: loop exit
PB: predicated region body
PF: predicated region fallthrough
CT: control target
= control target key end

     0   :  { %s739_s15 = smov 0   ;;  %s906_s0 = inlined_call_operand.vmem [shape: bf16[4096,36], index: 0, kind: input, shape index: {}]   ;;  %s907_s1 = inlined_call_operand.vmem [shape: bf16[36,48], index: 1, kind: input, shape index: {}]   ;;  %s908_s2 = inlined_call_operand.vmem [shape: f32[1,48], index: 2, kind: input, shape index: {}]   ;;  %s909_s3 = inlined_call_operand.<no memory space> [shape: f32[1,1], index: 3, kind: input, shape index: {}]   ;;  %s910_s4 = inlined_call_operand.vmem [shape: f32[4096,48], index: 4, kind: output, shape index: {}]  }
   0x1 LB: > { %s571_s16 = sadd.s32 4294967295, %s712_s15   ;;  %p575_p0 = scmp.ge.s32.totalorder %s712_s15, 1  ;;  %s712_s15 = sphi %s739_s15, %s16_s15  }
   0x2   : > { %p165_p1 = scmp.lt.s32.totalorder %s712_s15, 17 }
   0x4   : > { %p166_p2 = pnand %p575_p0, %p165_p1 }
   0x5   : > { %s576_s18 = sshll.u32 (!%p166_p2), %s571_s16, 5 }
   0x6   : > { %169 = sbr.rel (%p166_p2) target bundleno = 221 (0xdd), region = 36  ;;  %p192_p3 = scmp.lt.s32.totalorder (!%p166_p2), %s576_s18, 511 }
   0xb   : > { %v240_v0 = vld [vmem:[%s907_s1 + $0x10] sm:$0x3]  ;;  %vm389_vm0 = vcmask 1041408   ;;  %s912_s18 = smov (!%p192_p3, %s576_s18), 511  ;;  %v687_v4 = vld [vmem:[%s907_s1 + $0x8] sm:$0xff]  ;;  %v686_v5 = vld [vmem:[%s907_s1] sm:$0xff] }
   0xc   : > { %v334_v1 = vunpack.c.l.b16 %v240_v0  ;;  %s577_s21 = sshll.u32 %s912_s18, 2  ;;  %vm340_vm1 = vcmask 293888   ;;  %s579_s27 = sshll.u32 %s912_s18, 3  ;;  %v800_v22 = vld [vmem:[%s908_s2] ss:$0 sm:$0xff]  ;;  %vm482_vm2 = vcmask 392192  }
   0xd   : > { %s762_s26 = scalar_lea.vmem %s906_s0, %s577_s21  ;;  %s805_s6 = scalar_lea.vmem %s910_s4, %s579_s27 }
   0xe   : > { %v337_v2 = vpack.c.b16 %v334_v1, %v334_v1  ;;  %v670_v6 = vld [vmem:[%s762_s26] sm:$0xff]  ;;  %v671_v10 = vld [vmem:[%s762_s26 + $0x8] sm:$0xff]  ;;  %v672_v14 = vld [vmem:[%s762_s26 + $0x10] sm:$0xff] }
   0xf   : > { %v674_v7 = vld [vmem:[%s762_s26 + $0x20] sm:$0xff]  ;;  %v675_v11 = vld [vmem:[%s762_s26 + $0x28] sm:$0xff]  ;;  %v676_v15 = vld [vmem:[%s762_s26 + $0x30] sm:$0xff] }
  0x10   : > { %v391_v3 = vsel %vm389_vm0, %v337_v2, 0  ;;  %v678_v8 = vld [vmem:[%s762_s26 + $0x40] sm:$0xff]  ;;  %v679_v12 = vld [vmem:[%s762_s26 + $0x48] sm:$0xff]  ;;  %v680_v16 = vld [vmem:[%s762_s26 + $0x50] sm:$0xff] }
  0x11   : > { %398 = vmatpush.bf16.msra.mxu0 %v391_v3  ;;  %688 = vmatpush.bf16.msra.mxu1 %v391_v3  ;;  %v682_v9 = vld [vmem:[%s762_s26 + $0x60] sm:$0xff]  ;;  %v683_v13 = vld [vmem:[%s762_s26 + $0x68] sm:$0xff]  ;;  %v684_v17 = vld [vmem:[%s762_s26 + $0x70] sm:$0xff] }
  0x12   : > { %689 = vmatpush.bf16.msra.mxu2 %v391_v3  ;;  %690 = vmatpush.bf16.msra.mxu3 %v391_v3  ;;  %v673_v18 = vld [vmem:[%s762_s26 + $0x18] sm:$0xff] }
  0x13   : > { %v677_v19 = vld [vmem:[%s762_s26 + $0x38] sm:$0xff] }
  0x14   : > { %v681_v20 = vld [vmem:[%s762_s26 + $0x58] sm:$0xff] }
  0x15   : > { %399 = vmatpush.bf16.msra.mxu0 %v687_v4  ;;  %691 = vmatpush.bf16.msra.mxu1 %v687_v4  ;;  %v685_v21 = vld [vmem:[%s762_s26 + $0x78] sm:$0xff] }
  0x16   : > { %692 = vmatpush.bf16.msra.mxu2 %v687_v4  ;;  %693 = vmatpush.bf16.msra.mxu3 %v687_v4 }
  0x19   : > { %400 = vmatpush.bf16.msra.mxu0 %v686_v5  ;;  %694 = vmatpush.bf16.msra.mxu1 %v686_v5 }
  0x1a   : > { %695 = vmatpush.bf16.msra.mxu2 %v686_v5  ;;  %696 = vmatpush.bf16.msra.mxu3 %v686_v5 }
  0x1c   : > { %652 = vmatmul.msk.bf16.vlgmr.msra.gmra.mxu0 %vm340_vm1, %v670_v6  ;;  %656 = vmatmul.msk.bf16.vlgmr.msra.gmra.mxu1 %vm340_vm1, %v674_v7 }
  0x1d   : > { %660 = vmatmul.msk.bf16.vlgmr.msra.gmra.mxu2 %vm340_vm1, %v678_v8  ;;  %664 = vmatmul.msk.bf16.vlgmr.msra.gmra.mxu3 %vm340_vm1, %v682_v9 }
  0x2c   : > { %653 = vmatmul.msk.bf16.gmra.mxu0 %vm340_vm1, %v671_v10  ;;  %657 = vmatmul.msk.bf16.gmra.mxu1 %vm340_vm1, %v675_v11 }
  0x2d   : > { %661 = vmatmul.msk.bf16.gmra.mxu2 %vm340_vm1, %v679_v12  ;;  %665 = vmatmul.msk.bf16.gmra.mxu3 %vm340_vm1, %v683_v13 }
  0x3c   : > { %654 = vmatmul.msk.bf16.gmra.mxu0 %vm340_vm1, %v672_v14  ;;  %658 = vmatmul.msk.bf16.gmra.mxu1 %vm340_vm1, %v676_v15 }
  0x3d   : > { %662 = vmatmul.msk.bf16.gmra.mxu2 %vm340_vm1, %v680_v16  ;;  %666 = vmatmul.msk.bf16.gmra.mxu3 %vm340_vm1, %v684_v17 }
  0x4c   : > { %655 = vmatmul.msk.bf16.gmra.mxu0 %vm340_vm1, %v673_v18  ;;  %659 = vmatmul.msk.bf16.gmra.mxu1 %vm340_vm1, %v677_v19 }
  0x4d   : > { %663 = vmatmul.msk.bf16.gmra.mxu2 %vm340_vm1, %v681_v20  ;;  %667 = vmatmul.msk.bf16.gmra.mxu3 %vm340_vm1, %v685_v21 }
  0x99   : > { %v402_v23 = vpop.f32.mrf.mxu0  ;;  %v422_v24 = vpop.f32.mrf.mxu1 }
  0x9a   : > { %v403_v25 = vadd.f32 %v800_v22, %v402_v23  ;;  %v423_v26 = vadd.f32 %v800_v22, %v422_v24 }
  0x9c   : > { %483 = vst.msk [vmem:[%s805_s6] sm:$0xff] %vm482_vm2, %v403_v25 }
  0x9d   : > { %491 = vst.msk [vmem:[%s805_s6 + $0x40] sm:$0xff] %vm482_vm2, %v423_v26 }
  0xa0   : > { %v442_v27 = vpop.f32.mrf.mxu2  ;;  %v462_v28 = vpop.f32.mrf.mxu3 }
  0xa1   : > { %v443_v29 = vadd.f32 %v800_v22, %v442_v27  ;;  %v463_v30 = vadd.f32 %v800_v22, %v462_v28  ;;  %v404_v31 = vpop.f32.mrf.mxu0  ;;  %v424_v32 = vpop.f32.mrf.mxu1 }
  0xa2   : > { %v405_v33 = vadd.f32 %v800_v22, %v404_v31  ;;  %v425_v34 = vadd.f32 %v800_v22, %v424_v32 }
  0xa3   : > { %499 = vst.msk [vmem:[%s805_s6 + $0x80] sm:$0xff] %vm482_vm2, %v443_v29 }
  0xa4   : > { %507 = vst.msk [vmem:[%s805_s6 + $0xc0] sm:$0xff] %vm482_vm2, %v463_v30 }
  0xa5   : > { %484 = vst.msk [vmem:[%s805_s6 + $0x8] sm:$0xff] %vm482_vm2, %v405_v33 }
  0xa6   : > { %492 = vst.msk [vmem:[%s805_s6 + $0x48] sm:$0xff] %vm482_vm2, %v425_v34 }
  0xa8   : > { %v444_v35 = vpop.f32.mrf.mxu2  ;;  %v464_v36 = vpop.f32.mrf.mxu3 }
  0xa9   : > { %v445_v37 = vadd.f32 %v800_v22, %v444_v35  ;;  %v465_v38 = vadd.f32 %v800_v22, %v464_v36  ;;  %v407_v39 = vpop.f32.mrf.mxu0  ;;  %v427_v40 = vpop.f32.mrf.mxu1 }
  0xaa   : > { %v408_v41 = vadd.f32 %v800_v22, %v407_v39  ;;  %v428_v42 = vadd.f32 %v800_v22, %v427_v40 }
  0xab   : > { %500 = vst.msk [vmem:[%s805_s6 + $0x88] sm:$0xff] %vm482_vm2, %v445_v37 }
  0xac   : > { %508 = vst.msk [vmem:[%s805_s6 + $0xc8] sm:$0xff] %vm482_vm2, %v465_v38 }
  0xad   : > { %485 = vst.msk [vmem:[%s805_s6 + $0x10] sm:$0xff] %vm482_vm2, %v408_v41 }
  0xae   : > { %493 = vst.msk [vmem:[%s805_s6 + $0x50] sm:$0xff] %vm482_vm2, %v428_v42 }
  0xb0   : > { %v447_v43 = vpop.f32.mrf.mxu2  ;;  %v467_v44 = vpop.f32.mrf.mxu3 }
  0xb1   : > { %v448_v45 = vadd.f32 %v800_v22, %v447_v43  ;;  %v468_v46 = vadd.f32 %v800_v22, %v467_v44  ;;  %v409_v47 = vpop.f32.mrf.mxu0  ;;  %v429_v48 = vpop.f32.mrf.mxu1 }
  0xb2   : > { %v410_v49 = vadd.f32 %v800_v22, %v409_v47  ;;  %v430_v50 = vadd.f32 %v800_v22, %v429_v48 }
  0xb3   : > { %501 = vst.msk [vmem:[%s805_s6 + $0x90] sm:$0xff] %vm482_vm2, %v448_v45 }
  0xb4   : > { %509 = vst.msk [vmem:[%s805_s6 + $0xd0] sm:$0xff] %vm482_vm2, %v468_v46 }
  0xb5   : > { %486 = vst.msk [vmem:[%s805_s6 + $0x18] sm:$0xff] %vm482_vm2, %v410_v49 }
  0xb6   : > { %494 = vst.msk [vmem:[%s805_s6 + $0x58] sm:$0xff] %vm482_vm2, %v430_v50 }
  0xb8   : > { %v449_v51 = vpop.f32.mrf.mxu2  ;;  %v469_v52 = vpop.f32.mrf.mxu3 }
  0xb9   : > { %v450_v53 = vadd.f32 %v800_v22, %v449_v51  ;;  %v470_v54 = vadd.f32 %v800_v22, %v469_v52  ;;  %v412_v55 = vpop.f32.mrf.mxu0  ;;  %v432_v56 = vpop.f32.mrf.mxu1 }
  0xba   : > { %v413_v57 = vadd.f32 %v800_v22, %v412_v55  ;;  %v433_v58 = vadd.f32 %v800_v22, %v432_v56 }
  0xbb   : > { %502 = vst.msk [vmem:[%s805_s6 + $0x98] sm:$0xff] %vm482_vm2, %v450_v53 }
  0xbc   : > { %510 = vst.msk [vmem:[%s805_s6 + $0xd8] sm:$0xff] %vm482_vm2, %v470_v54 }
  0xbd   : > { %487 = vst.msk [vmem:[%s805_s6 + $0x20] sm:$0xff] %vm482_vm2, %v413_v57 }
  0xbe   : > { %495 = vst.msk [vmem:[%s805_s6 + $0x60] sm:$0xff] %vm482_vm2, %v433_v58 }
  0xc0   : > { %v452_v59 = vpop.f32.mrf.mxu2  ;;  %v472_v60 = vpop.f32.mrf.mxu3 }
  0xc1   : > { %v453_v61 = vadd.f32 %v800_v22, %v452_v59  ;;  %v473_v62 = vadd.f32 %v800_v22, %v472_v60  ;;  %v414_v63 = vpop.f32.mrf.mxu0  ;;  %v434_v0 = vpop.f32.mrf.mxu1 }
  0xc2   : > { %v415_v1 = vadd.f32 %v800_v22, %v414_v63  ;;  %v435_v2 = vadd.f32 %v800_v22, %v434_v0 }
  0xc3   : > { %503 = vst.msk [vmem:[%s805_s6 + $0xa0] sm:$0xff] %vm482_vm2, %v453_v61 }
  0xc4   : > { %511 = vst.msk [vmem:[%s805_s6 + $0xe0] sm:$0xff] %vm482_vm2, %v473_v62 }
  0xc5   : > { %488 = vst.msk [vmem:[%s805_s6 + $0x28] sm:$0xff] %vm482_vm2, %v415_v1 }
  0xc6   : > { %496 = vst.msk [vmem:[%s805_s6 + $0x68] sm:$0xff] %vm482_vm2, %v435_v2 }
  0xc8   : > { %v454_v3 = vpop.f32.mrf.mxu2  ;;  %v474_v4 = vpop.f32.mrf.mxu3 }
  0xc9   : > { %v455_v5 = vadd.f32 %v800_v22, %v454_v3  ;;  %v475_v6 = vadd.f32 %v800_v22, %v474_v4  ;;  %v417_v7 = vpop.f32.mrf.mxu0  ;;  %v437_v8 = vpop.f32.mrf.mxu1 }
  0xca   : > { %v418_v9 = vadd.f32 %v800_v22, %v417_v7  ;;  %v438_v10 = vadd.f32 %v800_v22, %v437_v8 }
  0xcb   : > { %504 = vst.msk [vmem:[%s805_s6 + $0xa8] sm:$0xff] %vm482_vm2, %v455_v5 }
  0xcc   : > { %512 = vst.msk [vmem:[%s805_s6 + $0xe8] sm:$0xff] %vm482_vm2, %v475_v6 }
  0xcd   : > { %489 = vst.msk [vmem:[%s805_s6 + $0x30] sm:$0xff] %vm482_vm2, %v418_v9 }
  0xce   : > { %497 = vst.msk [vmem:[%s805_s6 + $0x70] sm:$0xff] %vm482_vm2, %v438_v10 }
  0xd0   : > { %v457_v11 = vpop.f32.mrf.mxu2  ;;  %v477_v12 = vpop.f32.mrf.mxu3 }
  0xd1   : > { %v458_v13 = vadd.f32 %v800_v22, %v457_v11  ;;  %v478_v14 = vadd.f32 %v800_v22, %v477_v12  ;;  %v419_v15 = vpop.f32.mrf.mxu0  ;;  %v439_v16 = vpop.f32.mrf.mxu1 }
  0xd2   : > { %v420_v17 = vadd.f32 %v800_v22, %v419_v15  ;;  %v440_v18 = vadd.f32 %v800_v22, %v439_v16 }
  0xd3   : > { %505 = vst.msk [vmem:[%s805_s6 + $0xb0] sm:$0xff] %vm482_vm2, %v458_v13 }
  0xd4   : > { %513 = vst.msk [vmem:[%s805_s6 + $0xf0] sm:$0xff] %vm482_vm2, %v478_v14 }
  0xd5   : > { %490 = vst.msk [vmem:[%s805_s6 + $0x38] sm:$0xff] %vm482_vm2, %v420_v17 }
  0xd6   : > { %498 = vst.msk [vmem:[%s805_s6 + $0x78] sm:$0xff] %vm482_vm2, %v440_v18 }
  0xd8   : > { %v459_v19 = vpop.f32.mrf.mxu2  ;;  %v479_v20 = vpop.f32.mrf.mxu3 }
  0xd9   : > { %v460_v21 = vadd.f32 %v800_v22, %v459_v19  ;;  %v480_v23 = vadd.f32 %v800_v22, %v479_v20 }
  0xdb   : > { %506 = vst.msk [vmem:[%s805_s6 + $0xb8] sm:$0xff] %vm482_vm2, %v460_v21 }
  0xdc   : > { %514 = vst.msk [vmem:[%s805_s6 + $0xf8] sm:$0xff] %vm482_vm2, %v480_v23 }
  0xdd PF: > { %s16_s15 = sadd.s32 1, %s712_s15  }
  0xde   : > { %p13_p4 = scmp.ge.s32.totalorder %s16_s15, 18  }
  0xe0   :  { %15 = sbr.rel (!%p13_p4) target bundleno = 1 (0x1), region = 66 }

// kernel: _lambda_.17
= control target key start
LH: loop header
LB: loop body
LE: loop exit
PB: predicated region body
PF: predicated region fallthrough
CT: control target
= control target key end

     0   :  { %s2683_s18 = smov 0   ;;  %s3538_s0 = inlined_call_operand.vmem [shape: f32[16,8,512], index: 0, kind: input, shape index: {}]   ;;  %s3539_s1 = inlined_call_operand.vmem [shape: f32[16,8,512], index: 1, kind: input, shape index: {}]   ;;  %s3540_s2 = inlined_call_operand.vmem [shape: f32[16,8,512], index: 2, kind: input, shape index: {}]   ;;  %s3541_s3 = inlined_call_operand.vmem [shape: f32[16,1], index: 3, kind: input, shape index: {}]   ;;  %s3542_s4 = inlined_call_operand.vmem [shape: f32[16,8,8], index: 4, kind: input, shape index: {}]   ;;  %s3543_s5 = inlined_call_operand.vmem [shape: f32[16,8,512], index: 5, kind: output, shape index: {}]  }
   0x1 LB: > { %s2689_s19 = sadd.s32 4294967295, %s2650_s18   ;;  %p2514_p0 = scmp.ge.s32.totalorder %s2650_s18, 1  ;;  %s2650_s18 = sphi %s2683_s18, %s15_s18  }
   0x2   : > { %p233_p1 = scmp.lt.s32.totalorder %s2650_s18, 3 }
   0x4   : > { %p234_p2 = pnand %p2514_p0, %p233_p1 }
   0x6   : > { %237 = sbr.rel (%p234_p2) target bundleno = 770 (0x302), region = 40 }
   0xb   : > { %s2515_s20 = sshll.u32 %s2689_s19, 3  ;;  %p305_p4 = scmp.lt.s32.totalorder %s2689_s19, 1 }
   0xc   : > { %p285_p3 = scmp.lt.s32.totalorder %s2515_s20, 15 }
   0xd   : > { %s3642_s19 = smov (!%p305_p4, %s2689_s19), 1 }
   0xe   : > { %s3640_s20 = smov (!%p285_p3, %s2515_s20), 15  ;;  %s2524_s28 = sshll.u32 %s3642_s19, 3 }
   0xf   : > { %s2697_s21 = sshll.u32 %s3640_s20, 5  ;;  %s308_s6 = scalar_lea.vmem %s3541_s3, %s2524_s28 }
  0x10   : > { %s2703_s24 = scalar_lea.vmem %s3539_s1, %s2697_s21  ;;  %s2733_s27 = scalar_lea.vmem %s3538_s0, %s2697_s21 }
  0x11   : > { %v2706_v0 = vld [vmem:[%s2703_s24 + $0x20] sm:$0xff]  ;;  %v2709_v1 = vld [vmem:[%s2703_s24 + $0x28] sm:$0xff]  ;;  %v2712_v2 = vld [vmem:[%s2703_s24 + $0x30] sm:$0xff]  ;;  %s2526_s7 = sshll.u32 %s3640_s20, 3  ;;  %s3423_s13 = scalar_lea.vmem %s3540_s2, %s2697_s21 }
  0x12   : > { %v2715_v3 = vld [vmem:[%s2703_s24 + $0x38] sm:$0xff]  ;;  %v614_v4 = vmul.f32 %v2706_v0, %v2706_v0  ;;  %v615_v5 = vmul.f32 %v2709_v1, %v2709_v1  ;;  %v616_v6 = vmul.f32 %v2712_v2, %v2712_v2  ;;  %v2724_v7 = vld [vmem:[%s2703_s24] sm:$0xff]  ;;  %v2727_v8 = vld [vmem:[%s2703_s24 + $0x8] sm:$0xff]  ;;  %s3349_s10 = scalar_lea.vmem %s3542_s4, %s2526_s7  ;;  %s3501_s16 = scalar_lea.vmem %s3543_s5, %s2697_s21 }
  0x13   : > { %v2736_v9 = vld [vmem:[%s2703_s24 + $0x10] sm:$0xff]  ;;  %v2739_v10 = vld [vmem:[%s2703_s24 + $0x18] sm:$0xff]  ;;  %v610_v11 = vmul.f32 %v2724_v7, %v2724_v7  ;;  %v611_v12 = vmul.f32 %v2727_v8, %v2727_v8  ;;  %v2746_v13 = vld [vmem:[%s2703_s24 + $0x40] sm:$0xff]  ;;  %v617_v14 = vmul.f32 %v2715_v3, %v2715_v3 }
  0x14   : > { %v647_v15 = vadd.f32 %v615_v5, %v614_v4  ;;  %v612_v16 = vmul.f32 %v2736_v9, %v2736_v9  ;;  %v2753_v17 = vld [vmem:[%s2703_s24 + $0x48] sm:$0xff]  ;;  %v2756_v18 = vld [vmem:[%s2703_s24 + $0x50] sm:$0xff]  ;;  %v2759_v19 = vld [vmem:[%s2703_s24 + $0x58] sm:$0xff]  ;;  %v618_v20 = vmul.f32 %v2746_v13, %v2746_v13  ;;  %v613_v21 = vmul.f32 %v2739_v10, %v2739_v10 }
  0x15   : > { %v642_v22 = vadd.f32 %v611_v12, %v610_v11  ;;  %v619_v23 = vmul.f32 %v2753_v17, %v2753_v17  ;;  %v620_v24 = vmul.f32 %v2756_v18, %v2756_v18  ;;  %v2770_v25 = vld [vmem:[%s2733_s27 + $0x20] sm:$0xff]  ;;  %v2773_v26 = vld [vmem:[%s2733_s27 + $0x28] sm:$0xff]  ;;  %v2776_v27 = vld [vmem:[%s2733_s27 + $0x30] sm:$0xff]  ;;  %v621_v36 = vmul.f32 %v2759_v19, %v2759_v19 }
  0x16   : > { %v648_v28 = vadd.f32 %v647_v15, %v616_v6  ;;  %v2779_v29 = vld [vmem:[%s2733_s27 + $0x38] sm:$0xff]  ;;  %v422_v30 = vmul.f32 %v2770_v25, %v2770_v25  ;;  %v423_v31 = vmul.f32 %v2773_v26, %v2773_v26  ;;  %v424_v32 = vmul.f32 %v2776_v27, %v2776_v27  ;;  %v2788_v33 = vld [vmem:[%s2733_s27] sm:$0xff]  ;;  %v2791_v34 = vld [vmem:[%s2733_s27 + $0x8] sm:$0xff] }
  0x17   : > { %v643_v35 = vadd.f32 %v642_v22, %v612_v16  ;;  %v652_v37 = vadd.f32 %v619_v23, %v618_v20  ;;  %v2796_v38 = vld [vmem:[%s2733_s27 + $0x10] sm:$0xff]  ;;  %v418_v39 = vmul.f32 %v2788_v33, %v2788_v33  ;;  %v2801_v40 = vld [vmem:[%s2733_s27 + $0x40] sm:$0xff]  ;;  %v2804_v43 = vld [vmem:[%s2733_s27 + $0x18] sm:$0xff]  ;;  %v419_v44 = vmul.f32 %v2791_v34, %v2791_v34 }
  0x18   : > { %v649_v41 = vadd.f32 %v648_v28, %v617_v14  ;;  %v455_v42 = vadd.f32 %v423_v31, %v422_v30  ;;  %v420_v45 = vmul.f32 %v2796_v38, %v2796_v38  ;;  %v2811_v46 = vld [vmem:[%s2733_s27 + $0x48] sm:$0xff]  ;;  %v2814_v47 = vld [vmem:[%s2733_s27 + $0x50] sm:$0xff]  ;;  %v425_v50 = vmul.f32 %v2779_v29, %v2779_v29  ;;  %v2821_v52 = vld [vmem:[%s2703_s24 + $0x60] sm:$0xff] }
  0x19   : > { %v644_v48 = vadd.f32 %v643_v35, %v613_v21  ;;  %v653_v49 = vadd.f32 %v652_v37, %v620_v24  ;;  %v426_v51 = vmul.f32 %v2801_v40, %v2801_v40  ;;  %v2824_v53 = vld [vmem:[%s2703_s24 + $0x68] sm:$0xff]  ;;  %v450_v55 = vadd.f32 %v419_v44, %v418_v39  ;;  %v2827_v56 = vld [vmem:[%s2733_s27 + $0x58] sm:$0xff]  ;;  %v2834_v59 = vld [vmem:[%s2703_s24 + $0x80] sm:$0xff] }
  0x1a   : > { %650 = vadd.xlane.f32.xlu1 %v649_v41  ;;  %v456_v54 = vadd.f32 %v455_v42, %v424_v32  ;;  %v427_v57 = vmul.f32 %v2811_v46, %v2811_v46  ;;  %v428_v58 = vmul.f32 %v2814_v47, %v2814_v47  ;;  %v2837_v60 = vld [vmem:[%s2703_s24 + $0x88] sm:$0xff]  ;;  %v421_v62 = vmul.f32 %v2804_v43, %v2804_v43  ;;  %v2842_v63 = vld [vmem:[%s2703_s24 + $0x70] sm:$0xff]  ;;  %v2849_v12 = vld [vmem:[%s2733_s27 + $0x60] sm:$0xff] }
  0x1b   : > { %645 = vadd.xlane.f32.xlu0 %v644_v48  ;;  %v654_v61 = vadd.f32 %v653_v49, %v621_v36  ;;  %v622_v4 = vmul.f32 %v2821_v52, %v2821_v52  ;;  %v623_v5 = vmul.f32 %v2824_v53, %v2824_v53  ;;  %v451_v6 = vadd.f32 %v450_v55, %v420_v45  ;;  %v2852_v14 = vld [vmem:[%s2733_s27 + $0x68] sm:$0xff]  ;;  %v2861_v21 = vld [vmem:[%s2733_s27 + $0x70] sm:$0xff]  ;;  %v2864_v24 = vld [vmem:[%s2703_s24 + $0x78] sm:$0xff] }
  0x1c   : > { %v460_v11 = vadd.f32 %v427_v57, %v426_v51  ;;  %v429_v15 = vmul.f32 %v2827_v56, %v2827_v56  ;;  %v626_v16 = vmul.f32 %v2834_v59, %v2834_v59  ;;  %v627_v20 = vmul.f32 %v2837_v60, %v2837_v60  ;;  %v2869_v30 = vld [vmem:[%s2703_s24 + $0x90] sm:$0xff]  ;;  %v2872_v35 = vld [vmem:[%s2733_s27 + $0x78] sm:$0xff]  ;;  %v2879_v39 = vld [vmem:[%s2703_s24 + $0xa0] sm:$0xff] }
  0x1d   : > { %655 = vadd.xlane.f32.xlu2 %v654_v61  ;;  %v457_v22 = vadd.f32 %v456_v54, %v425_v50  ;;  %v624_v28 = vmul.f32 %v2842_v63, %v2842_v63  ;;  %v452_v31 = vadd.f32 %v451_v6, %v421_v62  ;;  %v657_v32 = vadd.f32 %v623_v5, %v622_v4  ;;  %v2882_v41 = vld [vmem:[%s2703_s24 + $0xa8] sm:$0xff]  ;;  %v2887_v44 = vld [vmem:[%s2733_s27 + $0x80] sm:$0xff]  ;;  %v2897_v55 = vld [vmem:[%s2703_s24 + $0x98] sm:$0xff] }
  0x1e   : > { %v461_v23 = vadd.f32 %v460_v11, %v428_v58  ;;  %3573 = vst [vmem:[#allocation2_spill] sm:$0xff] %v2872_v35  ;;  %v430_v36 = vmul.f32 %v2849_v12, %v2849_v12  ;;  %v431_v37 = vmul.f32 %v2852_v14, %v2852_v14  ;;  %v432_v42 = vmul.f32 %v2861_v21, %v2861_v21  ;;  %v2890_v45 = vld [vmem:[%s2733_s27 + $0x88] sm:$0xff]  ;;  %v2906_v62 = vld [vmem:[%s2733_s27 + $0xa0] sm:$0xff]  ;;  %v2912_v11 = vld [vmem:[%s2703_s24 + $0xb0] sm:$0xff] }
  0x1f   : > { %3574 = vst [vmem:[#allocation3_spill] sm:$0xff] %v2879_v39  ;;  %v628_v49 = vmul.f32 %v2869_v30, %v2869_v30  ;;  %v662_v50 = vadd.f32 %v627_v20, %v626_v16  ;;  %v625_v54 = vmul.f32 %v2864_v24, %v2864_v24  ;;  %v433_v57 = vmul.f32 %v2872_v35, %v2872_v35  ;;  %v2909_v4 = vld [vmem:[%s2733_s27 + $0xa8] sm:$0xff]  ;;  %v2919_v20 = vld [vmem:[%s2733_s27 + $0x90] sm:$0xff] }
  0x20   : > { %3575 = vst [vmem:[#allocation4_spill] sm:$0xff] %v2882_v41  ;;  %v462_v48 = vadd.f32 %v461_v23, %v429_v15  ;;  %v465_v51 = vadd.f32 %v431_v37, %v430_v36  ;;  %v630_v58 = vmul.f32 %v2879_v39, %v2879_v39  ;;  %v631_v61 = vmul.f32 %v2882_v41, %v2882_v41 }
  0x21   : > { %3576 = vst [vmem:[#allocation5_spill] sm:$0xff] %v2887_v44  ;;  %v658_v5 = vadd.f32 %v657_v32, %v624_v28  ;;  %v434_v15 = vmul.f32 %v2887_v44, %v2887_v44  ;;  %v435_v16 = vmul.f32 %v2890_v45, %v2890_v45  ;;  %v663_v23 = vadd.f32 %v662_v50, %v628_v49  ;;  %v2963_v44 = vld [vmem:[%s2703_s24 + $0xe8] sm:$0xff] }
  0x22   : > { %3577 = vst [vmem:[#allocation6_spill] sm:$0xff] %v2890_v45  ;;  %458 = vadd.xlane.f32.xlu1 %v457_v22  ;;  %v466_v6 = vadd.f32 %v465_v51, %v432_v42  ;;  %v629_v22 = vmul.f32 %v2897_v55, %v2897_v55  ;;  %v438_v28 = vmul.f32 %v2906_v62, %v2906_v62  ;;  %v2930_v42 = vld [vmem:[%s2733_s27 + $0xb0] sm:$0xff]  ;;  %v2933_v51 = vld [vmem:[%s2703_s24 + $0xb8] sm:$0xff]  ;;  %v2960_v45 = vld [vmem:[%s2703_s24 + $0xe0] sm:$0xff] }
  0x23   : > { %3578 = vst [vmem:[#allocation7_spill] sm:$0xff] %v2906_v62  ;;  %453 = vadd.xlane.f32.xlu0 %v452_v31  ;;  %v439_v31 = vmul.f32 %v2909_v4, %v2909_v4  ;;  %v632_v36 = vmul.f32 %v2912_v11, %v2912_v11  ;;  %v667_v37 = vadd.f32 %v631_v61, %v630_v58  ;;  %v2938_v62 = vld [vmem:[%s2733_s27 + $0xc0] sm:$0xff]  ;;  %v2950_v58 = vld [vmem:[%s2703_s24 + $0xc8] sm:$0xff] }
  0x24   : > { %3579 = vst [vmem:[#allocation8_spill] sm:$0xff] %v2909_v4  ;;  %v467_v32 = vadd.f32 %v466_v6, %v433_v57  ;;  %v436_v49 = vmul.f32 %v2919_v20, %v2919_v20  ;;  %v470_v50 = vadd.f32 %v435_v16, %v434_v15  ;;  %v2941_v4 = vld [vmem:[%s2733_s27 + $0xc8] sm:$0xff]  ;;  %v2944_v57 = vld [vmem:[%s2733_s27 + $0x98] sm:$0xff]  ;;  %v2947_v6 = vld [vmem:[%s2703_s24 + $0xc0] sm:$0xff]  ;;  %v664_v61 = vadd.f32 %v663_v23, %v629_v22 }
  0x25   : > { %3580 = vst [vmem:[#allocation9_spill] sm:$0xff] %v2912_v11  ;;  %463 = vadd.xlane.f32.xlu2 %v462_v48  ;;  %v659_v48 = vadd.f32 %v658_v5, %v625_v54  ;;  %v440_v54 = vmul.f32 %v2930_v42, %v2930_v42  ;;  %v475_v5 = vadd.f32 %v439_v31, %v438_v28 }
  0x26   : > { %3581 = vst [vmem:[#allocation10_spill] sm:$0xff] %v2919_v20  ;;  %v633_v15 = vmul.f32 %v2933_v51, %v2933_v51  ;;  %v668_v16 = vadd.f32 %v667_v37, %v632_v36  ;;  %v2957_v20 = vld [vmem:[%s2733_s27 + $0xb8] sm:$0xff]  ;;  %v442_v22 = vmul.f32 %v2938_v62, %v2938_v62  ;;  %v443_v23 = vmul.f32 %v2941_v4, %v2941_v4  ;;  %v2976_v37 = vld [vmem:[%s2733_s27 + $0xd0] sm:$0xff] }
  0x27   : > { %3582 = vst [vmem:[#allocation11_spill] sm:$0xff] %v2930_v42  ;;  %v437_v28 = vmul.f32 %v2944_v57, %v2944_v57  ;;  %v471_v31 = vadd.f32 %v470_v50, %v436_v49  ;;  %v635_v36 = vmul.f32 %v2950_v58, %v2950_v58  ;;  %v638_v49 = vmul.f32 %v2960_v45, %v2960_v45 }
  0x28   : > { %3583 = vst [vmem:[#allocation12_spill] sm:$0xff] %v2933_v51  ;;  %v639_v50 = vmul.f32 %v2963_v44, %v2963_v44  ;;  %v669_v42 = vadd.f32 %v668_v16, %v633_v15 }
  0x29   : > { %3584 = vst [vmem:[#allocation13_spill] sm:$0xff] %v2938_v62  ;;  %v2979_v62 = vld [vmem:[%s2703_s24 + $0xd0] sm:$0xff]  ;;  %v472_v51 = vadd.f32 %v471_v31, %v437_v28 }
  0x2a   : > { %3585 = vst [vmem:[#allocation14_spill] sm:$0xff] %v2941_v4  ;;  %468 = vadd.xlane.f32.xlu1 %v467_v32  ;;  %v634_v32 = vmul.f32 %v2947_v6, %v2947_v6  ;;  %v476_v4 = vadd.f32 %v475_v5, %v440_v54  ;;  %v2995_v54 = vld [vmem:[%s2733_s27 + $0xd8] sm:$0xff] }
  0x2b   : > { %3586 = vst [vmem:[#allocation15_spill] sm:$0xff] %v2944_v57  ;;  %660 = vadd.xlane.f32.xlu0 %v659_v48  ;;  %v441_v48 = vmul.f32 %v2957_v20, %v2957_v20  ;;  %v480_v57 = vadd.f32 %v443_v23, %v442_v22  ;;  %v2998_v5 = vld [vmem:[%s2703_s24 + $0xd8] sm:$0xff]  ;;  %v445_v23 = vmul.f32 %v2995_v54, %v2995_v54 }
  0x2c   : > { %3587 = vst [vmem:[#allocation16_spill] sm:$0xff] %v2947_v6  ;;  %v444_v6 = vmul.f32 %v2976_v37, %v2976_v37  ;;  %v3009_v22 = vld [vmem:[%s2703_s24 + $0xf8] sm:$0xff]  ;;  %v637_v31 = vmul.f32 %v2998_v5, %v2998_v5 }
  0x2d   : > { %3588 = vst [vmem:[#allocation17_spill] sm:$0xff] %v2950_v58  ;;  %665 = vadd.xlane.f32.xlu2 %v664_v61  ;;  %v2988_v58 = vld [vmem:[%s2703_s24 + $0xf0] sm:$0xff]  ;;  %v636_v61 = vmul.f32 %v2979_v62, %v2979_v62  ;;  %v477_v15 = vadd.f32 %v476_v4, %v441_v48 }
  0x2e   : > { %3589 = vst [vmem:[#allocation18_spill] sm:$0xff] %v2957_v20  ;;  %v672_v20 = vadd.f32 %v635_v36, %v634_v32  ;;  %v640_v16 = vmul.f32 %v2988_v58, %v2988_v58  ;;  %v481_v28 = vadd.f32 %v480_v57, %v444_v6  ;;  %v3020_v48 = vld [vmem:[%s2733_s27 + $0xf0] sm:$0xff] }
  0x2f   : > { %3590 = vst [vmem:[#allocation19_spill] sm:$0xff] %v2960_v45  ;;  %v3001_v45 = vld [vmem:[%s2733_s27 + $0xe0] sm:$0xff] }
  0x30   : > { %3591 = vst [vmem:[#allocation20_spill] sm:$0xff] %v2963_v44  ;;  %v3004_v44 = vld [vmem:[%s2733_s27 + $0xe8] sm:$0xff]  ;;  %v673_v32 = vadd.f32 %v672_v20, %v636_v61  ;;  %v446_v4 = vmul.f32 %v3001_v45, %v3001_v45  ;;  %v3027_v20 = vld [vmem:[%s2733_s27 + $0xf8] sm:$0xff] }
  0x31   : > { %3592 = vst [vmem:[#allocation21_spill] sm:$0xff] %v2976_v37  ;;  %v677_v37 = vadd.f32 %v639_v50, %v638_v49  ;;  %v447_v36 = vmul.f32 %v3004_v44, %v3004_v44  ;;  %v482_v50 = vadd.f32 %v481_v28, %v445_v23 }
  0x32   : > { %3593 = vst [vmem:[#allocation22_spill] sm:$0xff] %v2979_v62  ;;  %670 = vadd.xlane.f32.xlu1 %v669_v42  ;;  %v641_v42 = vmul.f32 %v3009_v22, %v3009_v22  ;;  %v674_v57 = vadd.f32 %v673_v32, %v637_v31 }
  0x33   : > { %3594 = vst [vmem:[#allocation23_spill] sm:$0xff] %v2988_v58  ;;  %473 = vadd.xlane.f32.xlu0 %v472_v51  ;;  %v678_v49 = vadd.f32 %v677_v37, %v640_v16  ;;  %v448_v51 = vmul.f32 %v3020_v48, %v3020_v48  ;;  %v485_v6 = vadd.f32 %v447_v36, %v446_v4 }
  0x34   : > { %3595 = vst [vmem:[#allocation24_spill] sm:$0xff] %v2995_v54 }
  0x35   : > { %3596 = vst [vmem:[#allocation25_spill] sm:$0xff] %v2998_v5  ;;  %478 = vadd.xlane.f32.xlu2 %v477_v15  ;;  %v679_v61 = vadd.f32 %v678_v49, %v641_v42 }
  0x36   : > { %3597 = vst [vmem:[#allocation26_spill] sm:$0xff] %v3001_v45  ;;  %v486_v45 = vadd.f32 %v485_v6, %v448_v51 }
  0x37   : > { %3598 = vst [vmem:[#allocation27_spill] sm:$0xff] %v3004_v44  ;;  %v449_v44 = vmul.f32 %v3027_v20, %v3027_v20 }
  0x38   : > { %3599 = vst [vmem:[#allocation28_spill] sm:$0xff] %v3009_v22 }
  0x39   : > { %3600 = vst [vmem:[#allocation29_spill] sm:$0xff] %v3020_v48  ;;  %v487_v15 = vadd.f32 %v486_v45, %v449_v44 }
  0x3a   : > { %3601 = vst [vmem:[#allocation30_spill] sm:$0xff] %v3027_v20  ;;  %483 = vadd.xlane.f32.xlu1 %v482_v50 }
  0x3b   : > { %675 = vadd.xlane.f32.xlu0 %v674_v57 }
  0x3d   : > { %680 = vadd.xlane.f32.xlu2 %v679_v61 }
  0x43   : > { %488 = vadd.xlane.f32.xlu0 %v487_v15 }
  0x8d   : > { %v651_v54 = vpop.xlane.xlu1 %650 }
  0x8e   : > { %v683_v37 = vadd.f32 1e-12, %v651_v54  ;;  %v646_v16 = vpop.xlane.xlu0 %645 }
  0x8f   : > { %v682_v23 = vadd.f32 1e-12, %v646_v16 }
  0x90   : > { %2580 = vrsqrt.f32 %v683_v37  ;;  %v656_v28 = vpop.xlane.xlu2 %655  ;;  %vm706_vm0 = vweird.f32 %v683_v37 }
  0x91   : > { %2582 = vrsqrt.f32 %v682_v23  ;;  %v684_v31 = vadd.f32 1e-12, %v656_v28  ;;  %vm696_vm3 = vweird.f32 %v682_v23 }
  0x93   : > { %2584 = vrsqrt.f32 %v684_v31  ;;  %vm716_vm5 = vweird.f32 %v684_v31 }
  0x95   : > { %v459_v32 = vpop.xlane.xlu1 %458 }
  0x96   : > { %v2581_v4 = vpop.eup %2580  ;;  %v3031_v36 = vadd.f32 1e-12, %v459_v32  ;;  %v454_v42 = vpop.xlane.xlu0 %453 }
  0x97   : > { %v2583_v49 = vpop.eup %2582  ;;  %v701_v50 = vmul.f32 %v2581_v4, %v683_v37  ;;  %v3033_v57 = vadd.f32 1e-12, %v454_v42  ;;  %vm707_vm1 = vweird.f32 %v2581_v4 }
  0x98   : > { %v691_v44 = vmul.f32 %v2583_v49, %v682_v23  ;;  %2586 = vrsqrt.f32 %v3031_v36  ;;  %v464_v45 = vpop.xlane.xlu2 %463  ;;  %vm697_vm2 = vweird.f32 %v2583_v49  ;;  %vm708_vm4 = vmor %vm706_vm0, %vm707_vm1  ;;  %vm514_vm9 = vweird.f32 %v3031_v36 }
  0x99   : > { %v3036_v54 = vpop.eup %2584  ;;  %v702_v51 = vmul.f32 %v2581_v4, %v701_v50  ;;  %2588 = vrsqrt.f32 %v3033_v57  ;;  %v3039_v6 = vadd.f32 1e-12, %v464_v45  ;;  %vm698_vm6 = vmor %vm696_vm3, %vm697_vm2  ;;  %vm504_vm12 = vweird.f32 %v3033_v57 }
  0x9a   : > { %v692_v61 = vmul.f32 %v2583_v49, %v691_v44  ;;  %v711_v15 = vmul.f32 %v3036_v54, %v684_v31  ;;  %vm717_vm7 = vweird.f32 %v3036_v54 }
  0x9b   : > { %v703_v16 = vmul.f32 0.5, %v702_v51  ;;  %2590 = vrsqrt.f32 %v3039_v6  ;;  %vm3076_vm8 = vmor %vm716_vm5, %vm717_vm7  ;;  %vm524_vm1 = vweird.f32 %v3039_v6 }
  0x9c   : > { %v693_v28 = vmul.f32 0.5, %v692_v61  ;;  %v712_v32 = vmul.f32 %v3036_v54, %v711_v15 }
  0x9d   : > { %v704_v42 = vsub.f32 1.5, %v703_v16  ;;  %v469_v22 = vpop.xlane.xlu1 %468 }
  0x9e   : > { %v3044_v20 = vpop.eup %2586  ;;  %v661_v48 = vpop.xlane.xlu0 %660  ;;  %v713_v50 = vmul.f32 0.5, %v712_v32  ;;  %v694_v44 = vsub.f32 1.5, %v693_v28  ;;  %v3059_v62 = vadd.f32 1e-12, %v469_v22 }
  0x9f   : > { %v3046_v58 = vpop.eup %2588  ;;  %v3048_v45 = vadd.f32 1e-12, %v661_v48  ;;  %v509_v51 = vmul.f32 %v3044_v20, %v3031_v36  ;;  %v705_v32 = vmul.f32 %v2581_v4, %v704_v42  ;;  %vm515_vm11 = vweird.f32 %v3044_v20 }
  0xa0   : > { %v499_v61 = vmul.f32 %v3046_v58, %v3033_v57  ;;  %v666_v15 = vpop.xlane.xlu2 %665  ;;  %v714_v28 = vsub.f32 1.5, %v713_v50  ;;  %v695_v41 = vmul.f32 %v2583_v49, %v694_v44  ;;  %vm505_vm10 = vweird.f32 %v3046_v58  ;;  %vm516_vm0 = vmor %vm514_vm9, %vm515_vm11 }
  0xa1   : > { %v3054_v16 = vpop.eup %2590  ;;  %2592 = vrsqrt.f32 %v3048_v45  ;;  %v3057_v5 = vadd.f32 1e-12, %v666_v15  ;;  %v510_v11 = vmul.f32 %v3044_v20, %v509_v51  ;;  %v709_v23 = vsel %vm708_vm4, %v2581_v4, %v705_v32  ;;  %vm506_vm13 = vmor %vm504_vm12, %vm505_vm10 }
  0xa2   : > { %v500_v48 = vmul.f32 %v3046_v58, %v499_v61  ;;  %v519_v15 = vmul.f32 %v3054_v16, %v3039_v6  ;;  %v699_v42 = vsel %vm698_vm6, %v2583_v49, %v695_v41  ;;  %v774_v50 = vmul.f32 %v709_v23, %v2706_v0 }
  0xa3   : > { %2594 = vrsqrt.f32 %v3057_v5  ;;  %v715_v37 = vmul.f32 %v3036_v54, %v714_v28  ;;  %v770_v51 = vmul.f32 %v699_v42, %v2724_v7  ;;  %v771_v0 = vmul.f32 %v699_v42, %v2727_v8 }
  0xa4   : > { %v501_v22 = vmul.f32 0.5, %v500_v48  ;;  %2596 = vrsqrt.f32 %v3059_v62  ;;  %v511_v48 = vmul.f32 0.5, %v510_v11  ;;  %v520_v35 = vmul.f32 %v3054_v16, %v519_v15 }
  0xa5   : > { %v671_v4 = vpop.xlane.xlu1 %670  ;;  %817 = vmatpush.xpose.msra.mxu0 %v770_v51  ;;  %v772_v7 = vmul.f32 %v699_v42, %v2736_v9  ;;  %v773_v31 = vmul.f32 %v699_v42, %v2739_v10  ;;  %v775_v28 = vmul.f32 %v709_v23, %v2709_v1  ;;  %837 = vmatpush.xpose.msra.mxu1 %v771_v0  ;;  %vm726_vm14 = vweird.f32 %v3048_v45 }
  0xa6   : > { %v474_v39 = vpop.xlane.xlu0 %473  ;;  %v502_v32 = vsub.f32 1.5, %v501_v22  ;;  %v719_v9 = vsel %vm3076_vm8, %v3036_v54, %v715_v37  ;;  %v776_v1 = vmul.f32 %v709_v23, %v2712_v2  ;;  %v777_v10 = vmul.f32 %v709_v23, %v2715_v3 }
  0xa7   : > { %v3071_v61 = vpop.eup %2592  ;;  %857 = vmatpush.xpose.msra.mxu2 %v772_v7  ;;  %877 = vmatpush.xpose.msra.mxu3 %v773_v31  ;;  %v3102_v22 = vadd.f32 1e-12, %v671_v4  ;;  %v512_v42 = vsub.f32 1.5, %v511_v48  ;;  %v521_v51 = vmul.f32 0.5, %v520_v35  ;;  %v778_v54 = vmul.f32 %v719_v9, %v2746_v13 }
  0xa8   : > { %v721_v41 = vmul.f32 %v3071_v61, %v3048_v45  ;;  %v479_v0 = vpop.xlane.xlu2 %478  ;;  %v503_v2 = vmul.f32 %v3046_v58, %v502_v32  ;;  %v779_v23 = vmul.f32 %v719_v9, %v2753_v17  ;;  %vm727_vm15 = vweird.f32 %v3071_v61 }
  0xa9   : > { %v3084_v49 = vpop.eup %2594  ;;  %897 = vmatpush.xpose.msrb.mxu0 %v774_v50  ;;  %917 = vmatpush.xpose.msrb.mxu1 %v775_v28  ;;  %v3104_v50 = vadd.f32 1e-12, %v474_v39  ;;  %2598 = vrsqrt.f32 %v3102_v22  ;;  %v513_v44 = vmul.f32 %v3044_v20, %v512_v42  ;;  %v522_v48 = vsub.f32 1.5, %v521_v51  ;;  %vm728_vm3 = vmor %vm726_vm14, %vm727_vm15 }
  0xaa   : > { %v722_v11 = vmul.f32 %v3071_v61, %v721_v41  ;;  %v731_v8 = vmul.f32 %v3084_v49, %v3057_v5  ;;  %v3095_v15 = vpop.eup %2596  ;;  %v507_v57 = vsel %vm506_vm13, %v3046_v58, %v503_v2  ;;  %v3134_v28 = vadd.f32 1e-12, %v479_v0 }
  0xab   : > { %937 = vmatpush.xpose.msrb.mxu2 %v776_v1  ;;  %957 = vmatpush.xpose.msrb.mxu3 %v777_v10  ;;  %v529_v39 = vmul.f32 %v3095_v15, %v3059_v62  ;;  %2600 = vrsqrt.f32 %v3104_v50  ;;  %v578_v4 = vmul.f32 %v507_v57, %v2788_v33  ;;  %v579_v32 = vmul.f32 %v507_v57, %v2791_v34 }
  0xac   : > { %v723_v41 = vmul.f32 0.5, %v722_v11  ;;  %v732_v35 = vmul.f32 %v3084_v49, %v731_v8  ;;  %v580_v31 = vmul.f32 %v507_v57, %v2796_v38  ;;  %v581_v58 = vmul.f32 %v507_v57, %v2804_v43 }
  0xad   : > { %v530_v17 = vmul.f32 %v3095_v15, %v529_v39  ;;  %818 = vmatmul.f32.vlgmr.msra.gmra.mxu0 %v578_v4  ;;  %838 = vmatmul.f32.vlgmr.msra.gmra.mxu1 %v579_v32  ;;  %v780_v34 = vmul.f32 %v719_v9, %v2756_v18  ;;  %v781_v38 = vmul.f32 %v719_v9, %v2759_v19  ;;  %vm525_vm2 = vweird.f32 %v3054_v16 }
  0xae   : > { %v724_v3 = vsub.f32 1.5, %v723_v41  ;;  %v676_v37 = vpop.xlane.xlu0 %675  ;;  %v733_v13 = vmul.f32 0.5, %v732_v35  ;;  %858 = vmatmul.f32.vlgmr.msra.gmra.mxu2 %v580_v31  ;;  %878 = vmatmul.f32.vlgmr.msra.gmra.mxu3 %v581_v58  ;;  %v517_v18 = vsel %vm516_vm0, %v3044_v20, %v513_v44  ;;  %v523_v19 = vmul.f32 %v3054_v16, %v522_v48  ;;  %v3173_v41 = vld [vmem:[%s308_s6] sm:$0xff]  ;;  %vm526_vm6 = vmor %vm524_vm1, %vm525_vm2 }
  0xaf   : > { %v3136_v11 = vadd.f32 1e-12, %v676_v37  ;;  %v3138_v33 = vpop.eup %2598  ;;  %977 = vmatpush.xpose.msra.mxu0 %v778_v54  ;;  %997 = vmatpush.xpose.msra.mxu1 %v779_v23  ;;  %vm736_vm4 = vweird.f32 %v3057_v5  ;;  %vm737_vm5 = vweird.f32 %v3084_v49  ;;  %v531_v1 = vmul.f32 0.5, %v530_v17 }
  0xb0   : > { %v725_v7 = vmul.f32 %v3071_v61, %v724_v3  ;;  %v741_v36 = vmul.f32 %v3138_v33, %v3102_v22  ;;  %v681_v8 = vpop.xlane.xlu2 %680  ;;  %1017 = vmatpush.xpose.msra.mxu2 %v780_v34  ;;  %1037 = vmatpush.xpose.msra.mxu3 %v781_v38  ;;  %v734_v45 = vsub.f32 1.5, %v733_v13  ;;  %v582_v42 = vmul.f32 %v517_v18, %v2770_v25  ;;  %v484_v25 = vpop.xlane.xlu1 %483  ;;  %vm738_vm7 = vmor %vm736_vm4, %vm737_vm5 }
  0xb1   : > { %v3147_v43 = vpop.eup %2600  ;;  %2602 = vrsqrt.f32 %v3136_v11  ;;  %v583_v51 = vmul.f32 %v517_v18, %v2773_v26  ;;  %v584_v0 = vmul.f32 %v517_v18, %v2776_v27  ;;  %v585_v39 = vmul.f32 %v517_v18, %v2779_v29 }
  0xb2   : > { %v729_v9 = vsel %vm728_vm3, %v3071_v61, %v725_v7  ;;  %v742_v10 = vmul.f32 %v3138_v33, %v741_v36  ;;  %2604 = vrsqrt.f32 %v3134_v28  ;;  %v539_v20 = vmul.f32 %v3147_v43, %v3104_v50 }
  0xb3   : > { %v3171_v61 = vadd.f32 1e-12, %v681_v8  ;;  %v782_v2 = vmul.f32 %v729_v9, %v2821_v52  ;;  %v783_v3 = vmul.f32 %v729_v9, %v2824_v53  ;;  %v784_v57 = vmul.f32 %v729_v9, %v2842_v63 }
  0xb4   : > { %v743_v35 = vmul.f32 0.5, %v742_v10  ;;  %v785_v54 = vmul.f32 %v729_v9, %v2864_v24  ;;  %v2652_v23 = vmov 0   ;;  %v1451_v27 = vperm.slane %v3173_v41, 0 }
  0xb5   : > { %2577 = vset.pattern.permute.xlu1 %v2652_v23  ;;  %2578 = vset.pattern.permute.xlu2 %v2652_v23  ;;  %2606 = vrsqrt.f32 %v3171_v61  ;;  %v735_v29 = vmul.f32 %v3084_v49, %v734_v45  ;;  %v532_v52 = vsub.f32 1.5, %v531_v1  ;;  %v3198_v24 = vadd.f32 1e-12, %v484_v25  ;;  %v3612_v25 = vld [vmem:[#allocation4_spill] sm:$0xff] }
  0xb6   : > { %898 = vmatmul.f32.vlgmr.msrb.gmra.mxu0 %v582_v42  ;;  %918 = vmatmul.f32.vlgmr.msrb.gmra.mxu1 %v583_v51  ;;  %v527_v6 = vsel %vm526_vm6, %v3054_v16, %v523_v19  ;;  %v744_v37 = vsub.f32 1.5, %v743_v35  ;;  %v540_v44 = vmul.f32 %v3147_v43, %v539_v20  ;;  %vm534_vm8 = vweird.f32 %v3059_v62  ;;  %v489_v38 = vpop.xlane.xlu0 %488  ;;  %v3608_v35 = vld [vmem:[#allocation2_spill] sm:$0xff] }
  0xb7   : > { %v3181_v26 = vpop.eup %2602  ;;  %938 = vmatmul.f32.vlgmr.msrb.gmra.mxu2 %v584_v0  ;;  %958 = vmatmul.f32.vlgmr.msrb.gmra.mxu3 %v585_v39  ;;  %vm535_vm9 = vweird.f32 %v3095_v15  ;;  %v1444_v5 = vrot.slane %v3173_v41, 1  ;;  %v739_v4 = vsel %vm738_vm7, %v3084_v49, %v735_v29  ;;  %v533_v32 = vmul.f32 %v3095_v15, %v532_v52  ;;  %v3613_v29 = vld [vmem:[#allocation9_spill] sm:$0xff] }
  0xb8   : > { %v751_v53 = vmul.f32 %v3181_v26, %v3136_v11  ;;  %v3192_v63 = vpop.eup %2604  ;;  %1057 = vmatpush.xpose.msrb.mxu0 %v782_v2  ;;  %1077 = vmatpush.xpose.msrb.mxu1 %v783_v3  ;;  %vm746_vm10 = vweird.f32 %v3102_v22  ;;  %vm747_vm11 = vweird.f32 %v3138_v33  ;;  %2608 = vrsqrt.f32 %v3198_v24  ;;  %vm3224_vm12 = vmor %vm534_vm8, %vm535_vm9 }
  0xb9   : > { %1097 = vmatpush.xpose.msrb.mxu2 %v784_v57  ;;  %1117 = vmatpush.xpose.msrb.mxu3 %v785_v54  ;;  %v549_v7 = vmul.f32 %v3192_v63, %v3134_v28  ;;  %v586_v31 = vmul.f32 %v527_v6, %v2801_v40  ;;  %v587_v58 = vmul.f32 %v527_v6, %v2811_v46  ;;  %v541_v49 = vmul.f32 0.5, %v540_v44  ;;  %vm3239_vm13 = vmor %vm746_vm10, %vm747_vm11 }
  0xba   : > { %v752_v48 = vmul.f32 %v3181_v26, %v751_v53  ;;  %1460 = vperm.xlu1 %2577, %v1451_v27   ;;  %2579 = vset.pattern.permute.xlu0 %v2652_v23  ;;  %v745_v13 = vmul.f32 %v3138_v33, %v744_v37  ;;  %v588_v17 = vmul.f32 %v527_v6, %v2814_v47  ;;  %v1452_v8 = vperm.slane %v1444_v5, 0  ;;  %v3614_v53 = vld [vmem:[#allocation12_spill] sm:$0xff] }
  0xbb   : > { %v3210_v16 = vpop.eup %2606  ;;  %v589_v34 = vmul.f32 %v527_v6, %v2827_v56  ;;  %v786_v40 = vmul.f32 %v739_v4, %v2834_v59  ;;  %v787_v46 = vmul.f32 %v739_v4, %v2837_v60  ;;  %v788_v56 = vmul.f32 %v739_v4, %v2869_v30 }
  0xbc   : > { %v753_v18 = vmul.f32 0.5, %v752_v48  ;;  %v761_v47 = vmul.f32 %v3210_v16, %v3171_v61  ;;  %v789_v62 = vmul.f32 %v739_v4, %v2897_v55  ;;  %v1447_v19 = vrot.slane %v3173_v41, 4  ;;  %1464 = vperm.xlu2 %2578, %v1452_v8   ;;  %v3620_v8 = vld [vmem:[#allocation17_spill] sm:$0xff] }
  0xbd   : > { %v550_v60 = vmul.f32 %v3192_v63, %v549_v7  ;;  %v3244_v9 = vadd.f32 1e-12, %v489_v38  ;;  %v537_v30 = vsel %vm3224_vm12, %v3095_v15, %v533_v32  ;;  %v542_v55 = vsub.f32 1.5, %v541_v49  ;;  %v3617_v38 = vld [vmem:[#allocation10_spill] sm:$0xff] }
  0xbe   : > { %978 = vmatmul.f32.vlgmr.msra.gmra.mxu0 %v586_v31  ;;  %998 = vmatmul.f32.vlgmr.msra.gmra.mxu1 %v587_v58  ;;  %v1455_v45 = vperm.slane %v1447_v19, 0  ;;  %v3249_v1 = vpop.eup %2608  ;;  %vm544_vm14 = vweird.f32 %v3104_v50  ;;  %vm545_vm15 = vweird.f32 %v3147_v43  ;;  %v754_v22 = vsub.f32 1.5, %v753_v18  ;;  %v3615_v31 = vld [vmem:[#allocation5_spill] sm:$0xff]  ;;  %v3618_v18 = vld [vmem:[#allocation15_spill] sm:$0xff]  ;;  %v3621_v19 = vld [vmem:[#allocation22_spill] sm:$0xff] }
  0xbf   : > { %1018 = vmatmul.f32.vlgmr.msra.gmra.mxu2 %v588_v17  ;;  %1038 = vmatmul.f32.vlgmr.msra.gmra.mxu3 %v589_v34  ;;  %vm756_vm0 = vweird.f32 %v3136_v11  ;;  %v749_v10 = vsel %vm3239_vm13, %v3138_v33, %v745_v13  ;;  %vm757_vm1 = vweird.f32 %v3181_v26  ;;  %v762_v15 = vmul.f32 %v3210_v16, %v761_v47  ;;  %vm3272_vm2 = vmor %vm544_vm14, %vm545_vm15  ;;  %v3616_v13 = vld [vmem:[#allocation6_spill] sm:$0xff] }
  0xc0   : > { %1137 = vmatpush.xpose.msra.mxu0 %v786_v40  ;;  %1157 = vmatpush.xpose.msra.mxu1 %v787_v46  ;;  %v1446_v20 = vrot.slane %v3173_v41, 3  ;;  %v551_v42 = vmul.f32 0.5, %v550_v60  ;;  %2610 = vrsqrt.f32 %v3244_v9  ;;  %v590_v51 = vmul.f32 %v537_v30, %v2849_v12  ;;  %vm758_vm3 = vmor %vm756_vm0, %vm757_vm1  ;;  %v3619_v40 = vld [vmem:[#allocation16_spill] sm:$0xff]  ;;  %v3622_v60 = vld [vmem:[#allocation25_spill] sm:$0xff] }
  0xc1   : > { %1177 = vmatpush.xpose.msra.mxu2 %v788_v56  ;;  %1197 = vmatpush.xpose.msra.mxu3 %v789_v62  ;;  %v591_v0 = vmul.f32 %v537_v30, %v2852_v14  ;;  %v543_v2 = vmul.f32 %v3147_v43, %v542_v55  ;;  %v559_v3 = vmul.f32 %v3249_v1, %v3198_v24  ;;  %v3611_v14 = vld [vmem:[#allocation3_spill] sm:$0xff]  ;;  %v1445_v6 = vrot.slane %v3173_v41, 2 }
  0xc2   : > { %1476 = vperm.xlu1 %2577, %v1455_v45   ;;  %v592_v33 = vmul.f32 %v537_v30, %v2861_v21  ;;  %v593_v39 = vmul.f32 %v537_v30, %v3608_v35  ;;  %v755_v12 = vmul.f32 %v3181_v26, %v754_v22  ;;  %v790_v54 = vmul.f32 %v749_v10, %v3611_v14  ;;  %v3627_v35 = vld [vmem:[#allocation19_spill] sm:$0xff] }
  0xc3   : > { %v791_v23 = vmul.f32 %v749_v10, %v3612_v25  ;;  %v1454_v27 = vperm.slane %v1446_v20, 0  ;;  %v763_v21 = vmul.f32 0.5, %v762_v15  ;;  %v792_v52 = vmul.f32 %v749_v10, %v3613_v29  ;;  %v3624_v20 = vld [vmem:[#allocation8_spill] sm:$0xff]  ;;  %v3631_v29 = vld [vmem:[#allocation13_spill] sm:$0xff] }
  0xc4   : > { %v793_v50 = vmul.f32 %v749_v10, %v3614_v53  ;;  %v552_v37 = vsub.f32 1.5, %v551_v42  ;;  %v547_v44 = vsel %vm3272_vm2, %v3147_v43, %v543_v2  ;;  %v560_v48 = vmul.f32 %v3249_v1, %v559_v3  ;;  %v3626_v3 = vld [vmem:[#allocation18_spill] sm:$0xff] }
  0xc5   : > { %v1453_v5 = vperm.slane %v1445_v6, 0  ;;  %vm554_vm4 = vweird.f32 %v3134_v28  ;;  %1472 = vperm.xlu2 %2578, %v1454_v27   ;;  %v1448_v32 = vrot.slane %v3173_v41, 5  ;;  %vm555_vm5 = vweird.f32 %v3192_v63  ;;  %v3632_v53 = vld [vmem:[#allocation14_spill] sm:$0xff] }
  0xc6   : > { %1058 = vmatmul.f32.vlgmr.msrb.gmra.mxu0 %v590_v51  ;;  %1078 = vmatmul.f32.vlgmr.msrb.gmra.mxu1 %v591_v0  ;;  %v3290_v4 = vpop.eup %2610  ;;  %v759_v11 = vsel %vm758_vm3, %v3181_v26, %v755_v12  ;;  %v764_v7 = vsub.f32 1.5, %v763_v21  ;;  %vm766_vm6 = vweird.f32 %v3171_v61  ;;  %v553_v43 = vmul.f32 %v3192_v63, %v552_v37  ;;  %vm556_vm8 = vmor %vm554_vm4, %vm555_vm5  ;;  %v3623_v61 = vld [vmem:[#allocation7_spill] sm:$0xff]  ;;  %v3633_v37 = vld [vmem:[#allocation21_spill] sm:$0xff] }
  0xc7   : > { %1098 = vmatmul.f32.vlgmr.msrb.gmra.mxu2 %v592_v33  ;;  %1118 = vmatmul.f32.vlgmr.msrb.gmra.mxu3 %v593_v39  ;;  %vm767_vm7 = vweird.f32 %v3210_v16  ;;  %v594_v58 = vmul.f32 %v547_v44, %v3615_v31  ;;  %v595_v49 = vmul.f32 %v547_v44, %v3616_v13  ;;  %v561_v17 = vmul.f32 0.5, %v560_v48  ;;  %v3625_v0 = vld [vmem:[#allocation11_spill] sm:$0xff]  ;;  %v3628_v39 = vld [vmem:[#allocation20_spill] sm:$0xff] }
  0xc8   : > { %1217 = vmatpush.xpose.msrb.mxu0 %v790_v54  ;;  %1237 = vmatpush.xpose.msrb.mxu1 %v791_v23  ;;  %v569_v34 = vmul.f32 %v3290_v4, %v3244_v9  ;;  %v596_v36 = vmul.f32 %v547_v44, %v3617_v38  ;;  %v597_v26 = vmul.f32 %v547_v44, %v3618_v18  ;;  %v1456_v56 = vperm.slane %v1448_v32, 0  ;;  %vm768_vm9 = vmor %vm766_vm6, %vm767_vm7  ;;  %v3629_v12 = vld [vmem:[#allocation23_spill] sm:$0xff]  ;;  %v3630_v54 = vld [vmem:[#allocation28_spill] sm:$0xff] }
  0xc9   : > { %1257 = vmatpush.xpose.msrb.mxu2 %v792_v52  ;;  %1277 = vmatpush.xpose.msrb.mxu3 %v793_v50  ;;  %v794_v46 = vmul.f32 %v759_v11, %v3619_v40  ;;  %v795_v47 = vmul.f32 %v759_v11, %v3620_v8  ;;  %v765_v62 = vmul.f32 %v3210_v16, %v764_v7  ;;  %v562_v55 = vsub.f32 1.5, %v561_v17  ;;  %v3634_v48 = vld [vmem:[#allocation24_spill] sm:$0xff]  ;;  %v1499_v8 = vld [vmem:[%s3349_s10] sm:$0xff] }
  0xca   : > { %1468 = vperm.xlu0 %2579, %v1453_v5   ;;  %v796_v59 = vmul.f32 %v759_v11, %v3621_v19  ;;  %v797_v30 = vmul.f32 %v759_v11, %v3622_v60  ;;  %v557_v28 = vsel %vm556_vm8, %v3192_v63, %v553_v43  ;;  %v570_v45 = vmul.f32 %v3290_v4, %v569_v34  ;;  %v3636_v11 = vld [vmem:[#allocation27_spill] sm:$0xff]  ;;  %v3637_v43 = vld [vmem:[#allocation29_spill] sm:$0xff] }
  0xcb   : > { %v1449_v22 = vrot.slane %v3173_v41, 6  ;;  %v769_v10 = vsel %vm768_vm9, %v3210_v16, %v765_v62  ;;  %vm564_vm10 = vweird.f32 %v3198_v24  ;;  %vm565_vm11 = vweird.f32 %v3249_v1 }
  0xcc   : > { %v598_v15 = vmul.f32 %v557_v28, %v3623_v61  ;;  %v599_v42 = vmul.f32 %v557_v28, %v3624_v20  ;;  %v563_v63 = vmul.f32 %v3249_v1, %v562_v55  ;;  %v571_v51 = vmul.f32 0.5, %v570_v45  ;;  %vm566_vm12 = vmor %vm564_vm10, %vm565_vm11 }
  0xcd   : > { %1480 = vperm.xlu2 %2578, %v1456_v56   ;;  %v600_v2 = vmul.f32 %v557_v28, %v3625_v0  ;;  %v601_v33 = vmul.f32 %v557_v28, %v3626_v3  ;;  %v798_v16 = vmul.f32 %v769_v10, %v3627_v35  ;;  %v799_v24 = vmul.f32 %v769_v10, %v3628_v39 }
  0xce   : > { %1138 = vmatmul.f32.vlgmr.msra.gmra.mxu0 %v594_v58  ;;  %1158 = vmatmul.f32.vlgmr.msra.gmra.mxu1 %v595_v49  ;;  %v1457_v57 = vperm.slane %v1449_v22, 0  ;;  %v800_v14 = vmul.f32 %v769_v10, %v3629_v12  ;;  %v801_v25 = vmul.f32 %v769_v10, %v3630_v54  ;;  %v567_v23 = vsel %vm566_vm12, %v3249_v1, %v563_v63  ;;  %v3638_v58 = vld [vmem:[#allocation30_spill] sm:$0xff]  ;;  %v1500_v10 = vld [vmem:[%s3349_s10 + $0x8] sm:$0xff] }
  0xcf   : > { %1178 = vmatmul.f32.vlgmr.msra.gmra.mxu2 %v596_v36  ;;  %1198 = vmatmul.f32.vlgmr.msra.gmra.mxu3 %v597_v26  ;;  %v572_v27 = vsub.f32 1.5, %v571_v51  ;;  %v1450_v21 = vrot.slane %v3173_v41, 7  ;;  %vm574_vm13 = vweird.f32 %v3244_v9  ;;  %vm575_vm14 = vweird.f32 %v3290_v4  ;;  %v3635_v9 = vld [vmem:[#allocation26_spill] sm:$0xff] }
  0xd0   : > { %1297 = vmatpush.xpose.msra.mxu0 %v794_v46  ;;  %1317 = vmatpush.xpose.msra.mxu1 %v795_v47  ;;  %v602_v52 = vmul.f32 %v567_v23, %v3631_v29  ;;  %v603_v50 = vmul.f32 %v567_v23, %v3632_v53  ;;  %v604_v44 = vmul.f32 %v567_v23, %v3633_v37  ;;  %vm576_vm15 = vmor %vm574_vm13, %vm575_vm14  ;;  %vm1515_vm0 = vcmask 64512  }
  0xd1   : > { %1337 = vmatpush.xpose.msra.mxu2 %v796_v59  ;;  %1357 = vmatpush.xpose.msra.mxu3 %v797_v30  ;;  %v573_v6 = vmul.f32 %v3290_v4, %v572_v27  ;;  %v605_v1 = vmul.f32 %v567_v23, %v3634_v48  ;;  %v1458_v5 = vperm.slane %v1450_v21, 0 }
  0xd3   : > { %v577_v41 = vsel %vm576_vm15, %v3290_v4, %v573_v6 }
  0xd4   : > { %v606_v32 = vmul.f32 %v577_v41, %v3635_v9  ;;  %v607_v7 = vmul.f32 %v577_v41, %v3636_v11  ;;  %v608_v31 = vmul.f32 %v577_v41, %v3637_v43  ;;  %v609_v13 = vmul.f32 %v577_v41, %v3638_v58  ;;  %v1503_v11 = vld [vmem:[%s3349_s10 + $0x20] sm:$0xff] }
  0xd5   : > { %1484 = vperm.xlu2 %2578, %v1457_v57  }
  0xd6   : > { %1218 = vmatmul.f32.vlgmr.msrb.gmra.mxu0 %v598_v15  ;;  %1238 = vmatmul.f32.vlgmr.msrb.gmra.mxu1 %v599_v42 }
  0xd7   : > { %1258 = vmatmul.f32.vlgmr.msrb.gmra.mxu2 %v600_v2  ;;  %1278 = vmatmul.f32.vlgmr.msrb.gmra.mxu3 %v601_v33 }
  0xd8   : > { %1377 = vmatpush.xpose.msrb.mxu0 %v798_v16  ;;  %1397 = vmatpush.xpose.msrb.mxu1 %v799_v24  ;;  %v1501_v16 = vld [vmem:[%s3349_s10 + $0x10] sm:$0xff] }
  0xd9   : > { %1417 = vmatpush.xpose.msrb.mxu2 %v800_v14  ;;  %1437 = vmatpush.xpose.msrb.mxu3 %v801_v25 }
  0xdd   : > { %1488 = vperm.xlu2 %2578, %v1458_v5  }
  0xde   : > { %1298 = vmatmul.f32.vlgmr.msra.gmra.mxu0 %v602_v52  ;;  %1318 = vmatmul.f32.vlgmr.msra.gmra.mxu1 %v603_v50  ;;  %v1502_v52 = vld [vmem:[%s3349_s10 + $0x18] sm:$0xff] }
  0xdf   : > { %1338 = vmatmul.f32.vlgmr.msra.gmra.mxu2 %v604_v44  ;;  %1358 = vmatmul.f32.vlgmr.msra.gmra.mxu3 %v605_v1 }
  0xe6   : > { %1378 = vmatmul.f32.vlgmr.msrb.gmra.mxu0 %v606_v32  ;;  %1398 = vmatmul.f32.vlgmr.msrb.gmra.mxu1 %v607_v7 }
  0xe7   : > { %1418 = vmatmul.f32.vlgmr.msrb.gmra.mxu2 %v608_v31  ;;  %1438 = vmatmul.f32.vlgmr.msrb.gmra.mxu3 %v609_v13 }
 0x116   : > { %v1465_v22 = vpop.permute.xlu2 %1464 }
 0x11f   : > { %v1473_v29 = vpop.permute.xlu2 %1472 }
 0x127   : > { %v1481_v43 = vpop.permute.xlu2 %1480 }
 0x12a   : > { %v819_v49 = vpop.f32.mrf.mxu0  ;;  %v839_v17 = vpop.f32.mrf.mxu1 }
 0x12b   : > { %v840_v34 = vadd.f32 %v839_v17, %v819_v49 }
 0x12c   : > { %v1461_v46 = vpop.permute.xlu1 %1460 }
 0x131   : > { %v859_v38 = vpop.f32.mrf.mxu2  ;;  %v879_v36 = vpop.f32.mrf.mxu3 }
 0x132   : > { %v860_v4 = vadd.f32 %v859_v38, %v840_v34 }
 0x133   : > { %v899_v18 = vpop.f32.mrf.mxu0  ;;  %v919_v26 = vpop.f32.mrf.mxu1 }
 0x134   : > { %v880_v40 = vadd.f32 %v879_v36, %v860_v4  ;;  %v920_v56 = vadd.f32 %v919_v26, %v899_v18  ;;  %v1477_v32 = vpop.permute.xlu1 %1476  ;;  %v1504_v18 = vld [vmem:[%s3349_s10 + $0x28] sm:$0xff] }
 0x136   : > { %v1491_v47 = vmul.f32 %v1461_v46, %v880_v40 }
 0x138   : > { %v3352_v62 = vadd.f32 %v1499_v8, %v1491_v47 }
 0x13a   : > { %v939_v19 = vpop.f32.mrf.mxu2  ;;  %v959_v59 = vpop.f32.mrf.mxu3  ;;  %v1516_v55 = vsel %vm1515_vm0, %v3352_v62, -inf }
 0x13b   : > { %v940_v60 = vadd.f32 %v939_v19, %v920_v56  ;;  %v979_v30 = vpop.f32.mrf.mxu0  ;;  %v999_v28 = vpop.f32.mrf.mxu1  ;;  %1517 = vmax.xlane.f32.xlu1 %v1516_v55  ;;  %v1505_v55 = vld [vmem:[%s3349_s10 + $0x30] sm:$0xff] }
 0x13c   : > { %v1000_v15 = vadd.f32 %v999_v28, %v979_v30  ;;  %v1469_v33 = vpop.permute.xlu0 %1468 }
 0x13d   : > { %v960_v45 = vadd.f32 %v959_v59, %v940_v60  ;;  %v1485_v59 = vpop.permute.xlu2 %1484 }
 0x13f   : > { %v1492_v61 = vmul.f32 %v1465_v22, %v960_v45 }
 0x141   : > { %v3357_v20 = vadd.f32 %v1500_v10, %v1492_v61 }
 0x142   : > { %v1019_v42 = vpop.f32.mrf.mxu2  ;;  %v1039_v63 = vpop.f32.mrf.mxu3 }
 0x143   : > { %v1020_v51 = vadd.f32 %v1019_v42, %v1000_v15  ;;  %v1519_v0 = vsel %vm1515_vm0, %v3357_v20, -inf  ;;  %v1059_v2 = vpop.f32.mrf.mxu0  ;;  %v1079_v3 = vpop.f32.mrf.mxu1 }
 0x144   : > { %1520 = vmax.xlane.f32.xlu0 %v1519_v0  ;;  %v1080_v24 = vadd.f32 %v1079_v3, %v1059_v2  ;;  %v1506_v2 = vld [vmem:[%s3349_s10 + $0x38] sm:$0xff] }
 0x145   : > { %v1040_v35 = vadd.f32 %v1039_v63, %v1020_v51  ;;  %v1489_v0 = vpop.permute.xlu2 %1488 }
 0x147   : > { %v1493_v39 = vmul.f32 %v1469_v33, %v1040_v35 }
 0x149   : > { %v3362_v57 = vadd.f32 %v1501_v16, %v1493_v39 }
 0x14a   : > { %v1099_v12 = vpop.f32.mrf.mxu2  ;;  %v1119_v14 = vpop.f32.mrf.mxu3 }
 0x14b   : > { %v1100_v54 = vadd.f32 %v1099_v12, %v1080_v24  ;;  %v1139_v25 = vpop.f32.mrf.mxu0  ;;  %v1159_v23 = vpop.f32.mrf.mxu1  ;;  %v1522_v27 = vsel %vm1515_vm0, %v3362_v57, -inf }
 0x14c   : > { %1523 = vmax.xlane.f32.xlu2 %v1522_v27  ;;  %v1160_v50 = vadd.f32 %v1159_v23, %v1139_v25 }
 0x14d   : > { %v1120_v21 = vadd.f32 %v1119_v14, %v1100_v54 }
 0x14f   : > { %v1494_v53 = vmul.f32 %v1473_v29, %v1120_v21 }
 0x151   : > { %v3367_v6 = vadd.f32 %v1502_v52, %v1494_v53 }
 0x152   : > { %v1179_v37 = vpop.f32.mrf.mxu2  ;;  %v1199_v44 = vpop.f32.mrf.mxu3 }
 0x153   : > { %v1180_v48 = vadd.f32 %v1179_v37, %v1160_v50  ;;  %v1525_v1 = vsel %vm1515_vm0, %v3367_v6, -inf  ;;  %v1219_v5 = vpop.f32.mrf.mxu0  ;;  %v1239_v41 = vpop.f32.mrf.mxu1 }
 0x154   : > { %1526 = vmax.xlane.f32.xlu1 %v1525_v1  ;;  %v1240_v31 = vadd.f32 %v1239_v41, %v1219_v5 }
 0x155   : > { %v1200_v9 = vadd.f32 %v1199_v44, %v1180_v48 }
 0x157   : > { %v1495_v7 = vmul.f32 %v1477_v32, %v1200_v9 }
 0x159   : > { %v3372_v58 = vadd.f32 %v1503_v11, %v1495_v7 }
 0x15a   : > { %v1259_v13 = vpop.f32.mrf.mxu2  ;;  %v1279_v49 = vpop.f32.mrf.mxu3 }
 0x15b   : > { %v1260_v17 = vadd.f32 %v1259_v13, %v1240_v31  ;;  %v1528_v34 = vsel %vm1515_vm0, %v3372_v58, -inf  ;;  %v1299_v38 = vpop.f32.mrf.mxu0  ;;  %v1319_v36 = vpop.f32.mrf.mxu1 }
 0x15c   : > { %1529 = vmax.xlane.f32.xlu1 %v1528_v34  ;;  %v1320_v40 = vadd.f32 %v1319_v36, %v1299_v38 }
 0x15d   : > { %v1280_v4 = vadd.f32 %v1279_v49, %v1260_v17 }
 0x15f   : > { %v1496_v26 = vmul.f32 %v1481_v43, %v1280_v4 }
 0x161   : > { %v1512_v46 = vadd.f32 %v1504_v18, %v1496_v26 }
 0x162   : > { %v1339_v8 = vpop.f32.mrf.mxu2  ;;  %v1359_v47 = vpop.f32.mrf.mxu3 }
 0x163   : > { %v1340_v56 = vadd.f32 %v1339_v8, %v1320_v40  ;;  %v1531_v19 = vsel %vm1515_vm0, %v1512_v46, -inf  ;;  %v1379_v30 = vpop.f32.mrf.mxu0  ;;  %v1399_v28 = vpop.f32.mrf.mxu1  ;;  %v388_v40 = vld [vmem:[%s3423_s13 + $0x10] sm:$0xff]  ;;  %v386_v8 = vld [vmem:[%s3423_s13] sm:$0xff] }
 0x164   : > { %1532 = vmax.xlane.f32.xlu0 %v1531_v19  ;;  %v1400_v22 = vadd.f32 %v1399_v28, %v1379_v30  ;;  %1766 = vmatpush.msra.mxu2 %v388_v40  ;;  %v392_v19 = vld [vmem:[%s3423_s13 + $0x30] sm:$0xff]  ;;  %v391_v30 = vld [vmem:[%s3423_s13 + $0x28] sm:$0xff] }
 0x165   : > { %v1360_v60 = vadd.f32 %v1359_v47, %v1340_v56  ;;  %v387_v47 = vld [vmem:[%s3423_s13 + $0x8] sm:$0xff]  ;;  %1726 = vmatpush.msra.mxu0 %v386_v8  ;;  %v404_v40 = vld [vmem:[%s3423_s13 + $0x90] sm:$0xff] }
 0x166   : > { %1746 = vmatpush.msra.mxu1 %v387_v47  ;;  %1849 = vmatpush.msrb.mxu2 %v392_v19  ;;  %v403_v19 = vld [vmem:[%s3423_s13 + $0x88] sm:$0xff] }
 0x167   : > { %v1497_v45 = vmul.f32 %v1485_v59, %v1360_v60  ;;  %v393_v59 = vld [vmem:[%s3423_s13 + $0x38] sm:$0xff]  ;;  %v390_v60 = vld [vmem:[%s3423_s13 + $0x20] sm:$0xff] }
 0x168   : > { %1809 = vmatpush.msrb.mxu0 %v390_v60  ;;  %1829 = vmatpush.msrb.mxu1 %v391_v30 }
 0x169   : > { %v1513_v10 = vadd.f32 %v1505_v55, %v1497_v45 }
 0x16a   : > { %v1419_v61 = vpop.f32.mrf.mxu2  ;;  %v1439_v63 = vpop.f32.mrf.mxu3 }
 0x16b   : > { %v1420_v15 = vadd.f32 %v1419_v61, %v1400_v22  ;;  %v1534_v42 = vsel %vm1515_vm0, %v1513_v10, -inf }
 0x16c   : > { %1535 = vmax.xlane.f32.xlu1 %v1534_v42 }
 0x16d   : > { %v1440_v51 = vadd.f32 %v1439_v63, %v1420_v15 }
 0x16f   : > { %v1498_v3 = vmul.f32 %v1489_v0, %v1440_v51 }
 0x171   : > { %v1514_v33 = vadd.f32 %v1506_v2, %v1498_v3 }
 0x173   : > { %v1537_v35 = vsel %vm1515_vm0, %v1514_v33, -inf }
 0x174   : > { %1538 = vmax.xlane.f32.xlu0 %v1537_v35 }
 0x1ae   : > { %v1518_v16 = vpop.xlane.xlu1 %1517 }
 0x1af   : > { %v1540_v39 = vsub.f32 %v3352_v62, %v1518_v16 }
 0x1b1   : > { %v1548_v24 = vmul.f32 1.442695, %v1540_v39 }
 0x1b3   : > { %2612 = vpow2.f32 %v1548_v24  ;;  %v396_v24 = vld [vmem:[%s3423_s13 + $0x50] sm:$0xff] }
 0x1b7   : > { %v1521_v12 = vpop.xlane.xlu0 %1520 }
 0x1b8   : > { %v1541_v14 = vsub.f32 %v3357_v20, %v1521_v12  ;;  %v397_v12 = vld [vmem:[%s3423_s13 + $0x58] sm:$0xff] }
 0x1b9   : > { %v3384_v54 = vpop.eup %2612 }
 0x1ba   : > { %v1550_v25 = vmul.f32 1.442695, %v1541_v14  ;;  %v1564_v23 = vsel %vm1515_vm0, %v3384_v54, 0.0 }
 0x1bb   : > { %1565 = vadd.xlane.f32.xlu2 %v1564_v23  ;;  %v394_v23 = vld [vmem:[%s3423_s13 + $0x40] sm:$0xff] }
 0x1bc   : > { %2614 = vpow2.f32 %v1550_v25 }
 0x1bf   : > { %v1524_v27 = vpop.xlane.xlu2 %1523 }
 0x1c0   : > { %v1542_v21 = vsub.f32 %v3362_v57, %v1524_v27  ;;  %v395_v27 = vld [vmem:[%s3423_s13 + $0x48] sm:$0xff] }
 0x1c2   : > { %v3389_v29 = vpop.eup %2614  ;;  %v1552_v52 = vmul.f32 1.442695, %v1542_v21 }
 0x1c3   : > { %v1567_v62 = vsel %vm1515_vm0, %v3389_v29, 0.0 }
 0x1c4   : > { %2616 = vpow2.f32 %v1552_v52  ;;  %1568 = vadd.xlane.f32.xlu1 %v1567_v62 }
 0x1c7   : > { %v1527_v20 = vpop.xlane.xlu1 %1526 }
 0x1c8   : > { %v1543_v53 = vsub.f32 %v3367_v6, %v1527_v20 }
 0x1ca   : > { %v3394_v50 = vpop.eup %2616  ;;  %v1554_v37 = vmul.f32 1.442695, %v1543_v53 }
 0x1cb   : > { %v1570_v44 = vsel %vm1515_vm0, %v3394_v50, 0.0 }
 0x1cc   : > { %2618 = vpow2.f32 %v1554_v37  ;;  %1571 = vadd.xlane.f32.xlu2 %v1570_v44 }
 0x1cf   : > { %v1530_v57 = vpop.xlane.xlu1 %1529 }
 0x1d0   : > { %v1544_v48 = vsub.f32 %v3372_v58, %v1530_v57 }
 0x1d2   : > { %v3399_v1 = vpop.eup %2618  ;;  %v1556_v5 = vmul.f32 1.442695, %v1544_v48 }
 0x1d3   : > { %v1573_v41 = vsel %vm1515_vm0, %v3399_v1, 0.0 }
 0x1d4   : > { %2620 = vpow2.f32 %v1556_v5  ;;  %1574 = vadd.xlane.f32.xlu0 %v1573_v41  ;;  %v400_v5 = vld [vmem:[%s3423_s13 + $0x70] sm:$0xff]  ;;  %v401_v41 = vld [vmem:[%s3423_s13 + $0x78] sm:$0xff] }
 0x1d7   : > { %v1533_v6 = vpop.xlane.xlu0 %1532 }
 0x1d8   : > { %v1545_v9 = vsub.f32 %v1512_v46, %v1533_v6  ;;  %v389_v46 = vld [vmem:[%s3423_s13 + $0x18] sm:$0xff] }
 0x1d9   : > { %1786 = vmatpush.msra.mxu3 %v389_v46  ;;  %v405_v46 = vld [vmem:[%s3423_s13 + $0x98] sm:$0xff] }
 0x1da   : > { %v3403_v32 = vpop.eup %2620  ;;  %v1558_v11 = vmul.f32 1.442695, %v1545_v9 }
 0x1db   : > { %v1576_v7 = vsel %vm1515_vm0, %v3403_v32, 0.0  ;;  %1869 = vmatpush.msrb.mxu3 %v393_v59 }
 0x1dc   : > { %2622 = vpow2.f32 %v1558_v11  ;;  %1577 = vadd.xlane.f32.xlu1 %v1576_v7  ;;  %v398_v11 = vld [vmem:[%s3423_s13 + $0x60] sm:$0xff]  ;;  %v399_v7 = vld [vmem:[%s3423_s13 + $0x68] sm:$0xff] }
 0x1df   : > { %v1536_v43 = vpop.xlane.xlu1 %1535 }
 0x1e0   : > { %v1546_v31 = vsub.f32 %v1513_v10, %v1536_v43 }
 0x1e2   : > { %v3407_v58 = vpop.eup %2622  ;;  %v1560_v13 = vmul.f32 1.442695, %v1546_v31 }
 0x1e3   : > { %v1579_v49 = vsel %vm1515_vm0, %v3407_v58, 0.0 }
 0x1e4   : > { %2624 = vpow2.f32 %v1560_v13  ;;  %1580 = vadd.xlane.f32.xlu2 %v1579_v49 }
 0x1e7   : > { %v1539_v17 = vpop.xlane.xlu0 %1538 }
 0x1e8   : > { %v1547_v34 = vsub.f32 %v1514_v33, %v1539_v17 }
 0x1ea   : > { %v3411_v38 = vpop.eup %2624  ;;  %v1562_v36 = vmul.f32 1.442695, %v1547_v34 }
 0x1eb   : > { %v1582_v4 = vsel %vm1515_vm0, %v3411_v38, 0.0 }
 0x1ec   : > { %2626 = vpow2.f32 %v1562_v36  ;;  %1583 = vadd.xlane.f32.xlu0 %v1582_v4 }
 0x1f2   : > { %v3415_v18 = vpop.eup %2626 }
 0x1f3   : > { %v1585_v26 = vsel %vm1515_vm0, %v3415_v18, 0.0 }
 0x1f4   : > { %1586 = vadd.xlane.f32.xlu1 %v1585_v26 }
 0x22e   : > { %v1566_v56 = vpop.xlane.xlu2 %1565 }
 0x22f   : > { %2628 = vrcp.f32 %v1566_v56  ;;  %v1599_v10 = vand.u32 2147483648, %v1566_v56  ;;  %v1597_v15 = vand.u32 2147483647, %v1566_v56  ;;  %vm1593_vm2 = vweird.f32 %v1566_v56 }
 0x231   : > { %v1600_v51 = vor.u32 1.1754944e-38, %v1599_v10  ;;  %vm1598_vm4 = vcmp.eq.f32.partialorder %v1597_v15, 8.507059e+37  ;;  %v408_v15 = vld [vmem:[%s3423_s13 + $0xb0] sm:$0xff] }
 0x235   : > { %v2629_v28 = vpop.eup %2628 }
 0x236   : > { %v1589_v55 = vmul.f32 %v2629_v28, %v1566_v56  ;;  %vm1594_vm1 = vweird.f32 %v2629_v28  ;;  %v402_v56 = vld [vmem:[%s3423_s13 + $0x80] sm:$0xff] }
 0x237   : > { %v1569_v45 = vpop.xlane.xlu1 %1568  ;;  %vm1595_vm3 = vmor %vm1593_vm2, %vm1594_vm1 }
 0x238   : > { %2630 = vrcp.f32 %v1569_v45  ;;  %v1590_v22 = vsub.f32 1.0, %v1589_v55  ;;  %v1613_v39 = vand.u32 2147483648, %v1569_v45  ;;  %v1611_v25 = vand.u32 2147483647, %v1569_v45 }
 0x239   : > { %vm1607_vm6 = vweird.f32 %v1569_v45 }
 0x23a   : > { %v1591_v61 = vmul.f32 %v2629_v28, %v1590_v22  ;;  %v1614_v52 = vor.u32 1.1754944e-38, %v1613_v39  ;;  %vm1612_vm8 = vcmp.eq.f32.partialorder %v1611_v25, 8.507059e+37 }
 0x23c   : > { %v1592_v42 = vadd.f32 %v2629_v28, %v1591_v61 }
 0x23e   : > { %v2631_v63 = vpop.eup %2630  ;;  %v1596_v0 = vsel %vm1595_vm3, %v2629_v28, %v1592_v42  ;;  %v409_v42 = vld [vmem:[%s3423_s13 + $0xb8] sm:$0xff] }
 0x23f   : > { %v1603_v2 = vmul.f32 %v2631_v63, %v1569_v45  ;;  %v1572_v3 = vpop.xlane.xlu2 %1571  ;;  %v1601_v33 = vsel %vm1598_vm4, %v1600_v51, %v1596_v0  ;;  %vm1608_vm5 = vweird.f32 %v2631_v63  ;;  %v406_v0 = vld [vmem:[%s3423_s13 + $0xa0] sm:$0xff] }
 0x240   : > { %2632 = vrcp.f32 %v1572_v3  ;;  %v1700_v16 = vmul.f32 %v3384_v54, %v1601_v33  ;;  %vm1609_vm7 = vmor %vm1607_vm6, %vm1608_vm5  ;;  %v1627_v48 = vand.u32 2147483648, %v1572_v3  ;;  %v1625_v9 = vand.u32 2147483647, %v1572_v3 }
 0x241   : > { %v1604_v35 = vsub.f32 1.0, %v1603_v2  ;;  %vm1621_vm10 = vweird.f32 %v1572_v3  ;;  %v407_v2 = vld [vmem:[%s3423_s13 + $0xa8] sm:$0xff] }
 0x242   : > { %2530 = vmatmul.msk.f32.vlgmr.msra.gmra.mxu0 %vm1515_vm0, %v1700_v16  ;;  %2531 = vmatmul.msk.f32.vlgmr.msra.gmra.mxu1 %vm1515_vm0, %v1700_v16  ;;  %v1628_v31 = vor.u32 1.1754944e-38, %v1627_v48  ;;  %vm1626_vm12 = vcmp.eq.f32.partialorder %v1625_v9, 8.507059e+37  ;;  %v416_v9 = vld [vmem:[%s3423_s13 + $0xf0] sm:$0xff] }
 0x243   : > { %v1605_v14 = vmul.f32 %v2631_v63, %v1604_v35  ;;  %2532 = vmatmul.msk.f32.vlgmr.msra.gmra.mxu2 %vm1515_vm0, %v1700_v16  ;;  %2533 = vmatmul.msk.f32.vlgmr.msra.gmra.mxu3 %vm1515_vm0, %v1700_v16 }
 0x244   : > { %1932 = vmatpush.msra.mxu2 %v396_v24  ;;  %1952 = vmatpush.msra.mxu3 %v397_v12 }
 0x245   : > { %v1606_v21 = vadd.f32 %v2631_v63, %v1605_v14  ;;  %1892 = vmatpush.msra.mxu0 %v394_v23  ;;  %1912 = vmatpush.msra.mxu1 %v395_v27  ;;  %v412_v23 = vld [vmem:[%s3423_s13 + $0xd0] sm:$0xff]  ;;  %v413_v27 = vld [vmem:[%s3423_s13 + $0xd8] sm:$0xff] }
 0x246   : > { %v2633_v54 = vpop.eup %2632 }
 0x247   : > { %v1610_v62 = vsel %vm1609_vm7, %v2631_v63, %v1606_v21  ;;  %v1617_v20 = vmul.f32 %v2633_v54, %v1572_v3  ;;  %v1575_v53 = vpop.xlane.xlu0 %1574  ;;  %vm1622_vm9 = vweird.f32 %v2633_v54 }
 0x248   : > { %v1615_v37 = vsel %vm1612_vm8, %v1614_v52, %v1610_v62  ;;  %2634 = vrcp.f32 %v1575_v53  ;;  %vm1623_vm11 = vmor %vm1621_vm10, %vm1622_vm9  ;;  %v1641_v26 = vand.u32 2147483648, %v1575_v53  ;;  %v1639_v47 = vand.u32 2147483647, %v1575_v53  ;;  %v410_v52 = vld [vmem:[%s3423_s13 + $0xc0] sm:$0xff]  ;;  %v411_v62 = vld [vmem:[%s3423_s13 + $0xc8] sm:$0xff] }
 0x249   : > { %v1618_v44 = vsub.f32 1.0, %v1617_v20  ;;  %v1701_v57 = vmul.f32 %v3389_v29, %v1615_v37  ;;  %vm1635_vm14 = vweird.f32 %v1575_v53 }
 0x24a   : > { %v1642_v60 = vor.u32 1.1754944e-38, %v1641_v26  ;;  %vm1640_vm1 = vcmp.eq.f32.partialorder %v1639_v47, 8.507059e+37 }
 0x24b   : > { %v1619_v6 = vmul.f32 %v2633_v54, %v1618_v44  ;;  %2534 = vmatmul.msk.f32.vlgmr.msrb.gmra.mxu0 %vm1515_vm0, %v1701_v57  ;;  %2535 = vmatmul.msk.f32.vlgmr.msrb.gmra.mxu1 %vm1515_vm0, %v1701_v57 }
 0x24c   : > { %2536 = vmatmul.msk.f32.vlgmr.msrb.gmra.mxu2 %vm1515_vm0, %v1701_v57  ;;  %2537 = vmatmul.msk.f32.vlgmr.msrb.gmra.mxu3 %vm1515_vm0, %v1701_v57 }
 0x24d   : > { %v1620_v43 = vadd.f32 %v2633_v54, %v1619_v6  ;;  %2015 = vmatpush.msrb.mxu2 %v400_v5  ;;  %2035 = vmatpush.msrb.mxu3 %v401_v41 }
 0x24e   : > { %v2635_v29 = vpop.eup %2634  ;;  %1975 = vmatpush.msrb.mxu0 %v398_v11  ;;  %1995 = vmatpush.msrb.mxu1 %v399_v7  ;;  %v417_v11 = vld [vmem:[%s3423_s13 + $0xf8] sm:$0xff] }
 0x24f   : > { %v1624_v13 = vsel %vm1623_vm11, %v2633_v54, %v1620_v43  ;;  %v1631_v49 = vmul.f32 %v2635_v29, %v1575_v53  ;;  %v1578_v17 = vpop.xlane.xlu1 %1577  ;;  %vm1636_vm13 = vweird.f32 %v2635_v29 }
 0x250   : > { %v1629_v34 = vsel %vm1626_vm12, %v1628_v31, %v1624_v13  ;;  %2636 = vrcp.f32 %v1578_v17  ;;  %vm1637_vm15 = vmor %vm1635_vm14, %vm1636_vm13  ;;  %v1655_v61 = vand.u32 2147483648, %v1578_v17  ;;  %v1653_v51 = vand.u32 2147483647, %v1578_v17  ;;  %v415_v31 = vld [vmem:[%s3423_s13 + $0xe8] sm:$0xff] }
 0x251   : > { %v1632_v36 = vsub.f32 1.0, %v1631_v49  ;;  %v1702_v4 = vmul.f32 %v3394_v50, %v1629_v34  ;;  %vm1649_vm3 = vweird.f32 %v1578_v17 }
 0x252   : > { %v1656_v33 = vor.u32 1.1754944e-38, %v1655_v61  ;;  %vm1654_vm5 = vcmp.eq.f32.partialorder %v1653_v51, 8.507059e+37 }
 0x253   : > { %v1633_v8 = vmul.f32 %v2635_v29, %v1632_v36  ;;  %2538 = vmatmul.msk.f32.vlgmr.msra.gmra.mxu0 %vm1515_vm0, %v1702_v4  ;;  %2539 = vmatmul.msk.f32.vlgmr.msra.gmra.mxu1 %vm1515_vm0, %v1702_v4 }
 0x254   : > { %2540 = vmatmul.msk.f32.vlgmr.msra.gmra.mxu2 %vm1515_vm0, %v1702_v4  ;;  %2541 = vmatmul.msk.f32.vlgmr.msra.gmra.mxu3 %vm1515_vm0, %v1702_v4 }
 0x255   : > { %v1634_v59 = vadd.f32 %v2635_v29, %v1633_v8  ;;  %2098 = vmatpush.msra.mxu2 %v404_v40  ;;  %2118 = vmatpush.msra.mxu3 %v405_v46 }
 0x256   : > { %v2637_v50 = vpop.eup %2636  ;;  %2058 = vmatpush.msra.mxu0 %v402_v56  ;;  %2078 = vmatpush.msra.mxu1 %v403_v19 }
 0x257   : > { %v1638_v30 = vsel %vm1637_vm15, %v2635_v29, %v1634_v59  ;;  %v1645_v28 = vmul.f32 %v2637_v50, %v1578_v17  ;;  %v1581_v55 = vpop.xlane.xlu2 %1580  ;;  %vm1650_vm2 = vweird.f32 %v2637_v50  ;;  %v414_v29 = vld [vmem:[%s3423_s13 + $0xe0] sm:$0xff] }
 0x258   : > { %v1643_v45 = vsel %vm1640_vm1, %v1642_v60, %v1638_v30  ;;  %2638 = vrcp.f32 %v1581_v55  ;;  %vm1651_vm4 = vmor %vm1649_vm3, %vm1650_vm2  ;;  %v1669_v25 = vand.u32 2147483648, %v1581_v55  ;;  %v1667_v54 = vand.u32 2147483647, %v1581_v55 }
 0x259   : > { %v1646_v22 = vsub.f32 1.0, %v1645_v28  ;;  %v1703_v10 = vmul.f32 %v3399_v1, %v1643_v45  ;;  %vm1663_vm7 = vweird.f32 %v1581_v55 }
 0x25a   : > { %v1670_v53 = vor.u32 1.1754944e-38, %v1669_v25  ;;  %vm1668_vm9 = vcmp.eq.f32.partialorder %v1667_v54, 8.507059e+37 }
 0x25b   : > { %v1647_v63 = vmul.f32 %v2637_v50, %v1646_v22  ;;  %2542 = vmatmul.msk.f32.vlgmr.msrb.gmra.mxu0 %vm1515_vm0, %v1703_v10  ;;  %2543 = vmatmul.msk.f32.vlgmr.msrb.gmra.mxu1 %vm1515_vm0, %v1703_v10 }
 0x25c   : > { %2544 = vmatmul.msk.f32.vlgmr.msrb.gmra.mxu2 %vm1515_vm0, %v1703_v10  ;;  %2545 = vmatmul.msk.f32.vlgmr.msrb.gmra.mxu3 %vm1515_vm0, %v1703_v10 }
 0x25d   : > { %v1648_v3 = vadd.f32 %v2637_v50, %v1647_v63  ;;  %2181 = vmatpush.msrb.mxu2 %v408_v15  ;;  %2201 = vmatpush.msrb.mxu3 %v409_v42 }
 0x25e   : > { %v2639_v1 = vpop.eup %2638  ;;  %2141 = vmatpush.msrb.mxu0 %v406_v0  ;;  %2161 = vmatpush.msrb.mxu1 %v407_v2 }
 0x25f   : > { %v1652_v35 = vsel %vm1651_vm4, %v2637_v50, %v1648_v3  ;;  %v1659_v16 = vmul.f32 %v2639_v1, %v1581_v55  ;;  %v1584_v39 = vpop.xlane.xlu0 %1583  ;;  %vm1664_vm6 = vweird.f32 %v2639_v1 }
 0x260   : > { %v1657_v24 = vsel %vm1654_vm5, %v1656_v33, %v1652_v35  ;;  %2640 = vrcp.f32 %v1584_v39  ;;  %vm1665_vm8 = vmor %vm1663_vm7, %vm1664_vm6  ;;  %v1683_v6 = vand.u32 2147483648, %v1584_v39  ;;  %v1681_v43 = vand.u32 2147483647, %v1584_v39 }
 0x261   : > { %v1660_v12 = vsub.f32 1.0, %v1659_v16  ;;  %v1704_v14 = vmul.f32 %v3403_v32, %v1657_v24  ;;  %vm1677_vm11 = vweird.f32 %v1584_v39 }
 0x262   : > { %v1684_v49 = vor.u32 1.1754944e-38, %v1683_v6  ;;  %vm1682_vm13 = vcmp.eq.f32.partialorder %v1681_v43, 8.507059e+37 }
 0x263   : > { %v1661_v21 = vmul.f32 %v2639_v1, %v1660_v12  ;;  %2546 = vmatmul.msk.f32.vlgmr.msra.gmra.mxu0 %vm1515_vm0, %v1704_v14  ;;  %2547 = vmatmul.msk.f32.vlgmr.msra.gmra.mxu1 %vm1515_vm0, %v1704_v14 }
 0x264   : > { %2548 = vmatmul.msk.f32.vlgmr.msra.gmra.mxu2 %vm1515_vm0, %v1704_v14  ;;  %2549 = vmatmul.msk.f32.vlgmr.msra.gmra.mxu3 %vm1515_vm0, %v1704_v14 }
 0x265   : > { %v1662_v20 = vadd.f32 %v2639_v1, %v1661_v21  ;;  %2264 = vmatpush.msra.mxu2 %v412_v23  ;;  %2284 = vmatpush.msra.mxu3 %v413_v27 }
 0x266   : > { %v2641_v32 = vpop.eup %2640  ;;  %2224 = vmatpush.msra.mxu0 %v410_v52  ;;  %2244 = vmatpush.msra.mxu1 %v411_v62 }
 0x267   : > { %v1666_v37 = vsel %vm1665_vm8, %v2639_v1, %v1662_v20  ;;  %v1673_v44 = vmul.f32 %v2641_v32, %v1584_v39  ;;  %v1587_v57 = vpop.xlane.xlu1 %1586  ;;  %vm1678_vm10 = vweird.f32 %v2641_v32 }
 0x268   : > { %v1671_v48 = vsel %vm1668_vm9, %v1670_v53, %v1666_v37  ;;  %2642 = vrcp.f32 %v1587_v57  ;;  %vm1679_vm12 = vmor %vm1677_vm11, %vm1678_vm10  ;;  %v1697_v40 = vand.u32 2147483648, %v1587_v57  ;;  %v1695_v8 = vand.u32 2147483647, %v1587_v57 }
 0x269   : > { %v1705_v5 = vmul.f32 %v3407_v58, %v1671_v48  ;;  %v1674_v41 = vsub.f32 1.0, %v1673_v44  ;;  %vm1691_vm15 = vweird.f32 %v1587_v57 }
 0x26a   : > { %v1698_v56 = vor.u32 1.1754944e-38, %v1697_v40  ;;  %vm1696_vm2 = vcmp.eq.f32.partialorder %v1695_v8, 8.507059e+37 }
 0x26b   : > { %v1675_v7 = vmul.f32 %v2641_v32, %v1674_v41  ;;  %2550 = vmatmul.msk.f32.vlgmr.msrb.gmra.mxu0 %vm1515_vm0, %v1705_v5  ;;  %2551 = vmatmul.msk.f32.vlgmr.msrb.gmra.mxu1 %vm1515_vm0, %v1705_v5 }
 0x26c   : > { %2552 = vmatmul.msk.f32.vlgmr.msrb.gmra.mxu2 %vm1515_vm0, %v1705_v5  ;;  %2553 = vmatmul.msk.f32.vlgmr.msrb.gmra.mxu3 %vm1515_vm0, %v1705_v5 }
 0x26d   : > { %v1676_v13 = vadd.f32 %v2641_v32, %v1675_v7  ;;  %2347 = vmatpush.msrb.mxu2 %v416_v9  ;;  %2367 = vmatpush.msrb.mxu3 %v417_v11 }
 0x26e   : > { %v2643_v58 = vpop.eup %2642  ;;  %2307 = vmatpush.msrb.mxu0 %v414_v29  ;;  %2327 = vmatpush.msrb.mxu1 %v415_v31 }
 0x26f   : > { %v1680_v17 = vsel %vm1679_vm12, %v2641_v32, %v1676_v13  ;;  %v1687_v34 = vmul.f32 %v2643_v58, %v1587_v57  ;;  %vm1692_vm14 = vweird.f32 %v2643_v58 }
 0x270   : > { %v1685_v36 = vsel %vm1682_vm13, %v1684_v49, %v1680_v17  ;;  %vm1693_vm1 = vmor %vm1691_vm15, %vm1692_vm14 }
 0x271   : > { %v1706_v4 = vmul.f32 %v3411_v38, %v1685_v36  ;;  %v1688_v26 = vsub.f32 1.0, %v1687_v34 }
 0x273   : > { %v1689_v46 = vmul.f32 %v2643_v58, %v1688_v26  ;;  %2554 = vmatmul.msk.f32.vlgmr.msra.gmra.mxu0 %vm1515_vm0, %v1706_v4  ;;  %2555 = vmatmul.msk.f32.vlgmr.msra.gmra.mxu1 %vm1515_vm0, %v1706_v4 }
 0x274   : > { %2556 = vmatmul.msk.f32.vlgmr.msra.gmra.mxu2 %vm1515_vm0, %v1706_v4  ;;  %2557 = vmatmul.msk.f32.vlgmr.msra.gmra.mxu3 %vm1515_vm0, %v1706_v4 }
 0x275   : > { %v1690_v47 = vadd.f32 %v2643_v58, %v1689_v46 }
 0x277   : > { %v1694_v19 = vsel %vm1693_vm1, %v2643_v58, %v1690_v47 }
 0x278   : > { %v1699_v38 = vsel %vm1696_vm2, %v1698_v56, %v1694_v19 }
 0x279   : > { %v1707_v59 = vmul.f32 %v3415_v18, %v1699_v38 }
 0x27b   : > { %2558 = vmatmul.msk.f32.vlgmr.msrb.gmra.mxu0 %vm1515_vm0, %v1707_v59  ;;  %2559 = vmatmul.msk.f32.vlgmr.msrb.gmra.mxu1 %vm1515_vm0, %v1707_v59 }
 0x27c   : > { %2560 = vmatmul.msk.f32.vlgmr.msrb.gmra.mxu2 %vm1515_vm0, %v1707_v59  ;;  %2561 = vmatmul.msk.f32.vlgmr.msrb.gmra.mxu3 %vm1515_vm0, %v1707_v59 }
 0x2bf   : > { %v1728_v18 = vpop.f32.mrf.mxu0  ;;  %v1748_v50 = vpop.f32.mrf.mxu1 }
 0x2c0   : > { %2372 = vst [vmem:[%s3501_s16] sm:$0xff] %v1728_v18 }
 0x2c1   : > { %2373 = vst [vmem:[%s3501_s16 + $0x8] sm:$0xff] %v1748_v50 }
 0x2c6   : > { %v1768_v60 = vpop.f32.mrf.mxu2  ;;  %v1788_v30 = vpop.f32.mrf.mxu3 }
 0x2c7   : > { %2374 = vst [vmem:[%s3501_s16 + $0x10] sm:$0xff] %v1768_v60 }
 0x2c8   : > { %v1811_v28 = vpop.f32.mrf.mxu0  ;;  %v1831_v55 = vpop.f32.mrf.mxu1  ;;  %2375 = vst [vmem:[%s3501_s16 + $0x18] sm:$0xff] %v1788_v30 }
 0x2c9   : > { %2376 = vst [vmem:[%s3501_s16 + $0x20] sm:$0xff] %v1811_v28 }
 0x2ca   : > { %2377 = vst [vmem:[%s3501_s16 + $0x28] sm:$0xff] %v1831_v55 }
 0x2cf   : > { %v1851_v45 = vpop.f32.mrf.mxu2  ;;  %v1871_v22 = vpop.f32.mrf.mxu3 }
 0x2d0   : > { %2378 = vst [vmem:[%s3501_s16 + $0x30] sm:$0xff] %v1851_v45  ;;  %v1894_v10 = vpop.f32.mrf.mxu0  ;;  %v1914_v61 = vpop.f32.mrf.mxu1 }
 0x2d1   : > { %2379 = vst [vmem:[%s3501_s16 + $0x38] sm:$0xff] %v1871_v22 }
 0x2d2   : > { %2380 = vst [vmem:[%s3501_s16 + $0x40] sm:$0xff] %v1894_v10 }
 0x2d3   : > { %2381 = vst [vmem:[%s3501_s16 + $0x48] sm:$0xff] %v1914_v61 }
 0x2d7   : > { %v1934_v15 = vpop.f32.mrf.mxu2  ;;  %v1954_v42 = vpop.f32.mrf.mxu3 }
 0x2d8   : > { %2382 = vst [vmem:[%s3501_s16 + $0x50] sm:$0xff] %v1934_v15  ;;  %v1977_v63 = vpop.f32.mrf.mxu0  ;;  %v1997_v51 = vpop.f32.mrf.mxu1 }
 0x2d9   : > { %2383 = vst [vmem:[%s3501_s16 + $0x58] sm:$0xff] %v1954_v42 }
 0x2da   : > { %2384 = vst [vmem:[%s3501_s16 + $0x60] sm:$0xff] %v1977_v63 }
 0x2db   : > { %2385 = vst [vmem:[%s3501_s16 + $0x68] sm:$0xff] %v1997_v51 }
 0x2df   : > { %v2017_v0 = vpop.f32.mrf.mxu2  ;;  %v2037_v2 = vpop.f32.mrf.mxu3 }
 0x2e0   : > { %2386 = vst [vmem:[%s3501_s16 + $0x70] sm:$0xff] %v2017_v0  ;;  %v2060_v3 = vpop.f32.mrf.mxu0  ;;  %v2080_v1 = vpop.f32.mrf.mxu1 }
 0x2e1   : > { %2387 = vst [vmem:[%s3501_s16 + $0x78] sm:$0xff] %v2037_v2 }
 0x2e2   : > { %2388 = vst [vmem:[%s3501_s16 + $0x80] sm:$0xff] %v2060_v3 }
 0x2e3   : > { %2389 = vst [vmem:[%s3501_s16 + $0x88] sm:$0xff] %v2080_v1 }
 0x2e7   : > { %v2100_v33 = vpop.f32.mrf.mxu2  ;;  %v2120_v35 = vpop.f32.mrf.mxu3 }
 0x2e8   : > { %2390 = vst [vmem:[%s3501_s16 + $0x90] sm:$0xff] %v2100_v33  ;;  %v2143_v16 = vpop.f32.mrf.mxu0  ;;  %v2163_v39 = vpop.f32.mrf.mxu1 }
 0x2e9   : > { %2391 = vst [vmem:[%s3501_s16 + $0x98] sm:$0xff] %v2120_v35 }
 0x2ea   : > { %2392 = vst [vmem:[%s3501_s16 + $0xa0] sm:$0xff] %v2143_v16 }
 0x2eb   : > { %2393 = vst [vmem:[%s3501_s16 + $0xa8] sm:$0xff] %v2163_v39 }
 0x2ef   : > { %v2183_v24 = vpop.f32.mrf.mxu2  ;;  %v2203_v12 = vpop.f32.mrf.mxu3 }
 0x2f0   : > { %2394 = vst [vmem:[%s3501_s16 + $0xb0] sm:$0xff] %v2183_v24  ;;  %v2226_v14 = vpop.f32.mrf.mxu0  ;;  %v2246_v25 = vpop.f32.mrf.mxu1 }
 0x2f1   : > { %2395 = vst [vmem:[%s3501_s16 + $0xb8] sm:$0xff] %v2203_v12 }
 0x2f2   : > { %2396 = vst [vmem:[%s3501_s16 + $0xc0] sm:$0xff] %v2226_v14 }
 0x2f3   : > { %2397 = vst [vmem:[%s3501_s16 + $0xc8] sm:$0xff] %v2246_v25 }
 0x2f7   : > { %v2266_v23 = vpop.f32.mrf.mxu2  ;;  %v2286_v27 = vpop.f32.mrf.mxu3 }
 0x2f8   : > { %2398 = vst [vmem:[%s3501_s16 + $0xd0] sm:$0xff] %v2266_v23  ;;  %v2309_v21 = vpop.f32.mrf.mxu0  ;;  %v2329_v54 = vpop.f32.mrf.mxu1 }
 0x2f9   : > { %2399 = vst [vmem:[%s3501_s16 + $0xd8] sm:$0xff] %v2286_v27 }
 0x2fa   : > { %2400 = vst [vmem:[%s3501_s16 + $0xe0] sm:$0xff] %v2309_v21 }
 0x2fb   : > { %2401 = vst [vmem:[%s3501_s16 + $0xe8] sm:$0xff] %v2329_v54 }
 0x2ff   : > { %v2349_v52 = vpop.f32.mrf.mxu2  ;;  %v2369_v62 = vpop.f32.mrf.mxu3 }
 0x300   : > { %2402 = vst [vmem:[%s3501_s16 + $0xf0] sm:$0xff] %v2349_v52 }
 0x301   : > { %2403 = vst [vmem:[%s3501_s16 + $0xf8] sm:$0xff] %v2369_v62 }
 0x302 PF: > { %s15_s18 = sadd.s32 1, %s2650_s18  }
 0x303   : > { %p12_p5 = scmp.ge.s32.totalorder %s15_s18, 4  }
 0x305   :  { %14 = sbr.rel (!%p12_p5) target bundleno = 1 (0x1), region = 82 }

// kernel: _lambda_.18
= control target key start
LH: loop header
LB: loop body
LE: loop exit
PB: predicated region body
PF: predicated region fallthrough
CT: control target
= control target key end

     0   :  { %s711_s15 = smov 0   ;;  %s854_s0 = inlined_call_operand.vmem [shape: bf16[4096,16], index: 0, kind: input, shape index: {}]   ;;  %s855_s1 = inlined_call_operand.vmem [shape: bf16[16,16], index: 1, kind: input, shape index: {}]   ;;  %s856_s2 = inlined_call_operand.vmem [shape: f32[1,16], index: 2, kind: input, shape index: {}]   ;;  %s857_s3 = inlined_call_operand.<no memory space> [shape: f32[1,1], index: 3, kind: input, shape index: {}]   ;;  %s858_s4 = inlined_call_operand.vmem [shape: f32[4096,16], index: 4, kind: output, shape index: {}]  }
   0x1 LB: > { %s554_s16 = sadd.s32 4294967295, %s684_s15   ;;  %p558_p0 = scmp.ge.s32.totalorder %s684_s15, 1  ;;  %s684_s15 = sphi %s711_s15, %s16_s15  }
   0x2   : > { %p165_p1 = scmp.lt.s32.totalorder %s684_s15, 17 }
   0x4   : > { %p166_p2 = pnand %p558_p0, %p165_p1 }
   0x5   : > { %s559_s18 = sshll.u32 (!%p166_p2), %s554_s16, 5 }
   0x6   : > { %169 = sbr.rel (%p166_p2) target bundleno = 209 (0xd1), region = 36  ;;  %p192_p3 = scmp.lt.s32.totalorder (!%p166_p2), %s559_s18, 511 }
   0xb   : > { %v665_v0 = vld [vmem:[%s855_s1] sm:$0xff]  ;;  %s860_s18 = smov (!%p192_p3, %s559_s18), 511  ;;  %vm328_vm0 = vcmask 130048  }
   0xc   : > { %384 = vmatpush.bf16.msra.mxu0 %v665_v0  ;;  %666 = vmatpush.bf16.msra.mxu1 %v665_v0  ;;  %s560_s19 = sshll.u32 %s860_s18, 2  ;;  %s562_s23 = sshll.u32 %s860_s18, 3  ;;  %v748_v17 = vld [vmem:[%s856_s2] ss:$0 sm:$0xff] }
   0xd   : > { %667 = vmatpush.bf16.msra.mxu2 %v665_v0  ;;  %668 = vmatpush.bf16.msra.mxu3 %v665_v0  ;;  %s195_s22 = scalar_lea.vmem %s854_s0, %s560_s19  ;;  %s753_s28 = scalar_lea.vmem %s858_s4, %s562_s23 }
   0xe   : > { %v649_v1 = vld [vmem:[%s195_s22] sm:$0xff]  ;;  %v650_v5 = vld [vmem:[%s195_s22 + $0x8] sm:$0xff]  ;;  %v651_v9 = vld [vmem:[%s195_s22 + $0x10] sm:$0xff] }
   0xf   : > { %v653_v2 = vld [vmem:[%s195_s22 + $0x20] sm:$0xff]  ;;  %631 = vmatmul.msk.bf16.vlgmr.msra.gmra.mxu0 %vm328_vm0, %v649_v1  ;;  %v654_v6 = vld [vmem:[%s195_s22 + $0x28] sm:$0xff]  ;;  %v655_v10 = vld [vmem:[%s195_s22 + $0x30] sm:$0xff] }
  0x10   : > { %v657_v3 = vld [vmem:[%s195_s22 + $0x40] sm:$0xff]  ;;  %635 = vmatmul.msk.bf16.vlgmr.msra.gmra.mxu1 %vm328_vm0, %v653_v2  ;;  %v658_v7 = vld [vmem:[%s195_s22 + $0x48] sm:$0xff]  ;;  %v659_v11 = vld [vmem:[%s195_s22 + $0x50] sm:$0xff] }
  0x11   : > { %v661_v4 = vld [vmem:[%s195_s22 + $0x60] sm:$0xff]  ;;  %639 = vmatmul.msk.bf16.vlgmr.msra.gmra.mxu2 %vm328_vm0, %v657_v3  ;;  %v662_v8 = vld [vmem:[%s195_s22 + $0x68] sm:$0xff]  ;;  %v663_v12 = vld [vmem:[%s195_s22 + $0x70] sm:$0xff] }
  0x12   : > { %643 = vmatmul.msk.bf16.vlgmr.msra.gmra.mxu3 %vm328_vm0, %v661_v4  ;;  %v652_v13 = vld [vmem:[%s195_s22 + $0x18] sm:$0xff] }
  0x13   : > { %v656_v14 = vld [vmem:[%s195_s22 + $0x38] sm:$0xff] }
  0x14   : > { %v660_v15 = vld [vmem:[%s195_s22 + $0x58] sm:$0xff] }
  0x15   : > { %v664_v16 = vld [vmem:[%s195_s22 + $0x78] sm:$0xff] }
  0x1f   : > { %632 = vmatmul.msk.bf16.gmra.mxu0 %vm328_vm0, %v650_v5 }
  0x20   : > { %636 = vmatmul.msk.bf16.gmra.mxu1 %vm328_vm0, %v654_v6 }
  0x21   : > { %640 = vmatmul.msk.bf16.gmra.mxu2 %vm328_vm0, %v658_v7 }
  0x22   : > { %644 = vmatmul.msk.bf16.gmra.mxu3 %vm328_vm0, %v662_v8 }
  0x2f   : > { %633 = vmatmul.msk.bf16.gmra.mxu0 %vm328_vm0, %v651_v9 }
  0x30   : > { %637 = vmatmul.msk.bf16.gmra.mxu1 %vm328_vm0, %v655_v10 }
  0x31   : > { %641 = vmatmul.msk.bf16.gmra.mxu2 %vm328_vm0, %v659_v11 }
  0x32   : > { %645 = vmatmul.msk.bf16.gmra.mxu3 %vm328_vm0, %v663_v12 }
  0x3f   : > { %634 = vmatmul.msk.bf16.gmra.mxu0 %vm328_vm0, %v652_v13 }
  0x40   : > { %638 = vmatmul.msk.bf16.gmra.mxu1 %vm328_vm0, %v656_v14 }
  0x41   : > { %642 = vmatmul.msk.bf16.gmra.mxu2 %vm328_vm0, %v660_v15 }
  0x42   : > { %646 = vmatmul.msk.bf16.gmra.mxu3 %vm328_vm0, %v664_v16 }
  0x8c   : > { %v386_v18 = vpop.f32.mrf.mxu0 }
  0x8d   : > { %v406_v19 = vpop.f32.mrf.mxu1  ;;  %v387_v20 = vadd.f32 %v748_v17, %v386_v18 }
  0x8e   : > { %v407_v21 = vadd.f32 %v748_v17, %v406_v19 }
  0x8f   : > { %466 = vst.msk [vmem:[%s753_s28] sm:$0xff] %vm328_vm0, %v387_v20 }
  0x90   : > { %474 = vst.msk [vmem:[%s753_s28 + $0x40] sm:$0xff] %vm328_vm0, %v407_v21 }
  0x94   : > { %v426_v22 = vpop.f32.mrf.mxu2  ;;  %v388_v26 = vpop.f32.mrf.mxu0 }
  0x95   : > { %v446_v23 = vpop.f32.mrf.mxu3  ;;  %v427_v24 = vadd.f32 %v748_v17, %v426_v22  ;;  %v408_v27 = vpop.f32.mrf.mxu1  ;;  %v389_v28 = vadd.f32 %v748_v17, %v388_v26 }
  0x96   : > { %v447_v25 = vadd.f32 %v748_v17, %v446_v23  ;;  %v409_v29 = vadd.f32 %v748_v17, %v408_v27 }
  0x97   : > { %482 = vst.msk [vmem:[%s753_s28 + $0x80] sm:$0xff] %vm328_vm0, %v427_v24 }
  0x98   : > { %490 = vst.msk [vmem:[%s753_s28 + $0xc0] sm:$0xff] %vm328_vm0, %v447_v25 }
  0x99   : > { %467 = vst.msk [vmem:[%s753_s28 + $0x8] sm:$0xff] %vm328_vm0, %v389_v28 }
  0x9a   : > { %475 = vst.msk [vmem:[%s753_s28 + $0x48] sm:$0xff] %vm328_vm0, %v409_v29 }
  0x9c   : > { %v428_v30 = vpop.f32.mrf.mxu2  ;;  %v391_v34 = vpop.f32.mrf.mxu0 }
  0x9d   : > { %v448_v31 = vpop.f32.mrf.mxu3  ;;  %v429_v32 = vadd.f32 %v748_v17, %v428_v30  ;;  %v411_v35 = vpop.f32.mrf.mxu1  ;;  %v392_v36 = vadd.f32 %v748_v17, %v391_v34 }
  0x9e   : > { %v449_v33 = vadd.f32 %v748_v17, %v448_v31  ;;  %v412_v37 = vadd.f32 %v748_v17, %v411_v35 }
  0x9f   : > { %483 = vst.msk [vmem:[%s753_s28 + $0x88] sm:$0xff] %vm328_vm0, %v429_v32 }
  0xa0   : > { %491 = vst.msk [vmem:[%s753_s28 + $0xc8] sm:$0xff] %vm328_vm0, %v449_v33 }
  0xa1   : > { %468 = vst.msk [vmem:[%s753_s28 + $0x10] sm:$0xff] %vm328_vm0, %v392_v36 }
  0xa2   : > { %476 = vst.msk [vmem:[%s753_s28 + $0x50] sm:$0xff] %vm328_vm0, %v412_v37 }
  0xa4   : > { %v431_v38 = vpop.f32.mrf.mxu2  ;;  %v393_v42 = vpop.f32.mrf.mxu0 }
  0xa5   : > { %v451_v39 = vpop.f32.mrf.mxu3  ;;  %v432_v40 = vadd.f32 %v748_v17, %v431_v38  ;;  %v413_v43 = vpop.f32.mrf.mxu1  ;;  %v394_v44 = vadd.f32 %v748_v17, %v393_v42 }
  0xa6   : > { %v452_v41 = vadd.f32 %v748_v17, %v451_v39  ;;  %v414_v45 = vadd.f32 %v748_v17, %v413_v43 }
  0xa7   : > { %484 = vst.msk [vmem:[%s753_s28 + $0x90] sm:$0xff] %vm328_vm0, %v432_v40 }
  0xa8   : > { %492 = vst.msk [vmem:[%s753_s28 + $0xd0] sm:$0xff] %vm328_vm0, %v452_v41 }
  0xa9   : > { %469 = vst.msk [vmem:[%s753_s28 + $0x18] sm:$0xff] %vm328_vm0, %v394_v44 }
  0xaa   : > { %477 = vst.msk [vmem:[%s753_s28 + $0x58] sm:$0xff] %vm328_vm0, %v414_v45 }
  0xac   : > { %v433_v46 = vpop.f32.mrf.mxu2  ;;  %v396_v50 = vpop.f32.mrf.mxu0 }
  0xad   : > { %v453_v47 = vpop.f32.mrf.mxu3  ;;  %v434_v48 = vadd.f32 %v748_v17, %v433_v46  ;;  %v416_v51 = vpop.f32.mrf.mxu1  ;;  %v397_v52 = vadd.f32 %v748_v17, %v396_v50 }
  0xae   : > { %v454_v49 = vadd.f32 %v748_v17, %v453_v47  ;;  %v417_v53 = vadd.f32 %v748_v17, %v416_v51 }
  0xaf   : > { %485 = vst.msk [vmem:[%s753_s28 + $0x98] sm:$0xff] %vm328_vm0, %v434_v48 }
  0xb0   : > { %493 = vst.msk [vmem:[%s753_s28 + $0xd8] sm:$0xff] %vm328_vm0, %v454_v49 }
  0xb1   : > { %470 = vst.msk [vmem:[%s753_s28 + $0x20] sm:$0xff] %vm328_vm0, %v397_v52 }
  0xb2   : > { %478 = vst.msk [vmem:[%s753_s28 + $0x60] sm:$0xff] %vm328_vm0, %v417_v53 }
  0xb4   : > { %v436_v54 = vpop.f32.mrf.mxu2  ;;  %v398_v58 = vpop.f32.mrf.mxu0 }
  0xb5   : > { %v456_v55 = vpop.f32.mrf.mxu3  ;;  %v437_v56 = vadd.f32 %v748_v17, %v436_v54  ;;  %v418_v59 = vpop.f32.mrf.mxu1  ;;  %v399_v60 = vadd.f32 %v748_v17, %v398_v58 }
  0xb6   : > { %v457_v57 = vadd.f32 %v748_v17, %v456_v55  ;;  %v419_v61 = vadd.f32 %v748_v17, %v418_v59 }
  0xb7   : > { %486 = vst.msk [vmem:[%s753_s28 + $0xa0] sm:$0xff] %vm328_vm0, %v437_v56 }
  0xb8   : > { %494 = vst.msk [vmem:[%s753_s28 + $0xe0] sm:$0xff] %vm328_vm0, %v457_v57 }
  0xb9   : > { %471 = vst.msk [vmem:[%s753_s28 + $0x28] sm:$0xff] %vm328_vm0, %v399_v60 }
  0xba   : > { %479 = vst.msk [vmem:[%s753_s28 + $0x68] sm:$0xff] %vm328_vm0, %v419_v61 }
  0xbc   : > { %v438_v62 = vpop.f32.mrf.mxu2  ;;  %v401_v2 = vpop.f32.mrf.mxu0 }
  0xbd   : > { %v458_v63 = vpop.f32.mrf.mxu3  ;;  %v439_v0 = vadd.f32 %v748_v17, %v438_v62  ;;  %v421_v3 = vpop.f32.mrf.mxu1  ;;  %v402_v4 = vadd.f32 %v748_v17, %v401_v2 }
  0xbe   : > { %v459_v1 = vadd.f32 %v748_v17, %v458_v63  ;;  %v422_v5 = vadd.f32 %v748_v17, %v421_v3 }
  0xbf   : > { %487 = vst.msk [vmem:[%s753_s28 + $0xa8] sm:$0xff] %vm328_vm0, %v439_v0 }
  0xc0   : > { %495 = vst.msk [vmem:[%s753_s28 + $0xe8] sm:$0xff] %vm328_vm0, %v459_v1 }
  0xc1   : > { %472 = vst.msk [vmem:[%s753_s28 + $0x30] sm:$0xff] %vm328_vm0, %v402_v4 }
  0xc2   : > { %480 = vst.msk [vmem:[%s753_s28 + $0x70] sm:$0xff] %vm328_vm0, %v422_v5 }
  0xc4   : > { %v441_v6 = vpop.f32.mrf.mxu2  ;;  %v403_v10 = vpop.f32.mrf.mxu0 }
  0xc5   : > { %v461_v7 = vpop.f32.mrf.mxu3  ;;  %v442_v8 = vadd.f32 %v748_v17, %v441_v6  ;;  %v423_v11 = vpop.f32.mrf.mxu1  ;;  %v404_v12 = vadd.f32 %v748_v17, %v403_v10 }
  0xc6   : > { %v462_v9 = vadd.f32 %v748_v17, %v461_v7  ;;  %v424_v13 = vadd.f32 %v748_v17, %v423_v11 }
  0xc7   : > { %488 = vst.msk [vmem:[%s753_s28 + $0xb0] sm:$0xff] %vm328_vm0, %v442_v8 }
  0xc8   : > { %496 = vst.msk [vmem:[%s753_s28 + $0xf0] sm:$0xff] %vm328_vm0, %v462_v9 }
  0xc9   : > { %473 = vst.msk [vmem:[%s753_s28 + $0x38] sm:$0xff] %vm328_vm0, %v404_v12 }
  0xca   : > { %481 = vst.msk [vmem:[%s753_s28 + $0x78] sm:$0xff] %vm328_vm0, %v424_v13 }
  0xcc   : > { %v443_v14 = vpop.f32.mrf.mxu2 }
  0xcd   : > { %v463_v15 = vpop.f32.mrf.mxu3  ;;  %v444_v16 = vadd.f32 %v748_v17, %v443_v14 }
  0xce   : > { %v464_v18 = vadd.f32 %v748_v17, %v463_v15 }
  0xcf   : > { %489 = vst.msk [vmem:[%s753_s28 + $0xb8] sm:$0xff] %vm328_vm0, %v444_v16 }
  0xd0   : > { %497 = vst.msk [vmem:[%s753_s28 + $0xf8] sm:$0xff] %vm328_vm0, %v464_v18 }
  0xd1 PF: > { %s16_s15 = sadd.s32 1, %s684_s15  }
  0xd2   : > { %p13_p4 = scmp.ge.s32.totalorder %s16_s15, 18  }
  0xd4   :  { %15 = sbr.rel (!%p13_p4) target bundleno = 1 (0x1), region = 66 }

// kernel: _lambda_.19
= control target key start
LH: loop header
LB: loop body
LE: loop exit
PB: predicated region body
PF: predicated region fallthrough
CT: control target
= control target key end

     0   :  { %s704_s15 = smov 0   ;;  %s847_s0 = inlined_call_operand.vmem [shape: bf16[4096,4], index: 0, kind: input, shape index: {}]   ;;  %s848_s1 = inlined_call_operand.vmem [shape: bf16[4,16], index: 1, kind: input, shape index: {}]   ;;  %s849_s2 = inlined_call_operand.vmem [shape: f32[1,16], index: 2, kind: input, shape index: {}]   ;;  %s850_s3 = inlined_call_operand.<no memory space> [shape: f32[1,1], index: 3, kind: input, shape index: {}]   ;;  %s851_s4 = inlined_call_operand.vmem [shape: f32[4096,16], index: 4, kind: output, shape index: {}]  }
   0x1 LB: > { %s552_s16 = sadd.s32 4294967295, %s677_s15   ;;  %p556_p0 = scmp.ge.s32.totalorder %s677_s15, 1  ;;  %s677_s15 = sphi %s704_s15, %s16_s15  }
   0x2   : > { %p165_p1 = scmp.lt.s32.totalorder %s677_s15, 17 }
   0x4   : > { %p166_p2 = pnand %p556_p0, %p165_p1 }
   0x5   : > { %s557_s18 = sshll.u32 (!%p166_p2), %s552_s16, 5 }
   0x6   : > { %169 = sbr.rel (%p166_p2) target bundleno = 209 (0xd1), region = 36  ;;  %p192_p3 = scmp.lt.s32.totalorder (!%p166_p2), %s557_s18, 511 }
   0xb   : > { %v236_v0 = vld [vmem:[%s848_s1] sm:$0x3]  ;;  %vm370_vm0 = vcmask 1041408   ;;  %s853_s18 = smov (!%p192_p3, %s557_s18), 511  ;;  %vm321_vm1 = vcmask 31744   ;;  %vm463_vm2 = vcmask 130048  }
   0xc   : > { %v372_v1 = vsel %vm370_vm0, %v236_v0, 0  ;;  %s558_s19 = sshll.u32 %s853_s18, 2  ;;  %s560_s23 = sshll.u32 %s853_s18, 3  ;;  %v741_v18 = vld [vmem:[%s849_s2] ss:$0 sm:$0xff] }
   0xd   : > { %381 = vmatpush.bf16.msra.mxu0 %v372_v1  ;;  %659 = vmatpush.bf16.msra.mxu1 %v372_v1  ;;  %s195_s22 = scalar_lea.vmem %s847_s0, %s558_s19  ;;  %s746_s28 = scalar_lea.vmem %s851_s4, %s560_s23 }
   0xe   : > { %660 = vmatpush.bf16.msra.mxu2 %v372_v1  ;;  %661 = vmatpush.bf16.msra.mxu3 %v372_v1  ;;  %v643_v2 = vld [vmem:[%s195_s22] sm:$0xff]  ;;  %v644_v6 = vld [vmem:[%s195_s22 + $0x8] sm:$0xff]  ;;  %v645_v10 = vld [vmem:[%s195_s22 + $0x10] sm:$0xff] }
   0xf   : > { %v647_v3 = vld [vmem:[%s195_s22 + $0x20] sm:$0xff]  ;;  %v648_v7 = vld [vmem:[%s195_s22 + $0x28] sm:$0xff]  ;;  %v649_v11 = vld [vmem:[%s195_s22 + $0x30] sm:$0xff] }
  0x10   : > { %v651_v4 = vld [vmem:[%s195_s22 + $0x40] sm:$0xff]  ;;  %625 = vmatmul.msk.bf16.vlgmr.msra.gmra.mxu0 %vm321_vm1, %v643_v2  ;;  %629 = vmatmul.msk.bf16.vlgmr.msra.gmra.mxu1 %vm321_vm1, %v647_v3  ;;  %v652_v8 = vld [vmem:[%s195_s22 + $0x48] sm:$0xff]  ;;  %v653_v12 = vld [vmem:[%s195_s22 + $0x50] sm:$0xff] }
  0x11   : > { %v655_v5 = vld [vmem:[%s195_s22 + $0x60] sm:$0xff]  ;;  %633 = vmatmul.msk.bf16.vlgmr.msra.gmra.mxu2 %vm321_vm1, %v651_v4  ;;  %v656_v9 = vld [vmem:[%s195_s22 + $0x68] sm:$0xff]  ;;  %v657_v13 = vld [vmem:[%s195_s22 + $0x70] sm:$0xff] }
  0x12   : > { %637 = vmatmul.msk.bf16.vlgmr.msra.gmra.mxu3 %vm321_vm1, %v655_v5  ;;  %v646_v14 = vld [vmem:[%s195_s22 + $0x18] sm:$0xff] }
  0x13   : > { %v650_v15 = vld [vmem:[%s195_s22 + $0x38] sm:$0xff] }
  0x14   : > { %v654_v16 = vld [vmem:[%s195_s22 + $0x58] sm:$0xff] }
  0x15   : > { %v658_v17 = vld [vmem:[%s195_s22 + $0x78] sm:$0xff] }
  0x20   : > { %626 = vmatmul.msk.bf16.gmra.mxu0 %vm321_vm1, %v644_v6  ;;  %630 = vmatmul.msk.bf16.gmra.mxu1 %vm321_vm1, %v648_v7 }
  0x21   : > { %634 = vmatmul.msk.bf16.gmra.mxu2 %vm321_vm1, %v652_v8 }
  0x22   : > { %638 = vmatmul.msk.bf16.gmra.mxu3 %vm321_vm1, %v656_v9 }
  0x30   : > { %627 = vmatmul.msk.bf16.gmra.mxu0 %vm321_vm1, %v645_v10  ;;  %631 = vmatmul.msk.bf16.gmra.mxu1 %vm321_vm1, %v649_v11 }
  0x31   : > { %635 = vmatmul.msk.bf16.gmra.mxu2 %vm321_vm1, %v653_v12 }
  0x32   : > { %639 = vmatmul.msk.bf16.gmra.mxu3 %vm321_vm1, %v657_v13 }
  0x40   : > { %628 = vmatmul.msk.bf16.gmra.mxu0 %vm321_vm1, %v646_v14  ;;  %632 = vmatmul.msk.bf16.gmra.mxu1 %vm321_vm1, %v650_v15 }
  0x41   : > { %636 = vmatmul.msk.bf16.gmra.mxu2 %vm321_vm1, %v654_v16 }
  0x42   : > { %640 = vmatmul.msk.bf16.gmra.mxu3 %vm321_vm1, %v658_v17 }
  0x8d   : > { %v383_v19 = vpop.f32.mrf.mxu0  ;;  %v403_v20 = vpop.f32.mrf.mxu1 }
  0x8e   : > { %v384_v21 = vadd.f32 %v741_v18, %v383_v19  ;;  %v404_v22 = vadd.f32 %v741_v18, %v403_v20 }
  0x90   : > { %464 = vst.msk [vmem:[%s746_s28] sm:$0xff] %vm463_vm2, %v384_v21 }
  0x91   : > { %472 = vst.msk [vmem:[%s746_s28 + $0x40] sm:$0xff] %vm463_vm2, %v404_v22 }
  0x94   : > { %v423_v23 = vpop.f32.mrf.mxu2 }
  0x95   : > { %v443_v24 = vpop.f32.mrf.mxu3  ;;  %v424_v25 = vadd.f32 %v741_v18, %v423_v23  ;;  %v385_v27 = vpop.f32.mrf.mxu0 }
  0x96   : > { %v444_v26 = vadd.f32 %v741_v18, %v443_v24  ;;  %v405_v28 = vpop.f32.mrf.mxu1  ;;  %v386_v29 = vadd.f32 %v741_v18, %v385_v27 }
  0x97   : > { %v406_v30 = vadd.f32 %v741_v18, %v405_v28  ;;  %480 = vst.msk [vmem:[%s746_s28 + $0x80] sm:$0xff] %vm463_vm2, %v424_v25 }
  0x98   : > { %488 = vst.msk [vmem:[%s746_s28 + $0xc0] sm:$0xff] %vm463_vm2, %v444_v26 }
  0x99   : > { %465 = vst.msk [vmem:[%s746_s28 + $0x8] sm:$0xff] %vm463_vm2, %v386_v29 }
  0x9a   : > { %473 = vst.msk [vmem:[%s746_s28 + $0x48] sm:$0xff] %vm463_vm2, %v406_v30 }
  0x9c   : > { %v425_v31 = vpop.f32.mrf.mxu2 }
  0x9d   : > { %v445_v32 = vpop.f32.mrf.mxu3  ;;  %v426_v33 = vadd.f32 %v741_v18, %v425_v31  ;;  %v388_v35 = vpop.f32.mrf.mxu0 }
  0x9e   : > { %v446_v34 = vadd.f32 %v741_v18, %v445_v32  ;;  %v408_v36 = vpop.f32.mrf.mxu1  ;;  %v389_v37 = vadd.f32 %v741_v18, %v388_v35 }
  0x9f   : > { %v409_v38 = vadd.f32 %v741_v18, %v408_v36  ;;  %481 = vst.msk [vmem:[%s746_s28 + $0x88] sm:$0xff] %vm463_vm2, %v426_v33 }
  0xa0   : > { %489 = vst.msk [vmem:[%s746_s28 + $0xc8] sm:$0xff] %vm463_vm2, %v446_v34 }
  0xa1   : > { %466 = vst.msk [vmem:[%s746_s28 + $0x10] sm:$0xff] %vm463_vm2, %v389_v37 }
  0xa2   : > { %474 = vst.msk [vmem:[%s746_s28 + $0x50] sm:$0xff] %vm463_vm2, %v409_v38 }
  0xa4   : > { %v428_v39 = vpop.f32.mrf.mxu2 }
  0xa5   : > { %v448_v40 = vpop.f32.mrf.mxu3  ;;  %v429_v41 = vadd.f32 %v741_v18, %v428_v39  ;;  %v390_v43 = vpop.f32.mrf.mxu0 }
  0xa6   : > { %v449_v42 = vadd.f32 %v741_v18, %v448_v40  ;;  %v410_v44 = vpop.f32.mrf.mxu1  ;;  %v391_v45 = vadd.f32 %v741_v18, %v390_v43 }
  0xa7   : > { %v411_v46 = vadd.f32 %v741_v18, %v410_v44  ;;  %482 = vst.msk [vmem:[%s746_s28 + $0x90] sm:$0xff] %vm463_vm2, %v429_v41 }
  0xa8   : > { %490 = vst.msk [vmem:[%s746_s28 + $0xd0] sm:$0xff] %vm463_vm2, %v449_v42 }
  0xa9   : > { %467 = vst.msk [vmem:[%s746_s28 + $0x18] sm:$0xff] %vm463_vm2, %v391_v45 }
  0xaa   : > { %475 = vst.msk [vmem:[%s746_s28 + $0x58] sm:$0xff] %vm463_vm2, %v411_v46 }
  0xac   : > { %v430_v47 = vpop.f32.mrf.mxu2 }
  0xad   : > { %v450_v48 = vpop.f32.mrf.mxu3  ;;  %v431_v49 = vadd.f32 %v741_v18, %v430_v47  ;;  %v393_v51 = vpop.f32.mrf.mxu0 }
  0xae   : > { %v451_v50 = vadd.f32 %v741_v18, %v450_v48  ;;  %v413_v52 = vpop.f32.mrf.mxu1  ;;  %v394_v53 = vadd.f32 %v741_v18, %v393_v51 }
  0xaf   : > { %v414_v54 = vadd.f32 %v741_v18, %v413_v52  ;;  %483 = vst.msk [vmem:[%s746_s28 + $0x98] sm:$0xff] %vm463_vm2, %v431_v49 }
  0xb0   : > { %491 = vst.msk [vmem:[%s746_s28 + $0xd8] sm:$0xff] %vm463_vm2, %v451_v50 }
  0xb1   : > { %468 = vst.msk [vmem:[%s746_s28 + $0x20] sm:$0xff] %vm463_vm2, %v394_v53 }
  0xb2   : > { %476 = vst.msk [vmem:[%s746_s28 + $0x60] sm:$0xff] %vm463_vm2, %v414_v54 }
  0xb4   : > { %v433_v55 = vpop.f32.mrf.mxu2 }
  0xb5   : > { %v453_v56 = vpop.f32.mrf.mxu3  ;;  %v434_v57 = vadd.f32 %v741_v18, %v433_v55  ;;  %v395_v59 = vpop.f32.mrf.mxu0 }
  0xb6   : > { %v454_v58 = vadd.f32 %v741_v18, %v453_v56  ;;  %v415_v60 = vpop.f32.mrf.mxu1  ;;  %v396_v61 = vadd.f32 %v741_v18, %v395_v59 }
  0xb7   : > { %v416_v62 = vadd.f32 %v741_v18, %v415_v60  ;;  %484 = vst.msk [vmem:[%s746_s28 + $0xa0] sm:$0xff] %vm463_vm2, %v434_v57 }
  0xb8   : > { %492 = vst.msk [vmem:[%s746_s28 + $0xe0] sm:$0xff] %vm463_vm2, %v454_v58 }
  0xb9   : > { %469 = vst.msk [vmem:[%s746_s28 + $0x28] sm:$0xff] %vm463_vm2, %v396_v61 }
  0xba   : > { %477 = vst.msk [vmem:[%s746_s28 + $0x68] sm:$0xff] %vm463_vm2, %v416_v62 }
  0xbc   : > { %v435_v63 = vpop.f32.mrf.mxu2 }
  0xbd   : > { %v455_v0 = vpop.f32.mrf.mxu3  ;;  %v436_v1 = vadd.f32 %v741_v18, %v435_v63  ;;  %v398_v3 = vpop.f32.mrf.mxu0 }
  0xbe   : > { %v456_v2 = vadd.f32 %v741_v18, %v455_v0  ;;  %v418_v4 = vpop.f32.mrf.mxu1  ;;  %v399_v5 = vadd.f32 %v741_v18, %v398_v3 }
  0xbf   : > { %v419_v6 = vadd.f32 %v741_v18, %v418_v4  ;;  %485 = vst.msk [vmem:[%s746_s28 + $0xa8] sm:$0xff] %vm463_vm2, %v436_v1 }
  0xc0   : > { %493 = vst.msk [vmem:[%s746_s28 + $0xe8] sm:$0xff] %vm463_vm2, %v456_v2 }
  0xc1   : > { %470 = vst.msk [vmem:[%s746_s28 + $0x30] sm:$0xff] %vm463_vm2, %v399_v5 }
  0xc2   : > { %478 = vst.msk [vmem:[%s746_s28 + $0x70] sm:$0xff] %vm463_vm2, %v419_v6 }
  0xc4   : > { %v438_v7 = vpop.f32.mrf.mxu2 }
  0xc5   : > { %v458_v8 = vpop.f32.mrf.mxu3  ;;  %v439_v9 = vadd.f32 %v741_v18, %v438_v7  ;;  %v400_v11 = vpop.f32.mrf.mxu0 }
  0xc6   : > { %v459_v10 = vadd.f32 %v741_v18, %v458_v8  ;;  %v420_v12 = vpop.f32.mrf.mxu1  ;;  %v401_v13 = vadd.f32 %v741_v18, %v400_v11 }
  0xc7   : > { %v421_v14 = vadd.f32 %v741_v18, %v420_v12  ;;  %486 = vst.msk [vmem:[%s746_s28 + $0xb0] sm:$0xff] %vm463_vm2, %v439_v9 }
  0xc8   : > { %494 = vst.msk [vmem:[%s746_s28 + $0xf0] sm:$0xff] %vm463_vm2, %v459_v10 }
  0xc9   : > { %471 = vst.msk [vmem:[%s746_s28 + $0x38] sm:$0xff] %vm463_vm2, %v401_v13 }
  0xca   : > { %479 = vst.msk [vmem:[%s746_s28 + $0x78] sm:$0xff] %vm463_vm2, %v421_v14 }
  0xcc   : > { %v440_v15 = vpop.f32.mrf.mxu2 }
  0xcd   : > { %v460_v16 = vpop.f32.mrf.mxu3  ;;  %v441_v17 = vadd.f32 %v741_v18, %v440_v15 }
  0xce   : > { %v461_v19 = vadd.f32 %v741_v18, %v460_v16 }
  0xcf   : > { %487 = vst.msk [vmem:[%s746_s28 + $0xb8] sm:$0xff] %vm463_vm2, %v441_v17 }
  0xd0   : > { %495 = vst.msk [vmem:[%s746_s28 + $0xf8] sm:$0xff] %vm463_vm2, %v461_v19 }
  0xd1 PF: > { %s16_s15 = sadd.s32 1, %s677_s15  }
  0xd2   : > { %p13_p4 = scmp.ge.s32.totalorder %s16_s15, 18  }
  0xd4   :  { %15 = sbr.rel (!%p13_p4) target bundleno = 1 (0x1), region = 66 }

// kernel: _lambda_.20
= control target key start
LH: loop header
LB: loop body
LE: loop exit
PB: predicated region body
PF: predicated region fallthrough
CT: control target
= control target key end

     0   :  { %s735_s12 = smov 0   ;;  %s1319_s0 = inlined_call_operand.vmem [shape: f32[16,4096], index: 0, kind: input, shape index: {}]   ;;  %s1320_s1 = inlined_call_operand.vmem [shape: f32[1,4096], index: 1, kind: input, shape index: {}]   ;;  %s1321_s2 = inlined_call_operand.vmem [shape: f32[1,4096], index: 2, kind: input, shape index: {}]   ;;  %s1322_s3 = inlined_call_operand.vmem [shape: f32[16,4096], index: 3, kind: output, shape index: {}]  }
   0x1 LB: > { %s680_s13 = sadd.s32 4294967295, %s712_s12   ;;  %p684_p0 = scmp.ge.s32.totalorder %s712_s12, 1  ;;  %s712_s12 = sphi %s735_s12, %s13_s12  }
   0x2   : > { %p137_p1 = scmp.lt.s32.totalorder %s712_s12, 3 }
   0x4   : > { %p138_p2 = pnand %p684_p0, %p137_p1 }
   0x5   : > { %p161_p3 = scmp.lt.s32.totalorder (!%p138_p2), %s680_s13, 1 }
   0x6   : > { %141 = sbr.rel (%p138_p2) target bundleno = 440 (0x1b8), region = 32 }
   0xb   : > { %s1343_s13 = smov (!%p161_p3, %s680_s13), 1  ;;  %v714_v63 = vmov 4096.0  }
   0xc   : > { %s691_s14 = sshll.u32 %s1343_s13, 8  ;;  %702 = vrcp.f32 %v714_v63 }
   0xd   : > { %s751_s17 = scalar_lea.vmem %s1319_s0, %s691_s14  ;;  %s1159_s30 = scalar_lea.vmem %s1322_s3, %s691_s14 }
   0xe   : > { %v754_v0 = vld [vmem:[%s751_s17] sm:$0xff]  ;;  %v757_v1 = vld [vmem:[%s751_s17 + $0x8] sm:$0xff]  ;;  %v760_v2 = vld [vmem:[%s751_s17 + $0x10] sm:$0xff] }
   0xf   : > { %v203_v3 = vadd.f32 %v757_v1, %v754_v0  ;;  %v765_v4 = vld [vmem:[%s751_s17 + $0x18] sm:$0xff]  ;;  %v769_v6 = vld [vmem:[%s751_s17 + $0x20] sm:$0xff]  ;;  %v773_v8 = vld [vmem:[%s751_s17 + $0x28] sm:$0xff] }
  0x10   : > { %v777_v10 = vld [vmem:[%s751_s17 + $0x30] sm:$0xff]  ;;  %v781_v12 = vld [vmem:[%s751_s17 + $0x38] sm:$0xff]  ;;  %v785_v14 = vld [vmem:[%s751_s17 + $0x40] sm:$0xff] }
  0x11   : > { %v204_v5 = vadd.f32 %v203_v3, %v760_v2  ;;  %v789_v16 = vld [vmem:[%s751_s17 + $0x48] sm:$0xff]  ;;  %v793_v18 = vld [vmem:[%s751_s17 + $0x50] sm:$0xff]  ;;  %v797_v20 = vld [vmem:[%s751_s17 + $0x58] sm:$0xff] }
  0x12   : > { %v801_v22 = vld [vmem:[%s751_s17 + $0x60] sm:$0xff]  ;;  %v805_v24 = vld [vmem:[%s751_s17 + $0x68] sm:$0xff]  ;;  %v809_v26 = vld [vmem:[%s751_s17 + $0x70] sm:$0xff]  ;;  %v703_v3 = vpop.eup %702 }
  0x13   : > { %v205_v7 = vadd.f32 %v204_v5, %v765_v4  ;;  %v813_v28 = vld [vmem:[%s751_s17 + $0x78] sm:$0xff]  ;;  %v817_v30 = vld [vmem:[%s751_s17 + $0x80] sm:$0xff]  ;;  %v821_v32 = vld [vmem:[%s751_s17 + $0x88] sm:$0xff]  ;;  %v237_v5 = vmul.f32 4096.0, %v703_v3  ;;  %vm241_vm0 = vweird.f32 %v703_v3 }
  0x14   : > { %v825_v34 = vld [vmem:[%s751_s17 + $0x90] sm:$0xff]  ;;  %v829_v36 = vld [vmem:[%s751_s17 + $0x98] sm:$0xff]  ;;  %v833_v38 = vld [vmem:[%s751_s17 + $0xa0] sm:$0xff] }
  0x15   : > { %v206_v9 = vadd.f32 %v205_v7, %v769_v6  ;;  %v837_v40 = vld [vmem:[%s751_s17 + $0xa8] sm:$0xff]  ;;  %v841_v42 = vld [vmem:[%s751_s17 + $0xb0] sm:$0xff]  ;;  %v845_v44 = vld [vmem:[%s751_s17 + $0xb8] sm:$0xff]  ;;  %v238_v7 = vsub.f32 1.0, %v237_v5 }
  0x16   : > { %v849_v46 = vld [vmem:[%s751_s17 + $0xc0] sm:$0xff]  ;;  %v853_v48 = vld [vmem:[%s751_s17 + $0xc8] sm:$0xff]  ;;  %v857_v50 = vld [vmem:[%s751_s17 + $0xd0] sm:$0xff] }
  0x17   : > { %v207_v11 = vadd.f32 %v206_v9, %v773_v8  ;;  %v861_v52 = vld [vmem:[%s751_s17 + $0xd8] sm:$0xff]  ;;  %v865_v54 = vld [vmem:[%s751_s17 + $0xe0] sm:$0xff]  ;;  %v869_v56 = vld [vmem:[%s751_s17 + $0xe8] sm:$0xff]  ;;  %v239_v9 = vmul.f32 %v703_v3, %v238_v7 }
  0x18   : > { %v873_v58 = vld [vmem:[%s751_s17 + $0xf0] sm:$0xff]  ;;  %v877_v60 = vld [vmem:[%s751_s17 + $0xf8] sm:$0xff] }
  0x19   : > { %v208_v13 = vadd.f32 %v207_v11, %v777_v10  ;;  %v240_v11 = vadd.f32 %v703_v3, %v239_v9 }
  0x1b   : > { %v209_v15 = vadd.f32 %v208_v13, %v781_v12 }
  0x1d   : > { %v210_v17 = vadd.f32 %v209_v15, %v785_v14  ;;  %v881_v15 = vsel %vm241_vm0, %v703_v3, %v240_v11 }
  0x1f   : > { %v211_v19 = vadd.f32 %v210_v17, %v789_v16 }
  0x21   : > { %v212_v21 = vadd.f32 %v211_v19, %v793_v18 }
  0x23   : > { %v213_v23 = vadd.f32 %v212_v21, %v797_v20 }
  0x25   : > { %v214_v25 = vadd.f32 %v213_v23, %v801_v22 }
  0x27   : > { %v215_v27 = vadd.f32 %v214_v25, %v805_v24 }
  0x29   : > { %v216_v29 = vadd.f32 %v215_v27, %v809_v26 }
  0x2b   : > { %v217_v31 = vadd.f32 %v216_v29, %v813_v28 }
  0x2d   : > { %v218_v33 = vadd.f32 %v217_v31, %v817_v30 }
  0x2f   : > { %v219_v35 = vadd.f32 %v218_v33, %v821_v32 }
  0x31   : > { %v220_v37 = vadd.f32 %v219_v35, %v825_v34 }
  0x33   : > { %v221_v39 = vadd.f32 %v220_v37, %v829_v36 }
  0x35   : > { %v222_v41 = vadd.f32 %v221_v39, %v833_v38 }
  0x37   : > { %v223_v43 = vadd.f32 %v222_v41, %v837_v40 }
  0x39   : > { %v224_v45 = vadd.f32 %v223_v43, %v841_v42 }
  0x3b   : > { %v225_v47 = vadd.f32 %v224_v45, %v845_v44 }
  0x3d   : > { %v226_v49 = vadd.f32 %v225_v47, %v849_v46 }
  0x3f   : > { %v227_v51 = vadd.f32 %v226_v49, %v853_v48 }
  0x41   : > { %v228_v53 = vadd.f32 %v227_v51, %v857_v50 }
  0x43   : > { %v229_v55 = vadd.f32 %v228_v53, %v861_v52 }
  0x45   : > { %v230_v57 = vadd.f32 %v229_v55, %v865_v54 }
  0x47   : > { %v231_v59 = vadd.f32 %v230_v57, %v869_v56 }
  0x49   : > { %v232_v61 = vadd.f32 %v231_v59, %v873_v58 }
  0x4b   : > { %v233_v62 = vadd.f32 %v232_v61, %v877_v60 }
  0x4d   : > { %234 = vadd.xlane.f32.xlu0 %v233_v62 }
  0xc0   : > { %v235_v13 = vpop.xlane.xlu0 %234 }
  0xc1   : > { %v884_v17 = vmul.f32 %v881_v15, %v235_v13 }
  0xc3   : > { %v888_v19 = vsub.f32 %v754_v0, %v884_v17  ;;  %v892_v21 = vsub.f32 %v757_v1, %v884_v17  ;;  %v896_v23 = vsub.f32 %v760_v2, %v884_v17  ;;  %v904_v29 = vsub.f32 %v765_v4, %v884_v17 }
  0xc4   : > { %v908_v0 = vsub.f32 %v769_v6, %v884_v17  ;;  %v914_v2 = vsub.f32 %v773_v8, %v884_v17  ;;  %v920_v4 = vsub.f32 %v777_v10, %v884_v17  ;;  %v926_v39 = vsub.f32 %v781_v12, %v884_v17 }
  0xc5   : > { %v276_v25 = vmul.f32 %v888_v19, %v888_v19  ;;  %v277_v27 = vmul.f32 %v892_v21, %v892_v21  ;;  %v278_v1 = vmul.f32 %v896_v23, %v896_v23  ;;  %v279_v33 = vmul.f32 %v904_v29, %v904_v29 }
  0xc6   : > { %v280_v6 = vmul.f32 %v908_v0, %v908_v0  ;;  %v281_v8 = vmul.f32 %v914_v2, %v914_v2  ;;  %v932_v43 = vsub.f32 %v785_v14, %v884_v17  ;;  %v282_v10 = vmul.f32 %v920_v4, %v920_v4 }
  0xc7   : > { %v308_v31 = vadd.f32 %v277_v27, %v276_v25  ;;  %v938_v47 = vsub.f32 %v789_v16, %v884_v17  ;;  %v283_v12 = vmul.f32 %v926_v39, %v926_v39  ;;  %v944_v51 = vsub.f32 %v793_v18, %v884_v17 }
  0xc8   : > { %v284_v14 = vmul.f32 %v932_v43, %v932_v43  ;;  %v950_v55 = vsub.f32 %v797_v20, %v884_v17  ;;  %v956_v59 = vsub.f32 %v801_v22, %v884_v17  ;;  %v962_v62 = vsub.f32 %v805_v24, %v884_v17 }
  0xc9   : > { %v309_v35 = vadd.f32 %v308_v31, %v278_v1  ;;  %v285_v16 = vmul.f32 %v938_v47, %v938_v47  ;;  %v286_v18 = vmul.f32 %v944_v51, %v944_v51  ;;  %v968_v3 = vsub.f32 %v809_v26, %v884_v17 }
  0xca   : > { %v287_v20 = vmul.f32 %v950_v55, %v950_v55  ;;  %v288_v22 = vmul.f32 %v956_v59, %v956_v59  ;;  %v974_v7 = vsub.f32 %v813_v28, %v884_v17  ;;  %v289_v24 = vmul.f32 %v962_v62, %v962_v62 }
  0xcb   : > { %v310_v37 = vadd.f32 %v309_v35, %v279_v33  ;;  %v980_v11 = vsub.f32 %v817_v30, %v884_v17  ;;  %v290_v26 = vmul.f32 %v968_v3, %v968_v3  ;;  %v986_v25 = vsub.f32 %v821_v32, %v884_v17 }
  0xcc   : > { %v291_v28 = vmul.f32 %v974_v7, %v974_v7  ;;  %v992_v1 = vsub.f32 %v825_v34, %v884_v17  ;;  %v998_v33 = vsub.f32 %v829_v36, %v884_v17 }
  0xcd   : > { %v311_v41 = vadd.f32 %v310_v37, %v280_v6  ;;  %v292_v30 = vmul.f32 %v980_v11, %v980_v11  ;;  %v293_v32 = vmul.f32 %v986_v25, %v986_v25  ;;  %v1004_v6 = vsub.f32 %v833_v38, %v884_v17 }
  0xce   : > { %v294_v34 = vmul.f32 %v992_v1, %v992_v1  ;;  %v295_v36 = vmul.f32 %v998_v33, %v998_v33 }
  0xcf   : > { %v312_v45 = vadd.f32 %v311_v41, %v281_v8  ;;  %v1010_v8 = vsub.f32 %v837_v40, %v884_v17  ;;  %v296_v38 = vmul.f32 %v1004_v6, %v1004_v6 }
  0xd1   : > { %v313_v49 = vadd.f32 %v312_v45, %v282_v10  ;;  %v1016_v10 = vsub.f32 %v841_v42, %v884_v17  ;;  %v297_v40 = vmul.f32 %v1010_v8, %v1010_v8 }
  0xd3   : > { %v314_v53 = vadd.f32 %v313_v49, %v283_v12  ;;  %v1022_v12 = vsub.f32 %v845_v44, %v884_v17  ;;  %v298_v42 = vmul.f32 %v1016_v10, %v1016_v10 }
  0xd5   : > { %v315_v57 = vadd.f32 %v314_v53, %v284_v14  ;;  %v1028_v14 = vsub.f32 %v849_v46, %v884_v17  ;;  %v299_v44 = vmul.f32 %v1022_v12, %v1022_v12 }
  0xd7   : > { %v316_v61 = vadd.f32 %v315_v57, %v285_v16  ;;  %v1034_v16 = vsub.f32 %v853_v48, %v884_v17  ;;  %v300_v46 = vmul.f32 %v1028_v14, %v1028_v14 }
  0xd9   : > { %v317_v63 = vadd.f32 %v316_v61, %v286_v18  ;;  %v1040_v18 = vsub.f32 %v857_v50, %v884_v17  ;;  %v301_v48 = vmul.f32 %v1034_v16, %v1034_v16 }
  0xdb   : > { %v318_v5 = vadd.f32 %v317_v63, %v287_v20  ;;  %v1046_v20 = vsub.f32 %v861_v52, %v884_v17  ;;  %v302_v50 = vmul.f32 %v1040_v18, %v1040_v18 }
  0xdd   : > { %v319_v9 = vadd.f32 %v318_v5, %v288_v22  ;;  %v1052_v22 = vsub.f32 %v865_v54, %v884_v17  ;;  %v303_v52 = vmul.f32 %v1046_v20, %v1046_v20 }
  0xdf   : > { %v320_v13 = vadd.f32 %v319_v9, %v289_v24  ;;  %v1058_v24 = vsub.f32 %v869_v56, %v884_v17  ;;  %v304_v54 = vmul.f32 %v1052_v22, %v1052_v22 }
  0xe1   : > { %v321_v27 = vadd.f32 %v320_v13, %v290_v26  ;;  %v1064_v26 = vsub.f32 %v873_v58, %v884_v17  ;;  %v305_v56 = vmul.f32 %v1058_v24, %v1058_v24 }
  0xe3   : > { %v322_v31 = vadd.f32 %v321_v27, %v291_v28  ;;  %v1070_v28 = vsub.f32 %v877_v60, %v884_v17 }
  0xe5   : > { %v323_v35 = vadd.f32 %v322_v31, %v292_v30  ;;  %v306_v30 = vmul.f32 %v1064_v26, %v1064_v26  ;;  %v307_v58 = vmul.f32 %v1070_v28, %v1070_v28 }
  0xe7   : > { %v324_v37 = vadd.f32 %v323_v35, %v293_v32 }
  0xe9   : > { %v325_v41 = vadd.f32 %v324_v37, %v294_v34 }
  0xeb   : > { %v326_v45 = vadd.f32 %v325_v41, %v295_v36 }
  0xed   : > { %v327_v49 = vadd.f32 %v326_v45, %v296_v38 }
  0xef   : > { %v328_v53 = vadd.f32 %v327_v49, %v297_v40  ;;  %v1082_v40 = vld [vmem:[%s1320_s1] sm:$0xff]  ;;  %v1087_v49 = vld [vmem:[%s1320_s1 + $0x8] sm:$0xff] }
  0xf1   : > { %v329_v57 = vadd.f32 %v328_v53, %v298_v42  ;;  %v394_v53 = vperm.slane %v1082_v40, 1 }
  0xf3   : > { %v330_v61 = vadd.f32 %v329_v57, %v299_v44  ;;  %v395_v44 = vperm.slane %v1082_v40, 2  ;;  %v396_v57 = vperm.slane %v1082_v40, 3 }
  0xf5   : > { %v331_v63 = vadd.f32 %v330_v61, %v300_v46  ;;  %v397_v46 = vperm.slane %v1082_v40, 4  ;;  %v398_v61 = vperm.slane %v1082_v40, 5 }
  0xf7   : > { %v332_v5 = vadd.f32 %v331_v63, %v301_v48  ;;  %v1098_v48 = vld [vmem:[%s1320_s1 + $0x10] sm:$0xff]  ;;  %v399_v63 = vperm.slane %v1082_v40, 6 }
  0xf9   : > { %v333_v9 = vadd.f32 %v332_v5, %v302_v50  ;;  %v400_v50 = vperm.slane %v1082_v40, 7  ;;  %v401_v5 = vperm.slane %v1087_v49, 0 }
  0xfb   : > { %v334_v13 = vadd.f32 %v333_v9, %v303_v52  ;;  %v402_v52 = vperm.slane %v1087_v49, 1  ;;  %v403_v9 = vperm.slane %v1087_v49, 2 }
  0xfd   : > { %v335_v27 = vadd.f32 %v334_v13, %v304_v54  ;;  %v404_v54 = vperm.slane %v1087_v49, 3 }
  0xff   : > { %v336_v31 = vadd.f32 %v335_v27, %v305_v56  ;;  %v1112_v27 = vld [vmem:[%s1320_s1 + $0x18] sm:$0xff] }
 0x101   : > { %v337_v32 = vadd.f32 %v336_v31, %v306_v30 }
 0x103   : > { %v338_v35 = vadd.f32 %v337_v32, %v307_v58 }
 0x105   : > { %339 = vadd.xlane.f32.xlu0 %v338_v35 }
 0x178   : > { %v340_v34 = vpop.xlane.xlu0 %339 }
 0x179   : > { %v341_v37 = vmul.f32 %v340_v34, %v881_v15  ;;  %v393_v15 = vperm.slane %v1082_v40, 0 }
 0x17b   : > { %v342_v36 = vadd.f32 1e-05, %v341_v37 }
 0x17d   : > { %704 = vrsqrt.f32 %v342_v36  ;;  %vm349_vm2 = vweird.f32 %v342_v36 }
 0x183   : > { %v705_v60 = vpop.eup %704 }
 0x184   : > { %v344_v17 = vmul.f32 %v705_v60, %v342_v36  ;;  %vm350_vm1 = vweird.f32 %v705_v60  ;;  %v489_v36 = vld [vmem:[%s1321_s2] sm:$0xff] }
 0x185   : > { %vm351_vm3 = vmor %vm349_vm2, %vm350_vm1  ;;  %v498_v35 = vperm.slane %v489_v36, 1  ;;  %v500_v37 = vperm.slane %v489_v36, 3  ;;  %v501_v30 = vperm.slane %v489_v36, 4  ;;  %v502_v13 = vperm.slane %v489_v36, 5 }
 0x186   : > { %v345_v41 = vmul.f32 %v705_v60, %v344_v17 }
 0x188   : > { %v346_v38 = vmul.f32 0.5, %v345_v41  ;;  %v499_v41 = vperm.slane %v489_v36, 2 }
 0x18a   : > { %v347_v45 = vsub.f32 1.5, %v346_v38 }
 0x18c   : > { %v348_v42 = vmul.f32 %v705_v60, %v347_v45 }
 0x18e   : > { %v1107_v56 = vsel %vm351_vm3, %v705_v60, %v348_v42  ;;  %v424_v42 = vperm.slane %v1112_v27, 7 }
 0x18f   : > { %v353_v38 = vmul.f32 %v1107_v56, %v888_v19  ;;  %v354_v45 = vmul.f32 %v1107_v56, %v892_v21  ;;  %v355_v40 = vmul.f32 %v1107_v56, %v896_v23  ;;  %v356_v17 = vmul.f32 %v1107_v56, %v904_v29 }
 0x190   : > { %v357_v21 = vmul.f32 %v1107_v56, %v908_v0  ;;  %v358_v34 = vmul.f32 %v1107_v56, %v914_v2  ;;  %v497_v29 = vperm.slane %v489_v36, 0  ;;  %v359_v60 = vmul.f32 %v1107_v56, %v920_v4 }
 0x191   : > { %v457_v19 = vmul.f32 %v393_v15, %v353_v38  ;;  %v458_v32 = vmul.f32 %v394_v53, %v354_v45  ;;  %v459_v58 = vmul.f32 %v395_v44, %v355_v40  ;;  %v360_v0 = vmul.f32 %v1107_v56, %v926_v39 }
 0x192   : > { %v460_v23 = vmul.f32 %v396_v57, %v356_v17  ;;  %v361_v2 = vmul.f32 %v1107_v56, %v932_v43  ;;  %v461_v31 = vmul.f32 %v397_v46, %v357_v21  ;;  %v362_v4 = vmul.f32 %v1107_v56, %v938_v47  ;;  %v1168_v43 = vld [vmem:[%s1321_s2 + $0x8] sm:$0xff] }
 0x193   : > { %v363_v39 = vmul.f32 %v1107_v56, %v944_v51  ;;  %v462_v15 = vmul.f32 %v398_v61, %v358_v34  ;;  %v503_v53 = vperm.slane %v489_v36, 6  ;;  %v463_v44 = vmul.f32 %v399_v63, %v359_v60 }
 0x194   : > { %v561_v57 = vadd.f32 %v497_v29, %v457_v19  ;;  %v562_v46 = vadd.f32 %v498_v35, %v458_v32  ;;  %v563_v17 = vadd.f32 %v499_v41, %v459_v58  ;;  %v364_v38 = vmul.f32 %v1107_v56, %v950_v55  ;;  %v1209_v19 = vld [vmem:[%s1321_s2 + $0x10] sm:$0xff] }
 0x195   : > { %v464_v47 = vmul.f32 %v400_v50, %v360_v0  ;;  %v504_v45 = vperm.slane %v489_v36, 7  ;;  %v564_v51 = vadd.f32 %v500_v37, %v460_v23  ;;  %v365_v61 = vmul.f32 %v1107_v56, %v956_v59 }
 0x196   : > { %v465_v34 = vmul.f32 %v401_v5, %v361_v2  ;;  %v505_v40 = vperm.slane %v1168_v43, 0  ;;  %v565_v63 = vadd.f32 %v501_v30, %v461_v31  ;;  %593 = vst [vmem:[%s1159_s30] sm:$0xff] %v561_v57  ;;  %v366_v58 = vmul.f32 %v1107_v56, %v962_v62 }
 0x197   : > { %v466_v55 = vmul.f32 %v402_v52, %v362_v4  ;;  %v506_v50 = vperm.slane %v1168_v43, 1  ;;  %v566_v32 = vadd.f32 %v502_v13, %v462_v15  ;;  %594 = vst [vmem:[%s1159_s30 + $0x8] sm:$0xff] %v562_v46  ;;  %v367_v59 = vmul.f32 %v1107_v56, %v968_v3 }
 0x198   : > { %v467_v5 = vmul.f32 %v403_v9, %v363_v39  ;;  %v507_v30 = vperm.slane %v1168_v43, 2  ;;  %v567_v31 = vadd.f32 %v503_v53, %v463_v44  ;;  %595 = vst [vmem:[%s1159_s30 + $0x10] sm:$0xff] %v563_v17  ;;  %v368_v62 = vmul.f32 %v1107_v56, %v974_v7 }
 0x199   : > { %v468_v52 = vmul.f32 %v404_v54, %v364_v38  ;;  %v508_v13 = vperm.slane %v1168_v43, 3  ;;  %v568_v35 = vadd.f32 %v504_v45, %v464_v47  ;;  %596 = vst [vmem:[%s1159_s30 + $0x18] sm:$0xff] %v564_v51  ;;  %v369_v3 = vmul.f32 %v1107_v56, %v980_v11 }
 0x19a   : > { %v1323_v9 = vperm.slane %v1087_v49, 4  ;;  %v509_v36 = vperm.slane %v1168_v43, 4  ;;  %v569_v60 = vadd.f32 %v505_v40, %v465_v34  ;;  %597 = vst [vmem:[%s1159_s30 + $0x20] sm:$0xff] %v565_v63  ;;  %v370_v7 = vmul.f32 %v1107_v56, %v986_v25 }
 0x19b   : > { %v1324_v54 = vperm.slane %v1087_v49, 5  ;;  %v510_v11 = vperm.slane %v1168_v43, 5  ;;  %v570_v21 = vadd.f32 %v506_v50, %v466_v55  ;;  %598 = vst [vmem:[%s1159_s30 + $0x28] sm:$0xff] %v566_v32  ;;  %v371_v23 = vmul.f32 %v1107_v56, %v992_v1 }
 0x19c   : > { %v469_v37 = vmul.f32 %v1323_v9, %v365_v61  ;;  %v1325_v29 = vperm.slane %v1087_v49, 6  ;;  %v511_v25 = vperm.slane %v1168_v43, 6  ;;  %v571_v2 = vadd.f32 %v507_v30, %v467_v5  ;;  %599 = vst [vmem:[%s1159_s30 + $0x30] sm:$0xff] %v567_v31 }
 0x19d   : > { %v470_v41 = vmul.f32 %v1324_v54, %v366_v58  ;;  %v372_v4 = vmul.f32 %v1107_v56, %v998_v33  ;;  %v1326_v39 = vperm.slane %v1087_v49, 7  ;;  %v512_v53 = vperm.slane %v1168_v43, 7  ;;  %600 = vst [vmem:[%s1159_s30 + $0x38] sm:$0xff] %v568_v35 }
 0x19e   : > { %v471_v0 = vmul.f32 %v1325_v29, %v367_v59  ;;  %v572_v44 = vadd.f32 %v508_v13, %v468_v52  ;;  %v373_v1 = vmul.f32 %v1107_v56, %v1004_v6  ;;  %v1327_v57 = vperm.slane %v1098_v48, 0  ;;  %601 = vst [vmem:[%s1159_s30 + $0x40] sm:$0xff] %v569_v60  ;;  %v492_v52 = vld [vmem:[%s1321_s2 + $0x18] sm:$0xff] }
 0x19f   : > { %v472_v15 = vmul.f32 %v1326_v39, %v368_v62  ;;  %v513_v17 = vperm.slane %v1209_v19, 0  ;;  %v573_v38 = vadd.f32 %v509_v36, %v469_v37  ;;  %v374_v33 = vmul.f32 %v1107_v56, %v1010_v8  ;;  %602 = vst [vmem:[%s1159_s30 + $0x48] sm:$0xff] %v570_v21 }
 0x1a0   : > { %v473_v46 = vmul.f32 %v1327_v57, %v369_v3  ;;  %v1328_v49 = vperm.slane %v1098_v48, 1  ;;  %v514_v47 = vperm.slane %v1209_v19, 1  ;;  %v574_v45 = vadd.f32 %v510_v11, %v470_v41  ;;  %603 = vst [vmem:[%s1159_s30 + $0x50] sm:$0xff] %v571_v2 }
 0x1a1   : > { %v375_v6 = vmul.f32 %v1107_v56, %v1016_v10  ;;  %v1329_v51 = vperm.slane %v1098_v48, 2  ;;  %v515_v34 = vperm.slane %v1209_v19, 2  ;;  %v575_v40 = vadd.f32 %v511_v25, %v471_v0  ;;  %604 = vst [vmem:[%s1159_s30 + $0x58] sm:$0xff] %v572_v44 }
 0x1a2   : > { %v474_v43 = vmul.f32 %v1328_v49, %v370_v7  ;;  %v376_v8 = vmul.f32 %v1107_v56, %v1022_v12  ;;  %v1330_v63 = vperm.slane %v1098_v48, 3  ;;  %v516_v55 = vperm.slane %v1209_v19, 3  ;;  %605 = vst [vmem:[%s1159_s30 + $0x60] sm:$0xff] %v573_v38 }
 0x1a3   : > { %v475_v61 = vmul.f32 %v1329_v51, %v371_v23  ;;  %v576_v50 = vadd.f32 %v512_v53, %v472_v15  ;;  %v377_v10 = vmul.f32 %v1107_v56, %v1028_v14  ;;  %v1331_v32 = vperm.slane %v1098_v48, 4  ;;  %606 = vst [vmem:[%s1159_s30 + $0x68] sm:$0xff] %v574_v45 }
 0x1a4   : > { %v476_v58 = vmul.f32 %v1330_v63, %v372_v4  ;;  %v517_v5 = vperm.slane %v1209_v19, 4  ;;  %v577_v30 = vadd.f32 %v513_v17, %v473_v46  ;;  %v378_v12 = vmul.f32 %v1107_v56, %v1034_v16  ;;  %607 = vst [vmem:[%s1159_s30 + $0x70] sm:$0xff] %v575_v40 }
 0x1a5   : > { %v477_v59 = vmul.f32 %v1331_v32, %v373_v1  ;;  %v1332_v31 = vperm.slane %v1098_v48, 5  ;;  %v518_v14 = vperm.slane %v1209_v19, 5  ;;  %v578_v13 = vadd.f32 %v514_v47, %v474_v43  ;;  %608 = vst [vmem:[%s1159_s30 + $0x78] sm:$0xff] %v576_v50 }
 0x1a6   : > { %v379_v35 = vmul.f32 %v1107_v56, %v1040_v18  ;;  %v1333_v3 = vperm.slane %v1098_v48, 6  ;;  %v519_v16 = vperm.slane %v1209_v19, 6  ;;  %v579_v37 = vadd.f32 %v515_v34, %v475_v61  ;;  %609 = vst [vmem:[%s1159_s30 + $0x80] sm:$0xff] %v577_v30 }
 0x1a7   : > { %v478_v62 = vmul.f32 %v1332_v31, %v374_v33  ;;  %v380_v36 = vmul.f32 %v1107_v56, %v1046_v20  ;;  %v1334_v60 = vperm.slane %v1098_v48, 7  ;;  %v520_v54 = vperm.slane %v1209_v19, 7  ;;  %610 = vst [vmem:[%s1159_s30 + $0x88] sm:$0xff] %v578_v13 }
 0x1a8   : > { %v479_v9 = vmul.f32 %v1333_v3, %v375_v6  ;;  %v580_v41 = vadd.f32 %v516_v55, %v476_v58  ;;  %v381_v18 = vmul.f32 %v1107_v56, %v1052_v22  ;;  %v1335_v11 = vperm.slane %v1112_v27, 0  ;;  %611 = vst [vmem:[%s1159_s30 + $0x90] sm:$0xff] %v579_v37 }
 0x1a9   : > { %v480_v7 = vmul.f32 %v1334_v60, %v376_v8  ;;  %v521_v23 = vperm.slane %v492_v52, 0  ;;  %v581_v29 = vadd.f32 %v517_v5, %v477_v59  ;;  %v382_v20 = vmul.f32 %v1107_v56, %v1058_v24 }
 0x1aa   : > { %v481_v21 = vmul.f32 %v1335_v11, %v377_v10  ;;  %v1336_v48 = vperm.slane %v1112_v27, 1  ;;  %v522_v19 = vperm.slane %v492_v52, 1  ;;  %v582_v25 = vadd.f32 %v518_v14, %v478_v62  ;;  %612 = vst [vmem:[%s1159_s30 + $0x98] sm:$0xff] %v580_v41 }
 0x1ab   : > { %v383_v22 = vmul.f32 %v1107_v56, %v1064_v26  ;;  %v1337_v2 = vperm.slane %v1112_v27, 2  ;;  %v523_v39 = vperm.slane %v492_v52, 2  ;;  %v583_v15 = vadd.f32 %v519_v16, %v479_v9  ;;  %613 = vst [vmem:[%s1159_s30 + $0xa0] sm:$0xff] %v581_v29 }
 0x1ac   : > { %v482_v0 = vmul.f32 %v1336_v48, %v378_v12  ;;  %v384_v24 = vmul.f32 %v1107_v56, %v1070_v28  ;;  %v1338_v53 = vperm.slane %v1112_v27, 3  ;;  %v524_v1 = vperm.slane %v492_v52, 3  ;;  %614 = vst [vmem:[%s1159_s30 + $0xa8] sm:$0xff] %v582_v25 }
 0x1ad   : > { %v483_v4 = vmul.f32 %v1337_v2, %v379_v35  ;;  %v584_v57 = vadd.f32 %v520_v54, %v480_v7  ;;  %v1339_v46 = vperm.slane %v1112_v27, 4  ;;  %v525_v17 = vperm.slane %v492_v52, 4  ;;  %615 = vst [vmem:[%s1159_s30 + $0xb0] sm:$0xff] %v583_v15 }
 0x1ae   : > { %v484_v44 = vmul.f32 %v1338_v53, %v380_v36  ;;  %v585_v38 = vadd.f32 %v521_v23, %v481_v21  ;;  %v1340_v33 = vperm.slane %v1112_v27, 5  ;;  %v526_v28 = vperm.slane %v492_v52, 5 }
 0x1af   : > { %v485_v26 = vmul.f32 %v1339_v46, %v381_v18  ;;  %v586_v56 = vadd.f32 %v522_v19, %v482_v0  ;;  %v1341_v43 = vperm.slane %v1112_v27, 6  ;;  %v527_v45 = vperm.slane %v492_v52, 6  ;;  %616 = vst [vmem:[%s1159_s30 + $0xb8] sm:$0xff] %v584_v57 }
 0x1b0   : > { %v486_v49 = vmul.f32 %v1340_v33, %v382_v20  ;;  %v587_v6 = vadd.f32 %v523_v39, %v483_v4  ;;  %v488_v51 = vmul.f32 %v424_v42, %v384_v24  ;;  %v528_v61 = vperm.slane %v492_v52, 7  ;;  %617 = vst [vmem:[%s1159_s30 + $0xc0] sm:$0xff] %v585_v38 }
 0x1b1   : > { %v487_v47 = vmul.f32 %v1341_v43, %v383_v22  ;;  %v588_v34 = vadd.f32 %v524_v1, %v484_v44  ;;  %v589_v40 = vadd.f32 %v525_v17, %v485_v26  ;;  %618 = vst [vmem:[%s1159_s30 + $0xc8] sm:$0xff] %v586_v56 }
 0x1b2   : > { %v590_v8 = vadd.f32 %v526_v28, %v486_v49  ;;  %619 = vst [vmem:[%s1159_s30 + $0xd0] sm:$0xff] %v587_v6  ;;  %v592_v58 = vadd.f32 %v528_v61, %v488_v51 }
 0x1b3   : > { %v591_v63 = vadd.f32 %v527_v45, %v487_v47  ;;  %620 = vst [vmem:[%s1159_s30 + $0xd8] sm:$0xff] %v588_v34 }
 0x1b4   : > { %621 = vst [vmem:[%s1159_s30 + $0xe0] sm:$0xff] %v589_v40 }
 0x1b5   : > { %622 = vst [vmem:[%s1159_s30 + $0xe8] sm:$0xff] %v590_v8 }
 0x1b6   : > { %623 = vst [vmem:[%s1159_s30 + $0xf0] sm:$0xff] %v591_v63 }
 0x1b7   : > { %624 = vst [vmem:[%s1159_s30 + $0xf8] sm:$0xff] %v592_v58 }
 0x1b8 PF: > { %s13_s12 = sadd.s32 1, %s712_s12  }
 0x1b9   : > { %p10_p4 = scmp.ge.s32.totalorder %s13_s12, 4  }
 0x1bb   :  { %12 = sbr.rel (!%p10_p4) target bundleno = 1 (0x1), region = 62 }

// kernel: _lambda_.21
= control target key start
LH: loop header
LB: loop body
LE: loop exit
PB: predicated region body
PF: predicated region fallthrough
CT: control target
= control target key end

     0   :  { %s1893_s17 = smov 0   ;;  %s2287_s0 = inlined_call_operand.vmem [shape: bf16[4096,400], index: 0, kind: input, shape index: {}]   ;;  %s2288_s1 = inlined_call_operand.vmem [shape: bf16[400,64], index: 1, kind: input, shape index: {}]   ;;  %s2289_s2 = inlined_call_operand.vmem [shape: f32[1,64], index: 2, kind: input, shape index: {}]   ;;  %s2290_s3 = inlined_call_operand.<no memory space> [shape: f32[1,1], index: 3, kind: input, shape index: {}]   ;;  %s2291_s4 = inlined_call_operand.vmem [shape: f32[4096,64], index: 4, kind: output, shape index: {}]  }
   0x1   :  { %v9_v0 = vstv %s2290_s3 }
   0x2   :  { %10 = vst [vmem:[#allocation2] sm:$0x1] %v9_v0 }
   0x3 LB: > { %s1372_s18 = sadd.s32 4294967295, %s1863_s17   ;;  %p1376_p0 = scmp.ge.s32.totalorder %s1863_s17, 1  ;;  %s1863_s17 = sphi %s1893_s17, %s16_s17  }
   0x4   : > { %p166_p1 = scmp.lt.s32.totalorder %s1863_s17, 17 }
   0x6   : > { %p167_p2 = pnand %p1376_p0, %p166_p1 }
   0x7   : > { %s1377_s24 = sshll.u32 (!%p167_p2), %s1372_s18, 5 }
   0x8   : > { %170 = sbr.rel (%p167_p2) target bundleno = 435 (0x1b3), region = 36  ;;  %p194_p3 = scmp.lt.s32.totalorder (!%p167_p2), %s1377_s24, 511 }
   0xd   : > { %v1828_v1 = vld [vmem:[%s2288_s1 + $0x38] sm:$0xff]  ;;  %v1827_v4 = vld [vmem:[%s2288_s1 + $0x30] sm:$0xff]  ;;  %s2293_s24 = smov (!%p194_p3, %s1377_s24), 511  ;;  %v1826_v7 = vld [vmem:[%s2288_s1 + $0x28] sm:$0xff]  ;;  %vm779_vm0 = vcmask 130048   ;;  %vm1283_vm2 = vcmask 523264  }
   0xe   : > { %v1836_v2 = vld [vmem:[%s2288_s1 + $0x78] sm:$0xff]  ;;  %828 = vmatpush.bf16.msra.mxu0 %v1828_v1  ;;  %v1835_v5 = vld [vmem:[%s2288_s1 + $0x70] sm:$0xff]  ;;  %s1756_s5 = sshll.u32 %s2293_s24, 4  ;;  %v1834_v8 = vld [vmem:[%s2288_s1 + $0x68] sm:$0xff]  ;;  %s1381_s27 = sshll.u32 %s2293_s24, 3 }
   0xf   : > { %v1844_v3 = vld [vmem:[%s2288_s1 + $0xb8] sm:$0xff]  ;;  %917 = vmatpush.bf16.msra.mxu1 %v1836_v2  ;;  %v1843_v6 = vld [vmem:[%s2288_s1 + $0xb0] sm:$0xff]  ;;  %v1845_v9 = vld [vmem:[%s2288_s1 + $0xc0] sm:$0xff]  ;;  %s1934_s14 = scalar_lea.vmem %s2287_s0, %s1756_s5  ;;  %s2087_s30 = scalar_lea.vmem %s2291_s4, %s1381_s27 }
  0x10   : > { %1006 = vmatpush.bf16.msra.mxu2 %v1844_v3  ;;  %v1842_v10 = vld [vmem:[%s2288_s1 + $0xa8] sm:$0xff]  ;;  %v1394_v12 = vld [vmem:[%s1934_s14 + $0x18] sm:$0xf0]  ;;  %1102 = vmatpush.bf16.msra.mxu3 %v1845_v9  ;;  %v1825_v14 = vld [vmem:[%s2288_s1 + $0x20] sm:$0xff] }
  0x11   : > { %v1758_v11 = vld [vmem:[%s1934_s14 + $0xc] sm:$0xf]  ;;  %v1833_v15 = vld [vmem:[%s2288_s1 + $0x60] sm:$0xff]  ;;  %v1824_v17 = vld [vmem:[%s2288_s1 + $0x18] sm:$0xff] }
  0x12   : > { %829 = vmatpush.bf16.msra.mxu0 %v1827_v4  ;;  %v1397_v13 = vor.u32 %v1758_v11, %v1394_v12  ;;  %v1841_v16 = vld [vmem:[%s2288_s1 + $0xa0] sm:$0xff]  ;;  %v1832_v18 = vld [vmem:[%s2288_s1 + $0x58] sm:$0xff]  ;;  %v1823_v20 = vld [vmem:[%s2288_s1 + $0x10] sm:$0xff] }
  0x13   : > { %918 = vmatpush.bf16.msra.mxu1 %v1835_v5  ;;  %v1840_v19 = vld [vmem:[%s2288_s1 + $0x98] sm:$0xff]  ;;  %v1831_v21 = vld [vmem:[%s2288_s1 + $0x50] sm:$0xff]  ;;  %v1762_v23 = vld [vmem:[%s1934_s14 + $0x2c] sm:$0xf] }
  0x14   : > { %1007 = vmatpush.bf16.msra.mxu2 %v1843_v6  ;;  %1738 = vmatmul.msk.bf16.vlgmr.msra.gmra.mxu3 %vm779_vm0, %v1397_v13  ;;  %v1839_v22 = vld [vmem:[%s2288_s1 + $0x90] sm:$0xff]  ;;  %v1410_v24 = vld [vmem:[%s1934_s14 + $0x38] sm:$0xf0]  ;;  %v1822_v25 = vld [vmem:[%s2288_s1 + $0x8] sm:$0xff] }
  0x15   : > { %v1830_v26 = vld [vmem:[%s2288_s1 + $0x48] sm:$0xff]  ;;  %v1413_v28 = vor.u32 %v1762_v23, %v1410_v24  ;;  %v1821_v29 = vld [vmem:[%s2288_s1] sm:$0xff]  ;;  %v1759_v32 = vld [vmem:[%s1934_s14 + $0xc] sm:$0xf0] }
  0x16   : > { %830 = vmatpush.bf16.msra.mxu0 %v1826_v7  ;;  %v1838_v27 = vld [vmem:[%s2288_s1 + $0x88] sm:$0xff]  ;;  %v1829_v30 = vld [vmem:[%s2288_s1 + $0x40] sm:$0xff]  ;;  %v1386_v34 = vld [vmem:[%s1934_s14 + $0x10] sm:$0xf0] }
  0x17   : > { %919 = vmatpush.bf16.msra.mxu1 %v1834_v8  ;;  %v1384_v31 = vld [vmem:[%s1934_s14] sm:$0xf]  ;;  %v1757_v33 = vld [vmem:[%s1934_s14 + $0x4] sm:$0xf]  ;;  %v1392_v36 = vld [vmem:[%s1934_s14 + $0x8] sm:$0xf] }
  0x18   : > { %1008 = vmatpush.bf16.msra.mxu2 %v1842_v10  ;;  %v1837_v35 = vld [vmem:[%s2288_s1 + $0x80] sm:$0xff]  ;;  %v1760_v37 = vld [vmem:[%s1934_s14 + $0x14] sm:$0xf0]  ;;  %v1385_v38 = vor.u32 %v1759_v32, %v1384_v31  ;;  %v1389_v39 = vor.u32 %v1757_v33, %v1386_v34  ;;  %v1766_v41 = vld [vmem:[%s1934_s14 + $0x4c] sm:$0xf] }
  0x19   : > { %v1393_v40 = vor.u32 %v1760_v37, %v1392_v36  ;;  %v1426_v42 = vld [vmem:[%s1934_s14 + $0x58] sm:$0xf0]  ;;  %v1400_v44 = vld [vmem:[%s1934_s14 + $0x20] sm:$0xf]  ;;  %v1763_v45 = vld [vmem:[%s1934_s14 + $0x2c] sm:$0xf0] }
  0x1a   : > { %831 = vmatpush.bf16.msra.mxu0 %v1825_v14  ;;  %v1429_v43 = vor.u32 %v1766_v41, %v1426_v42  ;;  %v1761_v46 = vld [vmem:[%s1934_s14 + $0x24] sm:$0xf]  ;;  %v1402_v47 = vld [vmem:[%s1934_s14 + $0x30] sm:$0xf0]  ;;  %v1408_v48 = vld [vmem:[%s1934_s14 + $0x28] sm:$0xf]  ;;  %v1401_v50 = vor.u32 %v1763_v45, %v1400_v44 }
  0x1b   : > { %920 = vmatpush.bf16.msra.mxu1 %v1833_v15  ;;  %v1764_v49 = vld [vmem:[%s1934_s14 + $0x34] sm:$0xf0]  ;;  %v1405_v51 = vor.u32 %v1761_v46, %v1402_v47  ;;  %v1770_v53 = vld [vmem:[%s1934_s14 + $0x6c] sm:$0xf]  ;;  %v1442_v54 = vld [vmem:[%s1934_s14 + $0x78] sm:$0xf0] }
  0x1c   : > { %1009 = vmatpush.bf16.msra.mxu2 %v1841_v16  ;;  %v1409_v52 = vor.u32 %v1764_v49, %v1408_v48  ;;  %v1445_v55 = vor.u32 %v1770_v53, %v1442_v54  ;;  %v1416_v56 = vld [vmem:[%s1934_s14 + $0x40] sm:$0xf]  ;;  %v1767_v57 = vld [vmem:[%s1934_s14 + $0x4c] sm:$0xf0]  ;;  %v1765_v58 = vld [vmem:[%s1934_s14 + $0x44] sm:$0xf] }
  0x1d   : > { %v1418_v59 = vld [vmem:[%s1934_s14 + $0x50] sm:$0xf0]  ;;  %v1424_v60 = vld [vmem:[%s1934_s14 + $0x48] sm:$0xf]  ;;  %v1768_v61 = vld [vmem:[%s1934_s14 + $0x54] sm:$0xf0]  ;;  %v1417_v62 = vor.u32 %v1767_v57, %v1416_v56 }
  0x1e   : > { %832 = vmatpush.bf16.msra.mxu0 %v1824_v17  ;;  %v1421_v63 = vor.u32 %v1765_v58, %v1418_v59  ;;  %v1425_v0 = vor.u32 %v1768_v61, %v1424_v60  ;;  %v1774_v1 = vld [vmem:[%s1934_s14 + $0x8c] sm:$0xf]  ;;  %v1458_v2 = vld [vmem:[%s1934_s14 + $0x98] sm:$0xf0]  ;;  %v1432_v4 = vld [vmem:[%s1934_s14 + $0x60] sm:$0xf] }
  0x1f   : > { %921 = vmatpush.bf16.msra.mxu1 %v1832_v18  ;;  %v1461_v3 = vor.u32 %v1774_v1, %v1458_v2  ;;  %v1771_v5 = vld [vmem:[%s1934_s14 + $0x6c] sm:$0xf0]  ;;  %v1769_v6 = vld [vmem:[%s1934_s14 + $0x64] sm:$0xf]  ;;  %v1434_v7 = vld [vmem:[%s1934_s14 + $0x70] sm:$0xf0] }
  0x20   : > { %1010 = vmatpush.bf16.msra.mxu2 %v1840_v19  ;;  %v1440_v8 = vld [vmem:[%s1934_s14 + $0x68] sm:$0xf]  ;;  %v1772_v9 = vld [vmem:[%s1934_s14 + $0x74] sm:$0xf0]  ;;  %v1433_v10 = vor.u32 %v1771_v5, %v1432_v4  ;;  %v1437_v11 = vor.u32 %v1769_v6, %v1434_v7  ;;  %v1184_v13 = vld [vmem:[#allocation2] sm:$0x1] }
  0x21   : > { %v1441_v12 = vor.u32 %v1772_v9, %v1440_v8  ;;  %1846 = vpush %v1184_v13  ;;  %v1778_v14 = vld [vmem:[%s1934_s14 + $0xac] sm:$0xf]  ;;  %v1474_v15 = vld [vmem:[%s1934_s14 + $0xb8] sm:$0xf0]  ;;  %v1448_v17 = vld [vmem:[%s1934_s14 + $0x80] sm:$0xf] }
  0x22   : > { %833 = vmatpush.bf16.msra.mxu0 %v1823_v20  ;;  %v1477_v16 = vor.u32 %v1778_v14, %v1474_v15  ;;  %v1775_v18 = vld [vmem:[%s1934_s14 + $0x8c] sm:$0xf0]  ;;  %v1773_v19 = vld [vmem:[%s1934_s14 + $0x84] sm:$0xf]  ;;  %v1450_v20 = vld [vmem:[%s1934_s14 + $0x90] sm:$0xf0] }
  0x23   : > { %922 = vmatpush.bf16.msra.mxu1 %v1831_v21  ;;  %v1456_v21 = vld [vmem:[%s1934_s14 + $0x88] sm:$0xf]  ;;  %v1449_v23 = vor.u32 %v1775_v18, %v1448_v17  ;;  %v1453_v24 = vor.u32 %v1773_v19, %v1450_v20  ;;  %v1777_v31 = vld [vmem:[%s1934_s14 + $0xa4] sm:$0xf]  ;;  %v1466_v32 = vld [vmem:[%s1934_s14 + $0xb0] sm:$0xf0] }
  0x24   : > { %1011 = vmatpush.bf16.msra.mxu2 %v1839_v22  ;;  %1739 = vmatmul.msk.bf16.gmra.mxu3 %vm779_vm0, %v1413_v28  ;;  %v1776_v22 = vld [vmem:[%s1934_s14 + $0x94] sm:$0xf0]  ;;  %v1472_v33 = vld [vmem:[%s1934_s14 + $0xa8] sm:$0xf]  ;;  %v1469_v36 = vor.u32 %v1777_v31, %v1466_v32  ;;  %v1480_v41 = vld [vmem:[%s1934_s14 + $0xc0] sm:$0xf] }
  0x25   : > { %v1780_v34 = vld [vmem:[%s1934_s14 + $0xb4] sm:$0xf0]  ;;  %v1783_v42 = vld [vmem:[%s1934_s14 + $0xcc] sm:$0xf0]  ;;  %v1482_v44 = vld [vmem:[%s1934_s14 + $0xd0] sm:$0xf0] }
  0x26   : > { %834 = vmatpush.bf16.msra.mxu0 %v1822_v25  ;;  %v1457_v25 = vor.u32 %v1776_v22, %v1456_v21  ;;  %v1473_v37 = vor.u32 %v1780_v34, %v1472_v33  ;;  %v1488_v45 = vld [vmem:[%s1934_s14 + $0xc8] sm:$0xf]  ;;  %v1784_v46 = vld [vmem:[%s1934_s14 + $0xd4] sm:$0xf0]  ;;  %v1481_v47 = vor.u32 %v1783_v42, %v1480_v41  ;;  %v1496_v53 = vld [vmem:[%s1934_s14 + $0xe0] sm:$0xf] }
  0x27   : > { %923 = vmatpush.bf16.msra.mxu1 %v1830_v26  ;;  %v1782_v26 = vld [vmem:[%s1934_s14 + $0xcc] sm:$0xf]  ;;  %v1489_v49 = vor.u32 %v1784_v46, %v1488_v45  ;;  %v1787_v54 = vld [vmem:[%s1934_s14 + $0xec] sm:$0xf0]  ;;  %v1498_v56 = vld [vmem:[%s1934_s14 + $0xf0] sm:$0xf0] }
  0x28   : > { %1012 = vmatpush.bf16.msra.mxu2 %v1838_v27  ;;  %v1490_v27 = vld [vmem:[%s1934_s14 + $0xd8] sm:$0xf0]  ;;  %v1504_v57 = vld [vmem:[%s1934_s14 + $0xe8] sm:$0xf]  ;;  %v1788_v58 = vld [vmem:[%s1934_s14 + $0xf4] sm:$0xf0]  ;;  %v1497_v59 = vor.u32 %v1787_v54, %v1496_v53 }
  0x29   : > { %v1493_v28 = vor.u32 %v1782_v26, %v1490_v27  ;;  %v1505_v61 = vor.u32 %v1788_v58, %v1504_v57  ;;  %v1791_v4 = vld [vmem:[%s1934_s14 + $0x10c] sm:$0xf0]  ;;  %v1789_v5 = vld [vmem:[%s1934_s14 + $0x104] sm:$0xf]  ;;  %v1514_v6 = vld [vmem:[%s1934_s14 + $0x110] sm:$0xf0] }
  0x2a   : > { %835 = vmatpush.bf16.msra.mxu0 %v1821_v29  ;;  %v1464_v29 = vld [vmem:[%s1934_s14 + $0xa0] sm:$0xf]  ;;  %v1520_v8 = vld [vmem:[%s1934_s14 + $0x108] sm:$0xf]  ;;  %v1792_v9 = vld [vmem:[%s1934_s14 + $0x114] sm:$0xf0] }
  0x2b   : > { %924 = vmatpush.bf16.msra.mxu1 %v1829_v30  ;;  %v1779_v30 = vld [vmem:[%s1934_s14 + $0xac] sm:$0xf0]  ;;  %v2068_v7 = vld [vmem:[%s2289_s2] ss:$0 sm:$0xff]  ;;  %v1521_v14 = vor.u32 %v1792_v9, %v1520_v8  ;;  %v1798_v18 = vld [vmem:[%s1934_s14 + $0x14c] sm:$0xf] }
  0x2c   : > { %1013 = vmatpush.bf16.msra.mxu2 %v1837_v35  ;;  %v1465_v35 = vor.u32 %v1779_v30, %v1464_v29  ;;  %v1554_v19 = vld [vmem:[%s1934_s14 + $0x158] sm:$0xf0]  ;;  %v1528_v29 = vld [vmem:[%s1934_s14 + $0x120] sm:$0xf]  ;;  %v1795_v30 = vld [vmem:[%s1934_s14 + $0x12c] sm:$0xf0] }
  0x2d   : > { %836 = vmatmul.bf16.vlgmr.msra.gmra.mxu0 %v1385_v38  ;;  %v1786_v38 = vld [vmem:[%s1934_s14 + $0xec] sm:$0xf]  ;;  %v1557_v26 = vor.u32 %v1798_v18, %v1554_v19  ;;  %v1793_v32 = vld [vmem:[%s1934_s14 + $0x124] sm:$0xf]  ;;  %v1530_v33 = vld [vmem:[%s1934_s14 + $0x130] sm:$0xf0] }
  0x2e   : > { %925 = vmatmul.bf16.vlgmr.msra.gmra.mxu1 %v1389_v39  ;;  %v1506_v39 = vld [vmem:[%s1934_s14 + $0xf8] sm:$0xf0]  ;;  %v1536_v34 = vld [vmem:[%s1934_s14 + $0x128] sm:$0xf] }
  0x2f   : > { %1014 = vmatmul.bf16.vlgmr.msra.gmra.mxu2 %v1393_v40  ;;  %v1509_v40 = vor.u32 %v1786_v38, %v1506_v39  ;;  %v1529_v39 = vor.u32 %v1795_v30, %v1528_v29 }
  0x34   : > { %1740 = vmatmul.msk.bf16.gmra.mxu3 %vm779_vm0, %v1429_v43  ;;  %v1781_v43 = vld [vmem:[%s1934_s14 + $0xc4] sm:$0xf] }
  0x35   : > { %v1485_v48 = vor.u32 %v1781_v43, %v1482_v44 }
  0x3d   : > { %841 = vmatmul.bf16.gmra.mxu0 %v1401_v50  ;;  %v1790_v50 = vld [vmem:[%s1934_s14 + $0x10c] sm:$0xf] }
  0x3e   : > { %930 = vmatmul.bf16.gmra.mxu1 %v1405_v51  ;;  %v1522_v51 = vld [vmem:[%s1934_s14 + $0x118] sm:$0xf0] }
  0x3f   : > { %1019 = vmatmul.bf16.gmra.mxu2 %v1409_v52  ;;  %v1525_v52 = vor.u32 %v1790_v50, %v1522_v51  ;;  %v1802_v51 = vld [vmem:[%s1934_s14 + $0x16c] sm:$0xf] }
  0x44   : > { %1741 = vmatmul.msk.bf16.gmra.mxu3 %vm779_vm0, %v1445_v55  ;;  %v1785_v55 = vld [vmem:[%s1934_s14 + $0xe4] sm:$0xf] }
  0x45   : > { %v1501_v60 = vor.u32 %v1785_v55, %v1498_v56 }
  0x4d   : > { %846 = vmatmul.bf16.gmra.mxu0 %v1417_v62 }
  0x4e   : > { %935 = vmatmul.bf16.gmra.mxu1 %v1421_v63  ;;  %v1794_v63 = vld [vmem:[%s1934_s14 + $0x12c] sm:$0xf] }
  0x4f   : > { %1024 = vmatmul.bf16.gmra.mxu2 %v1425_v0  ;;  %v1538_v0 = vld [vmem:[%s1934_s14 + $0x138] sm:$0xf0] }
  0x50   : > { %v1541_v2 = vor.u32 %v1794_v63, %v1538_v0  ;;  %v1797_v0 = vld [vmem:[%s1934_s14 + $0x144] sm:$0xf] }
  0x52   : > { %s1847_s26 = spop %1846 }
  0x54   : > { %1742 = vmatmul.msk.bf16.gmra.mxu3 %vm779_vm0, %v1461_v3  ;;  %v1512_v3 = vld [vmem:[%s1934_s14 + $0x100] sm:$0xf] }
  0x5d   : > { %851 = vmatmul.bf16.gmra.mxu0 %v1433_v10  ;;  %v1513_v10 = vor.u32 %v1791_v4, %v1512_v3  ;;  %v1800_v3 = vld [vmem:[%s1934_s14 + $0x154] sm:$0xf0] }
  0x5e   : > { %940 = vmatmul.bf16.gmra.mxu1 %v1437_v11  ;;  %v1517_v11 = vor.u32 %v1789_v5, %v1514_v6 }
  0x5f   : > { %1029 = vmatmul.bf16.gmra.mxu2 %v1441_v12 }
  0x64   : > { %1743 = vmatmul.msk.bf16.gmra.mxu3 %vm779_vm0, %v1477_v16 }
  0x6d   : > { %856 = vmatmul.bf16.gmra.mxu0 %v1449_v23 }
  0x6e   : > { %945 = vmatmul.bf16.gmra.mxu1 %v1453_v24  ;;  %v2077_v24 = vstv %s1847_s26 }
  0x6f   : > { %1034 = vmatmul.bf16.gmra.mxu2 %v1457_v25 }
  0x74   : > { %1744 = vmatmul.msk.bf16.gmra.mxu3 %vm779_vm0, %v1493_v28 }
  0x7d   : > { %861 = vmatmul.bf16.gmra.mxu0 %v1465_v35  ;;  %v1796_v35 = vld [vmem:[%s1934_s14 + $0x134] sm:$0xf0] }
  0x7e   : > { %950 = vmatmul.bf16.gmra.mxu1 %v1469_v36  ;;  %v1537_v44 = vor.u32 %v1796_v35, %v1536_v34  ;;  %v1801_v34 = vld [vmem:[%s1934_s14 + $0x164] sm:$0xf]  ;;  %v1562_v35 = vld [vmem:[%s1934_s14 + $0x170] sm:$0xf0] }
  0x7f   : > { %1039 = vmatmul.bf16.gmra.mxu2 %v1473_v37 }
  0x84   : > { %1745 = vmatmul.msk.bf16.gmra.mxu3 %vm779_vm0, %v1509_v40  ;;  %v1533_v40 = vor.u32 %v1793_v32, %v1530_v33  ;;  %v1803_v32 = vld [vmem:[%s1934_s14 + $0x16c] sm:$0xf0] }
  0x8d   : > { %866 = vmatmul.bf16.gmra.mxu0 %v1481_v47 }
  0x8e   : > { %955 = vmatmul.bf16.gmra.mxu1 %v1485_v48 }
  0x8f   : > { %1044 = vmatmul.bf16.gmra.mxu2 %v1489_v49 }
  0x94   : > { %1746 = vmatmul.msk.bf16.gmra.mxu3 %vm779_vm0, %v1525_v52  ;;  %v1570_v52 = vld [vmem:[%s1934_s14 + $0x178] sm:$0xf0] }
  0x95   : > { %v1573_v58 = vor.u32 %v1802_v51, %v1570_v52 }
  0x97   : > { %v1104_v62 = vpop.f32.mrf.mxu3 }
  0x9d   : > { %871 = vmatmul.bf16.gmra.mxu0 %v1497_v59 }
  0x9e   : > { %960 = vmatmul.bf16.gmra.mxu1 %v1501_v60 }
  0x9f   : > { %1049 = vmatmul.bf16.gmra.mxu2 %v1505_v61  ;;  %v1106_v1 = vpop.f32.mrf.mxu3  ;;  %v1544_v61 = vld [vmem:[%s1934_s14 + $0x140] sm:$0xf] }
  0xa4   : > { %1747 = vmatmul.msk.bf16.gmra.mxu3 %vm779_vm0, %v1541_v2  ;;  %v1552_v2 = vld [vmem:[%s1934_s14 + $0x148] sm:$0xf] }
  0xa7   : > { %v1109_v16 = vpop.f32.mrf.mxu3 }
  0xaa   : > { %v837_v12 = vpop.f32.mrf.mxu0 }
  0xab   : > { %v926_v13 = vpop.f32.mrf.mxu1  ;;  %v838_v15 = vadd.f32 %v2068_v7, %v837_v12 }
  0xad   : > { %876 = vmatmul.bf16.gmra.mxu0 %v1513_v10  ;;  %v927_v17 = vadd.f32 %v926_v13, %v838_v15  ;;  %v1553_v13 = vor.u32 %v1800_v3, %v1552_v2  ;;  %v1805_v2 = vld [vmem:[%s1934_s14 + $0x184] sm:$0xf]  ;;  %v1578_v3 = vld [vmem:[%s1934_s14 + $0x190] sm:$0xf0] }
  0xae   : > { %965 = vmatmul.bf16.gmra.mxu1 %v1517_v11 }
  0xaf   : > { %1054 = vmatmul.bf16.gmra.mxu2 %v1521_v14  ;;  %v2079_v25 = vpop.f32.mrf.mxu3 }
  0xb2   : > { %v1015_v20 = vpop.f32.mrf.mxu2  ;;  %v839_v22 = vpop.f32.mrf.mxu0 }
  0xb3   : > { %v1016_v21 = vadd.f32 %v1015_v20, %v927_v17  ;;  %v928_v23 = vpop.f32.mrf.mxu1  ;;  %v840_v28 = vadd.f32 %v2068_v7, %v839_v22  ;;  %v1806_v20 = vld [vmem:[%s1934_s14 + $0x18c] sm:$0xf] }
  0xb4   : > { %1748 = vmatmul.msk.bf16.gmra.mxu3 %vm779_vm0, %v1557_v26 }
  0xb5   : > { %v1105_v27 = vadd.f32 %v1104_v62, %v1016_v21  ;;  %v929_v36 = vadd.f32 %v928_v23, %v840_v28  ;;  %v1799_v62 = vld [vmem:[%s1934_s14 + $0x14c] sm:$0xf0]  ;;  %v1586_v21 = vld [vmem:[%s1934_s14 + $0x198] sm:$0xf0] }
  0xb6   : > { %v1545_v8 = vor.u32 %v1799_v62, %v1544_v61  ;;  %v1589_v28 = vor.u32 %v1806_v20, %v1586_v21 }
  0xb7   : > { %vm1186_vm1 = vcmp.ge.f32.partialorder %v1105_v27, 0.0  ;;  %v1219_v31 = vmul.f32 %v2077_v24, %v1105_v27  ;;  %v1114_v46 = vpop.f32.mrf.mxu3 }
  0xb9   : > { %v1251_v37 = vsel %vm1186_vm1, %v1105_v27, %v1219_v31  ;;  %v1560_v31 = vld [vmem:[%s1934_s14 + $0x160] sm:$0xf] }
  0xba   : > { %1284 = vst.msk [vmem:[%s2087_s30] sm:$0xff] %vm1283_vm2, %v1251_v37  ;;  %v1017_v38 = vpop.f32.mrf.mxu2  ;;  %v842_v42 = vpop.f32.mrf.mxu0  ;;  %v1804_v37 = vld [vmem:[%s1934_s14 + $0x174] sm:$0xf0] }
  0xbb   : > { %v1018_v41 = vadd.f32 %v1017_v38, %v929_v36  ;;  %v931_v43 = vpop.f32.mrf.mxu1  ;;  %v843_v45 = vadd.f32 %v2068_v7, %v842_v42  ;;  %v1568_v36 = vld [vmem:[%s1934_s14 + $0x168] sm:$0xf]  ;;  %v1565_v42 = vor.u32 %v1801_v34, %v1562_v35  ;;  %v1811_v34 = vld [vmem:[%s1934_s14 + $0x1ac] sm:$0xf0] }
  0xbd   : > { %v1107_v47 = vadd.f32 %v1106_v1, %v1018_v41  ;;  %881 = vmatmul.bf16.gmra.mxu0 %v1529_v39  ;;  %v932_v49 = vadd.f32 %v931_v43, %v843_v45  ;;  %v1546_v1 = vld [vmem:[%s1934_s14 + $0x150] sm:$0xf0]  ;;  %v1561_v41 = vor.u32 %v1803_v32, %v1560_v31 }
  0xbe   : > { %970 = vmatmul.bf16.gmra.mxu1 %v1533_v40  ;;  %v1549_v9 = vor.u32 %v1797_v0, %v1546_v1  ;;  %v1807_v0 = vld [vmem:[%s1934_s14 + $0x18c] sm:$0xf0] }
  0xbf   : > { %vm1187_vm3 = vcmp.ge.f32.partialorder %v1107_v47, 0.0  ;;  %v1220_v48 = vmul.f32 %v2077_v24, %v1107_v47  ;;  %1059 = vmatmul.bf16.gmra.mxu2 %v1537_v44  ;;  %v2103_v57 = vpop.f32.mrf.mxu3 }
  0xc1   : > { %v1252_v50 = vsel %vm1187_vm3, %v1107_v47, %v1220_v48 }
  0xc2   : > { %1285 = vst.msk [vmem:[%s2087_s30 + $0x8] sm:$0xff] %vm1283_vm2, %v1252_v50  ;;  %v1020_v53 = vpop.f32.mrf.mxu2  ;;  %v844_v55 = vpop.f32.mrf.mxu0 }
  0xc3   : > { %v1021_v54 = vadd.f32 %v1020_v53, %v932_v49  ;;  %v933_v56 = vpop.f32.mrf.mxu1  ;;  %v845_v60 = vadd.f32 %v2068_v7, %v844_v55  ;;  %v1810_v53 = vld [vmem:[%s1934_s14 + $0x1ac] sm:$0xf] }
  0xc4   : > { %1749 = vmatmul.msk.bf16.gmra.mxu3 %vm779_vm0, %v1573_v58 }
  0xc5   : > { %v1110_v59 = vadd.f32 %v1109_v16, %v1021_v54  ;;  %v934_v5 = vadd.f32 %v933_v56, %v845_v60  ;;  %v1602_v54 = vld [vmem:[%s1934_s14 + $0x1b8] sm:$0xf0] }
  0xc6   : > { %v1605_v60 = vor.u32 %v1810_v53, %v1602_v54 }
  0xc7   : > { %vm1188_vm4 = vcmp.ge.f32.partialorder %v1110_v59, 0.0  ;;  %v1221_v63 = vmul.f32 %v2077_v24, %v1110_v59  ;;  %v1119_v15 = vpop.f32.mrf.mxu3 }
  0xc9   : > { %v1253_v4 = vsel %vm1188_vm4, %v1110_v59, %v1221_v63  ;;  %v1576_v63 = vld [vmem:[%s1934_s14 + $0x180] sm:$0xf] }
  0xca   : > { %1286 = vst.msk [vmem:[%s2087_s30 + $0x10] sm:$0xff] %vm1283_vm2, %v1253_v4  ;;  %v1022_v6 = vpop.f32.mrf.mxu2  ;;  %v847_v11 = vpop.f32.mrf.mxu0  ;;  %v1584_v4 = vld [vmem:[%s1934_s14 + $0x188] sm:$0xf] }
  0xcb   : > { %v1023_v10 = vadd.f32 %v1022_v6, %v934_v5  ;;  %v936_v12 = vpop.f32.mrf.mxu1  ;;  %v848_v14 = vadd.f32 %v2068_v7, %v847_v11  ;;  %v1808_v5 = vld [vmem:[%s1934_s14 + $0x194] sm:$0xf0]  ;;  %v1581_v11 = vor.u32 %v1805_v2, %v1578_v3  ;;  %v1815_v2 = vld [vmem:[%s1934_s14 + $0x1cc] sm:$0xf0] }
  0xcd   : > { %v1112_v16 = vadd.f32 %v2079_v25, %v1023_v10  ;;  %886 = vmatmul.bf16.gmra.mxu0 %v1545_v8  ;;  %v937_v18 = vadd.f32 %v936_v12, %v848_v14  ;;  %v1577_v10 = vor.u32 %v1807_v0, %v1576_v63 }
  0xce   : > { %975 = vmatmul.bf16.gmra.mxu1 %v1549_v9 }
  0xcf   : > { %vm1189_vm5 = vcmp.ge.f32.partialorder %v1112_v16, 0.0  ;;  %v1222_v17 = vmul.f32 %v2077_v24, %v1112_v16  ;;  %1064 = vmatmul.bf16.gmra.mxu2 %v1553_v13  ;;  %v2123_v27 = vpop.f32.mrf.mxu3 }
  0xd1   : > { %v1254_v19 = vsel %vm1189_vm5, %v1112_v16, %v1222_v17 }
  0xd2   : > { %1287 = vst.msk [vmem:[%s2087_s30 + $0x18] sm:$0xff] %vm1283_vm2, %v1254_v19  ;;  %v1025_v22 = vpop.f32.mrf.mxu2  ;;  %v849_v25 = vpop.f32.mrf.mxu0 }
  0xd3   : > { %v1026_v23 = vadd.f32 %v1025_v22, %v937_v18  ;;  %v938_v26 = vpop.f32.mrf.mxu1  ;;  %v850_v30 = vadd.f32 %v2068_v7, %v849_v25  ;;  %v1814_v22 = vld [vmem:[%s1934_s14 + $0x1cc] sm:$0xf] }
  0xd4   : > { %1750 = vmatmul.msk.bf16.gmra.mxu3 %vm779_vm0, %v1589_v28 }
  0xd5   : > { %v1115_v29 = vadd.f32 %v1114_v46, %v1026_v23  ;;  %v939_v39 = vadd.f32 %v938_v26, %v850_v30  ;;  %v1569_v46 = vor.u32 %v1804_v37, %v1568_v36  ;;  %v1618_v23 = vld [vmem:[%s1934_s14 + $0x1d8] sm:$0xf0]  ;;  %v1809_v36 = vld [vmem:[%s1934_s14 + $0x1a4] sm:$0xf]  ;;  %v1594_v37 = vld [vmem:[%s1934_s14 + $0x1b0] sm:$0xf0] }
  0xd6   : > { %v1621_v30 = vor.u32 %v1814_v22, %v1618_v23 }
  0xd7   : > { %vm1190_vm6 = vcmp.ge.f32.partialorder %v1115_v29, 0.0  ;;  %v1223_v33 = vmul.f32 %v2077_v24, %v1115_v29  ;;  %v1124_v48 = vpop.f32.mrf.mxu3 }
  0xd9   : > { %v1255_v38 = vsel %vm1190_vm6, %v1115_v29, %v1223_v33  ;;  %v1592_v33 = vld [vmem:[%s1934_s14 + $0x1a0] sm:$0xf] }
  0xda   : > { %1288 = vst.msk [vmem:[%s2087_s30 + $0x20] sm:$0xff] %vm1283_vm2, %v1255_v38  ;;  %v1027_v40 = vpop.f32.mrf.mxu2  ;;  %v852_v44 = vpop.f32.mrf.mxu0  ;;  %v1600_v38 = vld [vmem:[%s1934_s14 + $0x1a8] sm:$0xf] }
  0xdb   : > { %v1028_v43 = vadd.f32 %v1027_v40, %v939_v39  ;;  %v941_v45 = vpop.f32.mrf.mxu1  ;;  %v853_v47 = vadd.f32 %v2068_v7, %v852_v44  ;;  %v1812_v39 = vld [vmem:[%s1934_s14 + $0x1b4] sm:$0xf0]  ;;  %v1597_v44 = vor.u32 %v1809_v36, %v1594_v37  ;;  %v1626_v36 = vld [vmem:[%s1934_s14 + $0x1f0] sm:$0xf0]  ;;  %v1632_v37 = vld [vmem:[%s1934_s14 + $0x1e8] sm:$0xf] }
  0xdd   : > { %v1117_v49 = vadd.f32 %v2103_v57, %v1028_v43  ;;  %891 = vmatmul.bf16.gmra.mxu0 %v1561_v41  ;;  %v942_v51 = vadd.f32 %v941_v45, %v853_v47  ;;  %v1593_v43 = vor.u32 %v1811_v34, %v1592_v33  ;;  %v1819_v33 = vld [vmem:[%s1934_s14 + $0x1ec] sm:$0xf0] }
  0xde   : > { %980 = vmatmul.bf16.gmra.mxu1 %v1565_v42 }
  0xdf   : > { %vm1191_vm7 = vcmp.ge.f32.partialorder %v1117_v49, 0.0  ;;  %v1224_v50 = vmul.f32 %v2077_v24, %v1117_v49  ;;  %1069 = vmatmul.bf16.gmra.mxu2 %v1569_v46  ;;  %v2143_v59 = vpop.f32.mrf.mxu3 }
  0xe1   : > { %v1256_v52 = vsel %vm1191_vm7, %v1117_v49, %v1224_v50 }
  0xe2   : > { %1289 = vst.msk [vmem:[%s2087_s30 + $0x28] sm:$0xff] %vm1283_vm2, %v1256_v52  ;;  %v1030_v55 = vpop.f32.mrf.mxu2  ;;  %v854_v57 = vpop.f32.mrf.mxu0 }
  0xe3   : > { %v1031_v56 = vadd.f32 %v1030_v55, %v942_v51  ;;  %v943_v58 = vpop.f32.mrf.mxu1  ;;  %v855_v62 = vadd.f32 %v2068_v7, %v854_v57  ;;  %v1818_v55 = vld [vmem:[%s1934_s14 + $0x1ec] sm:$0xf] }
  0xe4   : > { %1751 = vmatmul.msk.bf16.gmra.mxu3 %vm779_vm0, %v1605_v60 }
  0xe5   : > { %v1120_v61 = vadd.f32 %v1119_v15, %v1031_v56  ;;  %v944_v8 = vadd.f32 %v943_v58, %v855_v62  ;;  %v1585_v15 = vor.u32 %v1808_v5, %v1584_v4  ;;  %v1634_v56 = vld [vmem:[%s1934_s14 + $0x1f8] sm:$0xf0]  ;;  %v1813_v4 = vld [vmem:[%s1934_s14 + $0x1c4] sm:$0xf]  ;;  %v1610_v5 = vld [vmem:[%s1934_s14 + $0x1d0] sm:$0xf0] }
  0xe6   : > { %v1637_v62 = vor.u32 %v1818_v55, %v1634_v56 }
  0xe7   : > { %vm1192_vm8 = vcmp.ge.f32.partialorder %v1120_v61, 0.0  ;;  %v1225_v1 = vmul.f32 %v2077_v24, %v1120_v61  ;;  %v1129_v17 = vpop.f32.mrf.mxu3 }
  0xe9   : > { %v1257_v6 = vsel %vm1192_vm8, %v1120_v61, %v1225_v1  ;;  %v1608_v1 = vld [vmem:[%s1934_s14 + $0x1c0] sm:$0xf] }
  0xea   : > { %1290 = vst.msk [vmem:[%s2087_s30 + $0x30] sm:$0xff] %vm1283_vm2, %v1257_v6  ;;  %v1032_v9 = vpop.f32.mrf.mxu2  ;;  %v857_v13 = vpop.f32.mrf.mxu0  ;;  %v1616_v6 = vld [vmem:[%s1934_s14 + $0x1c8] sm:$0xf] }
  0xeb   : > { %v1033_v12 = vadd.f32 %v1032_v9, %v944_v8  ;;  %v946_v14 = vpop.f32.mrf.mxu1  ;;  %v858_v16 = vadd.f32 %v2068_v7, %v857_v13  ;;  %v1816_v8 = vld [vmem:[%s1934_s14 + $0x1d4] sm:$0xf0]  ;;  %v1613_v13 = vor.u32 %v1813_v4, %v1610_v5 }
  0xed   : > { %v1122_v18 = vadd.f32 %v2123_v27, %v1033_v12  ;;  %896 = vmatmul.bf16.gmra.mxu0 %v1577_v10  ;;  %v947_v20 = vadd.f32 %v946_v14, %v858_v16  ;;  %v1609_v12 = vor.u32 %v1815_v2, %v1608_v1 }
  0xee   : > { %985 = vmatmul.bf16.gmra.mxu1 %v1581_v11 }
  0xef   : > { %vm1193_vm9 = vcmp.ge.f32.partialorder %v1122_v18, 0.0  ;;  %v1226_v19 = vmul.f32 %v2077_v24, %v1122_v18  ;;  %1074 = vmatmul.bf16.gmra.mxu2 %v1585_v15  ;;  %v2163_v29 = vpop.f32.mrf.mxu3 }
  0xf1   : > { %v1258_v21 = vsel %vm1193_vm9, %v1122_v18, %v1226_v19 }
  0xf2   : > { %1291 = vst.msk [vmem:[%s2087_s30 + $0x38] sm:$0xff] %vm1283_vm2, %v1258_v21  ;;  %v1035_v25 = vpop.f32.mrf.mxu2  ;;  %v859_v27 = vpop.f32.mrf.mxu0 }
  0xf3   : > { %v1036_v26 = vadd.f32 %v1035_v25, %v947_v20  ;;  %v948_v28 = vpop.f32.mrf.mxu1  ;;  %v860_v32 = vadd.f32 %v2068_v7, %v859_v27 }
  0xf4   : > { %1752 = vmatmul.msk.bf16.gmra.mxu3 %vm779_vm0, %v1621_v30 }
  0xf5   : > { %v1125_v31 = vadd.f32 %v1124_v48, %v1036_v26  ;;  %v949_v41 = vadd.f32 %v948_v28, %v860_v32  ;;  %v1601_v48 = vor.u32 %v1812_v39, %v1600_v38  ;;  %v1624_v32 = vld [vmem:[%s1934_s14 + $0x1e0] sm:$0xf]  ;;  %v1820_v38 = vld [vmem:[%s1934_s14 + $0x1f4] sm:$0xf0] }
  0xf7   : > { %vm1194_vm10 = vcmp.ge.f32.partialorder %v1125_v31, 0.0  ;;  %v1227_v35 = vmul.f32 %v2077_v24, %v1125_v31  ;;  %v1134_v50 = vpop.f32.mrf.mxu3 }
  0xf9   : > { %v1259_v40 = vsel %vm1194_vm10, %v1125_v31, %v1227_v35  ;;  %v1817_v35 = vld [vmem:[%s1934_s14 + $0x1e4] sm:$0xf] }
  0xfa   : > { %1292 = vst.msk [vmem:[%s2087_s30 + $0x40] sm:$0xff] %vm1283_vm2, %v1259_v40  ;;  %v1037_v42 = vpop.f32.mrf.mxu2  ;;  %v862_v46 = vpop.f32.mrf.mxu0 }
  0xfb   : > { %v1038_v45 = vadd.f32 %v1037_v42, %v949_v41  ;;  %v951_v47 = vpop.f32.mrf.mxu1  ;;  %v863_v49 = vadd.f32 %v2068_v7, %v862_v46  ;;  %v1625_v42 = vor.u32 %v1819_v33, %v1624_v32 }
  0xfd   : > { %v1127_v51 = vadd.f32 %v2143_v59, %v1038_v45  ;;  %901 = vmatmul.bf16.gmra.mxu0 %v1593_v43  ;;  %v952_v53 = vadd.f32 %v951_v47, %v863_v49  ;;  %v1629_v43 = vor.u32 %v1817_v35, %v1626_v36  ;;  %v1633_v47 = vor.u32 %v1820_v38, %v1632_v37 }
  0xfe   : > { %990 = vmatmul.bf16.gmra.mxu1 %v1597_v44 }
  0xff   : > { %vm1195_vm11 = vcmp.ge.f32.partialorder %v1127_v51, 0.0  ;;  %v1228_v52 = vmul.f32 %v2077_v24, %v1127_v51  ;;  %1079 = vmatmul.bf16.gmra.mxu2 %v1601_v48  ;;  %v1136_v61 = vpop.f32.mrf.mxu3 }
 0x101   : > { %v1260_v54 = vsel %vm1195_vm11, %v1127_v51, %v1228_v52 }
 0x102   : > { %1293 = vst.msk [vmem:[%s2087_s30 + $0x48] sm:$0xff] %vm1283_vm2, %v1260_v54  ;;  %v1040_v57 = vpop.f32.mrf.mxu2  ;;  %v864_v59 = vpop.f32.mrf.mxu0 }
 0x103   : > { %v1041_v58 = vadd.f32 %v1040_v57, %v952_v53  ;;  %v953_v60 = vpop.f32.mrf.mxu1  ;;  %v865_v0 = vadd.f32 %v2068_v7, %v864_v59 }
 0x104   : > { %1753 = vmatmul.msk.bf16.gmra.mxu3 %vm779_vm0, %v1637_v62 }
 0x105   : > { %v1130_v63 = vadd.f32 %v1129_v17, %v1041_v58  ;;  %v954_v10 = vadd.f32 %v953_v60, %v865_v0  ;;  %v1617_v17 = vor.u32 %v1816_v8, %v1616_v6 }
 0x107   : > { %vm1196_vm12 = vcmp.ge.f32.partialorder %v1130_v63, 0.0  ;;  %v1229_v3 = vmul.f32 %v2077_v24, %v1130_v63  ;;  %v1139_v19 = vpop.f32.mrf.mxu3 }
 0x109   : > { %v1261_v9 = vsel %vm1196_vm12, %v1130_v63, %v1229_v3 }
 0x10a   : > { %1294 = vst.msk [vmem:[%s2087_s30 + $0x50] sm:$0xff] %vm1283_vm2, %v1261_v9  ;;  %v1042_v11 = vpop.f32.mrf.mxu2  ;;  %v867_v15 = vpop.f32.mrf.mxu0 }
 0x10b   : > { %v1043_v14 = vadd.f32 %v1042_v11, %v954_v10  ;;  %v956_v16 = vpop.f32.mrf.mxu1  ;;  %v868_v18 = vadd.f32 %v2068_v7, %v867_v15 }
 0x10d   : > { %v1132_v20 = vadd.f32 %v2163_v29, %v1043_v14  ;;  %906 = vmatmul.bf16.gmra.mxu0 %v1609_v12  ;;  %v957_v22 = vadd.f32 %v956_v16, %v868_v18 }
 0x10e   : > { %995 = vmatmul.bf16.gmra.mxu1 %v1613_v13 }
 0x10f   : > { %vm1197_vm13 = vcmp.ge.f32.partialorder %v1132_v20, 0.0  ;;  %v1230_v21 = vmul.f32 %v2077_v24, %v1132_v20  ;;  %1084 = vmatmul.bf16.gmra.mxu2 %v1617_v17  ;;  %v1141_v29 = vpop.f32.mrf.mxu3 }
 0x111   : > { %v1262_v23 = vsel %vm1197_vm13, %v1132_v20, %v1230_v21 }
 0x112   : > { %1295 = vst.msk [vmem:[%s2087_s30 + $0x58] sm:$0xff] %vm1283_vm2, %v1262_v23  ;;  %v1045_v25 = vpop.f32.mrf.mxu2  ;;  %v869_v27 = vpop.f32.mrf.mxu0 }
 0x113   : > { %v1046_v26 = vadd.f32 %v1045_v25, %v957_v22  ;;  %v958_v28 = vpop.f32.mrf.mxu1  ;;  %v870_v31 = vadd.f32 %v2068_v7, %v869_v27 }
 0x115   : > { %v1135_v30 = vadd.f32 %v1134_v50, %v1046_v26  ;;  %v959_v40 = vadd.f32 %v958_v28, %v870_v31 }
 0x117   : > { %vm1198_vm14 = vcmp.ge.f32.partialorder %v1135_v30, 0.0  ;;  %v1231_v34 = vmul.f32 %v2077_v24, %v1135_v30  ;;  %v1144_v49 = vpop.f32.mrf.mxu3 }
 0x119   : > { %v1263_v39 = vsel %vm1198_vm14, %v1135_v30, %v1231_v34 }
 0x11a   : > { %1296 = vst.msk [vmem:[%s2087_s30 + $0x60] sm:$0xff] %vm1283_vm2, %v1263_v39  ;;  %v1047_v41 = vpop.f32.mrf.mxu2  ;;  %v872_v45 = vpop.f32.mrf.mxu0 }
 0x11b   : > { %v1048_v44 = vadd.f32 %v1047_v41, %v959_v40  ;;  %v961_v46 = vpop.f32.mrf.mxu1  ;;  %v873_v48 = vadd.f32 %v2068_v7, %v872_v45 }
 0x11d   : > { %v1137_v50 = vadd.f32 %v1136_v61, %v1048_v44  ;;  %911 = vmatmul.bf16.gmra.mxu0 %v1625_v42  ;;  %v962_v52 = vadd.f32 %v961_v46, %v873_v48 }
 0x11e   : > { %1000 = vmatmul.bf16.gmra.mxu1 %v1629_v43 }
 0x11f   : > { %vm1199_vm15 = vcmp.ge.f32.partialorder %v1137_v50, 0.0  ;;  %v1232_v51 = vmul.f32 %v2077_v24, %v1137_v50  ;;  %1089 = vmatmul.bf16.gmra.mxu2 %v1633_v47  ;;  %v1146_v58 = vpop.f32.mrf.mxu3 }
 0x121   : > { %v1264_v53 = vsel %vm1199_vm15, %v1137_v50, %v1232_v51 }
 0x122   : > { %1297 = vst.msk [vmem:[%s2087_s30 + $0x68] sm:$0xff] %vm1283_vm2, %v1264_v53  ;;  %v1050_v54 = vpop.f32.mrf.mxu2  ;;  %v874_v56 = vpop.f32.mrf.mxu0 }
 0x123   : > { %v1051_v55 = vadd.f32 %v1050_v54, %v962_v52  ;;  %v963_v57 = vpop.f32.mrf.mxu1  ;;  %v875_v60 = vadd.f32 %v2068_v7, %v874_v56 }
 0x125   : > { %v1140_v59 = vadd.f32 %v1139_v19, %v1051_v55  ;;  %v964_v63 = vadd.f32 %v963_v57, %v875_v60 }
 0x127   : > { %vm1200_vm0 = vcmp.ge.f32.partialorder %v1140_v59, 0.0  ;;  %v1233_v61 = vmul.f32 %v2077_v24, %v1140_v59  ;;  %v1149_v5 = vpop.f32.mrf.mxu3 }
 0x129   : > { %v1265_v62 = vsel %vm1200_vm0, %v1140_v59, %v1233_v61 }
 0x12a   : > { %1298 = vst.msk [vmem:[%s2087_s30 + $0x70] sm:$0xff] %vm1283_vm2, %v1265_v62  ;;  %v1052_v0 = vpop.f32.mrf.mxu2  ;;  %v877_v2 = vpop.f32.mrf.mxu0 }
 0x12b   : > { %v1053_v1 = vadd.f32 %v1052_v0, %v964_v63  ;;  %v966_v3 = vpop.f32.mrf.mxu1  ;;  %v878_v4 = vadd.f32 %v2068_v7, %v877_v2 }
 0x12d   : > { %v1142_v6 = vadd.f32 %v1141_v29, %v1053_v1  ;;  %v967_v9 = vadd.f32 %v966_v3, %v878_v4 }
 0x12f   : > { %vm1201_vm1 = vcmp.ge.f32.partialorder %v1142_v6, 0.0  ;;  %v1234_v8 = vmul.f32 %v2077_v24, %v1142_v6  ;;  %v1151_v15 = vpop.f32.mrf.mxu3 }
 0x131   : > { %v1266_v10 = vsel %vm1201_vm1, %v1142_v6, %v1234_v8 }
 0x132   : > { %1299 = vst.msk [vmem:[%s2087_s30 + $0x78] sm:$0xff] %vm1283_vm2, %v1266_v10  ;;  %v1055_v11 = vpop.f32.mrf.mxu2  ;;  %v879_v13 = vpop.f32.mrf.mxu0 }
 0x133   : > { %v1056_v12 = vadd.f32 %v1055_v11, %v967_v9  ;;  %v968_v14 = vpop.f32.mrf.mxu1  ;;  %v880_v17 = vadd.f32 %v2068_v7, %v879_v13 }
 0x135   : > { %v1145_v16 = vadd.f32 %v1144_v49, %v1056_v12  ;;  %v969_v20 = vadd.f32 %v968_v14, %v880_v17 }
 0x137   : > { %vm1202_vm3 = vcmp.ge.f32.partialorder %v1145_v16, 0.0  ;;  %v1235_v18 = vmul.f32 %v2077_v24, %v1145_v16  ;;  %v1154_v28 = vpop.f32.mrf.mxu3 }
 0x139   : > { %v1267_v19 = vsel %vm1202_vm3, %v1145_v16, %v1235_v18 }
 0x13a   : > { %1300 = vst.msk [vmem:[%s2087_s30 + $0x80] sm:$0xff] %vm1283_vm2, %v1267_v19  ;;  %v1057_v21 = vpop.f32.mrf.mxu2  ;;  %v882_v23 = vpop.f32.mrf.mxu0 }
 0x13b   : > { %v1058_v22 = vadd.f32 %v1057_v21, %v969_v20  ;;  %v971_v25 = vpop.f32.mrf.mxu1  ;;  %v883_v26 = vadd.f32 %v2068_v7, %v882_v23 }
 0x13d   : > { %v1147_v27 = vadd.f32 %v1146_v58, %v1058_v22  ;;  %v972_v30 = vadd.f32 %v971_v25, %v883_v26 }
 0x13f   : > { %vm1203_vm4 = vcmp.ge.f32.partialorder %v1147_v27, 0.0  ;;  %v1236_v29 = vmul.f32 %v2077_v24, %v1147_v27  ;;  %v1156_v39 = vpop.f32.mrf.mxu3 }
 0x141   : > { %v1268_v31 = vsel %vm1203_vm4, %v1147_v27, %v1236_v29 }
 0x142   : > { %1301 = vst.msk [vmem:[%s2087_s30 + $0x88] sm:$0xff] %vm1283_vm2, %v1268_v31  ;;  %v1060_v32 = vpop.f32.mrf.mxu2  ;;  %v884_v34 = vpop.f32.mrf.mxu0 }
 0x143   : > { %v1061_v33 = vadd.f32 %v1060_v32, %v972_v30  ;;  %v973_v35 = vpop.f32.mrf.mxu1  ;;  %v885_v37 = vadd.f32 %v2068_v7, %v884_v34 }
 0x145   : > { %v1150_v36 = vadd.f32 %v1149_v5, %v1061_v33  ;;  %v974_v41 = vadd.f32 %v973_v35, %v885_v37 }
 0x147   : > { %vm1204_vm5 = vcmp.ge.f32.partialorder %v1150_v36, 0.0  ;;  %v1237_v38 = vmul.f32 %v2077_v24, %v1150_v36  ;;  %v1159_v52 = vpop.f32.mrf.mxu3 }
 0x149   : > { %v1269_v40 = vsel %vm1204_vm5, %v1150_v36, %v1237_v38 }
 0x14a   : > { %1302 = vst.msk [vmem:[%s2087_s30 + $0x90] sm:$0xff] %vm1283_vm2, %v1269_v40  ;;  %v1062_v42 = vpop.f32.mrf.mxu2  ;;  %v887_v44 = vpop.f32.mrf.mxu0 }
 0x14b   : > { %v1063_v43 = vadd.f32 %v1062_v42, %v974_v41  ;;  %v976_v45 = vpop.f32.mrf.mxu1  ;;  %v888_v46 = vadd.f32 %v2068_v7, %v887_v44 }
 0x14d   : > { %v1152_v47 = vadd.f32 %v1151_v15, %v1063_v43  ;;  %v977_v49 = vadd.f32 %v976_v45, %v888_v46 }
 0x14f   : > { %vm1205_vm6 = vcmp.ge.f32.partialorder %v1152_v47, 0.0  ;;  %v1238_v48 = vmul.f32 %v2077_v24, %v1152_v47  ;;  %v1161_v2 = vpop.f32.mrf.mxu3 }
 0x151   : > { %v1270_v50 = vsel %vm1205_vm6, %v1152_v47, %v1238_v48 }
 0x152   : > { %1303 = vst.msk [vmem:[%s2087_s30 + $0x98] sm:$0xff] %vm1283_vm2, %v1270_v50  ;;  %v1065_v51 = vpop.f32.mrf.mxu2  ;;  %v889_v54 = vpop.f32.mrf.mxu0 }
 0x153   : > { %v1066_v53 = vadd.f32 %v1065_v51, %v977_v49  ;;  %v978_v55 = vpop.f32.mrf.mxu1  ;;  %v890_v57 = vadd.f32 %v2068_v7, %v889_v54 }
 0x155   : > { %v1155_v56 = vadd.f32 %v1154_v28, %v1066_v53  ;;  %v979_v60 = vadd.f32 %v978_v55, %v890_v57 }
 0x157   : > { %vm1206_vm7 = vcmp.ge.f32.partialorder %v1155_v56, 0.0  ;;  %v1239_v58 = vmul.f32 %v2077_v24, %v1155_v56  ;;  %v1164_v14 = vpop.f32.mrf.mxu3 }
 0x159   : > { %v1271_v59 = vsel %vm1206_vm7, %v1155_v56, %v1239_v58 }
 0x15a   : > { %1304 = vst.msk [vmem:[%s2087_s30 + $0xa0] sm:$0xff] %vm1283_vm2, %v1271_v59  ;;  %v1067_v61 = vpop.f32.mrf.mxu2  ;;  %v892_v63 = vpop.f32.mrf.mxu0 }
 0x15b   : > { %v1068_v62 = vadd.f32 %v1067_v61, %v979_v60  ;;  %v981_v0 = vpop.f32.mrf.mxu1  ;;  %v893_v1 = vadd.f32 %v2068_v7, %v892_v63 }
 0x15d   : > { %v1157_v3 = vadd.f32 %v1156_v39, %v1068_v62  ;;  %v982_v5 = vadd.f32 %v981_v0, %v893_v1 }
 0x15f   : > { %vm1207_vm8 = vcmp.ge.f32.partialorder %v1157_v3, 0.0  ;;  %v1240_v4 = vmul.f32 %v2077_v24, %v1157_v3  ;;  %v1166_v27 = vpop.f32.mrf.mxu3 }
 0x161   : > { %v1272_v6 = vsel %vm1207_vm8, %v1157_v3, %v1240_v4 }
 0x162   : > { %1305 = vst.msk [vmem:[%s2087_s30 + $0xa8] sm:$0xff] %vm1283_vm2, %v1272_v6  ;;  %v1070_v8 = vpop.f32.mrf.mxu2  ;;  %v894_v10 = vpop.f32.mrf.mxu0 }
 0x163   : > { %v1071_v9 = vadd.f32 %v1070_v8, %v982_v5  ;;  %v983_v11 = vpop.f32.mrf.mxu1  ;;  %v895_v13 = vadd.f32 %v2068_v7, %v894_v10 }
 0x165   : > { %v1160_v12 = vadd.f32 %v1159_v52, %v1071_v9  ;;  %v984_v17 = vadd.f32 %v983_v11, %v895_v13 }
 0x167   : > { %vm1208_vm9 = vcmp.ge.f32.partialorder %v1160_v12, 0.0  ;;  %v1241_v15 = vmul.f32 %v2077_v24, %v1160_v12  ;;  %v1169_v39 = vpop.f32.mrf.mxu3 }
 0x169   : > { %v1273_v16 = vsel %vm1208_vm9, %v1160_v12, %v1241_v15 }
 0x16a   : > { %1306 = vst.msk [vmem:[%s2087_s30 + $0xb0] sm:$0xff] %vm1283_vm2, %v1273_v16  ;;  %v1072_v18 = vpop.f32.mrf.mxu2  ;;  %v897_v20 = vpop.f32.mrf.mxu0 }
 0x16b   : > { %v1073_v19 = vadd.f32 %v1072_v18, %v984_v17  ;;  %v986_v21 = vpop.f32.mrf.mxu1  ;;  %v898_v22 = vadd.f32 %v2068_v7, %v897_v20 }
 0x16d   : > { %v1162_v23 = vadd.f32 %v1161_v2, %v1073_v19  ;;  %v987_v26 = vadd.f32 %v986_v21, %v898_v22 }
 0x16f   : > { %vm1209_vm10 = vcmp.ge.f32.partialorder %v1162_v23, 0.0  ;;  %v1242_v25 = vmul.f32 %v2077_v24, %v1162_v23  ;;  %v1171_v52 = vpop.f32.mrf.mxu3 }
 0x171   : > { %v1274_v28 = vsel %vm1209_vm10, %v1162_v23, %v1242_v25 }
 0x172   : > { %1307 = vst.msk [vmem:[%s2087_s30 + $0xb8] sm:$0xff] %vm1283_vm2, %v1274_v28  ;;  %v1075_v29 = vpop.f32.mrf.mxu2  ;;  %v899_v31 = vpop.f32.mrf.mxu0 }
 0x173   : > { %v1076_v30 = vadd.f32 %v1075_v29, %v987_v26  ;;  %v988_v32 = vpop.f32.mrf.mxu1  ;;  %v900_v34 = vadd.f32 %v2068_v7, %v899_v31 }
 0x175   : > { %v1165_v33 = vadd.f32 %v1164_v14, %v1076_v30  ;;  %v989_v37 = vadd.f32 %v988_v32, %v900_v34 }
 0x177   : > { %vm1210_vm11 = vcmp.ge.f32.partialorder %v1165_v33, 0.0  ;;  %v1243_v35 = vmul.f32 %v2077_v24, %v1165_v33  ;;  %v1174_v0 = vpop.f32.mrf.mxu3 }
 0x179   : > { %v1275_v36 = vsel %vm1210_vm11, %v1165_v33, %v1243_v35 }
 0x17a   : > { %1308 = vst.msk [vmem:[%s2087_s30 + $0xc0] sm:$0xff] %vm1283_vm2, %v1275_v36  ;;  %v1077_v38 = vpop.f32.mrf.mxu2  ;;  %v902_v41 = vpop.f32.mrf.mxu0 }
 0x17b   : > { %v1078_v40 = vadd.f32 %v1077_v38, %v989_v37  ;;  %v991_v42 = vpop.f32.mrf.mxu1  ;;  %v903_v43 = vadd.f32 %v2068_v7, %v902_v41 }
 0x17d   : > { %v1167_v44 = vadd.f32 %v1166_v27, %v1078_v40  ;;  %v992_v46 = vadd.f32 %v991_v42, %v903_v43 }
 0x17f   : > { %vm1211_vm12 = vcmp.ge.f32.partialorder %v1167_v44, 0.0  ;;  %v1244_v45 = vmul.f32 %v2077_v24, %v1167_v44  ;;  %v1176_v12 = vpop.f32.mrf.mxu3 }
 0x181   : > { %v1276_v47 = vsel %vm1211_vm12, %v1167_v44, %v1244_v45 }
 0x182   : > { %1309 = vst.msk [vmem:[%s2087_s30 + $0xc8] sm:$0xff] %vm1283_vm2, %v1276_v47  ;;  %v1080_v48 = vpop.f32.mrf.mxu2  ;;  %v904_v50 = vpop.f32.mrf.mxu0 }
 0x183   : > { %v1081_v49 = vadd.f32 %v1080_v48, %v992_v46  ;;  %v993_v51 = vpop.f32.mrf.mxu1  ;;  %v905_v54 = vadd.f32 %v2068_v7, %v904_v50 }
 0x185   : > { %v1170_v53 = vadd.f32 %v1169_v39, %v1081_v49  ;;  %v994_v57 = vadd.f32 %v993_v51, %v905_v54 }
 0x187   : > { %vm1212_vm13 = vcmp.ge.f32.partialorder %v1170_v53, 0.0  ;;  %v1245_v55 = vmul.f32 %v2077_v24, %v1170_v53  ;;  %v1179_v25 = vpop.f32.mrf.mxu3 }
 0x189   : > { %v1277_v56 = vsel %vm1212_vm13, %v1170_v53, %v1245_v55 }
 0x18a   : > { %1310 = vst.msk [vmem:[%s2087_s30 + $0xd0] sm:$0xff] %vm1283_vm2, %v1277_v56  ;;  %v1082_v58 = vpop.f32.mrf.mxu2  ;;  %v907_v60 = vpop.f32.mrf.mxu0 }
 0x18b   : > { %v1083_v59 = vadd.f32 %v1082_v58, %v994_v57  ;;  %v996_v61 = vpop.f32.mrf.mxu1  ;;  %v908_v62 = vadd.f32 %v2068_v7, %v907_v60 }
 0x18d   : > { %v1172_v63 = vadd.f32 %v1171_v52, %v1083_v59  ;;  %v997_v2 = vadd.f32 %v996_v61, %v908_v62 }
 0x18f   : > { %vm1213_vm14 = vcmp.ge.f32.partialorder %v1172_v63, 0.0  ;;  %v1246_v1 = vmul.f32 %v2077_v24, %v1172_v63  ;;  %v1181_v37 = vpop.f32.mrf.mxu3 }
 0x191   : > { %v1278_v3 = vsel %vm1213_vm14, %v1172_v63, %v1246_v1 }
 0x192   : > { %1311 = vst.msk [vmem:[%s2087_s30 + $0xd8] sm:$0xff] %vm1283_vm2, %v1278_v3  ;;  %v1085_v4 = vpop.f32.mrf.mxu2  ;;  %v909_v6 = vpop.f32.mrf.mxu0 }
 0x193   : > { %v1086_v5 = vadd.f32 %v1085_v4, %v997_v2  ;;  %v998_v8 = vpop.f32.mrf.mxu1  ;;  %v910_v10 = vadd.f32 %v2068_v7, %v909_v6 }
 0x195   : > { %v1175_v9 = vadd.f32 %v1174_v0, %v1086_v5  ;;  %v999_v14 = vadd.f32 %v998_v8, %v910_v10 }
 0x197   : > { %vm1214_vm15 = vcmp.ge.f32.partialorder %v1175_v9, 0.0  ;;  %v1247_v11 = vmul.f32 %v2077_v24, %v1175_v9 }
 0x199   : > { %v1279_v13 = vsel %vm1214_vm15, %v1175_v9, %v1247_v11 }
 0x19a   : > { %1312 = vst.msk [vmem:[%s2087_s30 + $0xe0] sm:$0xff] %vm1283_vm2, %v1279_v13  ;;  %v1087_v15 = vpop.f32.mrf.mxu2  ;;  %v912_v17 = vpop.f32.mrf.mxu0 }
 0x19b   : > { %v1088_v16 = vadd.f32 %v1087_v15, %v999_v14  ;;  %v913_v18 = vadd.f32 %v2068_v7, %v912_v17  ;;  %v1001_v20 = vpop.f32.mrf.mxu1 }
 0x19d   : > { %v1177_v19 = vadd.f32 %v1176_v12, %v1088_v16  ;;  %v1002_v22 = vadd.f32 %v1001_v20, %v913_v18 }
 0x19f   : > { %vm1215_vm0 = vcmp.ge.f32.partialorder %v1177_v19, 0.0  ;;  %v1248_v21 = vmul.f32 %v2077_v24, %v1177_v19 }
 0x1a1   : > { %v1280_v23 = vsel %vm1215_vm0, %v1177_v19, %v1248_v21 }
 0x1a2   : > { %1313 = vst.msk [vmem:[%s2087_s30 + $0xe8] sm:$0xff] %vm1283_vm2, %v1280_v23  ;;  %v1090_v26 = vpop.f32.mrf.mxu2  ;;  %v914_v28 = vpop.f32.mrf.mxu0 }
 0x1a3   : > { %v1091_v27 = vadd.f32 %v1090_v26, %v1002_v22  ;;  %v915_v30 = vadd.f32 %v2068_v7, %v914_v28  ;;  %v1003_v32 = vpop.f32.mrf.mxu1 }
 0x1a5   : > { %v1180_v29 = vadd.f32 %v1179_v25, %v1091_v27  ;;  %v1004_v34 = vadd.f32 %v1003_v32, %v915_v30 }
 0x1a7   : > { %vm1216_vm1 = vcmp.ge.f32.partialorder %v1180_v29, 0.0  ;;  %v1249_v31 = vmul.f32 %v2077_v24, %v1180_v29 }
 0x1a9   : > { %v1281_v33 = vsel %vm1216_vm1, %v1180_v29, %v1249_v31 }
 0x1aa   : > { %1314 = vst.msk [vmem:[%s2087_s30 + $0xf0] sm:$0xff] %vm1283_vm2, %v1281_v33  ;;  %v1092_v35 = vpop.f32.mrf.mxu2 }
 0x1ab   : > { %v1093_v36 = vadd.f32 %v1092_v35, %v1004_v34 }
 0x1ad   : > { %v1182_v38 = vadd.f32 %v1181_v37, %v1093_v36 }
 0x1af   : > { %vm1217_vm3 = vcmp.ge.f32.partialorder %v1182_v38, 0.0  ;;  %v1250_v39 = vmul.f32 %v2077_v24, %v1182_v38 }
 0x1b1   : > { %v1282_v40 = vsel %vm1217_vm3, %v1182_v38, %v1250_v39 }
 0x1b2   : > { %1315 = vst.msk [vmem:[%s2087_s30 + $0xf8] sm:$0xff] %vm1283_vm2, %v1282_v40 }
 0x1b3 PF: > { %s16_s17 = sadd.s32 1, %s1863_s17  }
 0x1b4   : > { %p13_p4 = scmp.ge.s32.totalorder %s16_s17, 18  }
 0x1b6   :  { %15 = sbr.rel (!%p13_p4) target bundleno = 3 (0x3), region = 66 }

// kernel: _lambda_.22
= control target key start
LH: loop header
LB: loop body
LE: loop exit
PB: predicated region body
PF: predicated region fallthrough
CT: control target
= control target key end

     0   :  { %s5204_s15 = smov 0   ;;  %s6350_s0 = inlined_call_operand.vmem [shape: bf16[4096,1600], index: 0, kind: input, shape index: {}]   ;;  %s6351_s1 = inlined_call_operand.vmem [shape: bf16[1600,16], index: 1, kind: input, shape index: {}]   ;;  %s6352_s2 = inlined_call_operand.vmem [shape: f32[1,16], index: 2, kind: input, shape index: {}]   ;;  %s6353_s3 = inlined_call_operand.<no memory space> [shape: f32[1,1], index: 3, kind: input, shape index: {}]   ;;  %s6354_s4 = inlined_call_operand.vmem [shape: f32[4096,16], index: 4, kind: output, shape index: {}]  }
   0x1 LB: > { %s3570_s16 = sadd.s32 4294967295, %s5177_s15   ;;  %p3574_p0 = scmp.ge.s32.totalorder %s5177_s15, 1  ;;  %s5177_s15 = sphi %s5204_s15, %s16_s15  }
   0x2   : > { %p166_p1 = scmp.lt.s32.totalorder %s5177_s15, 17 }
   0x4   : > { %p167_p2 = pnand %p3574_p0, %p166_p1 }
   0x5   : > { %s3575_s22 = sshll.u32 (!%p167_p2), %s3570_s16, 5 }
   0x6   : > { %170 = sbr.rel (%p167_p2) target bundleno = 1006 (0x3ee), region = 36  ;;  %p194_p3 = scmp.lt.s32.totalorder (!%p167_p2), %s3575_s22, 511 }
   0xb   : > { %v5044_v0 = vld [vmem:[%s6351_s1 + $0x38] sm:$0xff]  ;;  %v5043_v1 = vld [vmem:[%s6351_s1 + $0x30] sm:$0xff]  ;;  %v5042_v2 = vld [vmem:[%s6351_s1 + $0x28] sm:$0xff]  ;;  %s6356_s22 = smov (!%p194_p3, %s3575_s22), 511  ;;  %vm2275_vm0 = vcmask 523264   ;;  %vm3481_vm1 = vcmask 130048  }
   0xc   : > { %5137 = vmatpush.bf16.msra.mxu1 %v5044_v0  ;;  %5138 = vmatpush.bf16.msra.mxu2 %v5044_v0  ;;  %v5041_v3 = vld [vmem:[%s6351_s1 + $0x20] sm:$0xff]  ;;  %v5040_v4 = vld [vmem:[%s6351_s1 + $0x18] sm:$0xff]  ;;  %v5039_v5 = vld [vmem:[%s6351_s1 + $0x10] sm:$0xff]  ;;  %s5161_s29 = smul.u32 52, %s6356_s22  ;;  %s3578_s30 = sshll.u32 %s6356_s22, 3 }
   0xd   : > { %5139 = vmatpush.bf16.msra.mxu3 %v5044_v0  ;;  %2324 = vmatpush.bf16.msra.mxu0 %v5044_v0  ;;  %v5038_v6 = vld [vmem:[%s6351_s1 + $0x8] sm:$0xff]  ;;  %v5037_v7 = vld [vmem:[%s6351_s1] sm:$0xff]  ;;  %v5060_v16 = vld [vmem:[%s6351_s1 + $0xb8] sm:$0xff]  ;;  %s6187_s7 = scalar_lea.vmem %s6354_s4, %s3578_s30 }
   0xe   : > { %s5239_s8 = scalar_lea.vmem %s6350_s0, %s5161_s29  ;;  %v5068_v17 = vld [vmem:[%s6351_s1 + $0xf8] sm:$0xff]  ;;  %v5059_v24 = vld [vmem:[%s6351_s1 + $0xb0] sm:$0xff]  ;;  %v5058_v28 = vld [vmem:[%s6351_s1 + $0xa8] sm:$0xff] }
   0xf   : > { %v3789_v8 = vld [vmem:[%s5239_s8 + $0x1a0] sm:$0xf]  ;;  %v4887_v9 = vld [vmem:[%s5239_s8 + $0x1d0] sm:$0xf0]  ;;  %v5052_v22 = vld [vmem:[%s6351_s1 + $0x78] sm:$0xff] }
  0x10   : > { %5140 = vmatpush.bf16.msra.mxu1 %v5043_v1  ;;  %5141 = vmatpush.bf16.msra.mxu2 %v5043_v1  ;;  %v3997_v10 = vld [vmem:[%s5239_s8 + $0x340] sm:$0xf]  ;;  %v4939_v11 = vld [vmem:[%s5239_s8 + $0x370] sm:$0xf0]  ;;  %v3790_v18 = vor.u32 %v4887_v9, %v3789_v8  ;;  %v5076_v23 = vld [vmem:[%s6351_s1 + $0x138] sm:$0xff] }
  0x11   : > { %5142 = vmatpush.bf16.msra.mxu3 %v5043_v1  ;;  %2325 = vmatpush.bf16.msra.mxu0 %v5043_v1  ;;  %v4205_v12 = vld [vmem:[%s5239_s8 + $0x4e0] sm:$0xf]  ;;  %v4991_v13 = vld [vmem:[%s5239_s8 + $0x510] sm:$0xf0]  ;;  %v3998_v19 = vor.u32 %v4939_v11, %v3997_v10  ;;  %v5066_v29 = vld [vmem:[%s6351_s1 + $0xe8] sm:$0xff] }
  0x12   : > { %v3581_v14 = vld [vmem:[%s5239_s8] sm:$0xf]  ;;  %v4835_v15 = vld [vmem:[%s5239_s8 + $0x30] sm:$0xf0]  ;;  %v4206_v20 = vor.u32 %v4991_v13, %v4205_v12  ;;  %v5050_v30 = vld [vmem:[%s6351_s1 + $0x68] sm:$0xff] }
  0x13   : > { %v3582_v21 = vor.u32 %v4835_v15, %v3581_v14  ;;  %v5067_v25 = vld [vmem:[%s6351_s1 + $0xf0] sm:$0xff]  ;;  %v5074_v31 = vld [vmem:[%s6351_s1 + $0x128] sm:$0xff]  ;;  %v5057_v33 = vld [vmem:[%s6351_s1 + $0xa0] sm:$0xff] }
  0x14   : > { %5143 = vmatpush.bf16.msra.mxu1 %v5042_v2  ;;  %5144 = vmatpush.bf16.msra.mxu2 %v5042_v2  ;;  %v5051_v26 = vld [vmem:[%s6351_s1 + $0x70] sm:$0xff]  ;;  %v3841_v32 = vld [vmem:[%s5239_s8 + $0x208] sm:$0xf]  ;;  %v5065_v34 = vld [vmem:[%s6351_s1 + $0xe0] sm:$0xff] }
  0x15   : > { %5145 = vmatpush.bf16.msra.mxu3 %v5042_v2  ;;  %2326 = vmatpush.bf16.msra.mxu0 %v5042_v2  ;;  %v5075_v27 = vld [vmem:[%s6351_s1 + $0x130] sm:$0xff]  ;;  %v4900_v35 = vld [vmem:[%s5239_s8 + $0x238] sm:$0xf0]  ;;  %v4049_v36 = vld [vmem:[%s5239_s8 + $0x3a8] sm:$0xf] }
  0x16   : > { %v4952_v37 = vld [vmem:[%s5239_s8 + $0x3d8] sm:$0xf0]  ;;  %v4257_v38 = vld [vmem:[%s5239_s8 + $0x548] sm:$0xf]  ;;  %v5049_v42 = vld [vmem:[%s6351_s1 + $0x60] sm:$0xff]  ;;  %v3842_v46 = vor.u32 %v4900_v35, %v3841_v32 }
  0x17   : > { %v5004_v39 = vld [vmem:[%s5239_s8 + $0x578] sm:$0xf0]  ;;  %v3633_v40 = vld [vmem:[%s5239_s8 + $0x68] sm:$0xf]  ;;  %v5073_v43 = vld [vmem:[%s6351_s1 + $0x120] sm:$0xff]  ;;  %v4050_v47 = vor.u32 %v4952_v37, %v4049_v36 }
  0x18   : > { %5146 = vmatpush.bf16.msra.mxu1 %v5041_v3  ;;  %5147 = vmatpush.bf16.msra.mxu2 %v5041_v3  ;;  %v4848_v41 = vld [vmem:[%s5239_s8 + $0x98] sm:$0xf0]  ;;  %v4258_v48 = vor.u32 %v5004_v39, %v4257_v38  ;;  %v5055_v52 = vld [vmem:[%s6351_s1 + $0x90] sm:$0xff]  ;;  %v5054_v56 = vld [vmem:[%s6351_s1 + $0x88] sm:$0xff] }
  0x19   : > { %5148 = vmatpush.bf16.msra.mxu3 %v5041_v3  ;;  %2327 = vmatpush.bf16.msra.mxu0 %v5041_v3  ;;  %v5056_v44 = vld [vmem:[%s6351_s1 + $0x98] sm:$0xff]  ;;  %v3634_v49 = vor.u32 %v4848_v41, %v3633_v40  ;;  %v5063_v53 = vld [vmem:[%s6351_s1 + $0xd0] sm:$0xff]  ;;  %v5062_v57 = vld [vmem:[%s6351_s1 + $0xc8] sm:$0xff] }
  0x1a   : > { %v5064_v45 = vld [vmem:[%s6351_s1 + $0xd8] sm:$0xff]  ;;  %v5047_v54 = vld [vmem:[%s6351_s1 + $0x50] sm:$0xff]  ;;  %v5046_v58 = vld [vmem:[%s6351_s1 + $0x48] sm:$0xff] }
  0x1b   : > { %v5048_v50 = vld [vmem:[%s6351_s1 + $0x58] sm:$0xff]  ;;  %v5071_v55 = vld [vmem:[%s6351_s1 + $0x110] sm:$0xff]  ;;  %v5070_v59 = vld [vmem:[%s6351_s1 + $0x108] sm:$0xff] }
  0x1c   : > { %5149 = vmatpush.bf16.msra.mxu1 %v5040_v4  ;;  %5150 = vmatpush.bf16.msra.mxu2 %v5040_v4  ;;  %v5072_v51 = vld [vmem:[%s6351_s1 + $0x118] sm:$0xff]  ;;  %v3893_v60 = vld [vmem:[%s5239_s8 + $0x270] sm:$0xf]  ;;  %v5053_v61 = vld [vmem:[%s6351_s1 + $0x80] sm:$0xff] }
  0x1d   : > { %5151 = vmatpush.bf16.msra.mxu3 %v5040_v4  ;;  %2328 = vmatpush.bf16.msra.mxu0 %v5040_v4  ;;  %v5061_v62 = vld [vmem:[%s6351_s1 + $0xc0] sm:$0xff]  ;;  %v4101_v0 = vld [vmem:[%s5239_s8 + $0x410] sm:$0xf]  ;;  %v5092_v12 = vld [vmem:[%s6351_s1 + $0x1b8] sm:$0xff] }
  0x1e   : > { %v4913_v63 = vld [vmem:[%s5239_s8 + $0x2a0] sm:$0xf0]  ;;  %v4309_v2 = vld [vmem:[%s5239_s8 + $0x5b0] sm:$0xf]  ;;  %v5100_v13 = vld [vmem:[%s6351_s1 + $0x1f8] sm:$0xff] }
  0x1f   : > { %v4965_v1 = vld [vmem:[%s5239_s8 + $0x440] sm:$0xf0]  ;;  %v3685_v4 = vld [vmem:[%s5239_s8 + $0xd0] sm:$0xf]  ;;  %v3894_v8 = vor.u32 %v4913_v63, %v3893_v60  ;;  %v5084_v14 = vld [vmem:[%s6351_s1 + $0x178] sm:$0xff] }
  0x20   : > { %5152 = vmatpush.bf16.msra.mxu1 %v5039_v5  ;;  %5153 = vmatpush.bf16.msra.mxu2 %v5039_v5  ;;  %v5017_v3 = vld [vmem:[%s5239_s8 + $0x5e0] sm:$0xf0]  ;;  %v4102_v9 = vor.u32 %v4965_v1, %v4101_v0  ;;  %v5108_v15 = vld [vmem:[%s6351_s1 + $0x238] sm:$0xff]  ;;  %v4830_v32 = vld [vmem:[%s5239_s8 + $0xc] sm:$0xf] }
  0x21   : > { %5154 = vmatpush.bf16.msra.mxu3 %v5039_v5  ;;  %2329 = vmatpush.bf16.msra.mxu0 %v5039_v5  ;;  %v4861_v5 = vld [vmem:[%s5239_s8 + $0x100] sm:$0xf0]  ;;  %v4310_v10 = vor.u32 %v5017_v3, %v4309_v2  ;;  %v5091_v40 = vld [vmem:[%s6351_s1 + $0x1b0] sm:$0xff]  ;;  %v4856_v60 = vld [vmem:[%s5239_s8 + $0xdc] sm:$0xf] }
  0x22   : > { %v3686_v11 = vor.u32 %v4861_v5, %v3685_v4  ;;  %v4837_v35 = vld [vmem:[%s5239_s8 + $0x40] sm:$0xf0]  ;;  %v5099_v41 = vld [vmem:[%s6351_s1 + $0x1f0] sm:$0xff]  ;;  %v5090_v4 = vld [vmem:[%s6351_s1 + $0x1a8] sm:$0xff] }
  0x23   : > { %v4863_v63 = vld [vmem:[%s5239_s8 + $0x110] sm:$0xf0]  ;;  %v5098_v5 = vld [vmem:[%s6351_s1 + $0x1e8] sm:$0xff] }
  0x24   : > { %5155 = vmatpush.bf16.msra.mxu1 %v5038_v6  ;;  %5156 = vmatpush.bf16.msra.mxu2 %v5038_v6 }
  0x25   : > { %5157 = vmatpush.bf16.msra.mxu3 %v5038_v6  ;;  %2330 = vmatpush.bf16.msra.mxu0 %v5038_v6  ;;  %v5045_v6 = vld [vmem:[%s6351_s1 + $0x40] sm:$0xff] }
  0x28   : > { %5158 = vmatpush.bf16.msra.mxu1 %v5037_v7  ;;  %5159 = vmatpush.bf16.msra.mxu2 %v5037_v7 }
  0x29   : > { %5160 = vmatpush.bf16.msra.mxu3 %v5037_v7  ;;  %2331 = vmatpush.bf16.msra.mxu0 %v5037_v7  ;;  %v5069_v7 = vld [vmem:[%s6351_s1 + $0x100] sm:$0xff] }
  0x2b   : > { %2352 = vmatmul.bf16.vlgmr.msra.gmra.mxu1 %v3790_v18  ;;  %2372 = vmatmul.bf16.vlgmr.msra.gmra.mxu2 %v3998_v19  ;;  %v4153_v18 = vld [vmem:[%s5239_s8 + $0x478] sm:$0xf]  ;;  %v4978_v19 = vld [vmem:[%s5239_s8 + $0x4a8] sm:$0xf0] }
  0x2c   : > { %2502 = vmatpush.bf16.msrb.mxu2 %v5060_v16  ;;  %2392 = vmatmul.bf16.vlgmr.msra.gmra.mxu3 %v4206_v20  ;;  %v3945_v16 = vld [vmem:[%s5239_s8 + $0x2d8] sm:$0xf] }
  0x2d   : > { %2591 = vmatpush.bf16.msrb.mxu3 %v5068_v17  ;;  %2332 = vmatmul.bf16.vlgmr.msra.gmra.mxu0 %v3582_v21  ;;  %v4926_v17 = vld [vmem:[%s5239_s8 + $0x308] sm:$0xf0]  ;;  %v4361_v20 = vld [vmem:[%s5239_s8 + $0x618] sm:$0xf] }
  0x2e   : > { %2413 = vmatpush.bf16.msrb.mxu1 %v5052_v22  ;;  %2680 = vmatpush.bf16.msrb.mxu0 %v5076_v23  ;;  %v5030_v21 = vld [vmem:[%s5239_s8 + $0x648] sm:$0xf0]  ;;  %v3737_v22 = vld [vmem:[%s5239_s8 + $0x138] sm:$0xf] }
  0x2f   : > { %v4874_v23 = vld [vmem:[%s5239_s8 + $0x168] sm:$0xf0] }
  0x30   : > { %2503 = vmatpush.bf16.msrb.mxu2 %v5059_v24  ;;  %v3946_v24 = vor.u32 %v4926_v17, %v3945_v16 }
  0x31   : > { %2592 = vmatpush.bf16.msrb.mxu3 %v5067_v25  ;;  %v4154_v25 = vor.u32 %v4978_v19, %v4153_v18 }
  0x32   : > { %2414 = vmatpush.bf16.msrb.mxu1 %v5051_v26  ;;  %2681 = vmatpush.bf16.msrb.mxu0 %v5075_v27  ;;  %v4362_v26 = vor.u32 %v5030_v21, %v4361_v20  ;;  %v3738_v27 = vor.u32 %v4874_v23, %v3737_v22  ;;  %v5443_v20 = vld [vmem:[%s6352_s2] ss:$0 sm:$0xff]  ;;  %v4881_v21 = vld [vmem:[%s5239_s8 + $0x1a4] sm:$0xf]  ;;  %v3791_v22 = vld [vmem:[%s5239_s8 + $0x1d4] sm:$0xf0] }
  0x33   : > { %v3797_v23 = vld [vmem:[%s5239_s8 + $0x1a8] sm:$0xf] }
  0x34   : > { %2504 = vmatpush.bf16.msrb.mxu2 %v5058_v28  ;;  %v4829_v28 = vld [vmem:[%s5239_s8 + $0x4] sm:$0xf] }
  0x35   : > { %2593 = vmatpush.bf16.msrb.mxu3 %v5066_v29  ;;  %v3583_v29 = vld [vmem:[%s5239_s8 + $0x34] sm:$0xf0] }
  0x36   : > { %2415 = vmatpush.bf16.msrb.mxu1 %v5050_v30  ;;  %2682 = vmatpush.bf16.msrb.mxu0 %v5074_v31  ;;  %v3589_v30 = vld [vmem:[%s5239_s8 + $0x8] sm:$0xf]  ;;  %v4836_v31 = vld [vmem:[%s5239_s8 + $0x38] sm:$0xf0]  ;;  %v3586_v36 = vor.u32 %v4829_v28, %v3583_v29  ;;  %v4889_v28 = vld [vmem:[%s5239_s8 + $0x1e0] sm:$0xf0]  ;;  %v3794_v29 = vor.u32 %v4881_v21, %v3791_v22 }
  0x37   : > { %v3590_v37 = vor.u32 %v4836_v31, %v3589_v30 }
  0x38   : > { %2505 = vmatpush.bf16.msrb.mxu2 %v5057_v33  ;;  %v3591_v33 = vld [vmem:[%s5239_s8 + $0x3c] sm:$0xf0] }
  0x39   : > { %2594 = vmatpush.bf16.msrb.mxu3 %v5065_v34  ;;  %v3597_v34 = vld [vmem:[%s5239_s8 + $0x10] sm:$0xf]  ;;  %v3594_v38 = vor.u32 %v4830_v32, %v3591_v33 }
  0x3a   : > { %2416 = vmatpush.bf16.msrb.mxu1 %v5049_v42  ;;  %2683 = vmatpush.bf16.msrb.mxu0 %v5073_v43  ;;  %v3598_v39 = vor.u32 %v4837_v35, %v3597_v34  ;;  %v5083_v42 = vld [vmem:[%s6351_s1 + $0x170] sm:$0xff] }
  0x3b   : > { %2357 = vmatmul.bf16.gmra.mxu1 %v3842_v46  ;;  %2377 = vmatmul.bf16.gmra.mxu2 %v4050_v47  ;;  %v5107_v43 = vld [vmem:[%s6351_s1 + $0x230] sm:$0xff]  ;;  %v4849_v47 = vld [vmem:[%s5239_s8 + $0xa0] sm:$0xf0] }
  0x3c   : > { %2506 = vmatpush.bf16.msrb.mxu2 %v5056_v44  ;;  %2397 = vmatmul.bf16.gmra.mxu3 %v4258_v48  ;;  %v4842_v44 = vld [vmem:[%s5239_s8 + $0x6c] sm:$0xf]  ;;  %v3641_v46 = vld [vmem:[%s5239_s8 + $0x70] sm:$0xf]  ;;  %v4843_v48 = vld [vmem:[%s5239_s8 + $0x74] sm:$0xf] }
  0x3d   : > { %2595 = vmatpush.bf16.msrb.mxu3 %v5064_v45  ;;  %2337 = vmatmul.bf16.gmra.mxu0 %v3634_v49  ;;  %v3635_v45 = vld [vmem:[%s5239_s8 + $0x9c] sm:$0xf0]  ;;  %v3643_v49 = vld [vmem:[%s5239_s8 + $0xa4] sm:$0xf0] }
  0x3e   : > { %2417 = vmatpush.bf16.msrb.mxu1 %v5048_v50  ;;  %2684 = vmatpush.bf16.msrb.mxu0 %v5072_v51  ;;  %v3649_v50 = vld [vmem:[%s5239_s8 + $0x78] sm:$0xf]  ;;  %v4850_v51 = vld [vmem:[%s5239_s8 + $0xa8] sm:$0xf0] }
  0x40   : > { %2507 = vmatpush.bf16.msrb.mxu2 %v5055_v52  ;;  %v3638_v52 = vor.u32 %v4842_v44, %v3635_v45 }
  0x41   : > { %2596 = vmatpush.bf16.msrb.mxu3 %v5063_v53  ;;  %v3642_v53 = vor.u32 %v4849_v47, %v3641_v46  ;;  %v5105_v46 = vld [vmem:[%s6351_s1 + $0x220] sm:$0xff]  ;;  %v4894_v47 = vld [vmem:[%s5239_s8 + $0x20c] sm:$0xf] }
  0x42   : > { %2418 = vmatpush.bf16.msrb.mxu1 %v5047_v54  ;;  %2685 = vmatpush.bf16.msrb.mxu0 %v5071_v55  ;;  %v3646_v54 = vor.u32 %v4843_v48, %v3643_v49  ;;  %v3650_v55 = vor.u32 %v4850_v51, %v3649_v50  ;;  %v3843_v48 = vld [vmem:[%s5239_s8 + $0x23c] sm:$0xf0]  ;;  %v3849_v49 = vld [vmem:[%s5239_s8 + $0x210] sm:$0xf]  ;;  %v4901_v50 = vld [vmem:[%s5239_s8 + $0x240] sm:$0xf0] }
  0x43   : > { %v4895_v51 = vld [vmem:[%s5239_s8 + $0x214] sm:$0xf] }
  0x44   : > { %2508 = vmatpush.bf16.msrb.mxu2 %v5054_v56  ;;  %v4855_v56 = vld [vmem:[%s5239_s8 + $0xd4] sm:$0xf] }
  0x45   : > { %2597 = vmatpush.bf16.msrb.mxu3 %v5062_v57  ;;  %v3687_v57 = vld [vmem:[%s5239_s8 + $0x104] sm:$0xf0] }
  0x46   : > { %2419 = vmatpush.bf16.msrb.mxu1 %v5046_v58  ;;  %2686 = vmatpush.bf16.msrb.mxu0 %v5070_v59  ;;  %v3693_v58 = vld [vmem:[%s5239_s8 + $0xd8] sm:$0xf]  ;;  %v4862_v59 = vld [vmem:[%s5239_s8 + $0x108] sm:$0xf0]  ;;  %v3690_v0 = vor.u32 %v4855_v56, %v3687_v57 }
  0x47   : > { %v3694_v1 = vor.u32 %v4862_v59, %v3693_v58  ;;  %v3846_v58 = vor.u32 %v4894_v47, %v3843_v48  ;;  %v3850_v59 = vor.u32 %v4901_v50, %v3849_v49  ;;  %v3947_v47 = vld [vmem:[%s5239_s8 + $0x30c] sm:$0xf0]  ;;  %v3953_v48 = vld [vmem:[%s5239_s8 + $0x2e0] sm:$0xf]  ;;  %v4927_v49 = vld [vmem:[%s5239_s8 + $0x310] sm:$0xf0] }
  0x48   : > { %2509 = vmatpush.bf16.msrb.mxu2 %v5053_v61  ;;  %v3695_v61 = vld [vmem:[%s5239_s8 + $0x10c] sm:$0xf0]  ;;  %v4921_v50 = vld [vmem:[%s5239_s8 + $0x2e4] sm:$0xf] }
  0x49   : > { %2598 = vmatpush.bf16.msrb.mxu3 %v5061_v62  ;;  %v3701_v62 = vld [vmem:[%s5239_s8 + $0xe0] sm:$0xf]  ;;  %v3698_v2 = vor.u32 %v4856_v60, %v3695_v61 }
  0x4a   : > { %2420 = vmatpush.bf16.msrb.mxu1 %v5045_v6  ;;  %2687 = vmatpush.bf16.msrb.mxu0 %v5069_v7  ;;  %v3702_v3 = vor.u32 %v4863_v63, %v3701_v62  ;;  %v5082_v6 = vld [vmem:[%s6351_s1 + $0x168] sm:$0xff] }
  0x4b   : > { %2362 = vmatmul.bf16.gmra.mxu1 %v3894_v8  ;;  %2382 = vmatmul.bf16.gmra.mxu2 %v4102_v9  ;;  %v5106_v7 = vld [vmem:[%s6351_s1 + $0x228] sm:$0xff]  ;;  %v4868_v8 = vld [vmem:[%s5239_s8 + $0x13c] sm:$0xf]  ;;  %v3739_v9 = vld [vmem:[%s5239_s8 + $0x16c] sm:$0xf0] }
  0x4c   : > { %2402 = vmatmul.bf16.gmra.mxu3 %v4310_v10  ;;  %2858 = vmatpush.bf16.msra.mxu2 %v5092_v12  ;;  %v3745_v10 = vld [vmem:[%s5239_s8 + $0x140] sm:$0xf]  ;;  %v4869_v12 = vld [vmem:[%s5239_s8 + $0x144] sm:$0xf]  ;;  %v3742_v16 = vor.u32 %v4868_v8, %v3739_v9  ;;  %v4907_v9 = vld [vmem:[%s5239_s8 + $0x274] sm:$0xf] }
  0x4d   : > { %2342 = vmatmul.bf16.gmra.mxu0 %v3686_v11  ;;  %2947 = vmatpush.bf16.msra.mxu3 %v5100_v13  ;;  %v4875_v11 = vld [vmem:[%s5239_s8 + $0x170] sm:$0xf0]  ;;  %v3747_v13 = vld [vmem:[%s5239_s8 + $0x174] sm:$0xf0] }
  0x4e   : > { %2769 = vmatpush.bf16.msra.mxu1 %v5084_v14  ;;  %3036 = vmatpush.bf16.msra.mxu0 %v5108_v15  ;;  %v3753_v14 = vld [vmem:[%s5239_s8 + $0x148] sm:$0xf]  ;;  %v4876_v15 = vld [vmem:[%s5239_s8 + $0x178] sm:$0xf0]  ;;  %v3746_v17 = vor.u32 %v4875_v11, %v3745_v10  ;;  %v3750_v18 = vor.u32 %v4869_v12, %v3747_v13  ;;  %v3901_v11 = vld [vmem:[%s5239_s8 + $0x278] sm:$0xf] }
  0x4f   : > { %v3754_v19 = vor.u32 %v4876_v15, %v3753_v14  ;;  %v3895_v10 = vld [vmem:[%s5239_s8 + $0x2a4] sm:$0xf0]  ;;  %v4914_v12 = vld [vmem:[%s5239_s8 + $0x2a8] sm:$0xf0]  ;;  %v4908_v13 = vld [vmem:[%s5239_s8 + $0x27c] sm:$0xf] }
  0x50   : > { %2859 = vmatpush.bf16.msra.mxu2 %v5091_v40  ;;  %v3903_v14 = vld [vmem:[%s5239_s8 + $0x2ac] sm:$0xf0]  ;;  %v3909_v15 = vld [vmem:[%s5239_s8 + $0x280] sm:$0xf]  ;;  %v3898_v21 = vor.u32 %v4907_v9, %v3895_v10  ;;  %v3902_v22 = vor.u32 %v4914_v12, %v3901_v11 }
  0x51   : > { %2948 = vmatpush.bf16.msra.mxu3 %v5099_v41 }
  0x52   : > { %2770 = vmatpush.bf16.msra.mxu1 %v5083_v42  ;;  %3037 = vmatpush.bf16.msra.mxu0 %v5107_v43  ;;  %v5081_v43 = vld [vmem:[%s6351_s1 + $0x160] sm:$0xff] }
  0x54   : > { %2860 = vmatpush.bf16.msra.mxu2 %v5090_v4 }
  0x55   : > { %2949 = vmatpush.bf16.msra.mxu3 %v5098_v5 }
  0x56   : > { %2771 = vmatpush.bf16.msra.mxu1 %v5082_v6  ;;  %3038 = vmatpush.bf16.msra.mxu0 %v5106_v7 }
  0x5a   : > { %2772 = vmatpush.bf16.msra.mxu1 %v5081_v43  ;;  %3039 = vmatpush.bf16.msra.mxu0 %v5105_v46  ;;  %v5104_v43 = vld [vmem:[%s6351_s1 + $0x218] sm:$0xff] }
  0x5b   : > { %2367 = vmatmul.bf16.gmra.mxu1 %v3946_v24  ;;  %2387 = vmatmul.bf16.gmra.mxu2 %v4154_v25  ;;  %v4888_v24 = vld [vmem:[%s5239_s8 + $0x1d8] sm:$0xf0]  ;;  %v4882_v25 = vld [vmem:[%s5239_s8 + $0x1ac] sm:$0xf] }
  0x5c   : > { %2407 = vmatmul.bf16.gmra.mxu3 %v4362_v26  ;;  %v3799_v26 = vld [vmem:[%s5239_s8 + $0x1dc] sm:$0xf0]  ;;  %v3798_v30 = vor.u32 %v4888_v24, %v3797_v23  ;;  %v4920_v46 = vld [vmem:[%s5239_s8 + $0x2dc] sm:$0xf] }
  0x5d   : > { %2347 = vmatmul.bf16.gmra.mxu0 %v3738_v27  ;;  %v3805_v27 = vld [vmem:[%s5239_s8 + $0x1b0] sm:$0xf]  ;;  %v3802_v32 = vor.u32 %v4882_v25, %v3799_v26  ;;  %v3906_v25 = vor.u32 %v4908_v13, %v3903_v14 }
  0x5e   : > { %v3806_v33 = vor.u32 %v4889_v28, %v3805_v27  ;;  %3040 = vmatpush.bf16.msra.mxu0 %v5104_v43 }
  0x6b   : > { %2421 = vmatmul.bf16.vlgmr.msrb.gmra.mxu1 %v3586_v36  ;;  %2510 = vmatmul.bf16.vlgmr.msrb.gmra.mxu2 %v3590_v37  ;;  %v5089_v36 = vld [vmem:[%s6351_s1 + $0x1a0] sm:$0xff] }
  0x6c   : > { %2599 = vmatmul.bf16.vlgmr.msrb.gmra.mxu3 %v3594_v38  ;;  %v5097_v37 = vld [vmem:[%s6351_s1 + $0x1e0] sm:$0xff]  ;;  %2861 = vmatpush.bf16.msra.mxu2 %v5089_v36 }
  0x6d   : > { %2688 = vmatmul.bf16.vlgmr.msrb.gmra.mxu0 %v3598_v39  ;;  %2950 = vmatpush.bf16.msra.mxu3 %v5097_v37 }
  0x7b   : > { %2426 = vmatmul.bf16.gmra.mxu1 %v3638_v52  ;;  %2515 = vmatmul.bf16.gmra.mxu2 %v3642_v53  ;;  %v3851_v52 = vld [vmem:[%s5239_s8 + $0x244] sm:$0xf0]  ;;  %v3857_v53 = vld [vmem:[%s5239_s8 + $0x218] sm:$0xf] }
  0x7c   : > { %2604 = vmatmul.bf16.gmra.mxu3 %v3646_v54  ;;  %v4902_v54 = vld [vmem:[%s5239_s8 + $0x248] sm:$0xf0]  ;;  %v3854_v62 = vor.u32 %v4895_v51, %v3851_v52  ;;  %v3955_v51 = vld [vmem:[%s5239_s8 + $0x314] sm:$0xf0]  ;;  %v3961_v52 = vld [vmem:[%s5239_s8 + $0x2e8] sm:$0xf] }
  0x7d   : > { %2693 = vmatmul.bf16.gmra.mxu0 %v3650_v55  ;;  %v3858_v63 = vor.u32 %v4902_v54, %v3857_v53  ;;  %v4928_v53 = vld [vmem:[%s5239_s8 + $0x318] sm:$0xf0] }
  0x8b   : > { %2431 = vmatmul.bf16.gmra.mxu1 %v3690_v0  ;;  %2520 = vmatmul.bf16.gmra.mxu2 %v3694_v1 }
  0x8c   : > { %2609 = vmatmul.bf16.gmra.mxu3 %v3698_v2 }
  0x8d   : > { %2698 = vmatmul.bf16.gmra.mxu0 %v3702_v3 }
  0x9b   : > { %2436 = vmatmul.bf16.gmra.mxu1 %v3742_v16  ;;  %2525 = vmatmul.bf16.gmra.mxu2 %v3746_v17  ;;  %v4915_v16 = vld [vmem:[%s5239_s8 + $0x2b0] sm:$0xf0] }
  0x9c   : > { %2614 = vmatmul.bf16.gmra.mxu3 %v3750_v18  ;;  %v3910_v26 = vor.u32 %v4915_v16, %v3909_v15  ;;  %v4933_v16 = vld [vmem:[%s5239_s8 + $0x344] sm:$0xf] }
  0x9d   : > { %2703 = vmatmul.bf16.gmra.mxu0 %v3754_v19 }
  0xa8   : > { %v2353_v31 = vpop.f32.mrf.mxu1 }
  0xa9   : > { %v5454_v34 = vadd.f32 %v5443_v20, %v2353_v31 }
  0xaa   : > { %v5456_v35 = vpop.f32.mrf.mxu0 }
  0xab   : > { %2441 = vmatmul.bf16.gmra.mxu1 %v3794_v29  ;;  %2530 = vmatmul.bf16.gmra.mxu2 %v3798_v30  ;;  %v5088_v29 = vld [vmem:[%s6351_s1 + $0x198] sm:$0xff] }
  0xac   : > { %2619 = vmatmul.bf16.gmra.mxu3 %v3802_v32  ;;  %v5096_v30 = vld [vmem:[%s6351_s1 + $0x1d8] sm:$0xff]  ;;  %2862 = vmatpush.bf16.msra.mxu2 %v5088_v29 }
  0xad   : > { %2708 = vmatmul.bf16.gmra.mxu0 %v3806_v33  ;;  %2951 = vmatpush.bf16.msra.mxu3 %v5096_v30  ;;  %v2334_v30 = vadd.f32 %v5443_v20, %v5456_v35  ;;  %v5087_v35 = vld [vmem:[%s6351_s1 + $0x190] sm:$0xff] }
  0xae   : > { %v2373_v38 = vpop.f32.mrf.mxu2 }
  0xaf   : > { %v5465_v39 = vadd.f32 %v5443_v20, %v2373_v38  ;;  %v2393_v40 = vpop.f32.mrf.mxu3 }
  0xb0   : > { %v5468_v41 = vadd.f32 %v5443_v20, %v2393_v40  ;;  %v2355_v42 = vpop.f32.mrf.mxu1  ;;  %2863 = vmatpush.bf16.msra.mxu2 %v5087_v35 }
  0xb1   : > { %v5474_v44 = vadd.f32 %v5443_v20, %v2355_v42  ;;  %v5080_v42 = vld [vmem:[%s6351_s1 + $0x158] sm:$0xff] }
  0xb2   : > { %v5476_v45 = vpop.f32.mrf.mxu0  ;;  %2773 = vmatpush.bf16.msra.mxu1 %v5080_v42 }
  0xb6   : > { %v2375_v55 = vpop.f32.mrf.mxu2 }
  0xb7   : > { %v5490_v56 = vadd.f32 %v5443_v20, %v2375_v55  ;;  %v2395_v57 = vpop.f32.mrf.mxu3 }
  0xb8   : > { %v5493_v60 = vadd.f32 %v5443_v20, %v2395_v57  ;;  %v2358_v61 = vpop.f32.mrf.mxu1 }
  0xb9   : > { %v5496_v0 = vadd.f32 %v5443_v20, %v2358_v61 }
  0xba   : > { %v5498_v1 = vpop.f32.mrf.mxu0 }
  0xbb   : > { %2446 = vmatmul.bf16.gmra.mxu1 %v3846_v58  ;;  %2535 = vmatmul.bf16.gmra.mxu2 %v3850_v59  ;;  %v3950_v58 = vor.u32 %v4920_v46, %v3947_v47  ;;  %v3954_v59 = vor.u32 %v4927_v49, %v3953_v48 }
  0xbc   : > { %2624 = vmatmul.bf16.gmra.mxu3 %v3854_v62 }
  0xbd   : > { %2713 = vmatmul.bf16.gmra.mxu0 %v3858_v63  ;;  %v3958_v63 = vor.u32 %v4921_v50, %v3955_v51  ;;  %v5095_v51 = vld [vmem:[%s6351_s1 + $0x1d0] sm:$0xff] }
  0xbe   : > { %v2378_v2 = vpop.f32.mrf.mxu2  ;;  %2952 = vmatpush.bf16.msra.mxu3 %v5095_v51 }
  0xbf   : > { %v5501_v3 = vadd.f32 %v5443_v20, %v2378_v2  ;;  %v2398_v4 = vpop.f32.mrf.mxu3  ;;  %v3962_v2 = vor.u32 %v4928_v53, %v3961_v52  ;;  %v2336_v53 = vadd.f32 %v5443_v20, %v5476_v45  ;;  %v4051_v45 = vld [vmem:[%s5239_s8 + $0x3dc] sm:$0xf0] }
  0xc0   : > { %v5504_v5 = vadd.f32 %v5443_v20, %v2398_v4  ;;  %v2360_v6 = vpop.f32.mrf.mxu1 }
  0xc1   : > { %v5507_v7 = vadd.f32 %v5443_v20, %v2360_v6 }
  0xc2   : > { %v5509_v8 = vpop.f32.mrf.mxu0 }
  0xc3   : > { %v2341_v51 = vadd.f32 %v5443_v20, %v5509_v8 }
  0xc6   : > { %v2380_v17 = vpop.f32.mrf.mxu2 }
  0xc7   : > { %v5520_v18 = vadd.f32 %v5443_v20, %v2380_v17  ;;  %v2400_v19 = vpop.f32.mrf.mxu3  ;;  %v3999_v17 = vld [vmem:[%s5239_s8 + $0x374] sm:$0xf0] }
  0xc8   : > { %v5523_v23 = vadd.f32 %v5443_v20, %v2400_v19  ;;  %v2363_v24 = vpop.f32.mrf.mxu1  ;;  %v4005_v19 = vld [vmem:[%s5239_s8 + $0x348] sm:$0xf] }
  0xc9   : > { %v5526_v27 = vadd.f32 %v5443_v20, %v2363_v24  ;;  %v4007_v24 = vld [vmem:[%s5239_s8 + $0x37c] sm:$0xf0] }
  0xca   : > { %v5528_v28 = vpop.f32.mrf.mxu0 }
  0xcb   : > { %2451 = vmatmul.bf16.gmra.mxu1 %v3898_v21  ;;  %2540 = vmatmul.bf16.gmra.mxu2 %v3902_v22  ;;  %v4940_v21 = vld [vmem:[%s5239_s8 + $0x378] sm:$0xf0]  ;;  %v4934_v22 = vld [vmem:[%s5239_s8 + $0x34c] sm:$0xf]  ;;  %v2344_v8 = vadd.f32 %v5443_v20, %v5528_v28 }
  0xcc   : > { %2629 = vmatmul.bf16.gmra.mxu3 %v3906_v25  ;;  %v4013_v25 = vld [vmem:[%s5239_s8 + $0x350] sm:$0xf]  ;;  %v4006_v42 = vor.u32 %v4940_v21, %v4005_v19  ;;  %v4010_v47 = vor.u32 %v4934_v22, %v4007_v24  ;;  %v4947_v19 = vld [vmem:[%s5239_s8 + $0x3b4] sm:$0xf]  ;;  %v4059_v21 = vld [vmem:[%s5239_s8 + $0x3e4] sm:$0xf0] }
  0xcd   : > { %2718 = vmatmul.bf16.gmra.mxu0 %v3910_v26  ;;  %v4941_v26 = vld [vmem:[%s5239_s8 + $0x380] sm:$0xf0]  ;;  %v4065_v22 = vld [vmem:[%s5239_s8 + $0x3b8] sm:$0xf]  ;;  %v4954_v24 = vld [vmem:[%s5239_s8 + $0x3e8] sm:$0xf0] }
  0xce   : > { %v2383_v31 = vpop.f32.mrf.mxu2  ;;  %v4014_v48 = vor.u32 %v4941_v26, %v4013_v25  ;;  %v2339_v26 = vadd.f32 %v5443_v20, %v5498_v1  ;;  %v5086_v28 = vld [vmem:[%s6351_s1 + $0x188] sm:$0xff] }
  0xcf   : > { %v5537_v32 = vadd.f32 %v5443_v20, %v2383_v31  ;;  %v2403_v33 = vpop.f32.mrf.mxu3  ;;  %2864 = vmatpush.bf16.msra.mxu2 %v5086_v28 }
  0xd0   : > { %v5540_v36 = vadd.f32 %v5443_v20, %v2403_v33  ;;  %v2365_v37 = vpop.f32.mrf.mxu1 }
  0xd1   : > { %v5543_v38 = vadd.f32 %v5443_v20, %v2365_v37  ;;  %v4002_v37 = vor.u32 %v4933_v16, %v3999_v17  ;;  %v4057_v16 = vld [vmem:[%s5239_s8 + $0x3b0] sm:$0xf]  ;;  %v4953_v17 = vld [vmem:[%s5239_s8 + $0x3e0] sm:$0xf0] }
  0xd2   : > { %v5545_v40 = vpop.f32.mrf.mxu0 }
  0xd6   : > { %v2385_v54 = vpop.f32.mrf.mxu2 }
  0xd7   : > { %v5562_v55 = vadd.f32 %v5443_v20, %v2385_v54  ;;  %v2405_v57 = vpop.f32.mrf.mxu3 }
  0xd8   : > { %v5565_v61 = vadd.f32 %v5443_v20, %v2405_v57  ;;  %v2368_v62 = vpop.f32.mrf.mxu1 }
  0xd9   : > { %v5568_v4 = vadd.f32 %v5443_v20, %v2368_v62 }
  0xda   : > { %v5570_v6 = vpop.f32.mrf.mxu0 }
  0xdb   : > { %2456 = vmatmul.bf16.gmra.mxu1 %v3950_v58  ;;  %2545 = vmatmul.bf16.gmra.mxu2 %v3954_v59 }
  0xdc   : > { %2634 = vmatmul.bf16.gmra.mxu3 %v3958_v63 }
  0xdd   : > { %2723 = vmatmul.bf16.gmra.mxu0 %v3962_v2  ;;  %v5079_v2 = vld [vmem:[%s6351_s1 + $0x150] sm:$0xff] }
  0xde   : > { %v2388_v9 = vpop.f32.mrf.mxu2  ;;  %2774 = vmatpush.bf16.msra.mxu1 %v5079_v2  ;;  %v4103_v2 = vld [vmem:[%s5239_s8 + $0x444] sm:$0xf0] }
  0xdf   : > { %v5573_v10 = vadd.f32 %v5443_v20, %v2388_v9  ;;  %v2408_v11 = vpop.f32.mrf.mxu3  ;;  %v5103_v9 = vld [vmem:[%s6351_s1 + $0x210] sm:$0xff] }
  0xe0   : > { %v5576_v12 = vadd.f32 %v5443_v20, %v2408_v11  ;;  %v2370_v13 = vpop.f32.mrf.mxu1  ;;  %v4946_v11 = vld [vmem:[%s5239_s8 + $0x3ac] sm:$0xf]  ;;  %3041 = vmatpush.bf16.msra.mxu0 %v5103_v9  ;;  %v4109_v9 = vld [vmem:[%s5239_s8 + $0x418] sm:$0xf] }
  0xe1   : > { %v5579_v14 = vadd.f32 %v5443_v20, %v2370_v13 }
  0xe2   : > { %v5581_v15 = vpop.f32.mrf.mxu0 }
  0xe6   : > { %v2390_v29 = vpop.f32.mrf.mxu2 }
  0xe7   : > { %v5594_v31 = vadd.f32 %v5443_v20, %v2390_v29  ;;  %v2410_v33 = vpop.f32.mrf.mxu3 }
  0xe8   : > { %v5597_v43 = vadd.f32 %v5443_v20, %v2410_v33  ;;  %v2422_v46 = vpop.f32.mrf.mxu1  ;;  %v4054_v33 = vor.u32 %v4946_v11, %v4051_v45  ;;  %v4966_v11 = vld [vmem:[%s5239_s8 + $0x448] sm:$0xf0]  ;;  %v4960_v45 = vld [vmem:[%s5239_s8 + $0x41c] sm:$0xf] }
  0xe9   : > { %v2423_v49 = vadd.f32 %v2422_v46, %v2334_v30  ;;  %v4062_v46 = vor.u32 %v4947_v19, %v4059_v21  ;;  %v4967_v19 = vld [vmem:[%s5239_s8 + $0x450] sm:$0xf0] }
  0xea   : > { %v2689_v50 = vpop.f32.mrf.mxu0 }
  0xeb   : > { %2461 = vmatmul.bf16.gmra.mxu1 %v4002_v37  ;;  %2550 = vmatmul.bf16.gmra.mxu2 %v4006_v42  ;;  %v4058_v37 = vor.u32 %v4953_v17, %v4057_v16  ;;  %v4111_v16 = vld [vmem:[%s5239_s8 + $0x44c] sm:$0xf0]  ;;  %v4117_v17 = vld [vmem:[%s5239_s8 + $0x420] sm:$0xf] }
  0xec   : > { %2639 = vmatmul.bf16.gmra.mxu3 %v4010_v47  ;;  %v4066_v47 = vor.u32 %v4954_v24, %v4065_v22 }
  0xed   : > { %2728 = vmatmul.bf16.gmra.mxu0 %v4014_v48 }
  0xee   : > { %v2511_v52 = vpop.f32.mrf.mxu2 }
  0xef   : > { %v2512_v54 = vadd.f32 %v2511_v52, %v2423_v49  ;;  %v2600_v57 = vpop.f32.mrf.mxu3 }
  0xf0   : > { %v2424_v58 = vpop.f32.mrf.mxu1 }
  0xf1   : > { %v2601_v59 = vadd.f32 %v2600_v57, %v2512_v54  ;;  %v2425_v62 = vadd.f32 %v2424_v58, %v2336_v53 }
  0xf2   : > { %v2691_v63 = vpop.f32.mrf.mxu0 }
  0xf3   : > { %v5615_v13 = vadd.f32 %v2689_v50, %v2601_v59 }
  0xf6   : > { %v2513_v25 = vpop.f32.mrf.mxu2 }
  0xf7   : > { %v2514_v29 = vadd.f32 %v2513_v25, %v2425_v62  ;;  %v2602_v30 = vpop.f32.mrf.mxu3  ;;  %v4959_v62 = vld [vmem:[%s5239_s8 + $0x414] sm:$0xf] }
  0xf8   : > { %v2427_v42 = vpop.f32.mrf.mxu1  ;;  %v4106_v25 = vor.u32 %v4959_v62, %v4103_v2  ;;  %v4972_v62 = vld [vmem:[%s5239_s8 + $0x47c] sm:$0xf] }
  0xf9   : > { %v2603_v48 = vadd.f32 %v2602_v30, %v2514_v29  ;;  %v2428_v49 = vadd.f32 %v2427_v42, %v2339_v26  ;;  %v4110_v26 = vor.u32 %v4966_v11, %v4109_v9  ;;  %v4114_v30 = vor.u32 %v4960_v45, %v4111_v16  ;;  %v4161_v9 = vld [vmem:[%s5239_s8 + $0x480] sm:$0xf]  ;;  %v4979_v11 = vld [vmem:[%s5239_s8 + $0x4b0] sm:$0xf0]  ;;  %v4973_v45 = vld [vmem:[%s5239_s8 + $0x484] sm:$0xf] }
  0xfa   : > { %v2694_v50 = vpop.f32.mrf.mxu0  ;;  %v4163_v16 = vld [vmem:[%s5239_s8 + $0x4b4] sm:$0xf0] }
  0xfb   : > { %2466 = vmatmul.bf16.gmra.mxu1 %v4054_v33  ;;  %2555 = vmatmul.bf16.gmra.mxu2 %v4058_v37  ;;  %v5625_v35 = vadd.f32 %v2691_v63, %v2603_v48  ;;  %v4118_v33 = vor.u32 %v4967_v19, %v4117_v17  ;;  %v5094_v48 = vld [vmem:[%s6351_s1 + $0x1c8] sm:$0xff]  ;;  %v4980_v19 = vld [vmem:[%s5239_s8 + $0x4b8] sm:$0xf0] }
  0xfc   : > { %2644 = vmatmul.bf16.gmra.mxu3 %v4062_v46  ;;  %v4169_v17 = vld [vmem:[%s5239_s8 + $0x488] sm:$0xf] }
  0xfd   : > { %2733 = vmatmul.bf16.gmra.mxu0 %v4066_v47  ;;  %2953 = vmatpush.bf16.msra.mxu3 %v5094_v48  ;;  %v2351_v48 = vadd.f32 %v5443_v20, %v5581_v15 }
  0xfe   : > { %v2516_v1 = vpop.f32.mrf.mxu2 }
  0xff   : > { %v2517_v52 = vadd.f32 %v2516_v1, %v2428_v49  ;;  %v2605_v53 = vpop.f32.mrf.mxu3 }
 0x100   : > { %v2429_v54 = vpop.f32.mrf.mxu1 }
 0x101   : > { %v2606_v57 = vadd.f32 %v2605_v53, %v2517_v52  ;;  %v2430_v58 = vadd.f32 %v2429_v54, %v2341_v51 }
 0x102   : > { %v2696_v59 = vpop.f32.mrf.mxu0 }
 0x103   : > { %v5631_v63 = vadd.f32 %v2694_v50, %v2606_v57  ;;  %v2346_v50 = vadd.f32 %v5443_v20, %v5545_v40  ;;  %v4155_v40 = vld [vmem:[%s5239_s8 + $0x4ac] sm:$0xf0] }
 0x106   : > { %v2518_v21 = vpop.f32.mrf.mxu2 }
 0x107   : > { %v2519_v22 = vadd.f32 %v2518_v21, %v2430_v58  ;;  %v2607_v24 = vpop.f32.mrf.mxu3  ;;  %v5078_v58 = vld [vmem:[%s6351_s1 + $0x148] sm:$0xff] }
 0x108   : > { %v2432_v29 = vpop.f32.mrf.mxu1  ;;  %2775 = vmatpush.bf16.msra.mxu1 %v5078_v58  ;;  %v4207_v58 = vld [vmem:[%s5239_s8 + $0x514] sm:$0xf0] }
 0x109   : > { %v2608_v37 = vadd.f32 %v2607_v24, %v2519_v22  ;;  %v2433_v42 = vadd.f32 %v2432_v29, %v2344_v8  ;;  %v2349_v8 = vadd.f32 %v5443_v20, %v5570_v6 }
 0x10a   : > { %v2699_v46 = vpop.f32.mrf.mxu0 }
 0x10b   : > { %2471 = vmatmul.bf16.gmra.mxu1 %v4106_v25  ;;  %2560 = vmatmul.bf16.gmra.mxu2 %v4110_v26  ;;  %v5641_v47 = vadd.f32 %v2696_v59, %v2608_v37  ;;  %v5102_v59 = vld [vmem:[%s6351_s1 + $0x208] sm:$0xff]  ;;  %v4158_v25 = vor.u32 %v4972_v62, %v4155_v40  ;;  %v4162_v26 = vor.u32 %v4979_v11, %v4161_v9  ;;  %v4992_v62 = vld [vmem:[%s5239_s8 + $0x518] sm:$0xf0]  ;;  %v4215_v9 = vld [vmem:[%s5239_s8 + $0x51c] sm:$0xf0] }
 0x10c   : > { %2649 = vmatmul.bf16.gmra.mxu3 %v4114_v30  ;;  %3042 = vmatpush.bf16.msra.mxu0 %v5102_v59  ;;  %v4166_v30 = vor.u32 %v4973_v45, %v4163_v16  ;;  %v4213_v59 = vld [vmem:[%s5239_s8 + $0x4e8] sm:$0xf]  ;;  %v4986_v40 = vld [vmem:[%s5239_s8 + $0x4ec] sm:$0xf]  ;;  %v4221_v11 = vld [vmem:[%s5239_s8 + $0x4f0] sm:$0xf] }
 0x10d   : > { %2738 = vmatmul.bf16.gmra.mxu0 %v4118_v33  ;;  %v4170_v33 = vor.u32 %v4980_v19, %v4169_v17  ;;  %v4993_v45 = vld [vmem:[%s5239_s8 + $0x520] sm:$0xf0]  ;;  %v4214_v15 = vor.u32 %v4992_v62, %v4213_v59  ;;  %v4999_v59 = vld [vmem:[%s5239_s8 + $0x554] sm:$0xf]  ;;  %v4267_v62 = vld [vmem:[%s5239_s8 + $0x584] sm:$0xf0] }
 0x10e   : > { %v2521_v49 = vpop.f32.mrf.mxu2 }
 0x10f   : > { %v2522_v1 = vadd.f32 %v2521_v49, %v2433_v42  ;;  %v2610_v51 = vpop.f32.mrf.mxu3 }
 0x110   : > { %v2434_v52 = vpop.f32.mrf.mxu1 }
 0x111   : > { %v2611_v53 = vadd.f32 %v2610_v51, %v2522_v1  ;;  %v2435_v54 = vadd.f32 %v2434_v52, %v2346_v50 }
 0x112   : > { %v2701_v57 = vpop.f32.mrf.mxu0 }
 0x113   : > { %v5659_v2 = vadd.f32 %v2699_v46, %v2611_v53 }
 0x116   : > { %v2523_v21 = vpop.f32.mrf.mxu2 }
 0x117   : > { %v2524_v22 = vadd.f32 %v2523_v21, %v2435_v54  ;;  %v2612_v24 = vpop.f32.mrf.mxu3  ;;  %v4985_v54 = vld [vmem:[%s5239_s8 + $0x4e4] sm:$0xf] }
 0x118   : > { %v2437_v29 = vpop.f32.mrf.mxu1  ;;  %v4210_v20 = vor.u32 %v4985_v54, %v4207_v58  ;;  %v4265_v54 = vld [vmem:[%s5239_s8 + $0x550] sm:$0xf]  ;;  %v5005_v58 = vld [vmem:[%s5239_s8 + $0x580] sm:$0xf0] }
 0x119   : > { %v2613_v37 = vadd.f32 %v2612_v24, %v2524_v22  ;;  %v2438_v42 = vadd.f32 %v2437_v29, %v2349_v8  ;;  %v4218_v8 = vor.u32 %v4986_v40, %v4215_v9  ;;  %v4222_v22 = vor.u32 %v4993_v45, %v4221_v11  ;;  %v5006_v40 = vld [vmem:[%s5239_s8 + $0x588] sm:$0xf0] }
 0x11a   : > { %v2704_v46 = vpop.f32.mrf.mxu0 }
 0x11b   : > { %2476 = vmatmul.bf16.gmra.mxu1 %v4158_v25  ;;  %2565 = vmatmul.bf16.gmra.mxu2 %v4162_v26  ;;  %v5669_v28 = vadd.f32 %v2701_v57, %v2613_v37 }
 0x11c   : > { %2654 = vmatmul.bf16.gmra.mxu3 %v4166_v30  ;;  %v5085_v30 = vld [vmem:[%s6351_s1 + $0x180] sm:$0xff] }
 0x11d   : > { %2743 = vmatmul.bf16.gmra.mxu0 %v4170_v33  ;;  %v5093_v33 = vld [vmem:[%s6351_s1 + $0x1c0] sm:$0xff]  ;;  %2865 = vmatpush.bf16.msra.mxu2 %v5085_v30 }
 0x11e   : > { %v2526_v6 = vpop.f32.mrf.mxu2  ;;  %2954 = vmatpush.bf16.msra.mxu3 %v5093_v33 }
 0x11f   : > { %v2527_v49 = vadd.f32 %v2526_v6, %v2438_v42  ;;  %v2615_v50 = vpop.f32.mrf.mxu3 }
 0x120   : > { %v2439_v1 = vpop.f32.mrf.mxu1 }
 0x121   : > { %v2616_v51 = vadd.f32 %v2615_v50, %v2527_v49  ;;  %v2440_v52 = vadd.f32 %v2439_v1, %v2351_v48  ;;  %v5077_v50 = vld [vmem:[%s6351_s1 + $0x140] sm:$0xff] }
 0x122   : > { %v2706_v53 = vpop.f32.mrf.mxu0  ;;  %v5101_v1 = vld [vmem:[%s6351_s1 + $0x200] sm:$0xff]  ;;  %2776 = vmatpush.bf16.msra.mxu1 %v5077_v50  ;;  %v5012_v50 = vld [vmem:[%s5239_s8 + $0x5bc] sm:$0xf] }
 0x123   : > { %v5675_v57 = vadd.f32 %v2704_v46, %v2616_v51  ;;  %v4998_v51 = vld [vmem:[%s5239_s8 + $0x54c] sm:$0xf]  ;;  %3043 = vmatpush.bf16.msra.mxu0 %v5101_v1  ;;  %v4319_v1 = vld [vmem:[%s5239_s8 + $0x5ec] sm:$0xf0] }
 0x126   : > { %v2528_v16 = vpop.f32.mrf.mxu2 }
 0x127   : > { %v2529_v17 = vadd.f32 %v2528_v16, %v2440_v52  ;;  %v2617_v19 = vpop.f32.mrf.mxu3  ;;  %v4259_v52 = vld [vmem:[%s5239_s8 + $0x57c] sm:$0xf0] }
 0x128   : > { %v2442_v21 = vpop.f32.mrf.mxu1  ;;  %v4262_v16 = vor.u32 %v4998_v51, %v4259_v52  ;;  %v4325_v51 = vld [vmem:[%s5239_s8 + $0x5c0] sm:$0xf]  ;;  %v5019_v52 = vld [vmem:[%s5239_s8 + $0x5f0] sm:$0xf0] }
 0x129   : > { %v2618_v24 = vadd.f32 %v2617_v19, %v2529_v17  ;;  %v2443_v25 = vadd.f32 %v2442_v21, %v5454_v34  ;;  %v4266_v17 = vor.u32 %v5005_v58, %v4265_v54 }
 0x12a   : > { %v2709_v26 = vpop.f32.mrf.mxu0 }
 0x12b   : > { %2481 = vmatmul.bf16.gmra.mxu1 %v4210_v20  ;;  %2570 = vmatmul.bf16.gmra.mxu2 %v4214_v15  ;;  %v5684_v29 = vadd.f32 %v2706_v53, %v2618_v24  ;;  %v4270_v20 = vor.u32 %v4999_v59, %v4267_v62 }
 0x12c   : > { %2659 = vmatmul.bf16.gmra.mxu3 %v4218_v8 }
 0x12d   : > { %2748 = vmatmul.bf16.gmra.mxu0 %v4222_v22 }
 0x12e   : > { %v2531_v37 = vpop.f32.mrf.mxu2 }
 0x12f   : > { %v2532_v34 = vadd.f32 %v2531_v37, %v2443_v25  ;;  %v2620_v42 = vpop.f32.mrf.mxu3 }
 0x130   : > { %v2444_v46 = vpop.f32.mrf.mxu1 }
 0x131   : > { %v2621_v6 = vadd.f32 %v2620_v42, %v2532_v34  ;;  %v2445_v48 = vadd.f32 %v2444_v46, %v5474_v44  ;;  %v4273_v44 = vld [vmem:[%s5239_s8 + $0x558] sm:$0xf]  ;;  %v5011_v42 = vld [vmem:[%s5239_s8 + $0x5b4] sm:$0xf]  ;;  %v4311_v46 = vld [vmem:[%s5239_s8 + $0x5e4] sm:$0xf0] }
 0x132   : > { %v2711_v49 = vpop.f32.mrf.mxu0  ;;  %v4274_v15 = vor.u32 %v5006_v40, %v4273_v44  ;;  %v4314_v62 = vor.u32 %v5011_v42, %v4311_v46  ;;  %v4369_v42 = vld [vmem:[%s5239_s8 + $0x620] sm:$0xf]  ;;  %v5031_v46 = vld [vmem:[%s5239_s8 + $0x650] sm:$0xf0] }
 0x133   : > { %v5701_v53 = vadd.f32 %v2709_v26, %v2621_v6 }
 0x136   : > { %v2533_v9 = vpop.f32.mrf.mxu2 }
 0x137   : > { %v2534_v11 = vadd.f32 %v2533_v9, %v2445_v48  ;;  %v2622_v45 = vpop.f32.mrf.mxu3  ;;  %v4317_v48 = vld [vmem:[%s5239_s8 + $0x5b8] sm:$0xf]  ;;  %v4322_v9 = vor.u32 %v5012_v50, %v4319_v1  ;;  %v5032_v50 = vld [vmem:[%s5239_s8 + $0x658] sm:$0xf0] }
 0x138   : > { %v2447_v19 = vpop.f32.mrf.mxu1 }
 0x139   : > { %v2623_v21 = vadd.f32 %v2622_v45, %v2534_v11  ;;  %v2448_v8 = vadd.f32 %v2447_v19, %v5496_v0  ;;  %v4326_v11 = vor.u32 %v5019_v52, %v4325_v51  ;;  %v5124_v19 = vld [vmem:[%s6351_s1 + $0x2b8] sm:$0xff] }
 0x13a   : > { %v2714_v22 = vpop.f32.mrf.mxu0  ;;  %3214 = vmatpush.bf16.msrb.mxu2 %v5124_v19 }
 0x13b   : > { %2486 = vmatmul.bf16.gmra.mxu1 %v4262_v16  ;;  %2575 = vmatmul.bf16.gmra.mxu2 %v4266_v17  ;;  %v5710_v24 = vadd.f32 %v2711_v49, %v2623_v21  ;;  %v5018_v49 = vld [vmem:[%s5239_s8 + $0x5e8] sm:$0xf0] }
 0x13c   : > { %2664 = vmatmul.bf16.gmra.mxu3 %v4270_v20  ;;  %v4318_v44 = vor.u32 %v5018_v49, %v4317_v48  ;;  %v5132_v20 = vld [vmem:[%s6351_s1 + $0x2f8] sm:$0xff]  ;;  %v5025_v48 = vld [vmem:[%s5239_s8 + $0x624] sm:$0xf] }
 0x13d   : > { %2753 = vmatmul.bf16.gmra.mxu0 %v4274_v15  ;;  %3303 = vmatpush.bf16.msrb.mxu3 %v5132_v20  ;;  %v4371_v49 = vld [vmem:[%s5239_s8 + $0x654] sm:$0xf0] }
 0x13e   : > { %v2536_v25 = vpop.f32.mrf.mxu2 }
 0x13f   : > { %v2537_v26 = vadd.f32 %v2536_v25, %v2448_v8  ;;  %v2625_v30 = vpop.f32.mrf.mxu3 }
 0x140   : > { %v2449_v33 = vpop.f32.mrf.mxu1 }
 0x141   : > { %v2626_v37 = vadd.f32 %v2625_v30, %v2537_v26  ;;  %v2450_v0 = vadd.f32 %v2449_v33, %v5507_v7  ;;  %v5116_v30 = vld [vmem:[%s6351_s1 + $0x278] sm:$0xff] }
 0x142   : > { %v2716_v34 = vpop.f32.mrf.mxu0  ;;  %v5136_v33 = vld [vmem:[%s6351_s1 + $0x318] sm:$0xff]  ;;  %3125 = vmatpush.bf16.msrb.mxu1 %v5116_v30 }
 0x143   : > { %v5715_v6 = vadd.f32 %v2714_v22, %v2626_v37  ;;  %v5024_v37 = vld [vmem:[%s5239_s8 + $0x61c] sm:$0xf]  ;;  %3396 = vmatpush.bf16.msrb.mxu0 %v5136_v33  ;;  %v3607_v33 = vld [vmem:[%s5239_s8 + $0x4c] sm:$0xf0] }
 0x144   : > { %v4832_v30 = vld [vmem:[%s5239_s8 + $0x1c] sm:$0xf] }
 0x146   : > { %v2538_v54 = vpop.f32.mrf.mxu2 }
 0x147   : > { %v2539_v58 = vadd.f32 %v2538_v54, %v2450_v0  ;;  %v2627_v59 = vpop.f32.mrf.mxu3  ;;  %v4363_v0 = vld [vmem:[%s5239_s8 + $0x64c] sm:$0xf0] }
 0x148   : > { %v2452_v40 = vpop.f32.mrf.mxu1  ;;  %v4366_v54 = vor.u32 %v5024_v37, %v4363_v0  ;;  %v3613_v37 = vld [vmem:[%s5239_s8 + $0x20] sm:$0xf]  ;;  %v4839_v0 = vld [vmem:[%s5239_s8 + $0x50] sm:$0xf0] }
 0x149   : > { %v2628_v7 = vadd.f32 %v2627_v59, %v2539_v58  ;;  %v2453_v45 = vadd.f32 %v2452_v40, %v5526_v27  ;;  %v4370_v58 = vor.u32 %v5031_v46, %v4369_v42 }
 0x14a   : > { %v2719_v16 = vpop.f32.mrf.mxu0 }
 0x14b   : > { %2491 = vmatmul.bf16.gmra.mxu1 %v4314_v62  ;;  %2580 = vmatmul.bf16.gmra.mxu2 %v4318_v44  ;;  %v5724_v17 = vadd.f32 %v2716_v34, %v2628_v7  ;;  %v4374_v62 = vor.u32 %v5025_v48, %v4371_v49 }
 0x14c   : > { %2669 = vmatmul.bf16.gmra.mxu3 %v4322_v9 }
 0x14d   : > { %2758 = vmatmul.bf16.gmra.mxu0 %v4326_v11 }
 0x14e   : > { %v2541_v15 = vpop.f32.mrf.mxu2 }
 0x14f   : > { %v2542_v27 = vadd.f32 %v2541_v15, %v2453_v45  ;;  %v2630_v21 = vpop.f32.mrf.mxu3 }
 0x150   : > { %v2454_v8 = vpop.f32.mrf.mxu1 }
 0x151   : > { %v2631_v22 = vadd.f32 %v2630_v21, %v2542_v27  ;;  %v2455_v25 = vadd.f32 %v2454_v8, %v5543_v38  ;;  %v4377_v38 = vld [vmem:[%s5239_s8 + $0x628] sm:$0xf]  ;;  %v4831_v21 = vld [vmem:[%s5239_s8 + $0x14] sm:$0xf] }
 0x152   : > { %v2721_v26 = vpop.f32.mrf.mxu0  ;;  %v4378_v44 = vor.u32 %v5032_v50, %v4377_v38  ;;  %v3599_v8 = vld [vmem:[%s5239_s8 + $0x44] sm:$0xf0] }
 0x153   : > { %v5741_v34 = vadd.f32 %v2719_v16, %v2631_v22  ;;  %v3602_v49 = vor.u32 %v4831_v21, %v3599_v8  ;;  %v4851_v21 = vld [vmem:[%s5239_s8 + $0xb0] sm:$0xf0]  ;;  %v4845_v8 = vld [vmem:[%s5239_s8 + $0x84] sm:$0xf] }
 0x156   : > { %v2543_v1 = vpop.f32.mrf.mxu2 }
 0x157   : > { %v2544_v51 = vadd.f32 %v2543_v1, %v2455_v25  ;;  %v2632_v52 = vpop.f32.mrf.mxu3  ;;  %v3605_v25 = vld [vmem:[%s5239_s8 + $0x18] sm:$0xf]  ;;  %v3610_v1 = vor.u32 %v4832_v30, %v3607_v33  ;;  %v4852_v30 = vld [vmem:[%s5239_s8 + $0xb8] sm:$0xf0] }
 0x158   : > { %v2457_v59 = vpop.f32.mrf.mxu1 }
 0x159   : > { %v2633_v40 = vadd.f32 %v2632_v52, %v2544_v51  ;;  %v2458_v9 = vadd.f32 %v2457_v59, %v5568_v4  ;;  %v3614_v51 = vor.u32 %v4839_v0, %v3613_v37  ;;  %v5123_v59 = vld [vmem:[%s6351_s1 + $0x2b0] sm:$0xff] }
 0x15a   : > { %v2724_v11 = vpop.f32.mrf.mxu0  ;;  %3215 = vmatpush.bf16.msrb.mxu2 %v5123_v59 }
 0x15b   : > { %2496 = vmatmul.bf16.gmra.mxu1 %v4366_v54  ;;  %2585 = vmatmul.bf16.gmra.mxu2 %v4370_v58  ;;  %v5750_v7 = vadd.f32 %v2721_v26, %v2633_v40  ;;  %v4838_v26 = vld [vmem:[%s5239_s8 + $0x48] sm:$0xf0] }
 0x15c   : > { %2674 = vmatmul.bf16.gmra.mxu3 %v4374_v62  ;;  %v3606_v38 = vor.u32 %v4838_v26, %v3605_v25  ;;  %v5131_v62 = vld [vmem:[%s6351_s1 + $0x2f0] sm:$0xff]  ;;  %v3659_v25 = vld [vmem:[%s5239_s8 + $0xb4] sm:$0xf0]  ;;  %v3665_v26 = vld [vmem:[%s5239_s8 + $0x88] sm:$0xf] }
 0x15d   : > { %2763 = vmatmul.bf16.gmra.mxu0 %v4378_v44  ;;  %3304 = vmatpush.bf16.msrb.mxu3 %v5131_v62 }
 0x15e   : > { %v2546_v45 = vpop.f32.mrf.mxu2 }
 0x15f   : > { %v2547_v16 = vadd.f32 %v2546_v45, %v2458_v9  ;;  %v2635_v19 = vpop.f32.mrf.mxu3 }
 0x160   : > { %v2459_v20 = vpop.f32.mrf.mxu1 }
 0x161   : > { %v2636_v15 = vadd.f32 %v2635_v19, %v2547_v16  ;;  %v2460_v4 = vadd.f32 %v2459_v20, %v5579_v14  ;;  %v5115_v19 = vld [vmem:[%s6351_s1 + $0x270] sm:$0xff]  ;;  %v4844_v20 = vld [vmem:[%s5239_s8 + $0x7c] sm:$0xf] }
 0x162   : > { %v2726_v27 = vpop.f32.mrf.mxu0  ;;  %3126 = vmatpush.bf16.msrb.mxu1 %v5115_v19  ;;  %v3711_v19 = vld [vmem:[%s5239_s8 + $0x11c] sm:$0xf0] }
 0x163   : > { %v5755_v22 = vadd.f32 %v2724_v11, %v2636_v15  ;;  %v3651_v15 = vld [vmem:[%s5239_s8 + $0xac] sm:$0xf0] }
 0x166   : > { %v2548_v42 = vpop.f32.mrf.mxu2 }
 0x167   : > { %v2549_v46 = vadd.f32 %v2548_v42, %v2460_v4  ;;  %v2637_v48 = vpop.f32.mrf.mxu3 }
 0x168   : > { %v2462_v50 = vpop.f32.mrf.mxu1 }
 0x169   : > { %v2638_v14 = vadd.f32 %v2637_v48, %v2549_v46  ;;  %v2463_v52 = vadd.f32 %v2462_v50, %v5465_v39  ;;  %v3662_v48 = vor.u32 %v4845_v8, %v3659_v25 }
 0x16a   : > { %v2729_v54 = vpop.f32.mrf.mxu0 }
 0x16b   : > { %2777 = vmatmul.bf16.vlgmr.msra.gmra.mxu1 %v3602_v49  ;;  %2866 = vmatmul.bf16.vlgmr.msra.gmra.mxu2 %v3606_v38  ;;  %v5764_v58 = vadd.f32 %v2726_v27, %v2638_v14  ;;  %v3657_v27 = vld [vmem:[%s5239_s8 + $0x80] sm:$0xf]  ;;  %v3666_v49 = vor.u32 %v4852_v30, %v3665_v26 }
 0x16c   : > { %2955 = vmatmul.bf16.vlgmr.msra.gmra.mxu3 %v3610_v1  ;;  %v3658_v42 = vor.u32 %v4851_v21, %v3657_v27 }
 0x16d   : > { %3044 = vmatmul.bf16.vlgmr.msra.gmra.mxu0 %v3614_v51 }
 0x16e   : > { %v2551_v39 = vpop.f32.mrf.mxu2 }
 0x16f   : > { %v2552_v44 = vadd.f32 %v2551_v39, %v2463_v52  ;;  %v2640_v40 = vpop.f32.mrf.mxu3 }
 0x170   : > { %v2464_v9 = vpop.f32.mrf.mxu1 }
 0x171   : > { %v2641_v11 = vadd.f32 %v2640_v40, %v2552_v44  ;;  %v2465_v45 = vadd.f32 %v2464_v9, %v5490_v56  ;;  %v3654_v56 = vor.u32 %v4844_v20, %v3651_v15  ;;  %v4857_v44 = vld [vmem:[%s5239_s8 + $0xe4] sm:$0xf]  ;;  %v3703_v40 = vld [vmem:[%s5239_s8 + $0x114] sm:$0xf0]  ;;  %v3717_v20 = vld [vmem:[%s5239_s8 + $0xf0] sm:$0xf] }
 0x172   : > { %v2731_v16 = vpop.f32.mrf.mxu0  ;;  %v4865_v15 = vld [vmem:[%s5239_s8 + $0x120] sm:$0xf0]  ;;  %v3706_v25 = vor.u32 %v4857_v44, %v3703_v40  ;;  %v3761_v44 = vld [vmem:[%s5239_s8 + $0x150] sm:$0xf] }
 0x173   : > { %v5778_v4 = vadd.f32 %v2729_v54, %v2641_v11  ;;  %v3709_v11 = vld [vmem:[%s5239_s8 + $0xe8] sm:$0xf]  ;;  %v4877_v40 = vld [vmem:[%s5239_s8 + $0x180] sm:$0xf0] }
 0x176   : > { %v2553_v33 = vpop.f32.mrf.mxu2 }
 0x177   : > { %v2554_v37 = vadd.f32 %v2553_v33, %v2465_v45  ;;  %v2642_v0 = vpop.f32.mrf.mxu3  ;;  %v4864_v45 = vld [vmem:[%s5239_s8 + $0x118] sm:$0xf0] }
 0x178   : > { %v2467_v46 = vpop.f32.mrf.mxu1  ;;  %v3710_v26 = vor.u32 %v4864_v45, %v3709_v11  ;;  %v4871_v11 = vld [vmem:[%s5239_s8 + $0x154] sm:$0xf]  ;;  %v3763_v45 = vld [vmem:[%s5239_s8 + $0x184] sm:$0xf0] }
 0x179   : > { %v2643_v38 = vadd.f32 %v2642_v0, %v2554_v37  ;;  %v2468_v50 = vadd.f32 %v2467_v46, %v5501_v3  ;;  %v3718_v37 = vor.u32 %v4865_v15, %v3717_v20  ;;  %v5122_v46 = vld [vmem:[%s6351_s1 + $0x2a8] sm:$0xff] }
 0x17a   : > { %v2734_v1 = vpop.f32.mrf.mxu0  ;;  %3216 = vmatpush.bf16.msrb.mxu2 %v5122_v46 }
 0x17b   : > { %2782 = vmatmul.bf16.gmra.mxu1 %v3654_v56  ;;  %2871 = vmatmul.bf16.gmra.mxu2 %v3658_v42  ;;  %v5787_v51 = vadd.f32 %v2731_v16, %v2643_v38  ;;  %v4858_v16 = vld [vmem:[%s5239_s8 + $0xec] sm:$0xf] }
 0x17c   : > { %2960 = vmatmul.bf16.gmra.mxu3 %v3662_v48  ;;  %v3714_v33 = vor.u32 %v4858_v16, %v3711_v19  ;;  %v5130_v48 = vld [vmem:[%s6351_s1 + $0x2e8] sm:$0xff] }
 0x17d   : > { %3049 = vmatmul.bf16.gmra.mxu0 %v3666_v49  ;;  %3305 = vmatpush.bf16.msrb.mxu3 %v5130_v48  ;;  %v4878_v16 = vld [vmem:[%s5239_s8 + $0x188] sm:$0xf0] }
 0x17e   : > { %v2556_v14 = vpop.f32.mrf.mxu2 }
 0x17f   : > { %v2557_v52 = vadd.f32 %v2556_v14, %v2468_v50  ;;  %v2645_v54 = vpop.f32.mrf.mxu3 }
 0x180   : > { %v2469_v59 = vpop.f32.mrf.mxu1 }
 0x181   : > { %v2646_v62 = vadd.f32 %v2645_v54, %v2557_v52  ;;  %v2470_v3 = vadd.f32 %v2469_v59, %v5520_v18  ;;  %v5114_v54 = vld [vmem:[%s6351_s1 + $0x268] sm:$0xff]  ;;  %v5135_v59 = vld [vmem:[%s6351_s1 + $0x310] sm:$0xff] }
 0x182   : > { %v2736_v39 = vpop.f32.mrf.mxu0  ;;  %3127 = vmatpush.bf16.msrb.mxu1 %v5114_v54  ;;  %3397 = vmatpush.bf16.msrb.mxu0 %v5135_v59  ;;  %v4884_v54 = vld [vmem:[%s5239_s8 + $0x1bc] sm:$0xf]  ;;  %v3815_v59 = vld [vmem:[%s5239_s8 + $0x1ec] sm:$0xf0] }
 0x183   : > { %v5792_v9 = vadd.f32 %v2734_v1, %v2646_v62  ;;  %v4870_v62 = vld [vmem:[%s5239_s8 + $0x14c] sm:$0xf] }
 0x186   : > { %v2558_v27 = vpop.f32.mrf.mxu2 }
 0x187   : > { %v2559_v21 = vadd.f32 %v2558_v27, %v2470_v3  ;;  %v2647_v8 = vpop.f32.mrf.mxu3  ;;  %v3755_v3 = vld [vmem:[%s5239_s8 + $0x17c] sm:$0xf0] }
 0x188   : > { %v2472_v30 = vpop.f32.mrf.mxu1  ;;  %v3758_v27 = vor.u32 %v4870_v62, %v3755_v3  ;;  %v3821_v62 = vld [vmem:[%s5239_s8 + $0x1c0] sm:$0xf]  ;;  %v4891_v3 = vld [vmem:[%s5239_s8 + $0x1f0] sm:$0xf0] }
 0x189   : > { %v2648_v18 = vadd.f32 %v2647_v8, %v2559_v21  ;;  %v2473_v0 = vadd.f32 %v2472_v30, %v5537_v32  ;;  %v3762_v21 = vor.u32 %v4877_v40, %v3761_v44 }
 0x18a   : > { %v2739_v56 = vpop.f32.mrf.mxu0 }
 0x18b   : > { %2787 = vmatmul.bf16.gmra.mxu1 %v3706_v25  ;;  %2876 = vmatmul.bf16.gmra.mxu2 %v3710_v26  ;;  %v5801_v42 = vadd.f32 %v2736_v39, %v2648_v18  ;;  %v3766_v25 = vor.u32 %v4871_v11, %v3763_v45 }
 0x18c   : > { %2965 = vmatmul.bf16.gmra.mxu3 %v3714_v33 }
 0x18d   : > { %3054 = vmatmul.bf16.gmra.mxu0 %v3718_v37 }
 0x18e   : > { %v2561_v49 = vpop.f32.mrf.mxu2 }
 0x18f   : > { %v2562_v32 = vadd.f32 %v2561_v49, %v2473_v0  ;;  %v2650_v38 = vpop.f32.mrf.mxu3 }
 0x190   : > { %v2474_v50 = vpop.f32.mrf.mxu1 }
 0x191   : > { %v2651_v1 = vadd.f32 %v2650_v38, %v2562_v32  ;;  %v2475_v14 = vadd.f32 %v2474_v50, %v5562_v55  ;;  %v3769_v55 = vld [vmem:[%s5239_s8 + $0x158] sm:$0xf]  ;;  %v4883_v38 = vld [vmem:[%s5239_s8 + $0x1b4] sm:$0xf]  ;;  %v3807_v50 = vld [vmem:[%s5239_s8 + $0x1e4] sm:$0xf0] }
 0x192   : > { %v2741_v52 = vpop.f32.mrf.mxu0  ;;  %v3770_v26 = vor.u32 %v4878_v16, %v3769_v55  ;;  %v3810_v45 = vor.u32 %v4883_v38, %v3807_v50  ;;  %v4903_v38 = vld [vmem:[%s5239_s8 + $0x250] sm:$0xf0]  ;;  %v4897_v50 = vld [vmem:[%s5239_s8 + $0x224] sm:$0xf] }
 0x193   : > { %v5818_v39 = vadd.f32 %v2739_v56, %v2651_v1 }
 0x196   : > { %v2563_v19 = vpop.f32.mrf.mxu2 }
 0x197   : > { %v2564_v20 = vadd.f32 %v2563_v19, %v2475_v14  ;;  %v2652_v15 = vpop.f32.mrf.mxu3  ;;  %v3813_v14 = vld [vmem:[%s5239_s8 + $0x1b8] sm:$0xf]  ;;  %v3818_v19 = vor.u32 %v4884_v54, %v3815_v59  ;;  %v4904_v54 = vld [vmem:[%s5239_s8 + $0x258] sm:$0xf0] }
 0x198   : > { %v2477_v8 = vpop.f32.mrf.mxu1 }
 0x199   : > { %v2653_v30 = vadd.f32 %v2652_v15, %v2564_v20  ;;  %v2478_v33 = vadd.f32 %v2477_v8, %v5573_v10  ;;  %v3822_v20 = vor.u32 %v4891_v3, %v3821_v62  ;;  %v5121_v8 = vld [vmem:[%s6351_s1 + $0x2a0] sm:$0xff] }
 0x19a   : > { %v2744_v37 = vpop.f32.mrf.mxu0  ;;  %3217 = vmatpush.bf16.msrb.mxu2 %v5121_v8 }
 0x19b   : > { %2792 = vmatmul.bf16.gmra.mxu1 %v3758_v27  ;;  %2881 = vmatmul.bf16.gmra.mxu2 %v3762_v21  ;;  %v5827_v18 = vadd.f32 %v2741_v52, %v2653_v30  ;;  %v4890_v52 = vld [vmem:[%s5239_s8 + $0x1e8] sm:$0xf0] }
 0x19c   : > { %2970 = vmatmul.bf16.gmra.mxu3 %v3766_v25  ;;  %v3814_v55 = vor.u32 %v4890_v52, %v3813_v14  ;;  %v5129_v25 = vld [vmem:[%s6351_s1 + $0x2e0] sm:$0xff]  ;;  %v3867_v14 = vld [vmem:[%s5239_s8 + $0x254] sm:$0xf0]  ;;  %v3873_v52 = vld [vmem:[%s5239_s8 + $0x228] sm:$0xf] }
 0x19d   : > { %3059 = vmatmul.bf16.gmra.mxu0 %v3770_v26  ;;  %3306 = vmatpush.bf16.msrb.mxu3 %v5129_v25 }
 0x19e   : > { %v2566_v0 = vpop.f32.mrf.mxu2 }
 0x19f   : > { %v2567_v56 = vadd.f32 %v2566_v0, %v2478_v33  ;;  %v2655_v46 = vpop.f32.mrf.mxu3 }
 0x1a0   : > { %v2479_v48 = vpop.f32.mrf.mxu1 }
 0x1a1   : > { %v2656_v49 = vadd.f32 %v2655_v46, %v2567_v56  ;;  %v2480_v10 = vadd.f32 %v2479_v48, %v5594_v31  ;;  %v5113_v46 = vld [vmem:[%s6351_s1 + $0x260] sm:$0xff]  ;;  %v4896_v48 = vld [vmem:[%s5239_s8 + $0x21c] sm:$0xf] }
 0x1a2   : > { %v2746_v32 = vpop.f32.mrf.mxu0  ;;  %3128 = vmatpush.bf16.msrb.mxu1 %v5113_v46  ;;  %v3919_v46 = vld [vmem:[%s5239_s8 + $0x2bc] sm:$0xf0] }
 0x1a3   : > { %v5832_v1 = vadd.f32 %v2744_v37, %v2656_v49  ;;  %v3859_v49 = vld [vmem:[%s5239_s8 + $0x24c] sm:$0xf0] }
 0x1a6   : > { %v2568_v44 = vpop.f32.mrf.mxu2 }
 0x1a7   : > { %v2569_v40 = vadd.f32 %v2568_v44, %v2480_v10  ;;  %v2657_v11 = vpop.f32.mrf.mxu3 }
 0x1a8   : > { %v2482_v16 = vpop.f32.mrf.mxu1 }
 0x1a9   : > { %v2658_v31 = vadd.f32 %v2657_v11, %v2569_v40  ;;  %v2483_v15 = vadd.f32 %v2482_v16, %v5468_v41  ;;  %v3870_v11 = vor.u32 %v4897_v50, %v3867_v14 }
 0x1aa   : > { %v2749_v27 = vpop.f32.mrf.mxu0 }
 0x1ab   : > { %2797 = vmatmul.bf16.gmra.mxu1 %v3810_v45  ;;  %2886 = vmatmul.bf16.gmra.mxu2 %v3814_v55  ;;  %v5841_v21 = vadd.f32 %v2746_v32, %v2658_v31  ;;  %v3865_v32 = vld [vmem:[%s5239_s8 + $0x220] sm:$0xf]  ;;  %v3874_v45 = vor.u32 %v4904_v54, %v3873_v52 }
 0x1ac   : > { %2975 = vmatmul.bf16.gmra.mxu3 %v3818_v19  ;;  %v3866_v44 = vor.u32 %v4903_v38, %v3865_v32 }
 0x1ad   : > { %3064 = vmatmul.bf16.gmra.mxu0 %v3822_v20 }
 0x1ae   : > { %v2571_v41 = vpop.f32.mrf.mxu2 }
 0x1af   : > { %v2572_v26 = vadd.f32 %v2571_v41, %v2483_v15  ;;  %v2660_v30 = vpop.f32.mrf.mxu3 }
 0x1b0   : > { %v2484_v33 = vpop.f32.mrf.mxu1 }
 0x1b1   : > { %v2661_v37 = vadd.f32 %v2660_v30, %v2572_v26  ;;  %v2485_v0 = vadd.f32 %v2484_v33, %v5493_v60  ;;  %v3862_v60 = vor.u32 %v4896_v48, %v3859_v49  ;;  %v4909_v26 = vld [vmem:[%s5239_s8 + $0x284] sm:$0xf]  ;;  %v3911_v30 = vld [vmem:[%s5239_s8 + $0x2b4] sm:$0xf0]  ;;  %v3925_v48 = vld [vmem:[%s5239_s8 + $0x290] sm:$0xf] }
 0x1b2   : > { %v2751_v56 = vpop.f32.mrf.mxu0  ;;  %v4917_v49 = vld [vmem:[%s5239_s8 + $0x2c0] sm:$0xf0]  ;;  %v3914_v14 = vor.u32 %v4909_v26, %v3911_v30  ;;  %v3969_v26 = vld [vmem:[%s5239_s8 + $0x2f0] sm:$0xf] }
 0x1b3   : > { %v5855_v10 = vadd.f32 %v2749_v27, %v2661_v37  ;;  %v3917_v37 = vld [vmem:[%s5239_s8 + $0x288] sm:$0xf]  ;;  %v4929_v30 = vld [vmem:[%s5239_s8 + $0x320] sm:$0xf0] }
 0x1b6   : > { %v2573_v59 = vpop.f32.mrf.mxu2 }
 0x1b7   : > { %v2574_v62 = vadd.f32 %v2573_v59, %v2485_v0  ;;  %v2662_v3 = vpop.f32.mrf.mxu3  ;;  %v4916_v0 = vld [vmem:[%s5239_s8 + $0x2b8] sm:$0xf0] }
 0x1b8   : > { %v2487_v40 = vpop.f32.mrf.mxu1  ;;  %v3918_v52 = vor.u32 %v4916_v0, %v3917_v37  ;;  %v4923_v37 = vld [vmem:[%s5239_s8 + $0x2f4] sm:$0xf]  ;;  %v3971_v0 = vld [vmem:[%s5239_s8 + $0x324] sm:$0xf0] }
 0x1b9   : > { %v2663_v55 = vadd.f32 %v2662_v3, %v2574_v62  ;;  %v2488_v16 = vadd.f32 %v2487_v40, %v5504_v5  ;;  %v3926_v62 = vor.u32 %v4917_v49, %v3925_v48  ;;  %v5120_v40 = vld [vmem:[%s6351_s1 + $0x298] sm:$0xff] }
 0x1ba   : > { %v2754_v19 = vpop.f32.mrf.mxu0  ;;  %3218 = vmatpush.bf16.msrb.mxu2 %v5120_v40 }
 0x1bb   : > { %2802 = vmatmul.bf16.gmra.mxu1 %v3862_v60  ;;  %2891 = vmatmul.bf16.gmra.mxu2 %v3866_v44  ;;  %v5864_v20 = vadd.f32 %v2751_v56, %v2663_v55  ;;  %v4910_v56 = vld [vmem:[%s5239_s8 + $0x28c] sm:$0xf] }
 0x1bc   : > { %2980 = vmatmul.bf16.gmra.mxu3 %v3870_v11  ;;  %v3922_v59 = vor.u32 %v4910_v56, %v3919_v46  ;;  %v5128_v11 = vld [vmem:[%s6351_s1 + $0x2d8] sm:$0xff]  ;;  %v4930_v56 = vld [vmem:[%s5239_s8 + $0x328] sm:$0xf0] }
 0x1bd   : > { %3069 = vmatmul.bf16.gmra.mxu0 %v3874_v45  ;;  %3307 = vmatpush.bf16.msrb.mxu3 %v5128_v11 }
 0x1be   : > { %v2576_v31 = vpop.f32.mrf.mxu2 }
 0x1bf   : > { %v2577_v15 = vadd.f32 %v2576_v31, %v2488_v16  ;;  %v2665_v27 = vpop.f32.mrf.mxu3 }
 0x1c0   : > { %v2489_v8 = vpop.f32.mrf.mxu1 }
 0x1c1   : > { %v2666_v25 = vadd.f32 %v2665_v27, %v2577_v15  ;;  %v2490_v5 = vadd.f32 %v2489_v8, %v5523_v23  ;;  %v5112_v27 = vld [vmem:[%s6351_s1 + $0x258] sm:$0xff]  ;;  %v5134_v8 = vld [vmem:[%s6351_s1 + $0x308] sm:$0xff] }
 0x1c2   : > { %v2756_v41 = vpop.f32.mrf.mxu0  ;;  %3129 = vmatpush.bf16.msrb.mxu1 %v5112_v27  ;;  %3398 = vmatpush.bf16.msrb.mxu0 %v5134_v8  ;;  %v4936_v27 = vld [vmem:[%s5239_s8 + $0x35c] sm:$0xf]  ;;  %v4023_v8 = vld [vmem:[%s5239_s8 + $0x38c] sm:$0xf0] }
 0x1c3   : > { %v5869_v33 = vadd.f32 %v2754_v19, %v2666_v25  ;;  %v4922_v25 = vld [vmem:[%s5239_s8 + $0x2ec] sm:$0xf] }
 0x1c6   : > { %v2578_v32 = vpop.f32.mrf.mxu2 }
 0x1c7   : > { %v2579_v38 = vadd.f32 %v2578_v32, %v2490_v5  ;;  %v2667_v50 = vpop.f32.mrf.mxu3  ;;  %v3963_v5 = vld [vmem:[%s5239_s8 + $0x31c] sm:$0xf0] }
 0x1c8   : > { %v2492_v54 = vpop.f32.mrf.mxu1  ;;  %v3966_v32 = vor.u32 %v4922_v25, %v3963_v5  ;;  %v4029_v25 = vld [vmem:[%s5239_s8 + $0x360] sm:$0xf]  ;;  %v4943_v5 = vld [vmem:[%s5239_s8 + $0x390] sm:$0xf0] }
 0x1c9   : > { %v2668_v23 = vadd.f32 %v2667_v50, %v2579_v38  ;;  %v2493_v3 = vadd.f32 %v2492_v54, %v5540_v36  ;;  %v3970_v38 = vor.u32 %v4929_v30, %v3969_v26 }
 0x1ca   : > { %v2759_v60 = vpop.f32.mrf.mxu0 }
 0x1cb   : > { %2807 = vmatmul.bf16.gmra.mxu1 %v3914_v14  ;;  %2896 = vmatmul.bf16.gmra.mxu2 %v3918_v52  ;;  %v5878_v44 = vadd.f32 %v2756_v41, %v2668_v23  ;;  %v3974_v14 = vor.u32 %v4923_v37, %v3971_v0 }
 0x1cc   : > { %2985 = vmatmul.bf16.gmra.mxu3 %v3922_v59 }
 0x1cd   : > { %3074 = vmatmul.bf16.gmra.mxu0 %v3926_v62 }
 0x1ce   : > { %v2581_v45 = vpop.f32.mrf.mxu2 }
 0x1cf   : > { %v2582_v36 = vadd.f32 %v2581_v45, %v2493_v3  ;;  %v2670_v55 = vpop.f32.mrf.mxu3 }
 0x1d0   : > { %v2494_v16 = vpop.f32.mrf.mxu1 }
 0x1d1   : > { %v2671_v19 = vadd.f32 %v2670_v55, %v2582_v36  ;;  %v2495_v31 = vadd.f32 %v2494_v16, %v5565_v61  ;;  %v3977_v61 = vld [vmem:[%s5239_s8 + $0x2f8] sm:$0xf]  ;;  %v4935_v55 = vld [vmem:[%s5239_s8 + $0x354] sm:$0xf]  ;;  %v4015_v16 = vld [vmem:[%s5239_s8 + $0x384] sm:$0xf0] }
 0x1d2   : > { %v2761_v15 = vpop.f32.mrf.mxu0  ;;  %v3978_v52 = vor.u32 %v4930_v56, %v3977_v61  ;;  %v4018_v0 = vor.u32 %v4935_v55, %v4015_v16  ;;  %v4955_v55 = vld [vmem:[%s5239_s8 + $0x3f0] sm:$0xf0]  ;;  %v4949_v16 = vld [vmem:[%s5239_s8 + $0x3c4] sm:$0xf] }
 0x1d3   : > { %v5895_v41 = vadd.f32 %v2759_v60, %v2671_v19 }
 0x1d6   : > { %v2583_v46 = vpop.f32.mrf.mxu2 }
 0x1d7   : > { %v2584_v48 = vadd.f32 %v2583_v46, %v2495_v31  ;;  %v2672_v49 = vpop.f32.mrf.mxu3  ;;  %v4021_v31 = vld [vmem:[%s5239_s8 + $0x358] sm:$0xf]  ;;  %v4026_v46 = vor.u32 %v4936_v27, %v4023_v8  ;;  %v4956_v27 = vld [vmem:[%s5239_s8 + $0x3f8] sm:$0xf0] }
 0x1d8   : > { %v2497_v50 = vpop.f32.mrf.mxu1 }
 0x1d9   : > { %v2673_v54 = vadd.f32 %v2672_v49, %v2584_v48  ;;  %v2498_v59 = vadd.f32 %v2497_v50, %v5576_v12  ;;  %v4030_v48 = vor.u32 %v4943_v5, %v4029_v25  ;;  %v5119_v50 = vld [vmem:[%s6351_s1 + $0x290] sm:$0xff] }
 0x1da   : > { %v2764_v62 = vpop.f32.mrf.mxu0  ;;  %3219 = vmatpush.bf16.msrb.mxu2 %v5119_v50 }
 0x1db   : > { %2812 = vmatmul.bf16.gmra.mxu1 %v3966_v32  ;;  %2901 = vmatmul.bf16.gmra.mxu2 %v3970_v38  ;;  %v5904_v23 = vadd.f32 %v2761_v15, %v2673_v54  ;;  %v4942_v15 = vld [vmem:[%s5239_s8 + $0x388] sm:$0xf0] }
 0x1dc   : > { %2990 = vmatmul.bf16.gmra.mxu3 %v3974_v14  ;;  %v4022_v61 = vor.u32 %v4942_v15, %v4021_v31  ;;  %v5127_v14 = vld [vmem:[%s6351_s1 + $0x2d0] sm:$0xff]  ;;  %v4075_v31 = vld [vmem:[%s5239_s8 + $0x3f4] sm:$0xf0]  ;;  %v4081_v15 = vld [vmem:[%s5239_s8 + $0x3c8] sm:$0xf] }
 0x1dd   : > { %3079 = vmatmul.bf16.gmra.mxu0 %v3978_v52  ;;  %3308 = vmatpush.bf16.msrb.mxu3 %v5127_v14 }
 0x1de   : > { %v2586_v3 = vpop.f32.mrf.mxu2 }
 0x1df   : > { %v2587_v60 = vadd.f32 %v2586_v3, %v2498_v59  ;;  %v2675_v40 = vpop.f32.mrf.mxu3 }
 0x1e0   : > { %v2499_v11 = vpop.f32.mrf.mxu1 }
 0x1e1   : > { %v2676_v45 = vadd.f32 %v2675_v40, %v2587_v60  ;;  %v2500_v12 = vadd.f32 %v2499_v11, %v5597_v43  ;;  %v5111_v40 = vld [vmem:[%s6351_s1 + $0x250] sm:$0xff]  ;;  %v4948_v11 = vld [vmem:[%s5239_s8 + $0x3bc] sm:$0xf] }
 0x1e2   : > { %v2766_v36 = vpop.f32.mrf.mxu0  ;;  %3130 = vmatpush.bf16.msrb.mxu1 %v5111_v40  ;;  %v4127_v40 = vld [vmem:[%s5239_s8 + $0x45c] sm:$0xf0] }
 0x1e3   : > { %v5909_v19 = vadd.f32 %v2764_v62, %v2676_v45  ;;  %v4067_v45 = vld [vmem:[%s5239_s8 + $0x3ec] sm:$0xf0] }
 0x1e6   : > { %v2588_v26 = vpop.f32.mrf.mxu2 }
 0x1e7   : > { %v2589_v30 = vadd.f32 %v2588_v26, %v2500_v12  ;;  %v2677_v37 = vpop.f32.mrf.mxu3 }
 0x1e8   : > { %v2778_v56 = vpop.f32.mrf.mxu1 }
 0x1e9   : > { %v2678_v43 = vadd.f32 %v2677_v37, %v2589_v30  ;;  %v2779_v49 = vadd.f32 %v2778_v56, %v5615_v13  ;;  %v4078_v37 = vor.u32 %v4949_v16, %v4075_v31 }
 0x1ea   : > { %v3045_v32 = vpop.f32.mrf.mxu0 }
 0x1eb   : > { %2817 = vmatmul.bf16.gmra.mxu1 %v4018_v0  ;;  %2906 = vmatmul.bf16.gmra.mxu2 %v4022_v61  ;;  %v5918_v38 = vadd.f32 %v2766_v36, %v2678_v43  ;;  %v4073_v36 = vld [vmem:[%s5239_s8 + $0x3c0] sm:$0xf]  ;;  %v4082_v0 = vor.u32 %v4956_v27, %v4081_v15 }
 0x1ec   : > { %2995 = vmatmul.bf16.gmra.mxu3 %v4026_v46  ;;  %v4074_v26 = vor.u32 %v4955_v55, %v4073_v36 }
 0x1ed   : > { %3084 = vmatmul.bf16.gmra.mxu0 %v4030_v48 }
 0x1ee   : > { %v2867_v13 = vpop.f32.mrf.mxu2 }
 0x1ef   : > { %v2868_v52 = vadd.f32 %v2867_v13, %v2779_v49  ;;  %v2956_v54 = vpop.f32.mrf.mxu3 }
 0x1f0   : > { %v2780_v59 = vpop.f32.mrf.mxu1 }
 0x1f1   : > { %v2957_v62 = vadd.f32 %v2956_v54, %v2868_v52  ;;  %v2781_v3 = vadd.f32 %v2780_v59, %v5625_v35  ;;  %v4070_v35 = vor.u32 %v4948_v11, %v4067_v45  ;;  %v4961_v52 = vld [vmem:[%s5239_s8 + $0x424] sm:$0xf]  ;;  %v4119_v54 = vld [vmem:[%s5239_s8 + $0x454] sm:$0xf0]  ;;  %v4133_v11 = vld [vmem:[%s5239_s8 + $0x430] sm:$0xf] }
 0x1f2   : > { %v3047_v60 = vpop.f32.mrf.mxu0  ;;  %v4969_v45 = vld [vmem:[%s5239_s8 + $0x460] sm:$0xf0]  ;;  %v4122_v31 = vor.u32 %v4961_v52, %v4119_v54  ;;  %v4177_v52 = vld [vmem:[%s5239_s8 + $0x490] sm:$0xf] }
 0x1f3   : > { %v5932_v12 = vadd.f32 %v3045_v32, %v2957_v62  ;;  %v4125_v62 = vld [vmem:[%s5239_s8 + $0x428] sm:$0xf]  ;;  %v4981_v54 = vld [vmem:[%s5239_s8 + $0x4c0] sm:$0xf0] }
 0x1f6   : > { %v2869_v8 = vpop.f32.mrf.mxu2 }
 0x1f7   : > { %v2870_v25 = vadd.f32 %v2869_v8, %v2781_v3  ;;  %v2958_v5 = vpop.f32.mrf.mxu3  ;;  %v4968_v3 = vld [vmem:[%s5239_s8 + $0x458] sm:$0xf0] }
 0x1f8   : > { %v2783_v30 = vpop.f32.mrf.mxu1  ;;  %v4126_v15 = vor.u32 %v4968_v3, %v4125_v62  ;;  %v4975_v62 = vld [vmem:[%s5239_s8 + $0x494] sm:$0xf]  ;;  %v4179_v3 = vld [vmem:[%s5239_s8 + $0x4c4] sm:$0xf0] }
 0x1f9   : > { %v2959_v61 = vadd.f32 %v2958_v5, %v2870_v25  ;;  %v2784_v56 = vadd.f32 %v2783_v30, %v5631_v63  ;;  %v4134_v25 = vor.u32 %v4969_v45, %v4133_v11  ;;  %v5118_v30 = vld [vmem:[%s6351_s1 + $0x288] sm:$0xff] }
 0x1fa   : > { %v3050_v46 = vpop.f32.mrf.mxu0  ;;  %3220 = vmatpush.bf16.msrb.mxu2 %v5118_v30 }
 0x1fb   : > { %2822 = vmatmul.bf16.gmra.mxu1 %v4070_v35  ;;  %2911 = vmatmul.bf16.gmra.mxu2 %v4074_v26  ;;  %v5941_v48 = vadd.f32 %v3047_v60, %v2959_v61  ;;  %v4962_v60 = vld [vmem:[%s5239_s8 + $0x42c] sm:$0xf] }
 0x1fc   : > { %3000 = vmatmul.bf16.gmra.mxu3 %v4078_v37  ;;  %v4130_v8 = vor.u32 %v4962_v60, %v4127_v40  ;;  %v5126_v37 = vld [vmem:[%s6351_s1 + $0x2c8] sm:$0xff] }
 0x1fd   : > { %3089 = vmatmul.bf16.gmra.mxu0 %v4082_v0  ;;  %3309 = vmatpush.bf16.msrb.mxu3 %v5126_v37  ;;  %v4982_v60 = vld [vmem:[%s5239_s8 + $0x4c8] sm:$0xf0] }
 0x1fe   : > { %v2872_v43 = vpop.f32.mrf.mxu2 }
 0x1ff   : > { %v2873_v49 = vadd.f32 %v2872_v43, %v2784_v56  ;;  %v2961_v32 = vpop.f32.mrf.mxu3 }
 0x200   : > { %v2785_v50 = vpop.f32.mrf.mxu1 }
 0x201   : > { %v2962_v14 = vadd.f32 %v2961_v32, %v2873_v49  ;;  %v2786_v63 = vadd.f32 %v2785_v50, %v5641_v47  ;;  %v5110_v32 = vld [vmem:[%s6351_s1 + $0x248] sm:$0xff]  ;;  %v5133_v50 = vld [vmem:[%s6351_s1 + $0x300] sm:$0xff] }
 0x202   : > { %v3052_v13 = vpop.f32.mrf.mxu0  ;;  %3131 = vmatpush.bf16.msrb.mxu1 %v5110_v32  ;;  %3399 = vmatpush.bf16.msrb.mxu0 %v5133_v50  ;;  %v4988_v32 = vld [vmem:[%s5239_s8 + $0x4fc] sm:$0xf]  ;;  %v4231_v50 = vld [vmem:[%s5239_s8 + $0x52c] sm:$0xf0] }
 0x203   : > { %v5946_v59 = vadd.f32 %v3050_v46, %v2962_v14  ;;  %v4974_v14 = vld [vmem:[%s5239_s8 + $0x48c] sm:$0xf] }
 0x206   : > { %v2874_v36 = vpop.f32.mrf.mxu2 }
 0x207   : > { %v2875_v55 = vadd.f32 %v2874_v36, %v2786_v63  ;;  %v2963_v16 = vpop.f32.mrf.mxu3  ;;  %v4171_v63 = vld [vmem:[%s5239_s8 + $0x4bc] sm:$0xf0] }
 0x208   : > { %v2788_v27 = vpop.f32.mrf.mxu1  ;;  %v4174_v36 = vor.u32 %v4974_v14, %v4171_v63  ;;  %v4237_v14 = vld [vmem:[%s5239_s8 + $0x500] sm:$0xf]  ;;  %v4995_v63 = vld [vmem:[%s5239_s8 + $0x530] sm:$0xf0] }
 0x209   : > { %v2964_v47 = vadd.f32 %v2963_v16, %v2875_v55  ;;  %v2789_v5 = vadd.f32 %v2788_v27, %v5659_v2  ;;  %v4178_v55 = vor.u32 %v4981_v54, %v4177_v52 }
 0x20a   : > { %v3055_v35 = vpop.f32.mrf.mxu0 }
 0x20b   : > { %2827 = vmatmul.bf16.gmra.mxu1 %v4122_v31  ;;  %2916 = vmatmul.bf16.gmra.mxu2 %v4126_v15  ;;  %v5955_v26 = vadd.f32 %v3052_v13, %v2964_v47  ;;  %v4182_v31 = vor.u32 %v4975_v62, %v4179_v3 }
 0x20c   : > { %3005 = vmatmul.bf16.gmra.mxu3 %v4130_v8 }
 0x20d   : > { %3094 = vmatmul.bf16.gmra.mxu0 %v4134_v25 }
 0x20e   : > { %v2877_v0 = vpop.f32.mrf.mxu2 }
 0x20f   : > { %v2878_v2 = vadd.f32 %v2877_v0, %v2789_v5  ;;  %v2966_v61 = vpop.f32.mrf.mxu3 }
 0x210   : > { %v2790_v56 = vpop.f32.mrf.mxu1 }
 0x211   : > { %v2967_v46 = vadd.f32 %v2966_v61, %v2878_v2  ;;  %v2791_v43 = vadd.f32 %v2790_v56, %v5669_v28  ;;  %v4185_v28 = vld [vmem:[%s5239_s8 + $0x498] sm:$0xf]  ;;  %v4987_v61 = vld [vmem:[%s5239_s8 + $0x4f4] sm:$0xf]  ;;  %v4223_v56 = vld [vmem:[%s5239_s8 + $0x524] sm:$0xf0] }
 0x212   : > { %v3057_v49 = vpop.f32.mrf.mxu0  ;;  %v4186_v15 = vor.u32 %v4982_v60, %v4185_v28  ;;  %v4226_v3 = vor.u32 %v4987_v61, %v4223_v56  ;;  %v5007_v61 = vld [vmem:[%s5239_s8 + $0x590] sm:$0xf0]  ;;  %v5001_v56 = vld [vmem:[%s5239_s8 + $0x564] sm:$0xf] }
 0x213   : > { %v5972_v13 = vadd.f32 %v3055_v35, %v2967_v46 }
 0x216   : > { %v2879_v40 = vpop.f32.mrf.mxu2 }
 0x217   : > { %v2880_v11 = vadd.f32 %v2879_v40, %v2791_v43  ;;  %v2968_v45 = vpop.f32.mrf.mxu3  ;;  %v4229_v43 = vld [vmem:[%s5239_s8 + $0x4f8] sm:$0xf]  ;;  %v4234_v40 = vor.u32 %v4988_v32, %v4231_v50  ;;  %v5008_v32 = vld [vmem:[%s5239_s8 + $0x598] sm:$0xf0] }
 0x218   : > { %v2793_v16 = vpop.f32.mrf.mxu1 }
 0x219   : > { %v2969_v27 = vadd.f32 %v2968_v45, %v2880_v11  ;;  %v2794_v8 = vadd.f32 %v2793_v16, %v5675_v57  ;;  %v4238_v11 = vor.u32 %v4995_v63, %v4237_v14  ;;  %v5117_v16 = vld [vmem:[%s6351_s1 + $0x280] sm:$0xff] }
 0x21a   : > { %v3060_v25 = vpop.f32.mrf.mxu0  ;;  %3221 = vmatpush.bf16.msrb.mxu2 %v5117_v16 }
 0x21b   : > { %2832 = vmatmul.bf16.gmra.mxu1 %v4174_v36  ;;  %2921 = vmatmul.bf16.gmra.mxu2 %v4178_v55  ;;  %v5981_v47 = vadd.f32 %v3057_v49, %v2969_v27  ;;  %v4994_v49 = vld [vmem:[%s5239_s8 + $0x528] sm:$0xf0] }
 0x21c   : > { %3010 = vmatmul.bf16.gmra.mxu3 %v4182_v31  ;;  %v4230_v28 = vor.u32 %v4994_v49, %v4229_v43  ;;  %v5125_v31 = vld [vmem:[%s6351_s1 + $0x2c0] sm:$0xff]  ;;  %v4283_v43 = vld [vmem:[%s5239_s8 + $0x594] sm:$0xf0]  ;;  %v4289_v49 = vld [vmem:[%s5239_s8 + $0x568] sm:$0xf] }
 0x21d   : > { %3099 = vmatmul.bf16.gmra.mxu0 %v4186_v15  ;;  %3310 = vmatpush.bf16.msrb.mxu3 %v5125_v31 }
 0x21e   : > { %v2882_v5 = vpop.f32.mrf.mxu2 }
 0x21f   : > { %v2883_v35 = vadd.f32 %v2882_v5, %v2794_v8  ;;  %v2971_v30 = vpop.f32.mrf.mxu3 }
 0x220   : > { %v2795_v37 = vpop.f32.mrf.mxu1 }
 0x221   : > { %v2972_v0 = vadd.f32 %v2971_v30, %v2883_v35  ;;  %v2796_v57 = vadd.f32 %v2795_v37, %v5684_v29  ;;  %v5109_v30 = vld [vmem:[%s6351_s1 + $0x240] sm:$0xff]  ;;  %v5000_v37 = vld [vmem:[%s5239_s8 + $0x55c] sm:$0xf] }
 0x222   : > { %v3062_v2 = vpop.f32.mrf.mxu0  ;;  %3132 = vmatpush.bf16.msrb.mxu1 %v5109_v30  ;;  %v4335_v30 = vld [vmem:[%s5239_s8 + $0x5fc] sm:$0xf0] }
 0x223   : > { %v5986_v46 = vadd.f32 %v3060_v25, %v2972_v0  ;;  %v4275_v0 = vld [vmem:[%s5239_s8 + $0x58c] sm:$0xf0] }
 0x226   : > { %v2884_v52 = vpop.f32.mrf.mxu2 }
 0x227   : > { %v2885_v54 = vadd.f32 %v2884_v52, %v2796_v57  ;;  %v2973_v62 = vpop.f32.mrf.mxu3 }
 0x228   : > { %v2798_v60 = vpop.f32.mrf.mxu1 }
 0x229   : > { %v2974_v29 = vadd.f32 %v2973_v62, %v2885_v54  ;;  %v2799_v45 = vadd.f32 %v2798_v60, %v5701_v53  ;;  %v4286_v62 = vor.u32 %v5001_v56, %v4283_v43 }
 0x22a   : > { %v3065_v36 = vpop.f32.mrf.mxu0 }
 0x22b   : > { %2837 = vmatmul.bf16.gmra.mxu1 %v4226_v3  ;;  %2926 = vmatmul.bf16.gmra.mxu2 %v4230_v28  ;;  %v5995_v55 = vadd.f32 %v3062_v2, %v2974_v29  ;;  %v4281_v2 = vld [vmem:[%s5239_s8 + $0x560] sm:$0xf]  ;;  %v4290_v3 = vor.u32 %v5008_v32, %v4289_v49 }
 0x22c   : > { %3015 = vmatmul.bf16.gmra.mxu3 %v4234_v40  ;;  %v4282_v52 = vor.u32 %v5007_v61, %v4281_v2 }
 0x22d   : > { %3104 = vmatmul.bf16.gmra.mxu0 %v4238_v11 }
 0x22e   : > { %v2887_v53 = vpop.f32.mrf.mxu2 }
 0x22f   : > { %v2888_v15 = vadd.f32 %v2887_v53, %v2799_v45  ;;  %v2976_v27 = vpop.f32.mrf.mxu3 }
 0x230   : > { %v2800_v8 = vpop.f32.mrf.mxu1 }
 0x231   : > { %v2977_v25 = vadd.f32 %v2976_v27, %v2888_v15  ;;  %v2801_v5 = vadd.f32 %v2800_v8, %v5710_v24  ;;  %v4278_v24 = vor.u32 %v5000_v37, %v4275_v0  ;;  %v5013_v15 = vld [vmem:[%s5239_s8 + $0x5c4] sm:$0xf]  ;;  %v4327_v27 = vld [vmem:[%s5239_s8 + $0x5f4] sm:$0xf0]  ;;  %v4341_v37 = vld [vmem:[%s5239_s8 + $0x5d0] sm:$0xf] }
 0x232   : > { %v3067_v35 = vpop.f32.mrf.mxu0  ;;  %v5021_v0 = vld [vmem:[%s5239_s8 + $0x600] sm:$0xf0]  ;;  %v4330_v43 = vor.u32 %v5013_v15, %v4327_v27  ;;  %v4393_v15 = vld [vmem:[%s5239_s8 + $0x638] sm:$0xf]  ;;  %v5034_v27 = vld [vmem:[%s5239_s8 + $0x668] sm:$0xf0] }
 0x233   : > { %v6009_v57 = vadd.f32 %v3065_v36, %v2977_v25  ;;  %v4333_v25 = vld [vmem:[%s5239_s8 + $0x5c8] sm:$0xf] }
 0x236   : > { %v2889_v50 = vpop.f32.mrf.mxu2 }
 0x237   : > { %v2890_v14 = vadd.f32 %v2889_v50, %v2801_v5  ;;  %v2978_v63 = vpop.f32.mrf.mxu3  ;;  %v5020_v5 = vld [vmem:[%s5239_s8 + $0x5f8] sm:$0xf0] }
 0x238   : > { %v2803_v54 = vpop.f32.mrf.mxu1  ;;  %v4334_v49 = vor.u32 %v5020_v5, %v4333_v25 }
 0x239   : > { %v2979_v28 = vadd.f32 %v2978_v63, %v2890_v14  ;;  %v2804_v60 = vadd.f32 %v2803_v54, %v5715_v6  ;;  %v4342_v14 = vor.u32 %v5021_v0, %v4341_v37 }
 0x23a   : > { %v3070_v40 = vpop.f32.mrf.mxu0 }
 0x23b   : > { %2842 = vmatmul.bf16.gmra.mxu1 %v4278_v24  ;;  %2931 = vmatmul.bf16.gmra.mxu2 %v4282_v52  ;;  %v6018_v11 = vadd.f32 %v3067_v35, %v2979_v28  ;;  %v5014_v35 = vld [vmem:[%s5239_s8 + $0x5cc] sm:$0xf] }
 0x23c   : > { %3020 = vmatmul.bf16.gmra.mxu3 %v4286_v62  ;;  %v4338_v50 = vor.u32 %v5014_v35, %v4335_v30 }
 0x23d   : > { %3109 = vmatmul.bf16.gmra.mxu0 %v4290_v3 }
 0x23e   : > { %v2892_v29 = vpop.f32.mrf.mxu2 }
 0x23f   : > { %v2893_v45 = vadd.f32 %v2892_v29, %v2804_v60  ;;  %v2981_v36 = vpop.f32.mrf.mxu3  ;;  %v5026_v29 = vld [vmem:[%s5239_s8 + $0x62c] sm:$0xf] }
 0x240   : > { %v2805_v16 = vpop.f32.mrf.mxu1 }
 0x241   : > { %v2982_v31 = vadd.f32 %v2981_v36, %v2893_v45  ;;  %v2806_v6 = vadd.f32 %v2805_v16, %v5724_v17  ;;  %v4379_v45 = vld [vmem:[%s5239_s8 + $0x65c] sm:$0xf0]  ;;  %v4385_v16 = vld [vmem:[%s5239_s8 + $0x630] sm:$0xf] }
 0x242   : > { %v3072_v53 = vpop.f32.mrf.mxu0  ;;  %v4382_v30 = vor.u32 %v5026_v29, %v4379_v45  ;;  %v3629_v29 = vld [vmem:[%s5239_s8 + $0x30] sm:$0xf]  ;;  %v4841_v45 = vld [vmem:[%s5239_s8 + $0x60] sm:$0xf0] }
 0x243   : > { %v6023_v8 = vadd.f32 %v3070_v40, %v2982_v31  ;;  %v5033_v31 = vld [vmem:[%s5239_s8 + $0x660] sm:$0xf0] }
 0x244   : > { %v4386_v37 = vor.u32 %v5033_v31, %v4385_v16 }
 0x246   : > { %v2894_v2 = vpop.f32.mrf.mxu2 }
 0x247   : > { %v2895_v61 = vadd.f32 %v2894_v2, %v2806_v6  ;;  %v2983_v56 = vpop.f32.mrf.mxu3  ;;  %v5027_v6 = vld [vmem:[%s5239_s8 + $0x634] sm:$0xf] }
 0x248   : > { %v2808_v32 = vpop.f32.mrf.mxu1 }
 0x249   : > { %v2984_v17 = vadd.f32 %v2983_v56, %v2895_v61  ;;  %v2809_v63 = vadd.f32 %v2808_v32, %v5741_v34  ;;  %v4394_v61 = vor.u32 %v5034_v27, %v4393_v15 }
 0x24a   : > { %v3075_v24 = vpop.f32.mrf.mxu0 }
 0x24b   : > { %2847 = vmatmul.bf16.gmra.mxu1 %v4330_v43  ;;  %2936 = vmatmul.bf16.gmra.mxu2 %v4334_v49  ;;  %v6032_v52 = vadd.f32 %v3072_v53, %v2984_v17  ;;  %v4387_v53 = vld [vmem:[%s5239_s8 + $0x664] sm:$0xf0] }
 0x24c   : > { %3025 = vmatmul.bf16.gmra.mxu3 %v4338_v50  ;;  %v4390_v2 = vor.u32 %v5027_v6, %v4387_v53 }
 0x24d   : > { %3114 = vmatmul.bf16.gmra.mxu0 %v4342_v14 }
 0x24e   : > { %v2897_v54 = vpop.f32.mrf.mxu2 }
 0x24f   : > { %v2898_v62 = vadd.f32 %v2897_v54, %v2809_v63  ;;  %v2986_v3 = vpop.f32.mrf.mxu3  ;;  %v4833_v54 = vld [vmem:[%s5239_s8 + $0x24] sm:$0xf] }
 0x250   : > { %v2810_v28 = vpop.f32.mrf.mxu1 }
 0x251   : > { %v2987_v60 = vadd.f32 %v2986_v3, %v2898_v62  ;;  %v2811_v34 = vadd.f32 %v2810_v28, %v5750_v7  ;;  %v3615_v62 = vld [vmem:[%s5239_s8 + $0x54] sm:$0xf0]  ;;  %v3621_v28 = vld [vmem:[%s5239_s8 + $0x28] sm:$0xf] }
 0x252   : > { %v3077_v40 = vpop.f32.mrf.mxu0  ;;  %v3618_v53 = vor.u32 %v4833_v54, %v3615_v62  ;;  %v3681_v54 = vld [vmem:[%s5239_s8 + $0x98] sm:$0xf]  ;;  %v4854_v62 = vld [vmem:[%s5239_s8 + $0xc8] sm:$0xf0] }
 0x253   : > { %v6037_v36 = vadd.f32 %v3075_v24, %v2987_v60  ;;  %v4840_v60 = vld [vmem:[%s5239_s8 + $0x58] sm:$0xf0] }
 0x254   : > { %v3622_v15 = vor.u32 %v4840_v60, %v3621_v28 }
 0x256   : > { %v2899_v25 = vpop.f32.mrf.mxu2 }
 0x257   : > { %v2900_v5 = vadd.f32 %v2899_v25, %v2811_v34  ;;  %v2988_v35 = vpop.f32.mrf.mxu3  ;;  %v4834_v34 = vld [vmem:[%s5239_s8 + $0x2c] sm:$0xf] }
 0x258   : > { %v2813_v0 = vpop.f32.mrf.mxu1 }
 0x259   : > { %v2989_v7 = vadd.f32 %v2988_v35, %v2900_v5  ;;  %v2814_v56 = vadd.f32 %v2813_v0, %v5755_v22  ;;  %v3630_v5 = vor.u32 %v4841_v45, %v3629_v29 }
 0x25a   : > { %v3080_v43 = vpop.f32.mrf.mxu0 }
 0x25b   : > { %2852 = vmatmul.bf16.gmra.mxu1 %v4382_v30  ;;  %2941 = vmatmul.bf16.gmra.mxu2 %v4386_v37  ;;  %v6046_v49 = vadd.f32 %v3077_v40, %v2989_v7  ;;  %v3623_v40 = vld [vmem:[%s5239_s8 + $0x5c] sm:$0xf0] }
 0x25c   : > { %3030 = vmatmul.bf16.gmra.mxu3 %v4390_v2  ;;  %v3626_v25 = vor.u32 %v4834_v34, %v3623_v40 }
 0x25d   : > { %3119 = vmatmul.bf16.gmra.mxu0 %v4394_v61 }
 0x25e   : > { %v2902_v32 = vpop.f32.mrf.mxu2 }
 0x25f   : > { %v2903_v50 = vadd.f32 %v2902_v32, %v2814_v56  ;;  %v2991_v14 = vpop.f32.mrf.mxu3  ;;  %v4846_v32 = vld [vmem:[%s5239_s8 + $0x8c] sm:$0xf] }
 0x260   : > { %v2815_v17 = vpop.f32.mrf.mxu1 }
 0x261   : > { %v2992_v63 = vadd.f32 %v2991_v14, %v2903_v50  ;;  %v2816_v22 = vadd.f32 %v2815_v17, %v5764_v58  ;;  %v3667_v50 = vld [vmem:[%s5239_s8 + $0xbc] sm:$0xf0]  ;;  %v3673_v17 = vld [vmem:[%s5239_s8 + $0x90] sm:$0xf] }
 0x262   : > { %v3082_v24 = vpop.f32.mrf.mxu0  ;;  %v3670_v40 = vor.u32 %v4846_v32, %v3667_v50  ;;  %v3733_v32 = vld [vmem:[%s5239_s8 + $0x100] sm:$0xf]  ;;  %v4867_v50 = vld [vmem:[%s5239_s8 + $0x130] sm:$0xf0] }
 0x263   : > { %v6051_v3 = vadd.f32 %v3080_v43, %v2992_v63  ;;  %v4853_v63 = vld [vmem:[%s5239_s8 + $0xc0] sm:$0xf0] }
 0x264   : > { %v3674_v29 = vor.u32 %v4853_v63, %v3673_v17 }
 0x266   : > { %v2904_v16 = vpop.f32.mrf.mxu2 }
 0x267   : > { %v2905_v31 = vadd.f32 %v2904_v16, %v2816_v22  ;;  %v2993_v6 = vpop.f32.mrf.mxu3  ;;  %v4847_v22 = vld [vmem:[%s5239_s8 + $0x94] sm:$0xf] }
 0x268   : > { %v2818_v27 = vpop.f32.mrf.mxu1 }
 0x269   : > { %v2994_v58 = vadd.f32 %v2993_v6, %v2905_v31  ;;  %v2819_v35 = vadd.f32 %v2818_v27, %v5778_v4  ;;  %v3682_v31 = vor.u32 %v4854_v62, %v3681_v54 }
 0x26a   : > { %v3085_v30 = vpop.f32.mrf.mxu0 }
 0x26b   : > { %3133 = vmatmul.bf16.vlgmr.msrb.gmra.mxu1 %v3618_v53  ;;  %3222 = vmatmul.bf16.vlgmr.msrb.gmra.mxu2 %v3622_v15  ;;  %v6060_v37 = vadd.f32 %v3082_v24, %v2994_v58  ;;  %v3675_v24 = vld [vmem:[%s5239_s8 + $0xc4] sm:$0xf0] }
 0x26c   : > { %3311 = vmatmul.bf16.vlgmr.msrb.gmra.mxu3 %v3626_v25  ;;  %v3678_v16 = vor.u32 %v4847_v22, %v3675_v24 }
 0x26d   : > { %4811 = vmatmul.msk.bf16.vlgmr.msrb.gmra.mxu0 %vm2275_vm0, %v3630_v5 }
 0x26e   : > { %v2907_v0 = vpop.f32.mrf.mxu2 }
 0x26f   : > { %v2908_v2 = vadd.f32 %v2907_v0, %v2819_v35  ;;  %v2996_v61 = vpop.f32.mrf.mxu3  ;;  %v4859_v0 = vld [vmem:[%s5239_s8 + $0xf4] sm:$0xf] }
 0x270   : > { %v2820_v4 = vpop.f32.mrf.mxu1 }
 0x271   : > { %v2997_v7 = vadd.f32 %v2996_v61, %v2908_v2  ;;  %v2821_v56 = vadd.f32 %v2820_v4, %v5787_v51  ;;  %v3719_v2 = vld [vmem:[%s5239_s8 + $0x124] sm:$0xf0]  ;;  %v3725_v4 = vld [vmem:[%s5239_s8 + $0xf8] sm:$0xf] }
 0x272   : > { %v3087_v43 = vpop.f32.mrf.mxu0  ;;  %v3722_v24 = vor.u32 %v4859_v0, %v3719_v2  ;;  %v3785_v0 = vld [vmem:[%s5239_s8 + $0x168] sm:$0xf]  ;;  %v4880_v2 = vld [vmem:[%s5239_s8 + $0x198] sm:$0xf0] }
 0x273   : > { %v6066_v14 = vadd.f32 %v3085_v30, %v2997_v7  ;;  %v4866_v7 = vld [vmem:[%s5239_s8 + $0x128] sm:$0xf0] }
 0x274   : > { %v3726_v54 = vor.u32 %v4866_v7, %v3725_v4 }
 0x276   : > { %v2909_v28 = vpop.f32.mrf.mxu2 }
 0x277   : > { %v2910_v60 = vadd.f32 %v2909_v28, %v2821_v56  ;;  %v2998_v34 = vpop.f32.mrf.mxu3  ;;  %v4860_v56 = vld [vmem:[%s5239_s8 + $0xfc] sm:$0xf] }
 0x278   : > { %v2823_v45 = vpop.f32.mrf.mxu1 }
 0x279   : > { %v2999_v51 = vadd.f32 %v2998_v34, %v2910_v60  ;;  %v2824_v6 = vadd.f32 %v2823_v45, %v5792_v9  ;;  %v3734_v60 = vor.u32 %v4867_v50, %v3733_v32 }
 0x27a   : > { %v3090_v53 = vpop.f32.mrf.mxu0 }
 0x27b   : > { %3138 = vmatmul.bf16.gmra.mxu1 %v3670_v40  ;;  %3227 = vmatmul.bf16.gmra.mxu2 %v3674_v29  ;;  %v6075_v15 = vadd.f32 %v3087_v43, %v2999_v51  ;;  %v3727_v43 = vld [vmem:[%s5239_s8 + $0x12c] sm:$0xf0] }
 0x27c   : > { %3316 = vmatmul.bf16.gmra.mxu3 %v3678_v16  ;;  %v3730_v28 = vor.u32 %v4860_v56, %v3727_v43 }
 0x27d   : > { %4812 = vmatmul.msk.bf16.gmra.mxu0 %vm2275_vm0, %v3682_v31 }
 0x27e   : > { %v2912_v27 = vpop.f32.mrf.mxu2 }
 0x27f   : > { %v2913_v25 = vadd.f32 %v2912_v27, %v2824_v6  ;;  %v3001_v5 = vpop.f32.mrf.mxu3  ;;  %v4872_v27 = vld [vmem:[%s5239_s8 + $0x15c] sm:$0xf] }
 0x280   : > { %v2825_v58 = vpop.f32.mrf.mxu1 }
 0x281   : > { %v3002_v35 = vadd.f32 %v3001_v5, %v2913_v25  ;;  %v2826_v9 = vadd.f32 %v2825_v58, %v5801_v42  ;;  %v3771_v25 = vld [vmem:[%s5239_s8 + $0x18c] sm:$0xf0]  ;;  %v3777_v58 = vld [vmem:[%s5239_s8 + $0x160] sm:$0xf] }
 0x282   : > { %v3092_v30 = vpop.f32.mrf.mxu0  ;;  %v3774_v43 = vor.u32 %v4872_v27, %v3771_v25  ;;  %v3837_v27 = vld [vmem:[%s5239_s8 + $0x1d0] sm:$0xf]  ;;  %v4893_v25 = vld [vmem:[%s5239_s8 + $0x200] sm:$0xf0] }
 0x283   : > { %v6081_v61 = vadd.f32 %v3090_v53, %v3002_v35  ;;  %v4879_v35 = vld [vmem:[%s5239_s8 + $0x190] sm:$0xf0] }
 0x284   : > { %v3778_v32 = vor.u32 %v4879_v35, %v3777_v58 }
 0x286   : > { %v2914_v17 = vpop.f32.mrf.mxu2 }
 0x287   : > { %v2915_v63 = vadd.f32 %v2914_v17, %v2826_v9  ;;  %v3003_v22 = vpop.f32.mrf.mxu3  ;;  %v4873_v9 = vld [vmem:[%s5239_s8 + $0x164] sm:$0xf] }
 0x288   : > { %v2828_v62 = vpop.f32.mrf.mxu1 }
 0x289   : > { %v3004_v42 = vadd.f32 %v3003_v22, %v2915_v63  ;;  %v2829_v34 = vadd.f32 %v2828_v62, %v5818_v39  ;;  %v3786_v63 = vor.u32 %v4880_v2, %v3785_v0 }
 0x28a   : > { %v3095_v40 = vpop.f32.mrf.mxu0 }
 0x28b   : > { %3143 = vmatmul.bf16.gmra.mxu1 %v3722_v24  ;;  %3232 = vmatmul.bf16.gmra.mxu2 %v3726_v54  ;;  %v6090_v29 = vadd.f32 %v3092_v30, %v3004_v42  ;;  %v3779_v30 = vld [vmem:[%s5239_s8 + $0x194] sm:$0xf0] }
 0x28c   : > { %3321 = vmatmul.bf16.gmra.mxu3 %v3730_v28  ;;  %v3782_v17 = vor.u32 %v4873_v9, %v3779_v30 }
 0x28d   : > { %4813 = vmatmul.msk.bf16.gmra.mxu0 %vm2275_vm0, %v3734_v60 }
 0x28e   : > { %v2917_v45 = vpop.f32.mrf.mxu2 }
 0x28f   : > { %v2918_v16 = vadd.f32 %v2917_v45, %v2829_v34  ;;  %v3006_v31 = vpop.f32.mrf.mxu3  ;;  %v4885_v45 = vld [vmem:[%s5239_s8 + $0x1c4] sm:$0xf] }
 0x290   : > { %v2830_v51 = vpop.f32.mrf.mxu1 }
 0x291   : > { %v3007_v6 = vadd.f32 %v3006_v31, %v2918_v16  ;;  %v2831_v39 = vadd.f32 %v2830_v51, %v5827_v18  ;;  %v3823_v16 = vld [vmem:[%s5239_s8 + $0x1f4] sm:$0xf0]  ;;  %v3829_v51 = vld [vmem:[%s5239_s8 + $0x1c8] sm:$0xf] }
 0x292   : > { %v3097_v53 = vpop.f32.mrf.mxu0  ;;  %v3826_v30 = vor.u32 %v4885_v45, %v3823_v16  ;;  %v3889_v45 = vld [vmem:[%s5239_s8 + $0x238] sm:$0xf]  ;;  %v4906_v16 = vld [vmem:[%s5239_s8 + $0x268] sm:$0xf0] }
 0x293   : > { %v6096_v5 = vadd.f32 %v3095_v40, %v3007_v6  ;;  %v4892_v6 = vld [vmem:[%s5239_s8 + $0x1f8] sm:$0xf0] }
 0x294   : > { %v3830_v0 = vor.u32 %v4892_v6, %v3829_v51 }
 0x296   : > { %v2919_v4 = vpop.f32.mrf.mxu2 }
 0x297   : > { %v2920_v7 = vadd.f32 %v2919_v4, %v2831_v39  ;;  %v3008_v56 = vpop.f32.mrf.mxu3  ;;  %v4886_v39 = vld [vmem:[%s5239_s8 + $0x1cc] sm:$0xf] }
 0x298   : > { %v2833_v50 = vpop.f32.mrf.mxu1 }
 0x299   : > { %v3009_v18 = vadd.f32 %v3008_v56, %v2920_v7  ;;  %v2834_v22 = vadd.f32 %v2833_v50, %v5832_v1  ;;  %v3838_v7 = vor.u32 %v4893_v25, %v3837_v27 }
 0x29a   : > { %v3100_v24 = vpop.f32.mrf.mxu0 }
 0x29b   : > { %3148 = vmatmul.bf16.gmra.mxu1 %v3774_v43  ;;  %3237 = vmatmul.bf16.gmra.mxu2 %v3778_v32  ;;  %v6105_v54 = vadd.f32 %v3097_v53, %v3009_v18  ;;  %v3831_v53 = vld [vmem:[%s5239_s8 + $0x1fc] sm:$0xf0] }
 0x29c   : > { %3326 = vmatmul.bf16.gmra.mxu3 %v3782_v17  ;;  %v3834_v4 = vor.u32 %v4886_v39, %v3831_v53 }
 0x29d   : > { %4814 = vmatmul.msk.bf16.gmra.mxu0 %vm2275_vm0, %v3786_v63 }
 0x29e   : > { %v2922_v62 = vpop.f32.mrf.mxu2 }
 0x29f   : > { %v2923_v28 = vadd.f32 %v2922_v62, %v2834_v22  ;;  %v3011_v60 = vpop.f32.mrf.mxu3  ;;  %v4898_v62 = vld [vmem:[%s5239_s8 + $0x22c] sm:$0xf] }
 0x2a0   : > { %v2835_v42 = vpop.f32.mrf.mxu1 }
 0x2a1   : > { %v3012_v34 = vadd.f32 %v3011_v60, %v2923_v28  ;;  %v2836_v1 = vadd.f32 %v2835_v42, %v5841_v21  ;;  %v3875_v28 = vld [vmem:[%s5239_s8 + $0x25c] sm:$0xf0]  ;;  %v3881_v42 = vld [vmem:[%s5239_s8 + $0x230] sm:$0xf] }
 0x2a2   : > { %v3102_v40 = vpop.f32.mrf.mxu0  ;;  %v3878_v53 = vor.u32 %v4898_v62, %v3875_v28  ;;  %v3941_v62 = vld [vmem:[%s5239_s8 + $0x2a0] sm:$0xf]  ;;  %v4919_v28 = vld [vmem:[%s5239_s8 + $0x2d0] sm:$0xf0] }
 0x2a3   : > { %v6111_v31 = vadd.f32 %v3100_v24, %v3012_v34  ;;  %v4905_v34 = vld [vmem:[%s5239_s8 + $0x260] sm:$0xf0] }
 0x2a4   : > { %v3882_v27 = vor.u32 %v4905_v34, %v3881_v42 }
 0x2a6   : > { %v2924_v58 = vpop.f32.mrf.mxu2 }
 0x2a7   : > { %v2925_v35 = vadd.f32 %v2924_v58, %v2836_v1  ;;  %v3013_v9 = vpop.f32.mrf.mxu3  ;;  %v4899_v1 = vld [vmem:[%s5239_s8 + $0x234] sm:$0xf] }
 0x2a8   : > { %v2838_v2 = vpop.f32.mrf.mxu1 }
 0x2a9   : > { %v3014_v21 = vadd.f32 %v3013_v9, %v2925_v35  ;;  %v2839_v56 = vadd.f32 %v2838_v2, %v5855_v10  ;;  %v3890_v35 = vor.u32 %v4906_v16, %v3889_v45 }
 0x2aa   : > { %v3105_v43 = vpop.f32.mrf.mxu0 }
 0x2ab   : > { %3153 = vmatmul.bf16.gmra.mxu1 %v3826_v30  ;;  %3242 = vmatmul.bf16.gmra.mxu2 %v3830_v0  ;;  %v6120_v32 = vadd.f32 %v3102_v40, %v3014_v21  ;;  %v3883_v40 = vld [vmem:[%s5239_s8 + $0x264] sm:$0xf0] }
 0x2ac   : > { %3331 = vmatmul.bf16.gmra.mxu3 %v3834_v4  ;;  %v3886_v58 = vor.u32 %v4899_v1, %v3883_v40 }
 0x2ad   : > { %4815 = vmatmul.msk.bf16.gmra.mxu0 %vm2275_vm0, %v3838_v7 }
 0x2ae   : > { %v2927_v50 = vpop.f32.mrf.mxu2 }
 0x2af   : > { %v2928_v17 = vadd.f32 %v2927_v50, %v2839_v56  ;;  %v3016_v63 = vpop.f32.mrf.mxu3  ;;  %v4911_v50 = vld [vmem:[%s5239_s8 + $0x294] sm:$0xf] }
 0x2b0   : > { %v2840_v18 = vpop.f32.mrf.mxu1 }
 0x2b1   : > { %v3017_v22 = vadd.f32 %v3016_v63, %v2928_v17  ;;  %v2841_v10 = vadd.f32 %v2840_v18, %v5864_v20  ;;  %v3927_v17 = vld [vmem:[%s5239_s8 + $0x2c4] sm:$0xf0]  ;;  %v3933_v18 = vld [vmem:[%s5239_s8 + $0x298] sm:$0xf] }
 0x2b2   : > { %v3107_v24 = vpop.f32.mrf.mxu0  ;;  %v3930_v40 = vor.u32 %v4911_v50, %v3927_v17  ;;  %v3993_v50 = vld [vmem:[%s5239_s8 + $0x308] sm:$0xf]  ;;  %v4932_v17 = vld [vmem:[%s5239_s8 + $0x338] sm:$0xf0] }
 0x2b3   : > { %v6126_v60 = vadd.f32 %v3105_v43, %v3017_v22  ;;  %v4918_v22 = vld [vmem:[%s5239_s8 + $0x2c8] sm:$0xf0] }
 0x2b4   : > { %v3934_v45 = vor.u32 %v4918_v22, %v3933_v18 }
 0x2b6   : > { %v2929_v51 = vpop.f32.mrf.mxu2 }
 0x2b7   : > { %v2930_v6 = vadd.f32 %v2929_v51, %v2841_v10  ;;  %v3018_v39 = vpop.f32.mrf.mxu3  ;;  %v4912_v10 = vld [vmem:[%s5239_s8 + $0x29c] sm:$0xf] }
 0x2b8   : > { %v2843_v25 = vpop.f32.mrf.mxu1 }
 0x2b9   : > { %v3019_v20 = vadd.f32 %v3018_v39, %v2930_v6  ;;  %v2844_v9 = vadd.f32 %v2843_v25, %v5869_v33  ;;  %v3942_v6 = vor.u32 %v4919_v28, %v3941_v62 }
 0x2ba   : > { %v3110_v30 = vpop.f32.mrf.mxu0 }
 0x2bb   : > { %3158 = vmatmul.bf16.gmra.mxu1 %v3878_v53  ;;  %3247 = vmatmul.bf16.gmra.mxu2 %v3882_v27  ;;  %v6135_v0 = vadd.f32 %v3107_v24, %v3019_v20  ;;  %v3935_v24 = vld [vmem:[%s5239_s8 + $0x2cc] sm:$0xf0] }
 0x2bc   : > { %3336 = vmatmul.bf16.gmra.mxu3 %v3886_v58  ;;  %v3938_v51 = vor.u32 %v4912_v10, %v3935_v24 }
 0x2bd   : > { %4816 = vmatmul.msk.bf16.gmra.mxu0 %vm2275_vm0, %v3890_v35 }
 0x2be   : > { %v2932_v2 = vpop.f32.mrf.mxu2 }
 0x2bf   : > { %v2933_v4 = vadd.f32 %v2932_v2, %v2844_v9  ;;  %v3021_v7 = vpop.f32.mrf.mxu3  ;;  %v4924_v2 = vld [vmem:[%s5239_s8 + $0x2fc] sm:$0xf] }
 0x2c0   : > { %v2845_v21 = vpop.f32.mrf.mxu1 }
 0x2c1   : > { %v3022_v56 = vadd.f32 %v3021_v7, %v2933_v4  ;;  %v2846_v33 = vadd.f32 %v2845_v21, %v5878_v44  ;;  %v3979_v4 = vld [vmem:[%s5239_s8 + $0x32c] sm:$0xf0]  ;;  %v3985_v21 = vld [vmem:[%s5239_s8 + $0x300] sm:$0xf] }
 0x2c2   : > { %v3112_v43 = vpop.f32.mrf.mxu0  ;;  %v3982_v24 = vor.u32 %v4924_v2, %v3979_v4  ;;  %v4045_v2 = vld [vmem:[%s5239_s8 + $0x370] sm:$0xf]  ;;  %v4945_v4 = vld [vmem:[%s5239_s8 + $0x3a0] sm:$0xf0] }
 0x2c3   : > { %v6141_v63 = vadd.f32 %v3110_v30, %v3022_v56  ;;  %v4931_v56 = vld [vmem:[%s5239_s8 + $0x330] sm:$0xf0] }
 0x2c4   : > { %v3986_v62 = vor.u32 %v4931_v56, %v3985_v21 }
 0x2c6   : > { %v2934_v42 = vpop.f32.mrf.mxu2 }
 0x2c7   : > { %v2935_v34 = vadd.f32 %v2934_v42, %v2846_v33  ;;  %v3023_v1 = vpop.f32.mrf.mxu3  ;;  %v4925_v33 = vld [vmem:[%s5239_s8 + $0x304] sm:$0xf] }
 0x2c8   : > { %v2848_v16 = vpop.f32.mrf.mxu1 }
 0x2c9   : > { %v3024_v44 = vadd.f32 %v3023_v1, %v2935_v34  ;;  %v2849_v39 = vadd.f32 %v2848_v16, %v5895_v41  ;;  %v3994_v34 = vor.u32 %v4932_v17, %v3993_v50 }
 0x2ca   : > { %v3115_v53 = vpop.f32.mrf.mxu0 }
 0x2cb   : > { %3163 = vmatmul.bf16.gmra.mxu1 %v3930_v40  ;;  %3252 = vmatmul.bf16.gmra.mxu2 %v3934_v45  ;;  %v6150_v27 = vadd.f32 %v3112_v43, %v3024_v44  ;;  %v3987_v43 = vld [vmem:[%s5239_s8 + $0x334] sm:$0xf0] }
 0x2cc   : > { %3341 = vmatmul.bf16.gmra.mxu3 %v3938_v51  ;;  %v3990_v42 = vor.u32 %v4925_v33, %v3987_v43 }
 0x2cd   : > { %4817 = vmatmul.msk.bf16.gmra.mxu0 %vm2275_vm0, %v3942_v6 }
 0x2ce   : > { %v2937_v25 = vpop.f32.mrf.mxu2 }
 0x2cf   : > { %v2938_v58 = vadd.f32 %v2937_v25, %v2849_v39  ;;  %v3026_v35 = vpop.f32.mrf.mxu3  ;;  %v4937_v25 = vld [vmem:[%s5239_s8 + $0x364] sm:$0xf] }
 0x2d0   : > { %v2850_v20 = vpop.f32.mrf.mxu1 }
 0x2d1   : > { %v3027_v9 = vadd.f32 %v3026_v35, %v2938_v58  ;;  %v2851_v41 = vadd.f32 %v2850_v20, %v5904_v23  ;;  %v4031_v58 = vld [vmem:[%s5239_s8 + $0x394] sm:$0xf0]  ;;  %v4037_v20 = vld [vmem:[%s5239_s8 + $0x368] sm:$0xf] }
 0x2d2   : > { %v3117_v30 = vpop.f32.mrf.mxu0  ;;  %v4034_v43 = vor.u32 %v4937_v25, %v4031_v58  ;;  %v4097_v25 = vld [vmem:[%s5239_s8 + $0x3d8] sm:$0xf]  ;;  %v4958_v58 = vld [vmem:[%s5239_s8 + $0x408] sm:$0xf0] }
 0x2d3   : > { %v6156_v7 = vadd.f32 %v3115_v53, %v3027_v9  ;;  %v4944_v9 = vld [vmem:[%s5239_s8 + $0x398] sm:$0xf0] }
 0x2d4   : > { %v4038_v50 = vor.u32 %v4944_v9, %v4037_v20 }
 0x2d6   : > { %v2939_v18 = vpop.f32.mrf.mxu2 }
 0x2d7   : > { %v2940_v22 = vadd.f32 %v2939_v18, %v2851_v41  ;;  %v3028_v10 = vpop.f32.mrf.mxu3  ;;  %v4938_v41 = vld [vmem:[%s5239_s8 + $0x36c] sm:$0xf] }
 0x2d8   : > { %v2853_v28 = vpop.f32.mrf.mxu1 }
 0x2d9   : > { %v3029_v23 = vadd.f32 %v3028_v10, %v2940_v22  ;;  %v2854_v1 = vadd.f32 %v2853_v28, %v5909_v19 }
 0x2da   : > { %v3120_v40 = vpop.f32.mrf.mxu0 }
 0x2db   : > { %3168 = vmatmul.bf16.gmra.mxu1 %v3982_v24  ;;  %3257 = vmatmul.bf16.gmra.mxu2 %v3986_v62  ;;  %v6165_v45 = vadd.f32 %v3117_v30, %v3029_v23  ;;  %v4039_v30 = vld [vmem:[%s5239_s8 + $0x39c] sm:$0xf0] }
 0x2dc   : > { %3346 = vmatmul.bf16.gmra.mxu3 %v3990_v42  ;;  %v4042_v18 = vor.u32 %v4938_v41, %v4039_v30 }
 0x2dd   : > { %4818 = vmatmul.msk.bf16.gmra.mxu0 %vm2275_vm0, %v3994_v34 }
 0x2de   : > { %v2942_v16 = vpop.f32.mrf.mxu2 }
 0x2df   : > { %v2943_v51 = vadd.f32 %v2942_v16, %v2854_v1  ;;  %v3031_v6 = vpop.f32.mrf.mxu3 }
 0x2e0   : > { %v2855_v44 = vpop.f32.mrf.mxu1 }
 0x2e1   : > { %v3032_v39 = vadd.f32 %v3031_v6, %v2943_v51  ;;  %v2856_v19 = vadd.f32 %v2855_v44, %v5918_v38  ;;  %v4046_v38 = vor.u32 %v4945_v4, %v4045_v2  ;;  %v4950_v51 = vld [vmem:[%s5239_s8 + $0x3cc] sm:$0xf]  ;;  %v4089_v6 = vld [vmem:[%s5239_s8 + $0x3d0] sm:$0xf]  ;;  %v4957_v44 = vld [vmem:[%s5239_s8 + $0x400] sm:$0xf0] }
 0x2e2   : > { %v3122_v53 = vpop.f32.mrf.mxu0  ;;  %v4090_v2 = vor.u32 %v4957_v44, %v4089_v6 }
 0x2e3   : > { %v6171_v35 = vadd.f32 %v3120_v40, %v3032_v39  ;;  %v4951_v39 = vld [vmem:[%s5239_s8 + $0x3d4] sm:$0xf] }
 0x2e6   : > { %v2944_v21 = vpop.f32.mrf.mxu2 }
 0x2e7   : > { %v2945_v56 = vadd.f32 %v2944_v21, %v2856_v19  ;;  %v3033_v33 = vpop.f32.mrf.mxu3  ;;  %v4091_v19 = vld [vmem:[%s5239_s8 + $0x404] sm:$0xf0] }
 0x2e8   : > { %v3134_v17 = vpop.f32.mrf.mxu1  ;;  %v4094_v21 = vor.u32 %v4951_v39, %v4091_v19 }
 0x2e9   : > { %v3034_v22 = vadd.f32 %v3033_v33, %v2945_v56  ;;  %v3135_v62 = vadd.f32 %v3134_v17, %v5932_v12  ;;  %v4083_v12 = vld [vmem:[%s5239_s8 + $0x3fc] sm:$0xf0]  ;;  %v4098_v56 = vor.u32 %v4958_v58, %v4097_v25 }
 0x2ea   : > { %v3401_v10 = vpop.f32.mrf.mxu0  ;;  %v4086_v30 = vor.u32 %v4950_v51, %v4083_v12  ;;  %v4971_v12 = vld [vmem:[%s5239_s8 + $0x470] sm:$0xf0] }
 0x2eb   : > { %3173 = vmatmul.bf16.gmra.mxu1 %v4034_v43  ;;  %3262 = vmatmul.bf16.gmra.mxu2 %v4038_v50  ;;  %v6179_v24 = vadd.f32 %v3122_v53, %v3034_v22 }
 0x2ec   : > { %3351 = vmatmul.bf16.gmra.mxu3 %v4042_v18 }
 0x2ed   : > { %4819 = vmatmul.msk.bf16.gmra.mxu0 %vm2275_vm0, %v4046_v38 }
 0x2ee   : > { %v3223_v28 = vpop.f32.mrf.mxu2 }
 0x2ef   : > { %v3224_v42 = vadd.f32 %v3223_v28, %v3135_v62  ;;  %v3312_v34 = vpop.f32.mrf.mxu3 }
 0x2f0   : > { %v3136_v23 = vpop.f32.mrf.mxu1 }
 0x2f1   : > { %v3313_v1 = vadd.f32 %v3312_v34, %v3224_v42  ;;  %v3137_v53 = vadd.f32 %v3136_v23, %v5941_v48  ;;  %v4963_v42 = vld [vmem:[%s5239_s8 + $0x434] sm:$0xf]  ;;  %v4135_v34 = vld [vmem:[%s5239_s8 + $0x464] sm:$0xf0]  ;;  %v4141_v23 = vld [vmem:[%s5239_s8 + $0x438] sm:$0xf] }
 0x2f2   : > { %v3403_v40 = vpop.f32.mrf.mxu0  ;;  %v4138_v19 = vor.u32 %v4963_v42, %v4135_v34 }
 0x2f3   : > { %v3402_v16 = vadd.f32 %v3401_v10, %v3313_v1  ;;  %v4970_v1 = vld [vmem:[%s5239_s8 + $0x468] sm:$0xf0] }
 0x2f5   : > { %3482 = vst.msk [vmem:[%s6187_s7] sm:$0xff] %vm3481_vm1, %v3402_v16  ;;  %v4143_v16 = vld [vmem:[%s5239_s8 + $0x46c] sm:$0xf0] }
 0x2f6   : > { %v3225_v20 = vpop.f32.mrf.mxu2 }
 0x2f7   : > { %v3226_v9 = vadd.f32 %v3225_v20, %v3137_v53  ;;  %v3314_v41 = vpop.f32.mrf.mxu3  ;;  %v4142_v53 = vor.u32 %v4970_v1, %v4141_v23 }
 0x2f8   : > { %v3139_v4 = vpop.f32.mrf.mxu1 }
 0x2f9   : > { %v3315_v33 = vadd.f32 %v3314_v41, %v3226_v9  ;;  %v3140_v48 = vadd.f32 %v3139_v4, %v5946_v59  ;;  %v4149_v59 = vld [vmem:[%s5239_s8 + $0x440] sm:$0xf] }
 0x2fa   : > { %v3406_v43 = vpop.f32.mrf.mxu0  ;;  %v4150_v20 = vor.u32 %v4971_v12, %v4149_v59 }
 0x2fb   : > { %v3404_v50 = vadd.f32 %v3403_v40, %v3315_v33  ;;  %3178 = vmatmul.bf16.gmra.mxu1 %v4086_v30  ;;  %3267 = vmatmul.bf16.gmra.mxu2 %v4090_v2  ;;  %v4964_v40 = vld [vmem:[%s5239_s8 + $0x43c] sm:$0xf] }
 0x2fc   : > { %3356 = vmatmul.bf16.gmra.mxu3 %v4094_v21  ;;  %v4146_v58 = vor.u32 %v4964_v40, %v4143_v16 }
 0x2fd   : > { %4820 = vmatmul.msk.bf16.gmra.mxu0 %vm2275_vm0, %v4098_v56  ;;  %3483 = vst.msk [vmem:[%s6187_s7 + $0x8] sm:$0xff] %vm3481_vm1, %v3404_v50 }
 0x2fe   : > { %v3228_v17 = vpop.f32.mrf.mxu2 }
 0x2ff   : > { %v3229_v18 = vadd.f32 %v3228_v17, %v3140_v48  ;;  %v3317_v38 = vpop.f32.mrf.mxu3  ;;  %v4976_v48 = vld [vmem:[%s5239_s8 + $0x49c] sm:$0xf]  ;;  %v4187_v17 = vld [vmem:[%s5239_s8 + $0x4cc] sm:$0xf0] }
 0x300   : > { %v3141_v22 = vpop.f32.mrf.mxu1  ;;  %v4190_v1 = vor.u32 %v4976_v48, %v4187_v17 }
 0x301   : > { %v3318_v10 = vadd.f32 %v3317_v38, %v3229_v18  ;;  %v3142_v51 = vadd.f32 %v3141_v22, %v5955_v26  ;;  %v4193_v18 = vld [vmem:[%s5239_s8 + $0x4a0] sm:$0xf]  ;;  %v4983_v38 = vld [vmem:[%s5239_s8 + $0x4d0] sm:$0xf0]  ;;  %v4977_v22 = vld [vmem:[%s5239_s8 + $0x4a4] sm:$0xf] }
 0x302   : > { %v3408_v62 = vpop.f32.mrf.mxu0  ;;  %v4194_v40 = vor.u32 %v4983_v38, %v4193_v18 }
 0x303   : > { %v3407_v28 = vadd.f32 %v3406_v43, %v3318_v10  ;;  %v4195_v10 = vld [vmem:[%s5239_s8 + $0x4d4] sm:$0xf0] }
 0x305   : > { %3484 = vst.msk [vmem:[%s6187_s7 + $0x10] sm:$0xff] %vm3481_vm1, %v3407_v28  ;;  %v4984_v28 = vld [vmem:[%s5239_s8 + $0x4d8] sm:$0xf0] }
 0x306   : > { %v3230_v6 = vpop.f32.mrf.mxu2 }
 0x307   : > { %v3231_v44 = vadd.f32 %v3230_v6, %v3142_v51  ;;  %v3319_v39 = vpop.f32.mrf.mxu3  ;;  %v4198_v51 = vor.u32 %v4977_v22, %v4195_v10 }
 0x308   : > { %v3144_v25 = vpop.f32.mrf.mxu1 }
 0x309   : > { %v3320_v9 = vadd.f32 %v3319_v39, %v3231_v44  ;;  %v3145_v26 = vadd.f32 %v3144_v25, %v5972_v13  ;;  %v4201_v13 = vld [vmem:[%s5239_s8 + $0x4a8] sm:$0xf] }
 0x30a   : > { %v3411_v41 = vpop.f32.mrf.mxu0  ;;  %v4202_v59 = vor.u32 %v4984_v28, %v4201_v13 }
 0x30b   : > { %v3409_v30 = vadd.f32 %v3408_v62, %v3320_v9  ;;  %3183 = vmatmul.bf16.gmra.mxu1 %v4138_v19  ;;  %3272 = vmatmul.bf16.gmra.mxu2 %v4142_v53 }
 0x30c   : > { %3361 = vmatmul.bf16.gmra.mxu3 %v4146_v58 }
 0x30d   : > { %4821 = vmatmul.msk.bf16.gmra.mxu0 %vm2275_vm0, %v4150_v20  ;;  %3485 = vst.msk [vmem:[%s6187_s7 + $0x18] sm:$0xff] %vm3481_vm1, %v3409_v30  ;;  %v4239_v30 = vld [vmem:[%s5239_s8 + $0x534] sm:$0xf0] }
 0x30e   : > { %v3233_v2 = vpop.f32.mrf.mxu2 }
 0x30f   : > { %v3234_v4 = vadd.f32 %v3233_v2, %v3145_v26  ;;  %v3322_v21 = vpop.f32.mrf.mxu3  ;;  %v4245_v26 = vld [vmem:[%s5239_s8 + $0x508] sm:$0xf]  ;;  %v4996_v2 = vld [vmem:[%s5239_s8 + $0x538] sm:$0xf0] }
 0x310   : > { %v3146_v56 = vpop.f32.mrf.mxu1  ;;  %v4246_v18 = vor.u32 %v4996_v2, %v4245_v26 }
 0x311   : > { %v3323_v33 = vadd.f32 %v3322_v21, %v3234_v4  ;;  %v3147_v62 = vadd.f32 %v3146_v56, %v5981_v47  ;;  %v4990_v4 = vld [vmem:[%s5239_s8 + $0x50c] sm:$0xf]  ;;  %v4247_v21 = vld [vmem:[%s5239_s8 + $0x53c] sm:$0xf0] }
 0x312   : > { %v3413_v43 = vpop.f32.mrf.mxu0  ;;  %v4250_v22 = vor.u32 %v4990_v4, %v4247_v21 }
 0x313   : > { %v3412_v50 = vadd.f32 %v3411_v41, %v3323_v33  ;;  %v4989_v41 = vld [vmem:[%s5239_s8 + $0x504] sm:$0xf] }
 0x314   : > { %v4997_v33 = vld [vmem:[%s5239_s8 + $0x540] sm:$0xf0]  ;;  %v4242_v17 = vor.u32 %v4989_v41, %v4239_v30 }
 0x315   : > { %3486 = vst.msk [vmem:[%s6187_s7 + $0x20] sm:$0xff] %vm3481_vm1, %v3412_v50 }
 0x316   : > { %v3235_v42 = vpop.f32.mrf.mxu2 }
 0x317   : > { %v3236_v34 = vadd.f32 %v3235_v42, %v3147_v62  ;;  %v3324_v23 = vpop.f32.mrf.mxu3 }
 0x318   : > { %v3149_v16 = vpop.f32.mrf.mxu1 }
 0x319   : > { %v3325_v12 = vadd.f32 %v3324_v23, %v3236_v34  ;;  %v3150_v47 = vadd.f32 %v3149_v16, %v5986_v46  ;;  %v4253_v46 = vld [vmem:[%s5239_s8 + $0x510] sm:$0xf] }
 0x31a   : > { %v3416_v6 = vpop.f32.mrf.mxu0  ;;  %v4254_v10 = vor.u32 %v4997_v33, %v4253_v46 }
 0x31b   : > { %v3414_v44 = vadd.f32 %v3413_v43, %v3325_v12  ;;  %3188 = vmatmul.bf16.gmra.mxu1 %v4190_v1  ;;  %3277 = vmatmul.bf16.gmra.mxu2 %v4194_v40  ;;  %v4291_v12 = vld [vmem:[%s5239_s8 + $0x59c] sm:$0xf0] }
 0x31c   : > { %3366 = vmatmul.bf16.gmra.mxu3 %v4198_v51 }
 0x31d   : > { %4822 = vmatmul.msk.bf16.gmra.mxu0 %vm2275_vm0, %v4202_v59  ;;  %3487 = vst.msk [vmem:[%s6187_s7 + $0x28] sm:$0xff] %vm3481_vm1, %v3414_v44  ;;  %v5002_v59 = vld [vmem:[%s5239_s8 + $0x56c] sm:$0xf]  ;;  %v5009_v44 = vld [vmem:[%s5239_s8 + $0x5a0] sm:$0xf0] }
 0x31e   : > { %v3238_v39 = vpop.f32.mrf.mxu2 }
 0x31f   : > { %v3239_v19 = vadd.f32 %v3238_v39, %v3150_v47  ;;  %v3327_v53 = vpop.f32.mrf.mxu3  ;;  %v5003_v47 = vld [vmem:[%s5239_s8 + $0x574] sm:$0xf]  ;;  %v4299_v39 = vld [vmem:[%s5239_s8 + $0x5a4] sm:$0xf0] }
 0x320   : > { %v3151_v25 = vpop.f32.mrf.mxu1  ;;  %v4302_v26 = vor.u32 %v5003_v47, %v4299_v39 }
 0x321   : > { %v3328_v58 = vadd.f32 %v3327_v53, %v3239_v19  ;;  %v3152_v56 = vadd.f32 %v3151_v25, %v5995_v55  ;;  %v5010_v53 = vld [vmem:[%s5239_s8 + $0x5a8] sm:$0xf0] }
 0x322   : > { %v3418_v20 = vpop.f32.mrf.mxu0 }
 0x323   : > { %v3417_v9 = vadd.f32 %v3416_v6, %v3328_v58  ;;  %v4297_v6 = vld [vmem:[%s5239_s8 + $0x570] sm:$0xf] }
 0x324   : > { %v4298_v41 = vor.u32 %v5009_v44, %v4297_v6 }
 0x325   : > { %3488 = vst.msk [vmem:[%s6187_s7 + $0x30] sm:$0xff] %vm3481_vm1, %v3417_v9  ;;  %v4294_v9 = vor.u32 %v5002_v59, %v4291_v12 }
 0x326   : > { %v3240_v43 = vpop.f32.mrf.mxu2 }
 0x327   : > { %v3241_v50 = vadd.f32 %v3240_v43, %v3152_v56  ;;  %v3329_v48 = vpop.f32.mrf.mxu3 }
 0x328   : > { %v3154_v38 = vpop.f32.mrf.mxu1 }
 0x329   : > { %v3330_v62 = vadd.f32 %v3329_v48, %v3241_v50  ;;  %v3155_v55 = vadd.f32 %v3154_v38, %v6009_v57  ;;  %v4305_v57 = vld [vmem:[%s5239_s8 + $0x578] sm:$0xf]  ;;  %v5015_v38 = vld [vmem:[%s5239_s8 + $0x5d4] sm:$0xf] }
 0x32a   : > { %v3421_v13 = vpop.f32.mrf.mxu0  ;;  %v4306_v2 = vor.u32 %v5010_v53, %v4305_v57 }
 0x32b   : > { %v3419_v28 = vadd.f32 %v3418_v20, %v3330_v62  ;;  %3193 = vmatmul.bf16.gmra.mxu1 %v4242_v17  ;;  %3282 = vmatmul.bf16.gmra.mxu2 %v4246_v18  ;;  %v5022_v62 = vld [vmem:[%s5239_s8 + $0x608] sm:$0xf0] }
 0x32c   : > { %3371 = vmatmul.bf16.gmra.mxu3 %v4250_v22  ;;  %v4343_v22 = vld [vmem:[%s5239_s8 + $0x604] sm:$0xf0] }
 0x32d   : > { %4823 = vmatmul.msk.bf16.gmra.mxu0 %vm2275_vm0, %v4254_v10  ;;  %3489 = vst.msk [vmem:[%s6187_s7 + $0x38] sm:$0xff] %vm3481_vm1, %v3419_v28  ;;  %v4349_v10 = vld [vmem:[%s5239_s8 + $0x5d8] sm:$0xf]  ;;  %v4351_v28 = vld [vmem:[%s5239_s8 + $0x60c] sm:$0xf0] }
 0x32e   : > { %v3243_v42 = vpop.f32.mrf.mxu2 }
 0x32f   : > { %v3244_v34 = vadd.f32 %v3243_v42, %v3155_v55  ;;  %v3332_v23 = vpop.f32.mrf.mxu3  ;;  %v5023_v42 = vld [vmem:[%s5239_s8 + $0x610] sm:$0xf0] }
 0x330   : > { %v3156_v1 = vpop.f32.mrf.mxu1 }
 0x331   : > { %v3333_v40 = vadd.f32 %v3332_v23, %v3244_v34  ;;  %v3157_v19 = vadd.f32 %v3156_v1, %v6018_v11 }
 0x332   : > { %v3423_v16 = vpop.f32.mrf.mxu0 }
 0x333   : > { %v3422_v51 = vadd.f32 %v3421_v13, %v3333_v40  ;;  %v5016_v13 = vld [vmem:[%s5239_s8 + $0x5dc] sm:$0xf]  ;;  %v4346_v40 = vor.u32 %v5015_v38, %v4343_v22 }
 0x334   : > { %v4354_v59 = vor.u32 %v5016_v13, %v4351_v28 }
 0x335   : > { %3490 = vst.msk [vmem:[%s6187_s7 + $0x40] sm:$0xff] %vm3481_vm1, %v3422_v51 }
 0x336   : > { %v3245_v25 = vpop.f32.mrf.mxu2 }
 0x337   : > { %v3246_v58 = vadd.f32 %v3245_v25, %v3157_v19  ;;  %v3334_v20 = vpop.f32.mrf.mxu3 }
 0x338   : > { %v3159_v30 = vpop.f32.mrf.mxu1 }
 0x339   : > { %v3335_v4 = vadd.f32 %v3334_v20, %v3246_v58  ;;  %v3160_v11 = vadd.f32 %v3159_v30, %v6023_v8  ;;  %v4357_v8 = vld [vmem:[%s5239_s8 + $0x5e0] sm:$0xf] }
 0x33a   : > { %v3426_v21 = vpop.f32.mrf.mxu0  ;;  %v4358_v12 = vor.u32 %v5023_v42, %v4357_v8  ;;  %v4401_v30 = vld [vmem:[%s5239_s8 + $0x640] sm:$0xf] }
 0x33b   : > { %v3424_v56 = vadd.f32 %v3423_v16, %v3335_v4  ;;  %3198 = vmatmul.bf16.gmra.mxu1 %v4294_v9  ;;  %3287 = vmatmul.bf16.gmra.mxu2 %v4298_v41  ;;  %v4350_v16 = vor.u32 %v5022_v62, %v4349_v10  ;;  %v5028_v9 = vld [vmem:[%s5239_s8 + $0x63c] sm:$0xf]  ;;  %v4395_v41 = vld [vmem:[%s5239_s8 + $0x66c] sm:$0xf0]  ;;  %v4403_v4 = vld [vmem:[%s5239_s8 + $0x674] sm:$0xf0] }
 0x33c   : > { %3376 = vmatmul.bf16.gmra.mxu3 %v4302_v26  ;;  %v5035_v26 = vld [vmem:[%s5239_s8 + $0x670] sm:$0xf0] }
 0x33d   : > { %4824 = vmatmul.msk.bf16.gmra.mxu0 %vm2275_vm0, %v4306_v2  ;;  %3491 = vst.msk [vmem:[%s6187_s7 + $0x48] sm:$0xff] %vm3481_vm1, %v3424_v56  ;;  %v5029_v2 = vld [vmem:[%s5239_s8 + $0x644] sm:$0xf]  ;;  %v5036_v56 = vld [vmem:[%s5239_s8 + $0x678] sm:$0xf0] }
 0x33e   : > { %v3248_v46 = vpop.f32.mrf.mxu2 }
 0x33f   : > { %v3249_v33 = vadd.f32 %v3248_v46, %v3160_v11  ;;  %v3337_v43 = vpop.f32.mrf.mxu3 }
 0x340   : > { %v3161_v50 = vpop.f32.mrf.mxu1 }
 0x341   : > { %v3338_v48 = vadd.f32 %v3337_v43, %v3249_v33  ;;  %v3162_v55 = vadd.f32 %v3161_v50, %v6032_v52  ;;  %v4398_v43 = vor.u32 %v5028_v9, %v4395_v41  ;;  %v4402_v50 = vor.u32 %v5035_v26, %v4401_v30 }
 0x342   : > { %v3428_v17 = vpop.f32.mrf.mxu0 }
 0x343   : > { %v3427_v18 = vadd.f32 %v3426_v21, %v3338_v48 }
 0x345   : > { %3492 = vst.msk [vmem:[%s6187_s7 + $0x50] sm:$0xff] %vm3481_vm1, %v3427_v18 }
 0x346   : > { %v3250_v34 = vpop.f32.mrf.mxu2 }
 0x347   : > { %v3251_v23 = vadd.f32 %v3250_v34, %v3162_v55  ;;  %v3339_v1 = vpop.f32.mrf.mxu3 }
 0x348   : > { %v3164_v51 = vpop.f32.mrf.mxu1 }
 0x349   : > { %v3340_v6 = vadd.f32 %v3339_v1, %v3251_v23  ;;  %v3165_v52 = vadd.f32 %v3164_v51, %v6037_v36  ;;  %v4409_v36 = vld [vmem:[%s5239_s8 + $0x648] sm:$0xf] }
 0x34a   : > { %v3431_v44 = vpop.f32.mrf.mxu0  ;;  %v4410_v18 = vor.u32 %v5036_v56, %v4409_v36 }
 0x34b   : > { %v3429_v47 = vadd.f32 %v3428_v17, %v3340_v6  ;;  %3203 = vmatmul.bf16.gmra.mxu1 %v4346_v40  ;;  %3292 = vmatmul.bf16.gmra.mxu2 %v4350_v16  ;;  %v4406_v17 = vor.u32 %v5029_v2, %v4403_v4 }
 0x34c   : > { %3381 = vmatmul.bf16.gmra.mxu3 %v4354_v59 }
 0x34d   : > { %4825 = vmatmul.msk.bf16.gmra.mxu0 %vm2275_vm0, %v4358_v12  ;;  %3493 = vst.msk [vmem:[%s6187_s7 + $0x58] sm:$0xff] %vm3481_vm1, %v3429_v47 }
 0x34e   : > { %v3253_v39 = vpop.f32.mrf.mxu2 }
 0x34f   : > { %v3254_v19 = vadd.f32 %v3253_v39, %v3165_v52  ;;  %v3342_v57 = vpop.f32.mrf.mxu3 }
 0x350   : > { %v3166_v53 = vpop.f32.mrf.mxu1 }
 0x351   : > { %v3343_v25 = vadd.f32 %v3342_v57, %v3254_v19  ;;  %v3167_v21 = vadd.f32 %v3166_v53, %v6046_v49 }
 0x352   : > { %v3433_v58 = vpop.f32.mrf.mxu0 }
 0x353   : > { %v3432_v20 = vadd.f32 %v3431_v44, %v3343_v25 }
 0x355   : > { %3494 = vst.msk [vmem:[%s6187_s7 + $0x60] sm:$0xff] %vm3481_vm1, %v3432_v20 }
 0x356   : > { %v3255_v11 = vpop.f32.mrf.mxu2 }
 0x357   : > { %v3256_v46 = vadd.f32 %v3255_v11, %v3167_v21  ;;  %v3344_v33 = vpop.f32.mrf.mxu3 }
 0x358   : > { %v3169_v48 = vpop.f32.mrf.mxu1 }
 0x359   : > { %v3345_v38 = vadd.f32 %v3344_v33, %v3256_v46  ;;  %v3170_v49 = vadd.f32 %v3169_v48, %v6051_v3 }
 0x35a   : > { %v3436_v22 = vpop.f32.mrf.mxu0 }
 0x35b   : > { %v3434_v10 = vadd.f32 %v3433_v58, %v3345_v38  ;;  %3208 = vmatmul.bf16.gmra.mxu1 %v4398_v43  ;;  %3297 = vmatmul.bf16.gmra.mxu2 %v4402_v50 }
 0x35c   : > { %3386 = vmatmul.bf16.gmra.mxu3 %v4406_v17 }
 0x35d   : > { %4826 = vmatmul.msk.bf16.gmra.mxu0 %vm2275_vm0, %v4410_v18  ;;  %3495 = vst.msk [vmem:[%s6187_s7 + $0x68] sm:$0xff] %vm3481_vm1, %v3434_v10 }
 0x35e   : > { %v3258_v62 = vpop.f32.mrf.mxu2 }
 0x35f   : > { %v3259_v13 = vadd.f32 %v3258_v62, %v3170_v49  ;;  %v3347_v28 = vpop.f32.mrf.mxu3 }
 0x360   : > { %v3171_v55 = vpop.f32.mrf.mxu1 }
 0x361   : > { %v3348_v8 = vadd.f32 %v3347_v28, %v3259_v13  ;;  %v3172_v23 = vadd.f32 %v3171_v55, %v6060_v37 }
 0x362   : > { %v3438_v42 = vpop.f32.mrf.mxu0 }
 0x363   : > { %v3437_v34 = vadd.f32 %v3436_v22, %v3348_v8 }
 0x365   : > { %3496 = vst.msk [vmem:[%s6187_s7 + $0x70] sm:$0xff] %vm3481_vm1, %v3437_v34 }
 0x366   : > { %v3260_v1 = vpop.f32.mrf.mxu2 }
 0x367   : > { %v3261_v40 = vadd.f32 %v3260_v1, %v3172_v23  ;;  %v3349_v16 = vpop.f32.mrf.mxu3 }
 0x368   : > { %v3174_v51 = vpop.f32.mrf.mxu1 }
 0x369   : > { %v3350_v59 = vadd.f32 %v3349_v16, %v3261_v40  ;;  %v3175_v6 = vadd.f32 %v3174_v51, %v6066_v14 }
 0x36a   : > { %v3441_v12 = vpop.f32.mrf.mxu0 }
 0x36b   : > { %v3439_v3 = vadd.f32 %v3438_v42, %v3350_v59 }
 0x36d   : > { %3497 = vst.msk [vmem:[%s6187_s7 + $0x78] sm:$0xff] %vm3481_vm1, %v3439_v3 }
 0x36e   : > { %v3263_v44 = vpop.f32.mrf.mxu2 }
 0x36f   : > { %v3264_v47 = vadd.f32 %v3263_v44, %v3175_v6  ;;  %v3352_v52 = vpop.f32.mrf.mxu3 }
 0x370   : > { %v3176_v39 = vpop.f32.mrf.mxu1 }
 0x371   : > { %v3353_v19 = vadd.f32 %v3352_v52, %v3264_v47  ;;  %v3177_v53 = vadd.f32 %v3176_v39, %v6075_v15 }
 0x372   : > { %v3443_v57 = vpop.f32.mrf.mxu0 }
 0x373   : > { %v3442_v37 = vadd.f32 %v3441_v12, %v3353_v19 }
 0x375   : > { %3498 = vst.msk [vmem:[%s6187_s7 + $0x80] sm:$0xff] %vm3481_vm1, %v3442_v37 }
 0x376   : > { %v3265_v25 = vpop.f32.mrf.mxu2 }
 0x377   : > { %v3266_v58 = vadd.f32 %v3265_v25, %v3177_v53  ;;  %v3354_v20 = vpop.f32.mrf.mxu3 }
 0x378   : > { %v3179_v9 = vpop.f32.mrf.mxu1 }
 0x379   : > { %v3355_v41 = vadd.f32 %v3354_v20, %v3266_v58  ;;  %v3180_v26 = vadd.f32 %v3179_v9, %v6081_v61 }
 0x37a   : > { %v3446_v30 = vpop.f32.mrf.mxu0 }
 0x37b   : > { %v3444_v14 = vadd.f32 %v3443_v57, %v3355_v41 }
 0x37d   : > { %3499 = vst.msk [vmem:[%s6187_s7 + $0x88] sm:$0xff] %vm3481_vm1, %v3444_v14 }
 0x37e   : > { %v3268_v2 = vpop.f32.mrf.mxu2 }
 0x37f   : > { %v3269_v4 = vadd.f32 %v3268_v2, %v3180_v26  ;;  %v3357_v21 = vpop.f32.mrf.mxu3 }
 0x380   : > { %v3181_v36 = vpop.f32.mrf.mxu1 }
 0x381   : > { %v3358_v56 = vadd.f32 %v3357_v21, %v3269_v4  ;;  %v3182_v46 = vadd.f32 %v3181_v36, %v6090_v29 }
 0x382   : > { %v3448_v11 = vpop.f32.mrf.mxu0 }
 0x383   : > { %v3447_v15 = vadd.f32 %v3446_v30, %v3358_v56 }
 0x385   : > { %3500 = vst.msk [vmem:[%s6187_s7 + $0x90] sm:$0xff] %vm3481_vm1, %v3447_v15 }
 0x386   : > { %v3270_v33 = vpop.f32.mrf.mxu2 }
 0x387   : > { %v3271_v43 = vadd.f32 %v3270_v33, %v3182_v46  ;;  %v3359_v50 = vpop.f32.mrf.mxu3 }
 0x388   : > { %v3184_v48 = vpop.f32.mrf.mxu1 }
 0x389   : > { %v3360_v17 = vadd.f32 %v3359_v50, %v3271_v43  ;;  %v3185_v38 = vadd.f32 %v3184_v48, %v6096_v5 }
 0x38a   : > { %v3451_v18 = vpop.f32.mrf.mxu0 }
 0x38b   : > { %v3449_v61 = vadd.f32 %v3448_v11, %v3360_v17 }
 0x38d   : > { %3501 = vst.msk [vmem:[%s6187_s7 + $0x98] sm:$0xff] %vm3481_vm1, %v3449_v61 }
 0x38e   : > { %v3273_v22 = vpop.f32.mrf.mxu2 }
 0x38f   : > { %v3274_v10 = vadd.f32 %v3273_v22, %v3185_v38  ;;  %v3362_v49 = vpop.f32.mrf.mxu3 }
 0x390   : > { %v3186_v62 = vpop.f32.mrf.mxu1 }
 0x391   : > { %v3363_v13 = vadd.f32 %v3362_v49, %v3274_v10  ;;  %v3187_v55 = vadd.f32 %v3186_v62, %v6105_v54 }
 0x392   : > { %v3453_v28 = vpop.f32.mrf.mxu0 }
 0x393   : > { %v3452_v29 = vadd.f32 %v3451_v18, %v3363_v13 }
 0x395   : > { %3502 = vst.msk [vmem:[%s6187_s7 + $0xa0] sm:$0xff] %vm3481_vm1, %v3452_v29 }
 0x396   : > { %v3275_v8 = vpop.f32.mrf.mxu2 }
 0x397   : > { %v3276_v42 = vadd.f32 %v3275_v8, %v3187_v55  ;;  %v3364_v34 = vpop.f32.mrf.mxu3 }
 0x398   : > { %v3189_v23 = vpop.f32.mrf.mxu1 }
 0x399   : > { %v3365_v1 = vadd.f32 %v3364_v34, %v3276_v42  ;;  %v3190_v16 = vadd.f32 %v3189_v23, %v6111_v31 }
 0x39a   : > { %v3456_v40 = vpop.f32.mrf.mxu0 }
 0x39b   : > { %v3454_v5 = vadd.f32 %v3453_v28, %v3365_v1 }
 0x39d   : > { %3503 = vst.msk [vmem:[%s6187_s7 + $0xa8] sm:$0xff] %vm3481_vm1, %v3454_v5 }
 0x39e   : > { %v3278_v51 = vpop.f32.mrf.mxu2 }
 0x39f   : > { %v3279_v59 = vadd.f32 %v3278_v51, %v3190_v16  ;;  %v3367_v12 = vpop.f32.mrf.mxu3 }
 0x3a0   : > { %v3191_v3 = vpop.f32.mrf.mxu1 }
 0x3a1   : > { %v3368_v6 = vadd.f32 %v3367_v12, %v3279_v59  ;;  %v3192_v47 = vadd.f32 %v3191_v3, %v6120_v32 }
 0x3a2   : > { %v3458_v44 = vpop.f32.mrf.mxu0 }
 0x3a3   : > { %v3457_v54 = vadd.f32 %v3456_v40, %v3368_v6 }
 0x3a5   : > { %3504 = vst.msk [vmem:[%s6187_s7 + $0xb0] sm:$0xff] %vm3481_vm1, %v3457_v54 }
 0x3a6   : > { %v3280_v52 = vpop.f32.mrf.mxu2 }
 0x3a7   : > { %v3281_v39 = vadd.f32 %v3280_v52, %v3192_v47  ;;  %v3369_v19 = vpop.f32.mrf.mxu3 }
 0x3a8   : > { %v3194_v57 = vpop.f32.mrf.mxu1 }
 0x3a9   : > { %v3370_v37 = vadd.f32 %v3369_v19, %v3281_v39  ;;  %v3195_v25 = vadd.f32 %v3194_v57, %v6126_v60 }
 0x3aa   : > { %v3461_v53 = vpop.f32.mrf.mxu0 }
 0x3ab   : > { %v3459_v31 = vadd.f32 %v3458_v44, %v3370_v37 }
 0x3ad   : > { %3505 = vst.msk [vmem:[%s6187_s7 + $0xb8] sm:$0xff] %vm3481_vm1, %v3459_v31 }
 0x3ae   : > { %v3283_v58 = vpop.f32.mrf.mxu2 }
 0x3af   : > { %v3284_v20 = vadd.f32 %v3283_v58, %v3195_v25  ;;  %v3372_v9 = vpop.f32.mrf.mxu3 }
 0x3b0   : > { %v3196_v41 = vpop.f32.mrf.mxu1 }
 0x3b1   : > { %v3373_v30 = vadd.f32 %v3372_v9, %v3284_v20  ;;  %v3197_v26 = vadd.f32 %v3196_v41, %v6135_v0 }
 0x3b2   : > { %v3463_v14 = vpop.f32.mrf.mxu0 }
 0x3b3   : > { %v3462_v32 = vadd.f32 %v3461_v53, %v3373_v30 }
 0x3b5   : > { %3506 = vst.msk [vmem:[%s6187_s7 + $0xc0] sm:$0xff] %vm3481_vm1, %v3462_v32 }
 0x3b6   : > { %v3285_v2 = vpop.f32.mrf.mxu2 }
 0x3b7   : > { %v3286_v4 = vadd.f32 %v3285_v2, %v3197_v26  ;;  %v3374_v21 = vpop.f32.mrf.mxu3 }
 0x3b8   : > { %v3199_v36 = vpop.f32.mrf.mxu1 }
 0x3b9   : > { %v3375_v56 = vadd.f32 %v3374_v21, %v3286_v4  ;;  %v3200_v15 = vadd.f32 %v3199_v36, %v6141_v63 }
 0x3ba   : > { %v3466_v11 = vpop.f32.mrf.mxu0 }
 0x3bb   : > { %v3464_v60 = vadd.f32 %v3463_v14, %v3375_v56 }
 0x3bd   : > { %3507 = vst.msk [vmem:[%s6187_s7 + $0xc8] sm:$0xff] %vm3481_vm1, %v3464_v60 }
 0x3be   : > { %v3288_v46 = vpop.f32.mrf.mxu2 }
 0x3bf   : > { %v3289_v33 = vadd.f32 %v3288_v46, %v3200_v15  ;;  %v3377_v43 = vpop.f32.mrf.mxu3 }
 0x3c0   : > { %v3201_v50 = vpop.f32.mrf.mxu1 }
 0x3c1   : > { %v3378_v48 = vadd.f32 %v3377_v43, %v3289_v33  ;;  %v3202_v18 = vadd.f32 %v3201_v50, %v6150_v27 }
 0x3c2   : > { %v3468_v17 = vpop.f32.mrf.mxu0 }
 0x3c3   : > { %v3467_v0 = vadd.f32 %v3466_v11, %v3378_v48 }
 0x3c5   : > { %3508 = vst.msk [vmem:[%s6187_s7 + $0xd0] sm:$0xff] %vm3481_vm1, %v3467_v0 }
 0x3c6   : > { %v3290_v61 = vpop.f32.mrf.mxu2 }
 0x3c7   : > { %v3291_v38 = vadd.f32 %v3290_v61, %v3202_v18  ;;  %v3379_v22 = vpop.f32.mrf.mxu3 }
 0x3c8   : > { %v3204_v10 = vpop.f32.mrf.mxu1 }
 0x3c9   : > { %v3380_v49 = vadd.f32 %v3379_v22, %v3291_v38  ;;  %v3205_v13 = vadd.f32 %v3204_v10, %v6156_v7 }
 0x3ca   : > { %v3471_v63 = vpop.f32.mrf.mxu0 }
 0x3cb   : > { %v3469_v62 = vadd.f32 %v3468_v17, %v3380_v49 }
 0x3cd   : > { %3509 = vst.msk [vmem:[%s6187_s7 + $0xd8] sm:$0xff] %vm3481_vm1, %v3469_v62 }
 0x3ce   : > { %v3293_v28 = vpop.f32.mrf.mxu2 }
 0x3cf   : > { %v3294_v29 = vadd.f32 %v3293_v28, %v3205_v13  ;;  %v3382_v55 = vpop.f32.mrf.mxu3 }
 0x3d0   : > { %v3206_v8 = vpop.f32.mrf.mxu1 }
 0x3d1   : > { %v3383_v42 = vadd.f32 %v3382_v55, %v3294_v29  ;;  %v3207_v27 = vadd.f32 %v3206_v8, %v6165_v45 }
 0x3d2   : > { %v3473_v23 = vpop.f32.mrf.mxu0 }
 0x3d3   : > { %v3472_v34 = vadd.f32 %v3471_v63, %v3383_v42 }
 0x3d5   : > { %3510 = vst.msk [vmem:[%s6187_s7 + $0xe0] sm:$0xff] %vm3481_vm1, %v3472_v34 }
 0x3d6   : > { %v3295_v1 = vpop.f32.mrf.mxu2 }
 0x3d7   : > { %v3296_v40 = vadd.f32 %v3295_v1, %v3207_v27  ;;  %v3384_v5 = vpop.f32.mrf.mxu3 }
 0x3d8   : > { %v3209_v16 = vpop.f32.mrf.mxu1 }
 0x3d9   : > { %v3385_v51 = vadd.f32 %v3384_v5, %v3296_v40  ;;  %v3210_v7 = vadd.f32 %v3209_v16, %v6171_v35 }
 0x3da   : > { %v3476_v44 = vpop.f32.mrf.mxu0 }
 0x3db   : > { %v3474_v59 = vadd.f32 %v3473_v23, %v3385_v51 }
 0x3dd   : > { %3511 = vst.msk [vmem:[%s6187_s7 + $0xe8] sm:$0xff] %vm3481_vm1, %v3474_v59 }
 0x3de   : > { %v3298_v12 = vpop.f32.mrf.mxu2 }
 0x3df   : > { %v3299_v3 = vadd.f32 %v3298_v12, %v3210_v7  ;;  %v3387_v6 = vpop.f32.mrf.mxu3 }
 0x3e0   : > { %v3211_v47 = vpop.f32.mrf.mxu1 }
 0x3e1   : > { %v3388_v54 = vadd.f32 %v3387_v6, %v3299_v3  ;;  %v3212_v52 = vadd.f32 %v3211_v47, %v6179_v24 }
 0x3e2   : > { %v3478_v53 = vpop.f32.mrf.mxu0 }
 0x3e3   : > { %v3477_v45 = vadd.f32 %v3476_v44, %v3388_v54 }
 0x3e5   : > { %3512 = vst.msk [vmem:[%s6187_s7 + $0xf0] sm:$0xff] %vm3481_vm1, %v3477_v45 }
 0x3e6   : > { %v3300_v39 = vpop.f32.mrf.mxu2 }
 0x3e7   : > { %v3301_v19 = vadd.f32 %v3300_v39, %v3212_v52  ;;  %v3389_v57 = vpop.f32.mrf.mxu3 }
 0x3e9   : > { %v3390_v37 = vadd.f32 %v3389_v57, %v3301_v19 }
 0x3eb   : > { %v3479_v31 = vadd.f32 %v3478_v53, %v3390_v37 }
 0x3ed   : > { %3513 = vst.msk [vmem:[%s6187_s7 + $0xf8] sm:$0xff] %vm3481_vm1, %v3479_v31 }
 0x3ee PF: > { %s16_s15 = sadd.s32 1, %s5177_s15  }
 0x3ef   : > { %p13_p4 = scmp.ge.s32.totalorder %s16_s15, 18  }
 0x3f1   :  { %15 = sbr.rel (!%p13_p4) target bundleno = 1 (0x1), region = 66 }

// kernel: _lambda_.24
= control target key start
LH: loop header
LB: loop body
LE: loop exit
PB: predicated region body
PF: predicated region fallthrough
CT: control target
= control target key end

     0   :  { %s1060_s15 = smov 0   ;;  %s1302_s0 = inlined_call_operand.vmem [shape: bf16[4096,144], index: 0, kind: input, shape index: {}]   ;;  %s1303_s1 = inlined_call_operand.vmem [shape: bf16[144,48], index: 1, kind: input, shape index: {}]   ;;  %s1304_s2 = inlined_call_operand.vmem [shape: f32[1,48], index: 2, kind: input, shape index: {}]   ;;  %s1305_s3 = inlined_call_operand.<no memory space> [shape: f32[1,1], index: 3, kind: input, shape index: {}]   ;;  %s1306_s4 = inlined_call_operand.vmem [shape: f32[4096,48], index: 4, kind: output, shape index: {}]  }
   0x1 LB: > { %s775_s16 = sadd.s32 4294967295, %s1033_s15   ;;  %p779_p0 = scmp.ge.s32.totalorder %s1033_s15, 1  ;;  %s1033_s15 = sphi %s1060_s15, %s16_s15  }
   0x2   : > { %p166_p1 = scmp.lt.s32.totalorder %s1033_s15, 17 }
   0x4   : > { %p167_p2 = pnand %p779_p0, %p166_p1 }
   0x5   : > { %s780_s20 = sshll.u32 (!%p167_p2), %s775_s16, 5 }
   0x6   : > { %170 = sbr.rel (%p167_p2) target bundleno = 300 (0x12c), region = 36  ;;  %p194_p3 = scmp.lt.s32.totalorder (!%p167_p2), %s780_s20, 511 }
   0xb   : > { %v1007_v0 = vld [vmem:[%s1303_s1 + $0x38] sm:$0xff]  ;;  %v1008_v1 = vld [vmem:[%s1303_s1 + $0x40] sm:$0xff]  ;;  %v1006_v2 = vld [vmem:[%s1303_s1 + $0x30] sm:$0xff]  ;;  %s1308_s20 = smov (!%p194_p3, %s780_s20), 511  ;;  %vm459_vm0 = vcmask 130048   ;;  %vm686_vm1 = vcmask 392192  }
   0xc   : > { %508 = vmatpush.bf16.msra.mxu0 %v1007_v0  ;;  %1009 = vmatpush.bf16.msra.mxu2 %v1007_v0  ;;  %s967_s23 = sshll.u32 %s1308_s20, 3  ;;  %v1005_v3 = vld [vmem:[%s1303_s1 + $0x28] sm:$0xff]  ;;  %v1004_v7 = vld [vmem:[%s1303_s1 + $0x20] sm:$0xff]  ;;  %v1003_v11 = vld [vmem:[%s1303_s1 + $0x18] sm:$0xff] }
   0xd   : > { %604 = vmatpush.bf16.msra.mxu1 %v1008_v1  ;;  %1017 = vmatpush.bf16.msra.mxu3 %v1008_v1  ;;  %s1085_s26 = scalar_lea.vmem %s1302_s0, %s967_s23  ;;  %v1002_v12 = vld [vmem:[%s1303_s1 + $0x10] sm:$0xff]  ;;  %v1001_v16 = vld [vmem:[%s1303_s1 + $0x8] sm:$0xff]  ;;  %v1000_v19 = vld [vmem:[%s1303_s1] sm:$0xff]  ;;  %s1196_s3 = scalar_lea.vmem %s1306_s4, %s967_s23 }
   0xe   : > { %v968_v4 = vld [vmem:[%s1085_s26 + $0x4] sm:$0xf]  ;;  %v789_v5 = vld [vmem:[%s1085_s26 + $0x8] sm:$0xf0]  ;;  %v986_v8 = vld [vmem:[%s1085_s26 + $0x94] sm:$0xf] }
   0xf   : > { %v792_v6 = vor.u32 %v968_v4, %v789_v5  ;;  %v861_v9 = vld [vmem:[%s1085_s26 + $0x98] sm:$0xf0]  ;;  %v970_v13 = vld [vmem:[%s1085_s26 + $0x14] sm:$0xf]  ;;  %v988_v17 = vld [vmem:[%s1085_s26 + $0xa4] sm:$0xf] }
  0x10   : > { %509 = vmatpush.bf16.msra.mxu0 %v1006_v2  ;;  %1010 = vmatpush.bf16.msra.mxu2 %v1006_v2  ;;  %v864_v10 = vor.u32 %v986_v8, %v861_v9  ;;  %v797_v14 = vld [vmem:[%s1085_s26 + $0x18] sm:$0xf0]  ;;  %v869_v18 = vld [vmem:[%s1085_s26 + $0xa8] sm:$0xf0]  ;;  %v787_v20 = vld [vmem:[%s1085_s26] sm:$0xf] }
  0x11   : > { %949 = vmatmul.msk.bf16.vlgmr.msra.gmra.mxu1 %vm459_vm0, %v792_v6  ;;  %v800_v15 = vor.u32 %v970_v13, %v797_v14  ;;  %v969_v21 = vld [vmem:[%s1085_s26 + $0x4] sm:$0xf0]  ;;  %v872_v22 = vor.u32 %v988_v17, %v869_v18  ;;  %v851_v23 = vld [vmem:[%s1085_s26 + $0x80] sm:$0xf]  ;;  %v972_v27 = vld [vmem:[%s1085_s26 + $0x24] sm:$0xf] }
  0x12   : > { %958 = vmatmul.msk.bf16.vlgmr.msra.gmra.mxu3 %vm459_vm0, %v864_v10  ;;  %v985_v24 = vld [vmem:[%s1085_s26 + $0x84] sm:$0xf0]  ;;  %v788_v25 = vor.u32 %v969_v21, %v787_v20  ;;  %v805_v28 = vld [vmem:[%s1085_s26 + $0x28] sm:$0xf0]  ;;  %v990_v30 = vld [vmem:[%s1085_s26 + $0xb4] sm:$0xf] }
  0x13   : > { %v852_v26 = vor.u32 %v985_v24, %v851_v23  ;;  %v808_v29 = vor.u32 %v972_v27, %v805_v28  ;;  %v877_v31 = vld [vmem:[%s1085_s26 + $0xb8] sm:$0xf0]  ;;  %v795_v32 = vld [vmem:[%s1085_s26 + $0x10] sm:$0xf]  ;;  %v971_v33 = vld [vmem:[%s1085_s26 + $0x14] sm:$0xf0] }
  0x14   : > { %510 = vmatpush.bf16.msra.mxu0 %v1005_v3  ;;  %1011 = vmatpush.bf16.msra.mxu2 %v1005_v3  ;;  %v880_v34 = vor.u32 %v990_v30, %v877_v31  ;;  %v859_v35 = vld [vmem:[%s1085_s26 + $0x90] sm:$0xf]  ;;  %v987_v36 = vld [vmem:[%s1085_s26 + $0x94] sm:$0xf0]  ;;  %v796_v37 = vor.u32 %v971_v33, %v795_v32  ;;  %v974_v39 = vld [vmem:[%s1085_s26 + $0x34] sm:$0xf] }
  0x15   : > { %v860_v38 = vor.u32 %v987_v36, %v859_v35  ;;  %v813_v40 = vld [vmem:[%s1085_s26 + $0x38] sm:$0xf0]  ;;  %v992_v42 = vld [vmem:[%s1085_s26 + $0xc4] sm:$0xf]  ;;  %v885_v43 = vld [vmem:[%s1085_s26 + $0xc8] sm:$0xf0] }
  0x16   : > { %v816_v41 = vor.u32 %v974_v39, %v813_v40  ;;  %v803_v44 = vld [vmem:[%s1085_s26 + $0x20] sm:$0xf]  ;;  %v973_v45 = vld [vmem:[%s1085_s26 + $0x24] sm:$0xf0]  ;;  %v888_v46 = vor.u32 %v992_v42, %v885_v43  ;;  %v976_v51 = vld [vmem:[%s1085_s26 + $0x44] sm:$0xf] }
  0x17   : > { %v867_v47 = vld [vmem:[%s1085_s26 + $0xa0] sm:$0xf]  ;;  %v989_v48 = vld [vmem:[%s1085_s26 + $0xa4] sm:$0xf0]  ;;  %v804_v49 = vor.u32 %v973_v45, %v803_v44  ;;  %v821_v52 = vld [vmem:[%s1085_s26 + $0x48] sm:$0xf0] }
  0x18   : > { %511 = vmatpush.bf16.msra.mxu0 %v1004_v7  ;;  %1012 = vmatpush.bf16.msra.mxu2 %v1004_v7  ;;  %v868_v50 = vor.u32 %v989_v48, %v867_v47  ;;  %v824_v53 = vor.u32 %v976_v51, %v821_v52  ;;  %v994_v54 = vld [vmem:[%s1085_s26 + $0xd4] sm:$0xf]  ;;  %v893_v55 = vld [vmem:[%s1085_s26 + $0xd8] sm:$0xf0]  ;;  %v811_v56 = vld [vmem:[%s1085_s26 + $0x30] sm:$0xf] }
  0x19   : > { %v975_v57 = vld [vmem:[%s1085_s26 + $0x34] sm:$0xf0]  ;;  %v896_v58 = vor.u32 %v994_v54, %v893_v55  ;;  %v875_v59 = vld [vmem:[%s1085_s26 + $0xb0] sm:$0xf]  ;;  %v978_v63 = vld [vmem:[%s1085_s26 + $0x54] sm:$0xf] }
  0x1a   : > { %v991_v60 = vld [vmem:[%s1085_s26 + $0xb4] sm:$0xf0]  ;;  %v812_v61 = vor.u32 %v975_v57, %v811_v56  ;;  %v829_v0 = vld [vmem:[%s1085_s26 + $0x58] sm:$0xf0]  ;;  %v996_v2 = vld [vmem:[%s1085_s26 + $0xe4] sm:$0xf] }
  0x1b   : > { %v876_v62 = vor.u32 %v991_v60, %v875_v59  ;;  %v832_v1 = vor.u32 %v978_v63, %v829_v0  ;;  %v901_v3 = vld [vmem:[%s1085_s26 + $0xe8] sm:$0xf0]  ;;  %v819_v4 = vld [vmem:[%s1085_s26 + $0x40] sm:$0xf]  ;;  %v977_v5 = vld [vmem:[%s1085_s26 + $0x44] sm:$0xf0] }
  0x1c   : > { %512 = vmatpush.bf16.msra.mxu0 %v1003_v11  ;;  %1013 = vmatpush.bf16.msra.mxu2 %v1003_v11  ;;  %v904_v6 = vor.u32 %v996_v2, %v901_v3  ;;  %v883_v7 = vld [vmem:[%s1085_s26 + $0xc0] sm:$0xf]  ;;  %v993_v8 = vld [vmem:[%s1085_s26 + $0xc4] sm:$0xf0]  ;;  %v820_v9 = vor.u32 %v977_v5, %v819_v4  ;;  %v980_v11 = vld [vmem:[%s1085_s26 + $0x64] sm:$0xf] }
  0x1d   : > { %v884_v10 = vor.u32 %v993_v8, %v883_v7  ;;  %v998_v14 = vld [vmem:[%s1085_s26 + $0xf4] sm:$0xf]  ;;  %v979_v17 = vld [vmem:[%s1085_s26 + $0x54] sm:$0xf0]  ;;  %v845_v24 = vld [vmem:[%s1085_s26 + $0x78] sm:$0xf0] }
  0x1e   : > { %v995_v20 = vld [vmem:[%s1085_s26 + $0xd4] sm:$0xf0]  ;;  %v982_v23 = vld [vmem:[%s1085_s26 + $0x74] sm:$0xf]  ;;  %v981_v27 = vld [vmem:[%s1085_s26 + $0x64] sm:$0xf0] }
  0x1f   : > { %v899_v28 = vld [vmem:[%s1085_s26 + $0xe0] sm:$0xf]  ;;  %v984_v32 = vld [vmem:[%s1085_s26 + $0x84] sm:$0xf]  ;;  %v853_v33 = vld [vmem:[%s1085_s26 + $0x88] sm:$0xf0] }
  0x20   : > { %513 = vmatpush.bf16.msra.mxu0 %v1002_v12  ;;  %1014 = vmatpush.bf16.msra.mxu2 %v1002_v12  ;;  %v837_v12 = vld [vmem:[%s1085_s26 + $0x68] sm:$0xf0]  ;;  %v843_v36 = vld [vmem:[%s1085_s26 + $0x70] sm:$0xf]  ;;  %v999_v39 = vld [vmem:[%s1085_s26 + $0xf4] sm:$0xf0] }
  0x21   : > { %950 = vmatmul.msk.bf16.gmra.mxu1 %vm459_vm0, %v800_v15  ;;  %v840_v13 = vor.u32 %v980_v11, %v837_v12  ;;  %v909_v15 = vld [vmem:[%s1085_s26 + $0xf8] sm:$0xf0]  ;;  %v1188_v44 = vld [vmem:[%s1304_s2] ss:$0 sm:$0xff] }
  0x22   : > { %959 = vmatmul.msk.bf16.gmra.mxu3 %vm459_vm0, %v872_v22  ;;  %v912_v18 = vor.u32 %v998_v14, %v909_v15 }
  0x24   : > { %514 = vmatpush.bf16.msra.mxu0 %v1001_v16  ;;  %1015 = vmatpush.bf16.msra.mxu2 %v1001_v16  ;;  %v827_v16 = vld [vmem:[%s1085_s26 + $0x50] sm:$0xf] }
  0x25   : > { %v828_v21 = vor.u32 %v979_v17, %v827_v16 }
  0x28   : > { %515 = vmatpush.bf16.msra.mxu0 %v1000_v19  ;;  %1016 = vmatpush.bf16.msra.mxu2 %v1000_v19  ;;  %v891_v19 = vld [vmem:[%s1085_s26 + $0xd0] sm:$0xf] }
  0x29   : > { %v892_v22 = vor.u32 %v995_v20, %v891_v19 }
  0x2b   : > { %516 = vmatmul.bf16.vlgmr.msra.gmra.mxu0 %v788_v25  ;;  %556 = vmatmul.bf16.vlgmr.msra.gmra.mxu2 %v852_v26  ;;  %v848_v25 = vor.u32 %v982_v23, %v845_v24  ;;  %v835_v26 = vld [vmem:[%s1085_s26 + $0x60] sm:$0xf] }
  0x2c   : > { %v836_v30 = vor.u32 %v981_v27, %v835_v26 }
  0x31   : > { %951 = vmatmul.msk.bf16.gmra.mxu1 %vm459_vm0, %v808_v29  ;;  %v997_v29 = vld [vmem:[%s1085_s26 + $0xe4] sm:$0xf0] }
  0x32   : > { %960 = vmatmul.msk.bf16.gmra.mxu3 %vm459_vm0, %v880_v34  ;;  %v900_v31 = vor.u32 %v997_v29, %v899_v28  ;;  %v856_v34 = vor.u32 %v984_v32, %v853_v33 }
  0x3b   : > { %521 = vmatmul.bf16.gmra.mxu0 %v796_v37  ;;  %561 = vmatmul.bf16.gmra.mxu2 %v860_v38  ;;  %v983_v37 = vld [vmem:[%s1085_s26 + $0x74] sm:$0xf0]  ;;  %v907_v38 = vld [vmem:[%s1085_s26 + $0xf0] sm:$0xf] }
  0x3c   : > { %v844_v40 = vor.u32 %v983_v37, %v843_v36 }
  0x41   : > { %952 = vmatmul.msk.bf16.gmra.mxu1 %vm459_vm0, %v816_v41  ;;  %v908_v41 = vor.u32 %v999_v39, %v907_v38 }
  0x42   : > { %961 = vmatmul.msk.bf16.gmra.mxu3 %vm459_vm0, %v888_v46 }
  0x4b   : > { %526 = vmatmul.bf16.gmra.mxu0 %v804_v49  ;;  %566 = vmatmul.bf16.gmra.mxu2 %v868_v50 }
  0x51   : > { %953 = vmatmul.msk.bf16.gmra.mxu1 %vm459_vm0, %v824_v53 }
  0x52   : > { %962 = vmatmul.msk.bf16.gmra.mxu3 %vm459_vm0, %v896_v58 }
  0x5b   : > { %531 = vmatmul.bf16.gmra.mxu0 %v812_v61  ;;  %571 = vmatmul.bf16.gmra.mxu2 %v876_v62 }
  0x61   : > { %954 = vmatmul.msk.bf16.gmra.mxu1 %vm459_vm0, %v832_v1 }
  0x62   : > { %963 = vmatmul.msk.bf16.gmra.mxu3 %vm459_vm0, %v904_v6 }
  0x6b   : > { %536 = vmatmul.bf16.gmra.mxu0 %v820_v9  ;;  %576 = vmatmul.bf16.gmra.mxu2 %v884_v10 }
  0x71   : > { %955 = vmatmul.msk.bf16.gmra.mxu1 %vm459_vm0, %v840_v13 }
  0x72   : > { %964 = vmatmul.msk.bf16.gmra.mxu3 %vm459_vm0, %v912_v18 }
  0x7b   : > { %541 = vmatmul.bf16.gmra.mxu0 %v828_v21  ;;  %581 = vmatmul.bf16.gmra.mxu2 %v892_v22 }
  0x81   : > { %956 = vmatmul.msk.bf16.gmra.mxu1 %vm459_vm0, %v848_v25 }
  0x8b   : > { %546 = vmatmul.bf16.gmra.mxu0 %v836_v30  ;;  %586 = vmatmul.bf16.gmra.mxu2 %v900_v31 }
  0x8e   : > { %v606_v35 = vpop.f32.mrf.mxu1 }
  0x91   : > { %957 = vmatmul.msk.bf16.gmra.mxu1 %vm459_vm0, %v856_v34 }
  0x95   : > { %v651_v45 = vpop.f32.mrf.mxu3 }
  0x96   : > { %v608_v42 = vpop.f32.mrf.mxu1 }
  0x9b   : > { %551 = vmatmul.bf16.gmra.mxu0 %v844_v40  ;;  %591 = vmatmul.bf16.gmra.mxu2 %v908_v41 }
  0x9d   : > { %v653_v54 = vpop.f32.mrf.mxu3 }
  0x9e   : > { %v611_v43 = vpop.f32.mrf.mxu1 }
  0xa5   : > { %v656_v61 = vpop.f32.mrf.mxu3 }
  0xa6   : > { %v613_v48 = vpop.f32.mrf.mxu1 }
  0xa8   : > { %v517_v46 = vpop.f32.mrf.mxu0 }
  0xa9   : > { %v518_v47 = vadd.f32 %v1188_v44, %v517_v46 }
  0xab   : > { %v607_v49 = vadd.f32 %v606_v35, %v518_v47 }
  0xad   : > { %687 = vst.msk [vmem:[%s1196_s3] sm:$0xff] %vm686_vm1, %v607_v49  ;;  %v658_v5 = vpop.f32.mrf.mxu3 }
  0xae   : > { %v1200_v50 = vpop.f32.mrf.mxu2  ;;  %v616_v53 = vpop.f32.mrf.mxu1 }
  0xb0   : > { %v519_v51 = vpop.f32.mrf.mxu0 }
  0xb1   : > { %v520_v52 = vadd.f32 %v1188_v44, %v519_v51 }
  0xb3   : > { %v609_v55 = vadd.f32 %v608_v42, %v520_v52 }
  0xb5   : > { %688 = vst.msk [vmem:[%s1196_s3 + $0x8] sm:$0xff] %vm686_vm1, %v609_v55  ;;  %v661_v14 = vpop.f32.mrf.mxu3 }
  0xb6   : > { %v1205_v56 = vpop.f32.mrf.mxu2  ;;  %v618_v59 = vpop.f32.mrf.mxu1 }
  0xb8   : > { %v522_v57 = vpop.f32.mrf.mxu0 }
  0xb9   : > { %v523_v58 = vadd.f32 %v1188_v44, %v522_v57 }
  0xbb   : > { %v612_v60 = vadd.f32 %v611_v43, %v523_v58 }
  0xbd   : > { %689 = vst.msk [vmem:[%s1196_s3 + $0x10] sm:$0xff] %vm686_vm1, %v612_v60  ;;  %v663_v26 = vpop.f32.mrf.mxu3 }
  0xbe   : > { %v562_v62 = vpop.f32.mrf.mxu2  ;;  %v621_v2 = vpop.f32.mrf.mxu1 }
  0xbf   : > { %v563_v63 = vadd.f32 %v1188_v44, %v562_v62 }
  0xc0   : > { %v524_v0 = vpop.f32.mrf.mxu0 }
  0xc1   : > { %v525_v1 = vadd.f32 %v1188_v44, %v524_v0  ;;  %v652_v3 = vadd.f32 %v651_v45, %v563_v63 }
  0xc3   : > { %v614_v4 = vadd.f32 %v613_v48, %v525_v1  ;;  %705 = vst.msk [vmem:[%s1196_s3 + $0x90] sm:$0xff] %vm686_vm1, %v652_v3 }
  0xc5   : > { %690 = vst.msk [vmem:[%s1196_s3 + $0x18] sm:$0xff] %vm686_vm1, %v614_v4  ;;  %v666_v36 = vpop.f32.mrf.mxu3 }
  0xc6   : > { %v564_v6 = vpop.f32.mrf.mxu2  ;;  %v623_v10 = vpop.f32.mrf.mxu1 }
  0xc7   : > { %v565_v7 = vadd.f32 %v1188_v44, %v564_v6 }
  0xc8   : > { %v527_v8 = vpop.f32.mrf.mxu0 }
  0xc9   : > { %v528_v9 = vadd.f32 %v1188_v44, %v527_v8  ;;  %v654_v11 = vadd.f32 %v653_v54, %v565_v7 }
  0xcb   : > { %v617_v12 = vadd.f32 %v616_v53, %v528_v9  ;;  %706 = vst.msk [vmem:[%s1196_s3 + $0x98] sm:$0xff] %vm686_vm1, %v654_v11 }
  0xcd   : > { %691 = vst.msk [vmem:[%s1196_s3 + $0x20] sm:$0xff] %vm686_vm1, %v617_v12  ;;  %v668_v45 = vpop.f32.mrf.mxu3 }
  0xce   : > { %v567_v13 = vpop.f32.mrf.mxu2  ;;  %v626_v18 = vpop.f32.mrf.mxu1 }
  0xcf   : > { %v568_v15 = vadd.f32 %v1188_v44, %v567_v13 }
  0xd0   : > { %v529_v16 = vpop.f32.mrf.mxu0 }
  0xd1   : > { %v530_v17 = vadd.f32 %v1188_v44, %v529_v16  ;;  %v657_v19 = vadd.f32 %v656_v61, %v568_v15  ;;  %v558_v16 = vadd.f32 %v1188_v44, %v1200_v50 }
  0xd3   : > { %v619_v20 = vadd.f32 %v618_v59, %v530_v17  ;;  %707 = vst.msk [vmem:[%s1196_s3 + $0xa0] sm:$0xff] %vm686_vm1, %v657_v19 }
  0xd5   : > { %692 = vst.msk [vmem:[%s1196_s3 + $0x28] sm:$0xff] %vm686_vm1, %v619_v20  ;;  %v671_v55 = vpop.f32.mrf.mxu3 }
  0xd6   : > { %v569_v21 = vpop.f32.mrf.mxu2  ;;  %v628_v25 = vpop.f32.mrf.mxu1 }
  0xd7   : > { %v570_v22 = vadd.f32 %v1188_v44, %v569_v21 }
  0xd8   : > { %v532_v23 = vpop.f32.mrf.mxu0 }
  0xd9   : > { %v533_v24 = vadd.f32 %v1188_v44, %v532_v23  ;;  %v659_v27 = vadd.f32 %v658_v5, %v570_v22 }
  0xdb   : > { %v622_v28 = vadd.f32 %v621_v2, %v533_v24  ;;  %708 = vst.msk [vmem:[%s1196_s3 + $0xa8] sm:$0xff] %vm686_vm1, %v659_v27 }
  0xdd   : > { %693 = vst.msk [vmem:[%s1196_s3 + $0x30] sm:$0xff] %vm686_vm1, %v622_v28  ;;  %v673_v4 = vpop.f32.mrf.mxu3 }
  0xde   : > { %v572_v29 = vpop.f32.mrf.mxu2  ;;  %v631_v33 = vpop.f32.mrf.mxu1 }
  0xdf   : > { %v573_v30 = vadd.f32 %v1188_v44, %v572_v29 }
  0xe0   : > { %v534_v31 = vpop.f32.mrf.mxu0 }
  0xe1   : > { %v535_v32 = vadd.f32 %v1188_v44, %v534_v31  ;;  %v662_v34 = vadd.f32 %v661_v14, %v573_v30 }
  0xe3   : > { %v624_v35 = vadd.f32 %v623_v10, %v535_v32  ;;  %709 = vst.msk [vmem:[%s1196_s3 + $0xb0] sm:$0xff] %vm686_vm1, %v662_v34 }
  0xe5   : > { %694 = vst.msk [vmem:[%s1196_s3 + $0x38] sm:$0xff] %vm686_vm1, %v624_v35  ;;  %v676_v14 = vpop.f32.mrf.mxu3 }
  0xe6   : > { %v574_v37 = vpop.f32.mrf.mxu2  ;;  %v633_v41 = vpop.f32.mrf.mxu1 }
  0xe7   : > { %v575_v38 = vadd.f32 %v1188_v44, %v574_v37 }
  0xe8   : > { %v537_v39 = vpop.f32.mrf.mxu0 }
  0xe9   : > { %v538_v40 = vadd.f32 %v1188_v44, %v537_v39  ;;  %v664_v42 = vadd.f32 %v663_v26, %v575_v38 }
  0xeb   : > { %v627_v43 = vadd.f32 %v626_v18, %v538_v40  ;;  %710 = vst.msk [vmem:[%s1196_s3 + $0xb8] sm:$0xff] %vm686_vm1, %v664_v42 }
  0xed   : > { %695 = vst.msk [vmem:[%s1196_s3 + $0x40] sm:$0xff] %vm686_vm1, %v627_v43  ;;  %v678_v24 = vpop.f32.mrf.mxu3 }
  0xee   : > { %v577_v46 = vpop.f32.mrf.mxu2  ;;  %v636_v51 = vpop.f32.mrf.mxu1 }
  0xef   : > { %v578_v47 = vadd.f32 %v1188_v44, %v577_v46 }
  0xf0   : > { %v539_v48 = vpop.f32.mrf.mxu0 }
  0xf1   : > { %v540_v49 = vadd.f32 %v1188_v44, %v539_v48  ;;  %v667_v52 = vadd.f32 %v666_v36, %v578_v47 }
  0xf3   : > { %v629_v53 = vadd.f32 %v628_v25, %v540_v49  ;;  %711 = vst.msk [vmem:[%s1196_s3 + $0xc0] sm:$0xff] %vm686_vm1, %v667_v52  ;;  %v560_v25 = vadd.f32 %v1188_v44, %v1205_v56 }
  0xf5   : > { %696 = vst.msk [vmem:[%s1196_s3 + $0x48] sm:$0xff] %vm686_vm1, %v629_v53 }
  0xf6   : > { %v579_v54 = vpop.f32.mrf.mxu2  ;;  %v638_v60 = vpop.f32.mrf.mxu1 }
  0xf7   : > { %v580_v57 = vadd.f32 %v1188_v44, %v579_v54 }
  0xf8   : > { %v542_v58 = vpop.f32.mrf.mxu0 }
  0xf9   : > { %v543_v59 = vadd.f32 %v1188_v44, %v542_v58  ;;  %v669_v61 = vadd.f32 %v668_v45, %v580_v57 }
  0xfb   : > { %v632_v62 = vadd.f32 %v631_v33, %v543_v59  ;;  %712 = vst.msk [vmem:[%s1196_s3 + $0xc8] sm:$0xff] %vm686_vm1, %v669_v61  ;;  %v681_v33 = vpop.f32.mrf.mxu3 }
  0xfd   : > { %697 = vst.msk [vmem:[%s1196_s3 + $0x50] sm:$0xff] %vm686_vm1, %v632_v62 }
  0xfe   : > { %v582_v63 = vpop.f32.mrf.mxu2  ;;  %v641_v3 = vpop.f32.mrf.mxu1 }
  0xff   : > { %v583_v0 = vadd.f32 %v1188_v44, %v582_v63 }
 0x100   : > { %v544_v1 = vpop.f32.mrf.mxu0 }
 0x101   : > { %v545_v2 = vadd.f32 %v1188_v44, %v544_v1  ;;  %v672_v5 = vadd.f32 %v671_v55, %v583_v0 }
 0x103   : > { %v634_v6 = vadd.f32 %v633_v41, %v545_v2  ;;  %713 = vst.msk [vmem:[%s1196_s3 + $0xd0] sm:$0xff] %vm686_vm1, %v672_v5  ;;  %v683_v41 = vpop.f32.mrf.mxu3 }
 0x105   : > { %698 = vst.msk [vmem:[%s1196_s3 + $0x58] sm:$0xff] %vm686_vm1, %v634_v6 }
 0x106   : > { %v584_v7 = vpop.f32.mrf.mxu2  ;;  %v643_v11 = vpop.f32.mrf.mxu1 }
 0x107   : > { %v585_v8 = vadd.f32 %v1188_v44, %v584_v7 }
 0x108   : > { %v547_v9 = vpop.f32.mrf.mxu0 }
 0x109   : > { %v548_v10 = vadd.f32 %v1188_v44, %v547_v9  ;;  %v674_v12 = vadd.f32 %v673_v4, %v585_v8 }
 0x10b   : > { %v637_v13 = vadd.f32 %v636_v51, %v548_v10  ;;  %714 = vst.msk [vmem:[%s1196_s3 + $0xd8] sm:$0xff] %vm686_vm1, %v674_v12 }
 0x10d   : > { %699 = vst.msk [vmem:[%s1196_s3 + $0x60] sm:$0xff] %vm686_vm1, %v637_v13 }
 0x10e   : > { %v587_v15 = vpop.f32.mrf.mxu2  ;;  %v646_v20 = vpop.f32.mrf.mxu1 }
 0x10f   : > { %v588_v17 = vadd.f32 %v1188_v44, %v587_v15  ;;  %v647_v22 = vadd.f32 %v646_v20, %v558_v16 }
 0x110   : > { %v549_v18 = vpop.f32.mrf.mxu0 }
 0x111   : > { %v550_v19 = vadd.f32 %v1188_v44, %v549_v18  ;;  %v677_v21 = vadd.f32 %v676_v14, %v588_v17  ;;  %703 = vst.msk [vmem:[%s1196_s3 + $0x80] sm:$0xff] %vm686_vm1, %v647_v22 }
 0x113   : > { %v639_v23 = vadd.f32 %v638_v60, %v550_v19  ;;  %715 = vst.msk [vmem:[%s1196_s3 + $0xe0] sm:$0xff] %vm686_vm1, %v677_v21 }
 0x115   : > { %700 = vst.msk [vmem:[%s1196_s3 + $0x68] sm:$0xff] %vm686_vm1, %v639_v23 }
 0x116   : > { %v589_v50 = vpop.f32.mrf.mxu2  ;;  %v648_v29 = vpop.f32.mrf.mxu1 }
 0x117   : > { %v590_v26 = vadd.f32 %v1188_v44, %v589_v50  ;;  %v649_v31 = vadd.f32 %v648_v29, %v560_v25 }
 0x118   : > { %v552_v27 = vpop.f32.mrf.mxu0 }
 0x119   : > { %v553_v28 = vadd.f32 %v1188_v44, %v552_v27  ;;  %v679_v30 = vadd.f32 %v678_v24, %v590_v26  ;;  %704 = vst.msk [vmem:[%s1196_s3 + $0x88] sm:$0xff] %vm686_vm1, %v649_v31 }
 0x11b   : > { %v642_v32 = vadd.f32 %v641_v3, %v553_v28  ;;  %716 = vst.msk [vmem:[%s1196_s3 + $0xe8] sm:$0xff] %vm686_vm1, %v679_v30 }
 0x11d   : > { %701 = vst.msk [vmem:[%s1196_s3 + $0x70] sm:$0xff] %vm686_vm1, %v642_v32 }
 0x11e   : > { %v592_v56 = vpop.f32.mrf.mxu2 }
 0x11f   : > { %v593_v34 = vadd.f32 %v1188_v44, %v592_v56 }
 0x120   : > { %v554_v35 = vpop.f32.mrf.mxu0 }
 0x121   : > { %v555_v36 = vadd.f32 %v1188_v44, %v554_v35  ;;  %v682_v37 = vadd.f32 %v681_v33, %v593_v34 }
 0x123   : > { %v644_v38 = vadd.f32 %v643_v11, %v555_v36  ;;  %717 = vst.msk [vmem:[%s1196_s3 + $0xf0] sm:$0xff] %vm686_vm1, %v682_v37 }
 0x125   : > { %702 = vst.msk [vmem:[%s1196_s3 + $0x78] sm:$0xff] %vm686_vm1, %v644_v38 }
 0x126   : > { %v594_v39 = vpop.f32.mrf.mxu2 }
 0x127   : > { %v595_v40 = vadd.f32 %v1188_v44, %v594_v39 }
 0x129   : > { %v684_v42 = vadd.f32 %v683_v41, %v595_v40 }
 0x12b   : > { %718 = vst.msk [vmem:[%s1196_s3 + $0xf8] sm:$0xff] %vm686_vm1, %v684_v42 }
 0x12c PF: > { %s16_s15 = sadd.s32 1, %s1033_s15  }
 0x12d   : > { %p13_p4 = scmp.ge.s32.totalorder %s16_s15, 18  }
 0x12f   :  { %15 = sbr.rel (!%p13_p4) target bundleno = 1 (0x1), region = 66 }

</bundles_post_ra>
